<compile_context>
chip_gen: v7x
topology: tpu7x:2x2x1
jax: 0.10.0
libtpu: 0.0.40
codegen_flags: <defaults>
</compile_context>

<pallas_src>
import numpy as np

import jax
import jax.numpy as jnp
from jax.experimental import pallas as pl
from jax.experimental.pallas import tpu as pltpu


# ----------------------------------------------------------------------------
# Fused multi-layer (matmul + bias + ReLU) kernel: whole model in one call.
# ----------------------------------------------------------------------------
def _make_fused_mlp_kernel(num_layers):
    def kernel(*refs):
        # refs = (x_ref, w1_ref, b1_ref, ..., wL_ref, bL_ref, o_ref)
        x_ref = refs[0]
        o_ref = refs[-1]
        h = x_ref[...]                                   # (Mpad, K0) f32
        for l in range(num_layers):                      # statically unrolled
            w_ref = refs[1 + 2 * l]                      # (Kpad, Npad)
            b_ref = refs[2 + 2 * l]                      # (1, Npad)
            acc = jnp.dot(h, w_ref[...], preferred_element_type=jnp.float32)
            h = jnp.maximum(acc + b_ref[...], 0.0)       # bias + ReLU fused
        o_ref[...] = h.astype(o_ref.dtype)
    return kernel


# ----------------------------------------------------------------------------
# One-time parameter preparation (host side, NumPy)
# ----------------------------------------------------------------------------
def _round_up(n, m):
    return ((n + m - 1) // m) * m


def _conv2d_as_matmul(w, b, in_chw):
    """Lower a stride-1 VALID Conv2d to an equivalent dense matmul.

    Returns (W_kn, b_full, out_chw) such that for an NCHW-flattened input row
    x_flat (Cin*H*W,):   conv_out_NCHW_flat = x_flat @ W_kn + b_full
    i.e. the output column order is exactly PyTorch's .view(N, -1) order, so a
    following Linear layer needs no weight permutation.
    """
    w = np.asarray(w, np.float32)
    b = np.asarray(b, np.float32)
    cout, cin, kh, kw = w.shape
    c_in, H, W = in_chw
    assert c_in == cin, (c_in, cin)
    oh, ow = H - kh + 1, W - kw + 1
    mat = np.zeros((cin, H, W, cout, oh, ow), np.float32)
    for i in range(kh):
        for j in range(kw):
            for y in range(oh):
                for x in range(ow):
                    # input pixel (y+i, x+j) feeds output pixel (y, x)
                    mat[:, y + i, x + j, :, y, x] = w[:, :, i, j].T  # (cin,cout)
    w_kn = mat.reshape(cin * H * W, cout * oh * ow)
    b_full = np.repeat(b, oh * ow)
    return w_kn, b_full, (cout, oh, ow)


def prepare_model(params, input_chw):
    """Convert the (name, kind, weight, bias) layer list into a padded chain of
    (Kpad, Npad) weights / (1, Npad) biases for the fused kernel."""
    layers = []                       # (w_kn, b_vec, true_out_dim)
    cur_chw = tuple(int(d) for d in input_chw)
    cur_feat = int(np.prod(cur_chw))
    for _name, kind, w, b in params:
        if kind == "conv2d":
            assert cur_chw is not None, "Conv2d after flatten not supported"
            w_kn, b_full, cur_chw = _conv2d_as_matmul(w, b, cur_chw)
            cur_feat = int(np.prod(cur_chw))
            layers.append((w_kn, b_full, cur_feat))
        elif kind == "linear":
            w = np.asarray(w, np.float32)                # (out, in)
            b = np.asarray(b, np.float32)
            assert w.shape[1] == cur_feat, (w.shape, cur_feat)
            layers.append((np.ascontiguousarray(w.T), b, int(w.shape[0])))
            cur_feat = int(w.shape[0])
            cur_chw = None
        else:
            # TODO(synk): Conv1d branch (3-D weights) not exercised by this synthetic state dict.
            raise NotImplementedError(kind)

    # Lane-pad every layer's output to a multiple of 128 (and the next layer's
    # contraction dim to match). Zero padding -> numerically exact.
    flat = []
    extra_k = 0
    for w_kn, b_vec, _n_true in layers:
        if extra_k:
            w_kn = np.pad(w_kn, ((0, extra_k), (0, 0)))
        n = w_kn.shape[1]
        n_pad = _round_up(n, 128)
        if n_pad > n:
            w_kn = np.pad(w_kn, ((0, 0), (0, n_pad - n)))
            b_vec = np.pad(b_vec, (0, n_pad - n))
        extra_k = n_pad - n
        flat.append(jnp.asarray(w_kn, jnp.float32))
        flat.append(jnp.asarray(b_vec.reshape(1, -1), jnp.float32))

    out_dim = layers[-1][2]
    return flat, len(layers), out_dim


def build_forward(params, input_chw):
    """Returns a jitted forward(x) matching SimpleModelWrapper.forward."""
    flat_params, num_layers, out_dim = prepare_model(params, input_chw)
    out_pad = int(flat_params[-2].shape[1])
    k0 = int(flat_params[0].shape[0])
    kernel = _make_fused_mlp_kernel(num_layers)

    def forward(x):
        x2d = x.reshape(x.shape[0], -1).astype(jnp.float32)   # free reshape
        assert x2d.shape[1] == k0, (x2d.shape, k0)
        m = x2d.shape[0]
        m_pad = _round_up(max(m, 1), 8)                        # sublane-dense
        if m_pad > m:
            x2d = jnp.pad(x2d, ((0, m_pad - m), (0, 0)))
        out = pl.pallas_call(
            kernel,
            out_shape=jax.ShapeDtypeStruct((m_pad, out_pad), jnp.float32),
            compiler_params=pltpu.CompilerParams(
                vmem_limit_bytes=64 * 1024 * 1024),
        )(x2d, *flat_params)
        return out[:m, :out_dim]          # drop batch + lane padding

    return jax.jit(forward)


# ----------------------------------------------------------------------------
# Synthetic state dict (same layers as before) and a NumPy reference
# ----------------------------------------------------------------------------
def make_params(key):
    """Deterministic synthetic 'state dict':
         conv1.weight (8, 4, 3, 3)  -> Conv2d(4, 8, 3x3)
         fc1.weight   (32, 8*14*14) -> Linear(1568, 32)
         fc2.weight   (16, 32)      -> Linear(32, 16)
    """
    k = jax.random.split(key, 6)
    return [
        ("conv1", "conv2d",
         0.1 * jax.random.normal(k[0], (8, 4, 3, 3), jnp.float32),
         0.1 * jax.random.normal(k[1], (8,), jnp.float32)),
        ("fc1", "linear",
         0.05 * jax.random.normal(k[2], (32, 8 * 14 * 14), jnp.float32),
         0.05 * jax.random.normal(k[3], (32,), jnp.float32)),
        ("fc2", "linear",
         0.1 * jax.random.normal(k[4], (16, 32), jnp.float32),
         0.1 * jax.random.normal(k[5], (16,), jnp.float32)),
    ]


def reference_forward(x, params):
    """Straightforward NumPy re-implementation of SimpleModelWrapper.forward."""
    x = np.asarray(x, np.float32)
    for _name, kind, w, b in params:
        w = np.asarray(w, np.float32)
        b = np.asarray(b, np.float32)
        if kind == "conv2d":
            cout, cin, kh, kw = w.shape
            n, _c, H, W = x.shape
            oh, ow = H - kh + 1, W - kw + 1
            out = np.zeros((n, cout, oh, ow), np.float32)
            for i in range(kh):
                for j in range(kw):
                    patch = x[:, :, i:i + oh, j:j + ow]          # (n,cin,oh,ow)
                    out += np.einsum('ncyx,oc->noyx', patch, w[:, :, i, j])
            x = np.maximum(out + b[None, :, None, None], 0.0)
        else:
            if x.ndim > 2:
                x = x.reshape(x.shape[0], -1)
            x = np.maximum(x @ w.T + b, 0.0)
    return x


if __name__ == "__main__":
    key = jax.random.PRNGKey(0)
    kx, kp = jax.random.split(key)
    # Input: NCHW, batch=2, channels=4, spatial=16x16
    x = jax.random.normal(kx, (2, 4, 16, 16), jnp.float32)
    params = make_params(kp)

    forward = build_forward(params, input_chw=(4, 16, 16))
    out = jax.block_until_ready(forward(x))

    assert out.shape == (2, 16), out.shape
    assert bool(jnp.all(out >= 0.0))                 # ReLU applied after final layer
    ref = reference_forward(np.asarray(x), params)
    max_err = float(np.max(np.abs(np.asarray(out) - ref)))
    assert np.allclose(np.asarray(out), ref, atol=2e-2, rtol=2e-2), max_err
    print("KERNEL_OK")
</pallas_src>

<mosaic_0001>
module attributes {stable_mosaic.version = 11 : i64} {
  func.func @kernel(%arg0: memref<8x1024xf32, #tpu.memory_space<vmem>>, %arg1: memref<1024x1664xf32, #tpu.memory_space<vmem>>, %arg2: memref<1x1664xf32, #tpu.memory_space<vmem>>, %arg3: memref<1664x128xf32, #tpu.memory_space<vmem>>, %arg4: memref<1x128xf32, #tpu.memory_space<vmem>>, %arg5: memref<128x128xf32, #tpu.memory_space<vmem>>, %arg6: memref<1x128xf32, #tpu.memory_space<vmem>>, %arg7: memref<8x128xf32, #tpu.memory_space<vmem>>) attributes {dimension_semantics = [], scalar_prefetch = 0 : i64, scratch_operands = 0 : i64, tpu.core_type = #tpu.core_type<tc>} {
    %c0 = arith.constant 0 : index
    %c0_0 = arith.constant 0 : index
    %0 = vector.load %arg0[%c0, %c0_0] : memref<8x1024xf32, #tpu.memory_space<vmem>>, vector<8x1024xf32>
    %c0_1 = arith.constant 0 : index
    %c0_2 = arith.constant 0 : index
    %1 = vector.load %arg1[%c0_1, %c0_2] : memref<1024x1664xf32, #tpu.memory_space<vmem>>, vector<1024x1664xf32>
    %cst = arith.constant dense<0.000000e+00> : vector<8x1664xf32>
    %2 = tpu.matmul %0, %1, %cst {dimension_numbers = #tpu.dot_dimension_numbers<[1], [0], [0], [1], [0, 0, 1, 1], [], []>} : vector<8x1024xf32>, vector<1024x1664xf32>, vector<8x1664xf32> -> vector<8x1664xf32>
    %c0_3 = arith.constant 0 : index
    %c0_4 = arith.constant 0 : index
    %3 = vector.load %arg2[%c0_3, %c0_4] : memref<1x1664xf32, #tpu.memory_space<vmem>>, vector<1x1664xf32>
    %4 = vector.broadcast %3 : vector<1x1664xf32> to vector<8x1664xf32>
    %5 = arith.addf %2, %4 : vector<8x1664xf32>
    %cst_5 = arith.constant 0.000000e+00 : f32
    %6 = vector.broadcast %cst_5 : f32 to vector<8x1664xf32>
    %7 = arith.maximumf %5, %6 : vector<8x1664xf32>
    %c0_6 = arith.constant 0 : index
    %c0_7 = arith.constant 0 : index
    %8 = vector.load %arg3[%c0_6, %c0_7] : memref<1664x128xf32, #tpu.memory_space<vmem>>, vector<1664x128xf32>
    %cst_8 = arith.constant dense<0.000000e+00> : vector<8x128xf32>
    %9 = tpu.matmul %7, %8, %cst_8 {dimension_numbers = #tpu.dot_dimension_numbers<[1], [0], [0], [1], [0, 0, 1, 1], [], []>} : vector<8x1664xf32>, vector<1664x128xf32>, vector<8x128xf32> -> vector<8x128xf32>
    %c0_9 = arith.constant 0 : index
    %c0_10 = arith.constant 0 : index
    %10 = vector.load %arg4[%c0_9, %c0_10] : memref<1x128xf32, #tpu.memory_space<vmem>>, vector<1x128xf32>
    %11 = vector.broadcast %10 : vector<1x128xf32> to vector<8x128xf32>
    %12 = arith.addf %9, %11 : vector<8x128xf32>
    %cst_11 = arith.constant 0.000000e+00 : f32
    %13 = vector.broadcast %cst_11 : f32 to vector<8x128xf32>
    %14 = arith.maximumf %12, %13 : vector<8x128xf32>
    %c0_12 = arith.constant 0 : index
    %c0_13 = arith.constant 0 : index
    %15 = vector.load %arg5[%c0_12, %c0_13] : memref<128x128xf32, #tpu.memory_space<vmem>>, vector<128x128xf32>
    %cst_14 = arith.constant dense<0.000000e+00> : vector<8x128xf32>
    %16 = tpu.matmul %14, %15, %cst_14 {dimension_numbers = #tpu.dot_dimension_numbers<[1], [0], [0], [1], [0, 0, 1, 1], [], []>} : vector<8x128xf32>, vector<128x128xf32>, vector<8x128xf32> -> vector<8x128xf32>
    %c0_15 = arith.constant 0 : index
    %c0_16 = arith.constant 0 : index
    %17 = vector.load %arg6[%c0_15, %c0_16] : memref<1x128xf32, #tpu.memory_space<vmem>>, vector<1x128xf32>
    %18 = vector.broadcast %17 : vector<1x128xf32> to vector<8x128xf32>
    %19 = arith.addf %16, %18 : vector<8x128xf32>
    %cst_17 = arith.constant 0.000000e+00 : f32
    %20 = vector.broadcast %cst_17 : f32 to vector<8x128xf32>
    %21 = arith.maximumf %19, %20 : vector<8x128xf32>
    %c0_18 = arith.constant 0 : index
    %c0_19 = arith.constant 0 : index
    %22 = vector.load %arg7[%c0_18, %c0_19] : memref<8x128xf32, #tpu.memory_space<vmem>>, vector<8x128xf32>
    tpu.vector_store %arg7[%c0_18, %c0_19], %21 {strides = array<i32>} : memref<8x128xf32, #tpu.memory_space<vmem>>, vector<8x128xf32>,
    return
  }
}

</mosaic_0001>

<bundles_post_ra>
// kernel: forward.1
= control target key start
LH: loop header
LB: loop body
LE: loop exit
PB: predicated region body
PF: predicated region fallthrough
CT: control target
= control target key end

     0   :  { %12 = vsyncpa [#allocation3], 0  ;;  %s7546_s0 = inlined_call_operand.hbm [shape: f32[8,1024], index: 0, kind: input, shape index: {}]   ;;  %s7547_s1 = inlined_call_operand.hbm [shape: f32[1024,1664], index: 1, kind: input, shape index: {}]   ;;  %s7548_s2 = inlined_call_operand.hbm [shape: f32[1,1664], index: 2, kind: input, shape index: {}]   ;;  %s7549_s3 = inlined_call_operand.hbm [shape: f32[1664,128], index: 3, kind: input, shape index: {}]   ;;  %s7550_s4 = inlined_call_operand.hbm [shape: f32[1,128], index: 4, kind: input, shape index: {}]   ;;  %s7551_s5 = inlined_call_operand.hbm [shape: f32[128,128], index: 5, kind: input, shape index: {}]   ;;  %s7552_s6 = inlined_call_operand.hbm [shape: f32[1,128], index: 6, kind: input, shape index: {}]   ;;  %s7553_s7 = inlined_call_operand.hbm [shape: f32[8,128], index: 7, kind: output, shape index: {}]  }
   0x1   :  { %13 = vsyncpa [#allocation6], 0 }
   0x2   :  { %14 = vsyncpa [#allocation9], 0 }
   0x3   :  { %15 = vsyncpa [#allocation12], 0 }
   0x4   :  { %16 = vsyncpa [#allocation4], 0  ;;  %s7303_s24 = smov [#allocation5]   ;;  %s7117_s28 = scalar_lea.hbm %s7547_s1, 212992 }
   0x5   :  { %s32_s25 = sshll.u32 %s7303_s24, 4  ;;  %p7118_p0 = scmp.ne.s32.totalorder %s7547_s1, %s7117_s28  ;;  %s33_s25 = int_to_ptr.vmem [resolvable:$true] %s32_s25 }
   0x6   :  { %p7121_p1 = scmp.lt.u32.totalorder %s7117_s28, %s7547_s1 }
   0x8   :  { %p7123_p2 = pnand %p7121_p1, %p7118_p0 }
   0xa   :  { %7126 = shalt.err (!%p7123_p2)
}
   0xb   :  { %s7127_s10 = scalar_lea.vmem %s33_s25, 212992  ;;  %p7132_p4 = scmp.lt.s32.totalorder %s33_s25, %s33_s25 }
   0xc   :  { %p7128_p3 = scmp.ne.s32.totalorder %s33_s25, %s7127_s10  ;;  %p7133_p5 = scmp.lt.s32.totalorder %s7127_s10, %s7127_s10 }
   0xe   :  { %p7134_p6 = por %p7133_p5, %p7132_p4 }
  0x10   :  { %p7135_p7 = pnand %p7134_p6, %p7128_p3 }
  0x12   :  { %7138 = shalt.err (!%p7135_p7)
}
  0x13   :  { %s7304_s11 = smov 1664   ;;  %s7305_s12 = smov 104  }
  0x14   :  { %38 = dma.hbm_to_vmem [thread:$0]  %s7547_s1, 212992, %s33_s25, [#allocation6], %s7304_s11, %s7304_s11, %s7305_s12  }
  0x15   :  { %s7306_s15 = smov [#allocation8]   ;;  %s7139_s19 = scalar_lea.hbm %s7549_s3, 26624 }
  0x16   :  { %s54_s16 = sshll.u32 %s7306_s15, 4  ;;  %p7140_p8 = scmp.ne.s32.totalorder %s7549_s3, %s7139_s19  ;;  %s55_s16 = int_to_ptr.vmem [resolvable:$true] %s54_s16 }
  0x17   :  { %p7143_p9 = scmp.lt.u32.totalorder %s7139_s19, %s7549_s3 }
  0x19   :  { %p7145_p10 = pnand %p7143_p9, %p7140_p8 }
  0x1b   :  { %7148 = shalt.err (!%p7145_p10)
}
  0x1c   :  { %s7149_s24 = scalar_lea.vmem %s55_s16, 26624  ;;  %p7154_p12 = scmp.lt.s32.totalorder %s55_s16, %s55_s16 }
  0x1d   :  { %p7150_p11 = scmp.ne.s32.totalorder %s55_s16, %s7149_s24  ;;  %p7155_p13 = scmp.lt.s32.totalorder %s7149_s24, %s7149_s24 }
  0x1f   :  { %p7156_p0 = por %p7155_p13, %p7154_p12 }
  0x21   :  { %p7157_p1 = pnand %p7156_p0, %p7150_p11 }
  0x23   :  { %7160 = shalt.err (!%p7157_p1)
}
  0x24   :  { %s7307_s1 = smov 128   ;;  %s7308_s25 = smov 8  }
  0x25   :  { %60 = dma.hbm_to_vmem [thread:$0]  %s7549_s3, 26624, %s55_s16, [#allocation9], %s7307_s1, %s7307_s1, %s7308_s25  }
  0x26   :  { %s7309_s28 = smov [#allocation11]   ;;  %s7310_s30 = smov [#allocation2]  }
  0x27   :  { %s76_s29 = sshll.u32 %s7309_s28, 4  ;;  %s23_s8 = sshll.u32 %s7310_s30, 4  ;;  %s77_s29 = int_to_ptr.vmem [resolvable:$true] %s76_s29  ;;  %s24_s8 = int_to_ptr.vmem [resolvable:$true] %s23_s8 }
  0x28   :  { %s7161_s11 = scalar_lea.hbm %s7551_s5, 2048 }
  0x29   :  { %p7162_p2 = scmp.ne.s32.totalorder %s7551_s5, %s7161_s11  ;;  %p7165_p3 = scmp.lt.u32.totalorder %s7161_s11, %s7551_s5 }
  0x2b   :  { %p7167_p4 = pnand %p7165_p3, %p7162_p2 }
  0x2d   :  { %7170 = shalt.err (!%p7167_p4)
}
  0x2e   :  { %s7171_s3 = scalar_lea.vmem %s77_s29, 2048  ;;  %p7176_p6 = scmp.lt.s32.totalorder %s77_s29, %s77_s29 }
  0x2f   :  { %p7172_p5 = scmp.ne.s32.totalorder %s77_s29, %s7171_s3  ;;  %p7177_p7 = scmp.lt.s32.totalorder %s7171_s3, %s7171_s3 }
  0x31   :  { %p7178_p8 = por %p7177_p7, %p7176_p6 }
  0x33   :  { %p7179_p9 = pnand %p7178_p8, %p7172_p5 }
  0x35   :  { %7182 = shalt.err (!%p7179_p9)
}
  0x36   :  { %82 = dma.hbm_to_vmem [thread:$0]  %s7551_s5, 2048, %s77_s29, [#allocation12], %s7307_s1, %s7307_s1, %s7308_s25  }
  0x37   :  { %s7183_s20 = scalar_lea.hbm %s7546_s0, 1024 }
  0x38   :  { %p7184_p10 = scmp.ne.s32.totalorder %s7546_s0, %s7183_s20  ;;  %p7187_p11 = scmp.lt.u32.totalorder %s7183_s20, %s7546_s0 }
  0x3a   :  { %p7189_p12 = pnand %p7187_p11, %p7184_p10 }
  0x3c   :  { %7192 = shalt.err (!%p7189_p12)
}
  0x3d   :  { %s7193_s26 = scalar_lea.vmem %s24_s8, 1024  ;;  %p7198_p0 = scmp.lt.s32.totalorder %s24_s8, %s24_s8 }
  0x3e   :  { %p7194_p13 = scmp.ne.s32.totalorder %s24_s8, %s7193_s26  ;;  %p7199_p1 = scmp.lt.s32.totalorder %s7193_s26, %s7193_s26 }
  0x40   :  { %p7200_p2 = por %p7199_p1, %p7198_p0 }
  0x42   :  { %p7201_p3 = pnand %p7200_p2, %p7194_p13 }
  0x44   :  { %7204 = shalt.err (!%p7201_p3)
}
  0x45   :  { %26 = dma.hbm_to_vmem [thread:$0]  %s7546_s0, 1024, %s24_s8, [#allocation3]  }
  0x46   :  { %s7311_s25 = smov [#allocation7]   ;;  %s7312_s28 = smov [#allocation10]  }
  0x47   :  { %s45_s27 = sshll.u32 %s7311_s25, 4  ;;  %s67_s29 = sshll.u32 %s7312_s28, 4  ;;  %s46_s27 = int_to_ptr.vmem [resolvable:$true] %s45_s27  ;;  %s68_s29 = int_to_ptr.vmem [resolvable:$true] %s67_s29 }
  0x48   :  { %s7205_s10 = scalar_lea.hbm %s7548_s2, 208 }
  0x49   :  { %p7206_p4 = scmp.ne.s32.totalorder %s7548_s2, %s7205_s10  ;;  %p7209_p5 = scmp.lt.u32.totalorder %s7205_s10, %s7548_s2 }
  0x4b   :  { %p7211_p6 = pnand %p7209_p5, %p7206_p4 }
  0x4d   :  { %7214 = shalt.err (!%p7211_p6)
}
  0x4e   :  { %s7215_s0 = scalar_lea.vmem %s46_s27, 208  ;;  %s7219_s8 = scalar_lea.vmem %s46_s27, 224 }
  0x4f   :  { %p7216_p7 = scmp.ne.s32.totalorder %s46_s27, %s7215_s0  ;;  %p7220_p8 = scmp.lt.s32.totalorder %s46_s27, %s46_s27 }
  0x50   :  { %p7221_p9 = scmp.lt.s32.totalorder %s7219_s8, %s7215_s0 }
  0x52   :  { %p7222_p10 = por %p7221_p9, %p7220_p8 }
  0x54   :  { %p7223_p11 = pnand %p7222_p10, %p7216_p7 }
  0x56   :  { %7226 = shalt.err (!%p7223_p11)
}
  0x57   :  { %48 = dma.hbm_to_vmem [thread:$0]  %s7548_s2, 208, %s46_s27, [#allocation6]  }
  0x58   :  { %s7227_s18 = scalar_lea.hbm %s7550_s4, 16 }
  0x59   :  { %p7228_p12 = scmp.ne.s32.totalorder %s7550_s4, %s7227_s18  ;;  %p7231_p13 = scmp.lt.u32.totalorder %s7227_s18, %s7550_s4 }
  0x5b   :  { %p7233_p0 = pnand %p7231_p13, %p7228_p12 }
  0x5d   :  { %7236 = shalt.err (!%p7233_p0)
}
  0x5e   :  { %s7237_s23 = scalar_lea.vmem %s68_s29, 16  ;;  %s7241_s24 = scalar_lea.vmem %s68_s29, 32 }
  0x5f   :  { %p7238_p1 = scmp.ne.s32.totalorder %s68_s29, %s7237_s23  ;;  %p7242_p2 = scmp.lt.s32.totalorder %s68_s29, %s68_s29 }
  0x60   :  { %p7243_p3 = scmp.lt.s32.totalorder %s7241_s24, %s7237_s23 }
  0x62   :  { %p7244_p4 = por %p7243_p3, %p7242_p2 }
  0x64   :  { %p7245_p5 = pnand %p7244_p4, %p7238_p1 }
  0x66   :  { %7248 = shalt.err (!%p7245_p5)
}
  0x67   :  { %70 = dma.hbm_to_vmem [thread:$0]  %s7550_s4, 16, %s68_s29, [#allocation9]  }
  0x68   :  { %s7313_s5 = smov [#allocation13]   ;;  %s7249_s28 = scalar_lea.hbm %s7552_s6, 16 }
  0x69   :  { %s89_s1 = sshll.u32 %s7313_s5, 4  ;;  %p7250_p6 = scmp.ne.s32.totalorder %s7552_s6, %s7249_s28  ;;  %s90_s1 = int_to_ptr.vmem [resolvable:$true] %s89_s1 }
  0x6a   :  { %p7253_p7 = scmp.lt.u32.totalorder %s7249_s28, %s7552_s6 }
  0x6c   :  { %p7255_p8 = pnand %p7253_p7, %p7250_p6 }
  0x6e   :  { %7258 = shalt.err (!%p7255_p8)
}
  0x6f   :  { %s7259_s12 = scalar_lea.vmem %s90_s1, 16  ;;  %s7263_s4 = scalar_lea.vmem %s90_s1, 32 }
  0x70   :  { %p7260_p9 = scmp.ne.s32.totalorder %s90_s1, %s7259_s12  ;;  %p7264_p10 = scmp.lt.s32.totalorder %s90_s1, %s90_s1 }
  0x71   :  { %p7265_p11 = scmp.lt.s32.totalorder %s7263_s4, %s7259_s12 }
  0x73   :  { %p7266_p12 = por %p7265_p11, %p7264_p10 }
  0x75   :  { %p7267_p13 = pnand %p7266_p12, %p7260_p9 }
  0x77   :  { %7270 = shalt.err (!%p7267_p13)
}
  0x78   :  { %92 = dma.hbm_to_vmem [thread:$0]  %s7552_s6, 16, %s90_s1, [#allocation12]  }
  0x79   :  { %7293 = dma.done.wait [#allocation3], 1024  }
  0x7a   :  { %7294 = vsyncadd [#allocation3], 4294966272 }
  0x7b   :  { %7295 = dma.done.wait [#allocation6], 213200  }
  0x7c   :  { %7296 = vsyncadd [#allocation6], 4294754096 }
  0x7d   :  { %7297 = dma.done.wait [#allocation9], 26640  }
  0x7e   :  { %7298 = vsyncadd [#allocation9], 4294940656 }
  0x7f   :  { %7299 = dma.done.wait [#allocation12], 2064  }
  0x80   :  { %7300 = vsyncadd [#allocation12], 4294965232  ;;  %v123_v0 = vld [vmem:[#allocation5 + $0x8] sm:$0xff]  ;;  %v136_v1 = vld [vmem:[#allocation5 + $0x70] sm:$0xff]  ;;  %vm7315_vm0 = vmmov 0   ;;  %s7317_s6 = smov [#allocation14]  }
  0x81   :  { %v125_v2 = vld [vmem:[#allocation5 + $0x18] sm:$0xff]  ;;  %v5127_v3 = vpack.c.bf16 %v136_v1, %v123_v0  ;;  %v138_v4 = vld [vmem:[#allocation5 + $0x80] sm:$0xff]  ;;  %v135_v6 = vld [vmem:[#allocation5 + $0x68] sm:$0xff]  ;;  %s4659_s14 = sshll.u32 %s7317_s6, 4  ;;  %s4660_s14 = int_to_ptr.vmem [resolvable:$true] %s4659_s14 }
  0x82   :  { %v122_v5 = vld [vmem:[#allocation5] sm:$0xff]  ;;  %v5383_v7 = vpack.c.bf16 %v138_v4, %v125_v2  ;;  %v124_v9 = vld [vmem:[#allocation5 + $0x10] sm:$0xff]  ;;  %v137_v10 = vld [vmem:[#allocation5 + $0x78] sm:$0xff]  ;;  %s7271_s0 = scalar_lea.vmem %s4660_s14, 128  ;;  %p7276_p1 = scmp.lt.s32.totalorder %s4660_s14, %s4660_s14 }
  0x83   :  { %v5129_v8 = vpack.c.bf16 %v135_v6, %v122_v5  ;;  %v149_v11 = vld [vmem:[#allocation5 + $0xd8] sm:$0xff]  ;;  %5128 = vmatprep.subr.bf16.mxu0 %v5127_v3  ;;  %v5385_v12 = vpack.c.bf16 %v137_v10, %v124_v9  ;;  %v162_v13 = vld [vmem:[#allocation5 + $0x140] sm:$0xff]  ;;  %v151_v14 = vld [vmem:[#allocation5 + $0xe8] sm:$0xff]  ;;  %p7272_p0 = scmp.ne.s32.totalorder %s4660_s14, %s7271_s0  ;;  %p7277_p2 = scmp.lt.s32.totalorder %s7271_s0, %s7271_s0 }
  0x84   :  { %v164_v15 = vld [vmem:[#allocation5 + $0x150] sm:$0xff]  ;;  %5384 = vmatprep.subr.bf16.mxu1 %v5383_v7  ;;  %v5131_v16 = vpack.c.bf16 %v162_v13, %v149_v11  ;;  %v161_v19 = vld [vmem:[#allocation5 + $0x138] sm:$0xff]  ;;  %v150_v20 = vld [vmem:[#allocation5 + $0xe0] sm:$0xff] }
  0x85   :  { %5130 = vmatpush1.bf16.msra.mxu0 %v5129_v8  ;;  %v5387_v17 = vpack.c.bf16 %v164_v15, %v151_v14  ;;  %v148_v18 = vld [vmem:[#allocation5 + $0xd0] sm:$0xff]  ;;  %5386 = vmatpush1.bf16.msra.mxu1 %v5385_v12  ;;  %v163_v22 = vld [vmem:[#allocation5 + $0x148] sm:$0xff]  ;;  %v177_v27 = vld [vmem:[#allocation5 + $0x1b8] sm:$0xff]  ;;  %p7278_p3 = por %p7277_p2, %p7276_p1 }
  0x86   :  { %v5133_v21 = vpack.c.bf16 %v161_v19, %v148_v18  ;;  %v175_v23 = vld [vmem:[#allocation5 + $0x1a8] sm:$0xff]  ;;  %v188_v24 = vld [vmem:[#allocation5 + $0x210] sm:$0xff]  ;;  %5132 = vmatprep.subr.bf16.mxu0 %v5131_v16  ;;  %v5389_v25 = vpack.c.bf16 %v163_v22, %v150_v20  ;;  %v190_v28 = vld [vmem:[#allocation5 + $0x220] sm:$0xff] }
  0x87   :  { %5388 = vmatprep.subr.bf16.mxu1 %v5387_v17  ;;  %v5135_v26 = vpack.c.bf16 %v188_v24, %v175_v23  ;;  %v174_v29 = vld [vmem:[#allocation5 + $0x1a0] sm:$0xff]  ;;  %v5391_v30 = vpack.c.bf16 %v190_v28, %v177_v27  ;;  %v187_v31 = vld [vmem:[#allocation5 + $0x208] sm:$0xff]  ;;  %v176_v32 = vld [vmem:[#allocation5 + $0x1b0] sm:$0xff]  ;;  %p7279_p4 = pnand %p7278_p3, %p7272_p0 }
  0x88   :  { %v189_v33 = vld [vmem:[#allocation5 + $0x218] sm:$0xff]  ;;  %v5137_v34 = vpack.c.bf16 %v187_v31, %v174_v29  ;;  %v214_v36 = vld [vmem:[#allocation5 + $0x2e0] sm:$0xff]  ;;  %v203_v37 = vld [vmem:[#allocation5 + $0x288] sm:$0xff] }
  0x89   :  { %5134 = vmatpush1.bf16.msra.mxu0 %v5133_v21  ;;  %v201_v35 = vld [vmem:[#allocation5 + $0x278] sm:$0xff]  ;;  %5390 = vmatpush1.bf16.msra.mxu1 %v5389_v25  ;;  %v5393_v38 = vpack.c.bf16 %v189_v33, %v176_v32  ;;  %v216_v40 = vld [vmem:[#allocation5 + $0x2f0] sm:$0xff]  ;;  %v202_v44 = vld [vmem:[#allocation5 + $0x280] sm:$0xff] }
  0x8a   :  { %5136 = vmatprep.subr.bf16.mxu0 %v5135_v26  ;;  %v5139_v39 = vpack.c.bf16 %v214_v36, %v201_v35  ;;  %v200_v41 = vld [vmem:[#allocation5 + $0x270] sm:$0xff]  ;;  %v213_v42 = vld [vmem:[#allocation5 + $0x2d8] sm:$0xff]  ;;  %5392 = vmatprep.subr.bf16.mxu1 %v5391_v30  ;;  %v5395_v43 = vpack.c.bf16 %v216_v40, %v203_v37  ;;  %v215_v45 = vld [vmem:[#allocation5 + $0x2e8] sm:$0xff] }
  0x8b   :  { %v227_v46 = vld [vmem:[#allocation5 + $0x348] sm:$0xff]  ;;  %v240_v47 = vld [vmem:[#allocation5 + $0x3b0] sm:$0xff]  ;;  %v229_v48 = vld [vmem:[#allocation5 + $0x358] sm:$0xff]  ;;  %v5141_v50 = vpack.c.bf16 %v213_v42, %v200_v41  ;;  %v5397_v51 = vpack.c.bf16 %v215_v45, %v202_v44 }
  0x8c   :  { %v242_v49 = vld [vmem:[#allocation5 + $0x3c0] sm:$0xff]  ;;  %v5143_v52 = vpack.c.bf16 %v240_v47, %v227_v46  ;;  %v239_v54 = vld [vmem:[#allocation5 + $0x3a8] sm:$0xff]  ;;  %v228_v55 = vld [vmem:[#allocation5 + $0x350] sm:$0xff] }
  0x8d   :  { %5138 = vmatpush1.bf16.msra.mxu0 %v5137_v34  ;;  %5394 = vmatpush1.bf16.msra.mxu1 %v5393_v38  ;;  %v226_v53 = vld [vmem:[#allocation5 + $0x340] sm:$0xff]  ;;  %v5399_v56 = vpack.c.bf16 %v242_v49, %v229_v48  ;;  %v241_v57 = vld [vmem:[#allocation5 + $0x3b8] sm:$0xff]  ;;  %v255_v60 = vld [vmem:[#allocation5 + $0x428] sm:$0xff] }
  0x8e   :  { %5140 = vmatprep.subr.bf16.mxu0 %v5139_v39  ;;  %5396 = vmatprep.subr.bf16.mxu1 %v5395_v43  ;;  %v253_v58 = vld [vmem:[#allocation5 + $0x418] sm:$0xff]  ;;  %v266_v59 = vld [vmem:[#allocation5 + $0x480] sm:$0xff]  ;;  %v268_v61 = vld [vmem:[#allocation5 + $0x490] sm:$0xff]  ;;  %v5145_v62 = vpack.c.bf16 %v239_v54, %v226_v53  ;;  %v5401_v63 = vpack.c.bf16 %v241_v57, %v228_v55 }
  0x8f   :  { %v5147_v0 = vpack.c.bf16 %v266_v59, %v253_v58  ;;  %v252_v1 = vld [vmem:[#allocation5 + $0x410] sm:$0xff]  ;;  %v265_v2 = vld [vmem:[#allocation5 + $0x478] sm:$0xff]  ;;  %v254_v3 = vld [vmem:[#allocation5 + $0x420] sm:$0xff]  ;;  %v5403_v4 = vpack.c.bf16 %v268_v61, %v255_v60 }
  0x90   :  { %v267_v5 = vld [vmem:[#allocation5 + $0x488] sm:$0xff]  ;;  %v292_v7 = vld [vmem:[#allocation5 + $0x550] sm:$0xff]  ;;  %v281_v8 = vld [vmem:[#allocation5 + $0x4f8] sm:$0xff]  ;;  %v5149_v10 = vpack.c.bf16 %v265_v2, %v252_v1 }
  0x91   :  { %5142 = vmatpush1.bf16.msra.mxu0 %v5141_v50  ;;  %5398 = vmatpush1.bf16.msra.mxu1 %v5397_v51  ;;  %v279_v6 = vld [vmem:[#allocation5 + $0x4e8] sm:$0xff]  ;;  %v294_v9 = vld [vmem:[#allocation5 + $0x560] sm:$0xff]  ;;  %v5405_v11 = vpack.c.bf16 %v267_v5, %v254_v3  ;;  %v280_v15 = vld [vmem:[#allocation5 + $0x4f0] sm:$0xff] }
  0x92   :  { %5144 = vmatprep.subr.bf16.mxu0 %v5143_v52  ;;  %5400 = vmatprep.subr.bf16.mxu1 %v5399_v56  ;;  %v5151_v12 = vpack.c.bf16 %v292_v7, %v279_v6  ;;  %v278_v13 = vld [vmem:[#allocation5 + $0x4e0] sm:$0xff]  ;;  %v291_v14 = vld [vmem:[#allocation5 + $0x548] sm:$0xff]  ;;  %v5407_v16 = vpack.c.bf16 %v294_v9, %v281_v8  ;;  %v293_v17 = vld [vmem:[#allocation5 + $0x558] sm:$0xff] }
  0x93   :  { %v305_v18 = vld [vmem:[#allocation5 + $0x5b8] sm:$0xff]  ;;  %v318_v19 = vld [vmem:[#allocation5 + $0x620] sm:$0xff]  ;;  %v307_v20 = vld [vmem:[#allocation5 + $0x5c8] sm:$0xff]  ;;  %v5153_v22 = vpack.c.bf16 %v291_v14, %v278_v13  ;;  %v5409_v23 = vpack.c.bf16 %v293_v17, %v280_v15 }
  0x94   :  { %v320_v21 = vld [vmem:[#allocation5 + $0x630] sm:$0xff]  ;;  %v5155_v24 = vpack.c.bf16 %v318_v19, %v305_v18  ;;  %v317_v26 = vld [vmem:[#allocation5 + $0x618] sm:$0xff]  ;;  %v306_v27 = vld [vmem:[#allocation5 + $0x5c0] sm:$0xff] }
  0x95   :  { %5146 = vmatpush1.bf16.msra.mxu0 %v5145_v62  ;;  %5402 = vmatpush1.bf16.msra.mxu1 %v5401_v63  ;;  %v304_v25 = vld [vmem:[#allocation5 + $0x5b0] sm:$0xff]  ;;  %v5411_v28 = vpack.c.bf16 %v320_v21, %v307_v20  ;;  %v319_v29 = vld [vmem:[#allocation5 + $0x628] sm:$0xff]  ;;  %v333_v32 = vld [vmem:[#allocation5 + $0x698] sm:$0xff] }
  0x96   :  { %5148 = vmatprep.subr.bf16.mxu0 %v5147_v0  ;;  %5404 = vmatprep.subr.bf16.mxu1 %v5403_v4  ;;  %v331_v30 = vld [vmem:[#allocation5 + $0x688] sm:$0xff]  ;;  %v344_v31 = vld [vmem:[#allocation5 + $0x6f0] sm:$0xff]  ;;  %v346_v33 = vld [vmem:[#allocation5 + $0x700] sm:$0xff]  ;;  %v5157_v34 = vpack.c.bf16 %v317_v26, %v304_v25  ;;  %v5413_v35 = vpack.c.bf16 %v319_v29, %v306_v27 }
  0x97   :  { %v5159_v36 = vpack.c.bf16 %v344_v31, %v331_v30  ;;  %v330_v37 = vld [vmem:[#allocation5 + $0x680] sm:$0xff]  ;;  %v343_v38 = vld [vmem:[#allocation5 + $0x6e8] sm:$0xff]  ;;  %v332_v39 = vld [vmem:[#allocation5 + $0x690] sm:$0xff]  ;;  %v5415_v40 = vpack.c.bf16 %v346_v33, %v333_v32 }
  0x98   :  { %v345_v41 = vld [vmem:[#allocation5 + $0x6f8] sm:$0xff]  ;;  %v370_v43 = vld [vmem:[#allocation5 + $0x7c0] sm:$0xff]  ;;  %v359_v44 = vld [vmem:[#allocation5 + $0x768] sm:$0xff]  ;;  %v5161_v46 = vpack.c.bf16 %v343_v38, %v330_v37 }
  0x99   :  { %5150 = vmatpush1.bf16.msra.mxu0 %v5149_v10  ;;  %5406 = vmatpush1.bf16.msra.mxu1 %v5405_v11  ;;  %v357_v42 = vld [vmem:[#allocation5 + $0x758] sm:$0xff]  ;;  %v372_v45 = vld [vmem:[#allocation5 + $0x7d0] sm:$0xff]  ;;  %v5417_v47 = vpack.c.bf16 %v345_v41, %v332_v39  ;;  %v358_v51 = vld [vmem:[#allocation5 + $0x760] sm:$0xff] }
  0x9a   :  { %5152 = vmatprep.subr.bf16.mxu0 %v5151_v12  ;;  %5408 = vmatprep.subr.bf16.mxu1 %v5407_v16  ;;  %v5163_v48 = vpack.c.bf16 %v370_v43, %v357_v42  ;;  %v356_v49 = vld [vmem:[#allocation5 + $0x750] sm:$0xff]  ;;  %v369_v50 = vld [vmem:[#allocation5 + $0x7b8] sm:$0xff]  ;;  %v5419_v52 = vpack.c.bf16 %v372_v45, %v359_v44  ;;  %v371_v53 = vld [vmem:[#allocation5 + $0x7c8] sm:$0xff] }
  0x9b   :  { %v383_v54 = vld [vmem:[#allocation5 + $0x828] sm:$0xff]  ;;  %v396_v55 = vld [vmem:[#allocation5 + $0x890] sm:$0xff]  ;;  %v385_v56 = vld [vmem:[#allocation5 + $0x838] sm:$0xff]  ;;  %v5165_v58 = vpack.c.bf16 %v369_v50, %v356_v49  ;;  %v5421_v59 = vpack.c.bf16 %v371_v53, %v358_v51 }
  0x9c   :  { %v398_v57 = vld [vmem:[#allocation5 + $0x8a0] sm:$0xff]  ;;  %v5167_v60 = vpack.c.bf16 %v396_v55, %v383_v54  ;;  %v395_v62 = vld [vmem:[#allocation5 + $0x888] sm:$0xff]  ;;  %v384_v63 = vld [vmem:[#allocation5 + $0x830] sm:$0xff] }
  0x9d   :  { %5154 = vmatpush1.bf16.msra.mxu0 %v5153_v22  ;;  %5410 = vmatpush1.bf16.msra.mxu1 %v5409_v23  ;;  %v382_v61 = vld [vmem:[#allocation5 + $0x820] sm:$0xff]  ;;  %v5423_v0 = vpack.c.bf16 %v398_v57, %v385_v56  ;;  %v397_v1 = vld [vmem:[#allocation5 + $0x898] sm:$0xff]  ;;  %v411_v4 = vld [vmem:[#allocation5 + $0x908] sm:$0xff] }
  0x9e   :  { %5156 = vmatprep.subr.bf16.mxu0 %v5155_v24  ;;  %5412 = vmatprep.subr.bf16.mxu1 %v5411_v28  ;;  %v409_v2 = vld [vmem:[#allocation5 + $0x8f8] sm:$0xff]  ;;  %v422_v3 = vld [vmem:[#allocation5 + $0x960] sm:$0xff]  ;;  %v424_v5 = vld [vmem:[#allocation5 + $0x970] sm:$0xff]  ;;  %v5169_v6 = vpack.c.bf16 %v395_v62, %v382_v61  ;;  %v5425_v8 = vpack.c.bf16 %v397_v1, %v384_v63 }
  0x9f   :  { %v408_v7 = vld [vmem:[#allocation5 + $0x8f0] sm:$0xff]  ;;  %v5171_v9 = vpack.c.bf16 %v422_v3, %v409_v2  ;;  %v421_v10 = vld [vmem:[#allocation5 + $0x958] sm:$0xff]  ;;  %v410_v11 = vld [vmem:[#allocation5 + $0x900] sm:$0xff]  ;;  %v5427_v13 = vpack.c.bf16 %v424_v5, %v411_v4 }
  0xa0   :  { %v423_v12 = vld [vmem:[#allocation5 + $0x968] sm:$0xff]  ;;  %v448_v15 = vld [vmem:[#allocation5 + $0xa30] sm:$0xff]  ;;  %v437_v17 = vld [vmem:[#allocation5 + $0x9d8] sm:$0xff]  ;;  %v5173_v19 = vpack.c.bf16 %v421_v10, %v408_v7 }
  0xa1   :  { %5158 = vmatpush1.bf16.msra.mxu0 %v5157_v34  ;;  %5414 = vmatpush1.bf16.msra.mxu1 %v5413_v35  ;;  %v435_v14 = vld [vmem:[#allocation5 + $0x9c8] sm:$0xff]  ;;  %v450_v18 = vld [vmem:[#allocation5 + $0xa40] sm:$0xff]  ;;  %v5429_v20 = vpack.c.bf16 %v423_v12, %v410_v11  ;;  %v436_v24 = vld [vmem:[#allocation5 + $0x9d0] sm:$0xff] }
  0xa2   :  { %5160 = vmatprep.subr.bf16.mxu0 %v5159_v36  ;;  %5416 = vmatprep.subr.bf16.mxu1 %v5415_v40  ;;  %v115_v16 = vld [vmem:[#allocation2 + $0x8] sm:$0xff]  ;;  %v5175_v21 = vpack.c.bf16 %v448_v15, %v435_v14  ;;  %v434_v22 = vld [vmem:[#allocation5 + $0x9c0] sm:$0xff]  ;;  %v5431_v25 = vpack.c.bf16 %v450_v18, %v437_v17  ;;  %v449_v26 = vld [vmem:[#allocation5 + $0xa38] sm:$0xff] }
  0xa3   :  { %1919 = vmatprep.mubr.f32.mxu0 %v115_v16  ;;  %2203 = vmatprep.mubr.f32.mxu1 %v115_v16  ;;  %v447_v23 = vld [vmem:[#allocation5 + $0xa28] sm:$0xff]  ;;  %v461_v27 = vld [vmem:[#allocation5 + $0xa98] sm:$0xff]  ;;  %v474_v28 = vld [vmem:[#allocation5 + $0xb00] sm:$0xff]  ;;  %v5433_v32 = vpack.c.bf16 %v449_v26, %v436_v24 }
  0xa4   :  { %v463_v29 = vld [vmem:[#allocation5 + $0xaa8] sm:$0xff]  ;;  %v476_v30 = vld [vmem:[#allocation5 + $0xb10] sm:$0xff]  ;;  %v5177_v31 = vpack.c.bf16 %v447_v23, %v434_v22  ;;  %v5179_v33 = vpack.c.bf16 %v474_v28, %v461_v27  ;;  %v473_v35 = vld [vmem:[#allocation5 + $0xaf8] sm:$0xff] }
  0xa5   :  { %5162 = vmatpush1.bf16.msra.mxu0 %v5161_v46  ;;  %5418 = vmatpush1.bf16.msra.mxu1 %v5417_v47  ;;  %v460_v34 = vld [vmem:[#allocation5 + $0xa90] sm:$0xff]  ;;  %v462_v36 = vld [vmem:[#allocation5 + $0xaa0] sm:$0xff]  ;;  %v5435_v37 = vpack.c.bf16 %v476_v30, %v463_v29  ;;  %v475_v38 = vld [vmem:[#allocation5 + $0xb08] sm:$0xff] }
  0xa6   :  { %5164 = vmatprep.subr.bf16.mxu0 %v5163_v48  ;;  %5420 = vmatprep.subr.bf16.mxu1 %v5419_v52  ;;  %v487_v39 = vld [vmem:[#allocation5 + $0xb68] sm:$0xff]  ;;  %v500_v40 = vld [vmem:[#allocation5 + $0xbd0] sm:$0xff]  ;;  %v489_v41 = vld [vmem:[#allocation5 + $0xb78] sm:$0xff]  ;;  %v5181_v43 = vpack.c.bf16 %v473_v35, %v460_v34  ;;  %v5437_v44 = vpack.c.bf16 %v475_v38, %v462_v36 }
  0xa7   :  { %v502_v42 = vld [vmem:[#allocation5 + $0xbe0] sm:$0xff]  ;;  %v5183_v45 = vpack.c.bf16 %v500_v40, %v487_v39  ;;  %v499_v47 = vld [vmem:[#allocation5 + $0xbc8] sm:$0xff]  ;;  %v488_v48 = vld [vmem:[#allocation5 + $0xb70] sm:$0xff] }
  0xa8   :  { %v486_v46 = vld [vmem:[#allocation5 + $0xb60] sm:$0xff]  ;;  %v5439_v49 = vpack.c.bf16 %v502_v42, %v489_v41  ;;  %v501_v50 = vld [vmem:[#allocation5 + $0xbd8] sm:$0xff]  ;;  %v515_v53 = vld [vmem:[#allocation5 + $0xc48] sm:$0xff] }
  0xa9   :  { %5166 = vmatpush1.bf16.msra.mxu0 %v5165_v58  ;;  %5422 = vmatpush1.bf16.msra.mxu1 %v5421_v59  ;;  %v513_v51 = vld [vmem:[#allocation5 + $0xc38] sm:$0xff]  ;;  %v526_v52 = vld [vmem:[#allocation5 + $0xca0] sm:$0xff]  ;;  %v528_v54 = vld [vmem:[#allocation5 + $0xcb0] sm:$0xff]  ;;  %v5185_v55 = vpack.c.bf16 %v499_v47, %v486_v46  ;;  %v5441_v56 = vpack.c.bf16 %v501_v50, %v488_v48 }
  0xaa   :  { %5168 = vmatprep.subr.bf16.mxu0 %v5167_v60  ;;  %5424 = vmatprep.subr.bf16.mxu1 %v5423_v0  ;;  %v5187_v57 = vpack.c.bf16 %v526_v52, %v513_v51  ;;  %v512_v58 = vld [vmem:[#allocation5 + $0xc30] sm:$0xff]  ;;  %v525_v59 = vld [vmem:[#allocation5 + $0xc98] sm:$0xff]  ;;  %v514_v60 = vld [vmem:[#allocation5 + $0xc40] sm:$0xff]  ;;  %v5443_v61 = vpack.c.bf16 %v528_v54, %v515_v53 }
  0xab   :  { %v527_v62 = vld [vmem:[#allocation5 + $0xca8] sm:$0xff]  ;;  %v552_v0 = vld [vmem:[#allocation5 + $0xd70] sm:$0xff]  ;;  %v541_v1 = vld [vmem:[#allocation5 + $0xd18] sm:$0xff]  ;;  %v5189_v3 = vpack.c.bf16 %v525_v59, %v512_v58 }
  0xac   :  { %v539_v63 = vld [vmem:[#allocation5 + $0xd08] sm:$0xff]  ;;  %v554_v2 = vld [vmem:[#allocation5 + $0xd80] sm:$0xff]  ;;  %v5445_v4 = vpack.c.bf16 %v527_v62, %v514_v60  ;;  %v553_v10 = vld [vmem:[#allocation5 + $0xd78] sm:$0xff] }
  0xad   :  { %5170 = vmatpush1.bf16.msra.mxu0 %v5169_v6  ;;  %5426 = vmatpush1.bf16.msra.mxu1 %v5425_v8  ;;  %v5191_v5 = vpack.c.bf16 %v552_v0, %v539_v63  ;;  %v538_v6 = vld [vmem:[#allocation5 + $0xd00] sm:$0xff]  ;;  %v551_v7 = vld [vmem:[#allocation5 + $0xd68] sm:$0xff]  ;;  %v540_v8 = vld [vmem:[#allocation5 + $0xd10] sm:$0xff] }
  0xae   :  { %5172 = vmatprep.subr.bf16.mxu0 %v5171_v9  ;;  %5428 = vmatprep.subr.bf16.mxu1 %v5427_v13  ;;  %v5447_v9 = vpack.c.bf16 %v554_v2, %v541_v1  ;;  %v565_v11 = vld [vmem:[#allocation5 + $0xdd8] sm:$0xff]  ;;  %v578_v12 = vld [vmem:[#allocation5 + $0xe40] sm:$0xff]  ;;  %v567_v13 = vld [vmem:[#allocation5 + $0xde8] sm:$0xff]  ;;  %v5193_v16 = vpack.c.bf16 %v551_v7, %v538_v6  ;;  %v5449_v17 = vpack.c.bf16 %v553_v10, %v540_v8 }
  0xaf   :  { %v580_v14 = vld [vmem:[#allocation5 + $0xe50] sm:$0xff]  ;;  %v114_v15 = vld [vmem:[#allocation2] sm:$0xff]  ;;  %v5195_v18 = vpack.c.bf16 %v578_v12, %v565_v11  ;;  %v579_v23 = vld [vmem:[#allocation5 + $0xe48] sm:$0xff] }
  0xb0   :  { %v5451_v22 = vpack.c.bf16 %v580_v14, %v567_v13  ;;  %v591_v24 = vld [vmem:[#allocation5 + $0xea8] sm:$0xff]  ;;  %v593_v26 = vld [vmem:[#allocation5 + $0xeb8] sm:$0xff]  ;;  %v606_v27 = vld [vmem:[#allocation5 + $0xf20] sm:$0xff] }
  0xb1   :  { %5174 = vmatpush1.bf16.msra.mxu0 %v5173_v19  ;;  %5430 = vmatpush1.bf16.msra.mxu1 %v5429_v20  ;;  %v564_v19 = vld [vmem:[#allocation5 + $0xdd0] sm:$0xff]  ;;  %v577_v20 = vld [vmem:[#allocation5 + $0xe38] sm:$0xff]  ;;  %v5455_v34 = vpack.c.bf16 %v606_v27, %v593_v26  ;;  %v619_v38 = vld [vmem:[#allocation5 + $0xf88] sm:$0xff] }
  0xb2   :  { %5176 = vmatprep.subr.bf16.mxu0 %v5175_v21  ;;  %5432 = vmatprep.subr.bf16.mxu1 %v5431_v25  ;;  %v566_v21 = vld [vmem:[#allocation5 + $0xde0] sm:$0xff]  ;;  %v604_v25 = vld [vmem:[#allocation5 + $0xf10] sm:$0xff]  ;;  %v5197_v28 = vpack.c.bf16 %v577_v20, %v564_v19  ;;  %v605_v35 = vld [vmem:[#allocation5 + $0xf18] sm:$0xff] }
  0xb3   :  { %v5453_v29 = vpack.c.bf16 %v579_v23, %v566_v21  ;;  %v5199_v30 = vpack.c.bf16 %v604_v25, %v591_v24  ;;  %v617_v36 = vld [vmem:[#allocation5 + $0xf78] sm:$0xff]  ;;  %v632_v39 = vld [vmem:[#allocation5 + $0xff0] sm:$0xff]  ;;  %v631_v47 = vld [vmem:[#allocation5 + $0xfe8] sm:$0xff] }
  0xb4   :  { %v5459_v46 = vpack.c.bf16 %v632_v39, %v619_v38  ;;  %v643_v48 = vld [vmem:[#allocation5 + $0x1048] sm:$0xff]  ;;  %v645_v50 = vld [vmem:[#allocation5 + $0x1058] sm:$0xff]  ;;  %v658_v51 = vld [vmem:[#allocation5 + $0x10c0] sm:$0xff] }
  0xb5   :  { %5178 = vmatpush1.bf16.msra.mxu0 %v5177_v31  ;;  %5434 = vmatpush1.bf16.msra.mxu1 %v5433_v32  ;;  %v590_v31 = vld [vmem:[#allocation5 + $0xea0] sm:$0xff]  ;;  %v603_v32 = vld [vmem:[#allocation5 + $0xf08] sm:$0xff]  ;;  %v5463_v58 = vpack.c.bf16 %v658_v51, %v645_v50  ;;  %v657_v59 = vld [vmem:[#allocation5 + $0x10b8] sm:$0xff] }
  0xb6   :  { %5180 = vmatprep.subr.bf16.mxu0 %v5179_v33  ;;  %5436 = vmatprep.subr.bf16.mxu1 %v5435_v37  ;;  %v592_v33 = vld [vmem:[#allocation5 + $0xeb0] sm:$0xff]  ;;  %v630_v37 = vld [vmem:[#allocation5 + $0xfe0] sm:$0xff]  ;;  %v5201_v40 = vpack.c.bf16 %v603_v32, %v590_v31  ;;  %v669_v60 = vld [vmem:[#allocation5 + $0x1118] sm:$0xff] }
  0xb7   :  { %v5457_v41 = vpack.c.bf16 %v605_v35, %v592_v33  ;;  %v5203_v42 = vpack.c.bf16 %v630_v37, %v617_v36  ;;  %v671_v62 = vld [vmem:[#allocation5 + $0x1128] sm:$0xff]  ;;  %v684_v63 = vld [vmem:[#allocation5 + $0x1190] sm:$0xff]  ;;  %v697_v10 = vld [vmem:[#allocation5 + $0x11f8] sm:$0xff] }
  0xb8   :  { %v5467_v6 = vpack.c.bf16 %v684_v63, %v671_v62  ;;  %v683_v7 = vld [vmem:[#allocation5 + $0x1188] sm:$0xff]  ;;  %v710_v11 = vld [vmem:[#allocation5 + $0x1260] sm:$0xff]  ;;  %v721_v20 = vld [vmem:[#allocation5 + $0x12b8] sm:$0xff] }
  0xb9   :  { %5182 = vmatpush1.bf16.msra.mxu0 %v5181_v43  ;;  %5438 = vmatpush1.bf16.msra.mxu1 %v5437_v44  ;;  %v616_v43 = vld [vmem:[#allocation5 + $0xf70] sm:$0xff]  ;;  %v629_v44 = vld [vmem:[#allocation5 + $0xfd8] sm:$0xff]  ;;  %v695_v8 = vld [vmem:[#allocation5 + $0x11e8] sm:$0xff]  ;;  %v5471_v19 = vpack.c.bf16 %v710_v11, %v697_v10 }
  0xba   :  { %5184 = vmatprep.subr.bf16.mxu0 %v5183_v45  ;;  %5440 = vmatprep.subr.bf16.mxu1 %v5439_v49  ;;  %v618_v45 = vld [vmem:[#allocation5 + $0xf80] sm:$0xff]  ;;  %v656_v49 = vld [vmem:[#allocation5 + $0x10b0] sm:$0xff]  ;;  %v5205_v52 = vpack.c.bf16 %v629_v44, %v616_v43  ;;  %v723_v23 = vld [vmem:[#allocation5 + $0x12c8] sm:$0xff] }
  0xbb   :  { %v5461_v53 = vpack.c.bf16 %v631_v47, %v618_v45  ;;  %v5207_v54 = vpack.c.bf16 %v656_v49, %v643_v48  ;;  %v694_v13 = vld [vmem:[#allocation5 + $0x11e0] sm:$0xff]  ;;  %v736_v24 = vld [vmem:[#allocation5 + $0x1330] sm:$0xff]  ;;  %v735_v32 = vld [vmem:[#allocation5 + $0x1328] sm:$0xff] }
  0xbc   :  { %v734_v21 = vld [vmem:[#allocation5 + $0x1320] sm:$0xff]  ;;  %v5475_v31 = vpack.c.bf16 %v736_v24, %v723_v23  ;;  %v747_v33 = vld [vmem:[#allocation5 + $0x1388] sm:$0xff]  ;;  %v749_v35 = vld [vmem:[#allocation5 + $0x1398] sm:$0xff] }
  0xbd   :  { %5186 = vmatpush1.bf16.msra.mxu0 %v5185_v55  ;;  %5442 = vmatpush1.bf16.msra.mxu1 %v5441_v56  ;;  %v642_v55 = vld [vmem:[#allocation5 + $0x1040] sm:$0xff]  ;;  %v655_v56 = vld [vmem:[#allocation5 + $0x10a8] sm:$0xff]  ;;  %v5219_v27 = vpack.c.bf16 %v734_v21, %v721_v20  ;;  %v761_v44 = vld [vmem:[#allocation5 + $0x13f8] sm:$0xff] }
  0xbe   :  { %5188 = vmatprep.subr.bf16.mxu0 %v5187_v57  ;;  %5444 = vmatprep.subr.bf16.mxu1 %v5443_v61  ;;  %v644_v57 = vld [vmem:[#allocation5 + $0x1050] sm:$0xff]  ;;  %v682_v61 = vld [vmem:[#allocation5 + $0x1180] sm:$0xff]  ;;  %v5209_v0 = vpack.c.bf16 %v655_v56, %v642_v55  ;;  %v773_v45 = vld [vmem:[#allocation5 + $0x1458] sm:$0xff] }
  0xbf   :  { %v5465_v1 = vpack.c.bf16 %v657_v59, %v644_v57  ;;  %v5211_v2 = vpack.c.bf16 %v682_v61, %v669_v60  ;;  %v762_v36 = vld [vmem:[#allocation5 + $0x1400] sm:$0xff]  ;;  %v775_v47 = vld [vmem:[#allocation5 + $0x1468] sm:$0xff]  ;;  %v788_v48 = vld [vmem:[#allocation5 + $0x14d0] sm:$0xff] }
  0xc0   :  { %v5479_v43 = vpack.c.bf16 %v762_v36, %v749_v35  ;;  %v5483_v55 = vpack.c.bf16 %v788_v48, %v775_v47  ;;  %v787_v56 = vld [vmem:[#allocation5 + $0x14c8] sm:$0xff]  ;;  %v801_v59 = vld [vmem:[#allocation5 + $0x1538] sm:$0xff]  ;;  %v814_v60 = vld [vmem:[#allocation5 + $0x15a0] sm:$0xff] }
  0xc1   :  { %5190 = vmatpush1.bf16.msra.mxu0 %v5189_v3  ;;  %5446 = vmatpush1.bf16.msra.mxu1 %v5445_v4  ;;  %v668_v3 = vld [vmem:[#allocation5 + $0x1110] sm:$0xff]  ;;  %v681_v4 = vld [vmem:[#allocation5 + $0x1178] sm:$0xff]  ;;  %v799_v57 = vld [vmem:[#allocation5 + $0x1528] sm:$0xff] }
  0xc2   :  { %5192 = vmatprep.subr.bf16.mxu0 %v5191_v5  ;;  %5448 = vmatprep.subr.bf16.mxu1 %v5447_v9  ;;  %v670_v5 = vld [vmem:[#allocation5 + $0x1120] sm:$0xff]  ;;  %v708_v9 = vld [vmem:[#allocation5 + $0x1250] sm:$0xff]  ;;  %v5213_v12 = vpack.c.bf16 %v681_v4, %v668_v3  ;;  %v5487_v3 = vpack.c.bf16 %v814_v60, %v801_v59  ;;  %v813_v4 = vld [vmem:[#allocation5 + $0x1598] sm:$0xff] }
  0xc3   :  { %v5469_v14 = vpack.c.bf16 %v683_v7, %v670_v5  ;;  %v825_v5 = vld [vmem:[#allocation5 + $0x15f8] sm:$0xff]  ;;  %v827_v7 = vld [vmem:[#allocation5 + $0x1608] sm:$0xff]  ;;  %v866_v20 = vld [vmem:[#allocation5 + $0x1740] sm:$0xff] }
  0xc4   :  { %1920 = vmatmul.mubr.f32.vlgmr.msra.gmra.mrb[0].mxu0 %v114_v15  ;;  %2204 = vmatmul.mubr.f32.vlgmr.msra.gmra.mrb[0].mxu1 %v114_v15  ;;  %v5215_v15 = vpack.c.bf16 %v708_v9, %v695_v8  ;;  %v840_v8 = vld [vmem:[#allocation5 + $0x1670] sm:$0xff]  ;;  %v850_v24 = vld [vmem:[#allocation5 + $0x16c0] sm:$0xff] }
  0xc5   :  { %5194 = vmatpush1.bf16.msra.mxu0 %v5193_v16  ;;  %5450 = vmatpush1.bf16.msra.mxu1 %v5449_v17  ;;  %v707_v16 = vld [vmem:[#allocation5 + $0x1248] sm:$0xff]  ;;  %v696_v17 = vld [vmem:[#allocation5 + $0x11f0] sm:$0xff]  ;;  %v902_v48 = vld [vmem:[#allocation5 + $0x1860] sm:$0xff] }
  0xc6   :  { %5196 = vmatprep.subr.bf16.mxu0 %v5195_v18  ;;  %5452 = vmatprep.subr.bf16.mxu1 %v5451_v22  ;;  %v709_v18 = vld [vmem:[#allocation5 + $0x1258] sm:$0xff]  ;;  %v5217_v25 = vpack.c.bf16 %v707_v16, %v694_v13  ;;  %v839_v16 = vld [vmem:[#allocation5 + $0x1668] sm:$0xff]  ;;  %v876_v36 = vld [vmem:[#allocation5 + $0x1790] sm:$0xff] }
  0xc7   :  { %v117_v22 = vld [vmem:[#allocation2 + $0x18] sm:$0xff]  ;;  %v5473_v26 = vpack.c.bf16 %v709_v18, %v696_v17  ;;  %v851_v17 = vld [vmem:[#allocation5 + $0x16c8] sm:$0xff]  ;;  %v864_v18 = vld [vmem:[#allocation5 + $0x1730] sm:$0xff] }
  0xc8   :  { %1990 = vmatprep.mubr.f32.mxu0 %v117_v22  ;;  %2274 = vmatprep.mubr.f32.mxu1 %v117_v22  ;;  %v837_v13 = vld [vmem:[#allocation5 + $0x1658] sm:$0xff]  ;;  %v5239_v23 = vpack.c.bf16 %v864_v18, %v851_v17  ;;  %v928_v60 = vld [vmem:[#allocation5 + $0x1930] sm:$0xff] }
  0xc9   :  { %5198 = vmatpush1.bf16.msra.mxu0 %v5197_v28  ;;  %5454 = vmatpush1.bf16.msra.mxu1 %v5453_v29  ;;  %v720_v28 = vld [vmem:[#allocation5 + $0x12b0] sm:$0xff]  ;;  %v733_v29 = vld [vmem:[#allocation5 + $0x1318] sm:$0xff] }
  0xca   :  { %5200 = vmatprep.subr.bf16.mxu0 %v5199_v30  ;;  %5456 = vmatprep.subr.bf16.mxu1 %v5455_v34  ;;  %v722_v30 = vld [vmem:[#allocation5 + $0x12c0] sm:$0xff]  ;;  %v760_v34 = vld [vmem:[#allocation5 + $0x13f0] sm:$0xff]  ;;  %v5221_v37 = vpack.c.bf16 %v733_v29, %v720_v28  ;;  %v865_v28 = vld [vmem:[#allocation5 + $0x1738] sm:$0xff] }
  0xcb   :  { %v5477_v38 = vpack.c.bf16 %v735_v32, %v722_v30  ;;  %v5223_v39 = vpack.c.bf16 %v760_v34, %v747_v33  ;;  %v877_v29 = vld [vmem:[#allocation5 + $0x1798] sm:$0xff]  ;;  %v890_v30 = vld [vmem:[#allocation5 + $0x1800] sm:$0xff]  ;;  %v892_v32 = vld [vmem:[#allocation5 + $0x1810] sm:$0xff] }
  0xcc   :  { %v5243_v35 = vpack.c.bf16 %v890_v30, %v877_v29  ;;  %v116_v17 = vld [vmem:[#allocation2 + $0x10] sm:$0xff]  ;;  %v1022_v29 = vld [vmem:[#allocation5 + $0x1c20] sm:$0xff]  ;;  %v119_v30 = vld [vmem:[#allocation2 + $0x28] sm:$0xff] }
  0xcd   :  { %5202 = vmatpush1.bf16.msra.mxu0 %v5201_v40  ;;  %5458 = vmatpush1.bf16.msra.mxu1 %v5457_v41  ;;  %v746_v40 = vld [vmem:[#allocation5 + $0x1380] sm:$0xff]  ;;  %v759_v41 = vld [vmem:[#allocation5 + $0x13e8] sm:$0xff] }
  0xce   :  { %5204 = vmatprep.subr.bf16.mxu0 %v5203_v42  ;;  %5460 = vmatprep.subr.bf16.mxu1 %v5459_v46  ;;  %v748_v42 = vld [vmem:[#allocation5 + $0x1390] sm:$0xff]  ;;  %v786_v46 = vld [vmem:[#allocation5 + $0x14c0] sm:$0xff]  ;;  %v5225_v49 = vpack.c.bf16 %v759_v41, %v746_v40  ;;  %v891_v40 = vld [vmem:[#allocation5 + $0x1808] sm:$0xff] }
  0xcf   :  { %v5481_v50 = vpack.c.bf16 %v761_v44, %v748_v42  ;;  %v5227_v51 = vpack.c.bf16 %v786_v46, %v773_v45  ;;  %v903_v41 = vld [vmem:[#allocation5 + $0x1868] sm:$0xff]  ;;  %v916_v42 = vld [vmem:[#allocation5 + $0x18d0] sm:$0xff]  ;;  %v918_v44 = vld [vmem:[#allocation5 + $0x18e0] sm:$0xff] }
  0xd0   :  { %v5247_v47 = vpack.c.bf16 %v916_v42, %v903_v41  ;;  %v1035_v41 = vld [vmem:[#allocation5 + $0x1c88] sm:$0xff]  ;;  %v1048_v42 = vld [vmem:[#allocation5 + $0x1cf0] sm:$0xff] }
  0xd1   :  { %5206 = vmatpush1.bf16.msra.mxu0 %v5205_v52  ;;  %5462 = vmatpush1.bf16.msra.mxu1 %v5461_v53  ;;  %v772_v52 = vld [vmem:[#allocation5 + $0x1450] sm:$0xff]  ;;  %v785_v53 = vld [vmem:[#allocation5 + $0x14b8] sm:$0xff] }
  0xd2   :  { %5208 = vmatprep.subr.bf16.mxu0 %v5207_v54  ;;  %5464 = vmatprep.subr.bf16.mxu1 %v5463_v58  ;;  %v774_v54 = vld [vmem:[#allocation5 + $0x1460] sm:$0xff]  ;;  %v812_v58 = vld [vmem:[#allocation5 + $0x1590] sm:$0xff]  ;;  %v5229_v61 = vpack.c.bf16 %v785_v53, %v772_v52  ;;  %v917_v52 = vld [vmem:[#allocation5 + $0x18d8] sm:$0xff] }
  0xd3   :  { %v5485_v62 = vpack.c.bf16 %v787_v56, %v774_v54  ;;  %v5231_v63 = vpack.c.bf16 %v812_v58, %v799_v57  ;;  %v929_v53 = vld [vmem:[#allocation5 + $0x1938] sm:$0xff]  ;;  %v942_v54 = vld [vmem:[#allocation5 + $0x19a0] sm:$0xff]  ;;  %v944_v56 = vld [vmem:[#allocation5 + $0x19b0] sm:$0xff] }
  0xd4   :  { %v5251_v59 = vpack.c.bf16 %v942_v54, %v929_v53  ;;  %v1061_v53 = vld [vmem:[#allocation5 + $0x1d58] sm:$0xff]  ;;  %v1074_v54 = vld [vmem:[#allocation5 + $0x1dc0] sm:$0xff] }
  0xd5   :  { %5210 = vmatpush1.bf16.msra.mxu0 %v5209_v0  ;;  %5466 = vmatpush1.bf16.msra.mxu1 %v5465_v1  ;;  %v798_v0 = vld [vmem:[#allocation5 + $0x1520] sm:$0xff]  ;;  %v811_v1 = vld [vmem:[#allocation5 + $0x1588] sm:$0xff] }
  0xd6   :  { %5212 = vmatprep.subr.bf16.mxu0 %v5211_v2  ;;  %5468 = vmatprep.subr.bf16.mxu1 %v5467_v6  ;;  %v800_v2 = vld [vmem:[#allocation5 + $0x1530] sm:$0xff]  ;;  %v838_v6 = vld [vmem:[#allocation5 + $0x1660] sm:$0xff]  ;;  %v5233_v9 = vpack.c.bf16 %v811_v1, %v798_v0  ;;  %v943_v0 = vld [vmem:[#allocation5 + $0x19a8] sm:$0xff] }
  0xd7   :  { %v5489_v10 = vpack.c.bf16 %v813_v4, %v800_v2  ;;  %v5235_v11 = vpack.c.bf16 %v838_v6, %v825_v5  ;;  %v955_v1 = vld [vmem:[#allocation5 + $0x1a08] sm:$0xff]  ;;  %v968_v2 = vld [vmem:[#allocation5 + $0x1a70] sm:$0xff]  ;;  %v970_v4 = vld [vmem:[#allocation5 + $0x1a80] sm:$0xff] }
  0xd9   :  { %5214 = vmatpush1.bf16.msra.mxu0 %v5213_v12  ;;  %5470 = vmatpush1.bf16.msra.mxu1 %v5469_v14  ;;  %v824_v12 = vld [vmem:[#allocation5 + $0x15f0] sm:$0xff]  ;;  %v826_v14 = vld [vmem:[#allocation5 + $0x1600] sm:$0xff] }
  0xda   :  { %5216 = vmatprep.subr.bf16.mxu0 %v5215_v15  ;;  %5472 = vmatprep.subr.bf16.mxu1 %v5471_v19  ;;  %v5491_v15 = vpack.c.bf16 %v840_v8, %v827_v7  ;;  %v853_v19 = vld [vmem:[#allocation5 + $0x16d8] sm:$0xff]  ;;  %v5237_v21 = vpack.c.bf16 %v837_v13, %v824_v12  ;;  %v5493_v22 = vpack.c.bf16 %v839_v16, %v826_v14  ;;  %v954_v8 = vld [vmem:[#allocation5 + $0x1a00] sm:$0xff]  ;;  %v996_v16 = vld [vmem:[#allocation5 + $0x1b50] sm:$0xff] }
  0xdb   :  { %v5255_v7 = vpack.c.bf16 %v968_v2, %v955_v1  ;;  %v969_v12 = vld [vmem:[#allocation5 + $0x1a78] sm:$0xff]  ;;  %v994_v14 = vld [vmem:[#allocation5 + $0x1b40] sm:$0xff]  ;;  %v1087_v1 = vld [vmem:[#allocation5 + $0x1e28] sm:$0xff] }
  0xdc   :  { %v981_v13 = vld [vmem:[#allocation5 + $0x1ad8] sm:$0xff]  ;;  %v1100_v2 = vld [vmem:[#allocation5 + $0x1e90] sm:$0xff] }
  0xdd   :  { %5218 = vmatpush1.bf16.msra.mxu0 %v5217_v25  ;;  %5474 = vmatpush1.bf16.msra.mxu1 %v5473_v26  ;;  %v863_v25 = vld [vmem:[#allocation5 + $0x1728] sm:$0xff]  ;;  %v852_v26 = vld [vmem:[#allocation5 + $0x16d0] sm:$0xff] }
  0xde   :  { %5220 = vmatprep.subr.bf16.mxu0 %v5219_v27  ;;  %5476 = vmatprep.subr.bf16.mxu1 %v5475_v31  ;;  %v5495_v27 = vpack.c.bf16 %v866_v20, %v853_v19  ;;  %v879_v31 = vld [vmem:[#allocation5 + $0x17a8] sm:$0xff]  ;;  %v5241_v33 = vpack.c.bf16 %v863_v25, %v850_v24  ;;  %v5497_v34 = vpack.c.bf16 %v865_v28, %v852_v26  ;;  %v1009_v28 = vld [vmem:[#allocation5 + $0x1bb8] sm:$0xff] }
  0xdf   :  { %v5259_v20 = vpack.c.bf16 %v994_v14, %v981_v13  ;;  %v995_v25 = vld [vmem:[#allocation5 + $0x1b48] sm:$0xff]  ;;  %v1113_v13 = vld [vmem:[#allocation5 + $0x1ef8] sm:$0xff]  ;;  %v1126_v14 = vld [vmem:[#allocation5 + $0x1f60] sm:$0xff] }
  0xe0   :  { %v1007_v26 = vld [vmem:[#allocation5 + $0x1ba8] sm:$0xff] }
  0xe1   :  { %5222 = vmatpush1.bf16.msra.mxu0 %v5221_v37  ;;  %5478 = vmatpush1.bf16.msra.mxu1 %v5477_v38  ;;  %v889_v37 = vld [vmem:[#allocation5 + $0x17f8] sm:$0xff]  ;;  %v878_v38 = vld [vmem:[#allocation5 + $0x17a0] sm:$0xff] }
  0xe2   :  { %5224 = vmatprep.subr.bf16.mxu0 %v5223_v39  ;;  %5480 = vmatprep.subr.bf16.mxu1 %v5479_v43  ;;  %v5499_v39 = vpack.c.bf16 %v892_v32, %v879_v31  ;;  %v905_v43 = vld [vmem:[#allocation5 + $0x1878] sm:$0xff]  ;;  %v5245_v45 = vpack.c.bf16 %v889_v37, %v876_v36  ;;  %v5501_v46 = vpack.c.bf16 %v891_v40, %v878_v38  ;;  %v1008_v36 = vld [vmem:[#allocation5 + $0x1bb0] sm:$0xff]  ;;  %v1046_v40 = vld [vmem:[#allocation5 + $0x1ce0] sm:$0xff] }
  0xe3   :  { %v5519_v37 = vpack.c.bf16 %v1022_v29, %v1009_v28  ;;  %v1021_v38 = vld [vmem:[#allocation5 + $0x1c18] sm:$0xff] }
  0xe5   :  { %5226 = vmatpush1.bf16.msra.mxu0 %v5225_v49  ;;  %5482 = vmatpush1.bf16.msra.mxu1 %v5481_v50  ;;  %v915_v49 = vld [vmem:[#allocation5 + $0x18c8] sm:$0xff]  ;;  %v904_v50 = vld [vmem:[#allocation5 + $0x1870] sm:$0xff] }
  0xe6   :  { %5228 = vmatprep.subr.bf16.mxu0 %v5227_v51  ;;  %5484 = vmatprep.subr.bf16.mxu1 %v5483_v55  ;;  %v5503_v51 = vpack.c.bf16 %v918_v44, %v905_v43  ;;  %v931_v55 = vld [vmem:[#allocation5 + $0x1948] sm:$0xff]  ;;  %v5249_v57 = vpack.c.bf16 %v915_v49, %v902_v48  ;;  %v5505_v58 = vpack.c.bf16 %v917_v52, %v904_v50  ;;  %v1034_v48 = vld [vmem:[#allocation5 + $0x1c80] sm:$0xff]  ;;  %v1072_v52 = vld [vmem:[#allocation5 + $0x1db0] sm:$0xff] }
  0xe7   :  { %v5521_v44 = vpack.c.bf16 %v1021_v38, %v1008_v36  ;;  %v5523_v49 = vpack.c.bf16 %v1048_v42, %v1035_v41  ;;  %v1047_v50 = vld [vmem:[#allocation5 + $0x1ce8] sm:$0xff]  ;;  %v1176_v36 = vld [vmem:[#allocation5 + $0x20f0] sm:$0xff]  ;;  %v1178_v38 = vld [vmem:[#allocation5 + $0x2100] sm:$0xff] }
  0xe8   :  { %v1162_v42 = vld [vmem:[#allocation5 + $0x2080] sm:$0xff] }
  0xe9   :  { %5230 = vmatpush1.bf16.msra.mxu0 %v5229_v61  ;;  %5486 = vmatpush1.bf16.msra.mxu1 %v5485_v62  ;;  %v941_v61 = vld [vmem:[#allocation5 + $0x1998] sm:$0xff]  ;;  %v930_v62 = vld [vmem:[#allocation5 + $0x1940] sm:$0xff] }
  0xea   :  { %5232 = vmatprep.subr.bf16.mxu0 %v5231_v63  ;;  %5488 = vmatprep.subr.bf16.mxu1 %v5487_v3  ;;  %v5507_v63 = vpack.c.bf16 %v944_v56, %v931_v55  ;;  %v957_v3 = vld [vmem:[#allocation5 + $0x1a18] sm:$0xff]  ;;  %v5253_v5 = vpack.c.bf16 %v941_v61, %v928_v60  ;;  %v5509_v6 = vpack.c.bf16 %v943_v0, %v930_v62  ;;  %v1060_v60 = vld [vmem:[#allocation5 + $0x1d50] sm:$0xff]  ;;  %v1098_v0 = vld [vmem:[#allocation5 + $0x1e80] sm:$0xff] }
  0xeb   :  { %v5525_v56 = vpack.c.bf16 %v1047_v50, %v1034_v48  ;;  %v5527_v61 = vpack.c.bf16 %v1074_v54, %v1061_v53  ;;  %v1073_v62 = vld [vmem:[#allocation5 + $0x1db8] sm:$0xff]  ;;  %v1202_v48 = vld [vmem:[#allocation5 + $0x21c0] sm:$0xff]  ;;  %v1204_v50 = vld [vmem:[#allocation5 + $0x21d0] sm:$0xff] }
  0xec   :  { %v1188_v54 = vld [vmem:[#allocation5 + $0x2150] sm:$0xff] }
  0xed   :  { %5234 = vmatpush1.bf16.msra.mxu0 %v5233_v9  ;;  %5490 = vmatpush1.bf16.msra.mxu1 %v5489_v10  ;;  %v967_v9 = vld [vmem:[#allocation5 + $0x1a68] sm:$0xff]  ;;  %v956_v10 = vld [vmem:[#allocation5 + $0x1a10] sm:$0xff] }
  0xee   :  { %5236 = vmatprep.subr.bf16.mxu0 %v5235_v11  ;;  %5492 = vmatprep.subr.bf16.mxu1 %v5491_v15  ;;  %v5511_v11 = vpack.c.bf16 %v970_v4, %v957_v3  ;;  %v983_v15 = vld [vmem:[#allocation5 + $0x1ae8] sm:$0xff]  ;;  %v5257_v18 = vpack.c.bf16 %v967_v9, %v954_v8  ;;  %v5513_v19 = vpack.c.bf16 %v969_v12, %v956_v10  ;;  %v1086_v8 = vld [vmem:[#allocation5 + $0x1e20] sm:$0xff]  ;;  %v1124_v12 = vld [vmem:[#allocation5 + $0x1f50] sm:$0xff] }
  0xef   :  { %v5515_v24 = vpack.c.bf16 %v996_v16, %v983_v15  ;;  %v5529_v4 = vpack.c.bf16 %v1073_v62, %v1060_v60  ;;  %v5531_v9 = vpack.c.bf16 %v1100_v2, %v1087_v1  ;;  %v1099_v10 = vld [vmem:[#allocation5 + $0x1e88] sm:$0xff]  ;;  %v1228_v60 = vld [vmem:[#allocation5 + $0x2290] sm:$0xff]  ;;  %v1230_v62 = vld [vmem:[#allocation5 + $0x22a0] sm:$0xff] }
  0xf0   :  { %v5533_v16 = vpack.c.bf16 %v1099_v10, %v1086_v8  ;;  %v1214_v2 = vld [vmem:[#allocation5 + $0x2220] sm:$0xff]  ;;  %v1256_v10 = vld [vmem:[#allocation5 + $0x2370] sm:$0xff] }
  0xf1   :  { %5238 = vmatpush1.bf16.msra.mxu0 %v5237_v21  ;;  %5494 = vmatpush1.bf16.msra.mxu1 %v5493_v22  ;;  %v980_v21 = vld [vmem:[#allocation5 + $0x1ad0] sm:$0xff]  ;;  %v993_v22 = vld [vmem:[#allocation5 + $0x1b38] sm:$0xff]  ;;  %v1254_v8 = vld [vmem:[#allocation5 + $0x2360] sm:$0xff] }
  0xf2   :  { %5240 = vmatprep.subr.bf16.mxu0 %v5239_v23  ;;  %5496 = vmatprep.subr.bf16.mxu1 %v5495_v27  ;;  %v982_v23 = vld [vmem:[#allocation5 + $0x1ae0] sm:$0xff]  ;;  %v1020_v27 = vld [vmem:[#allocation5 + $0x1c10] sm:$0xff]  ;;  %v5261_v31 = vpack.c.bf16 %v993_v22, %v980_v21  ;;  %v5535_v21 = vpack.c.bf16 %v1126_v14, %v1113_v13  ;;  %v1125_v22 = vld [vmem:[#allocation5 + $0x1f58] sm:$0xff] }
  0xf3   :  { %v5517_v32 = vpack.c.bf16 %v995_v25, %v982_v23  ;;  %v1137_v23 = vld [vmem:[#allocation5 + $0x1fb8] sm:$0xff]  ;;  %v1139_v25 = vld [vmem:[#allocation5 + $0x1fc8] sm:$0xff]  ;;  %v1240_v14 = vld [vmem:[#allocation5 + $0x22f0] sm:$0xff] }
  0xf5   :  { %5242 = vmatpush1.bf16.msra.mxu0 %v5241_v33  ;;  %5498 = vmatpush1.bf16.msra.mxu1 %v5497_v34  ;;  %v5263_v33 = vpack.c.bf16 %v1020_v27, %v1007_v26  ;;  %v1006_v34 = vld [vmem:[#allocation5 + $0x1ba0] sm:$0xff]  ;;  %v1152_v26 = vld [vmem:[#allocation5 + $0x2030] sm:$0xff] }
  0xf6   :  { %5244 = vmatprep.subr.bf16.mxu0 %v5243_v35  ;;  %5500 = vmatprep.subr.bf16.mxu1 %v5499_v39  ;;  %v1019_v35 = vld [vmem:[#allocation5 + $0x1c08] sm:$0xff]  ;;  %v1033_v39 = vld [vmem:[#allocation5 + $0x1c78] sm:$0xff] }
  0xf7   :  { %v5265_v43 = vpack.c.bf16 %v1019_v35, %v1006_v34  ;;  %v1151_v34 = vld [vmem:[#allocation5 + $0x2028] sm:$0xff] }
  0xf8   :  { %v1163_v35 = vld [vmem:[#allocation5 + $0x2088] sm:$0xff] }
  0xf9   :  { %5246 = vmatpush1.bf16.msra.mxu0 %v5245_v45  ;;  %5502 = vmatpush1.bf16.msra.mxu1 %v5501_v46  ;;  %v5267_v45 = vpack.c.bf16 %v1046_v40, %v1033_v39  ;;  %v1032_v46 = vld [vmem:[#allocation5 + $0x1c70] sm:$0xff]  ;;  %v5287_v41 = vpack.c.bf16 %v1176_v36, %v1163_v35 }
  0xfa   :  { %5248 = vmatprep.subr.bf16.mxu0 %v5247_v47  ;;  %5504 = vmatprep.subr.bf16.mxu1 %v5503_v51  ;;  %v1045_v47 = vld [vmem:[#allocation5 + $0x1cd8] sm:$0xff]  ;;  %v1059_v51 = vld [vmem:[#allocation5 + $0x1d48] sm:$0xff] }
  0xfb   :  { %v5269_v55 = vpack.c.bf16 %v1045_v47, %v1032_v46  ;;  %v1177_v46 = vld [vmem:[#allocation5 + $0x20f8] sm:$0xff] }
  0xfc   :  { %v1189_v47 = vld [vmem:[#allocation5 + $0x2158] sm:$0xff] }
  0xfd   :  { %5250 = vmatpush1.bf16.msra.mxu0 %v5249_v57  ;;  %5506 = vmatpush1.bf16.msra.mxu1 %v5505_v58  ;;  %v5271_v57 = vpack.c.bf16 %v1072_v52, %v1059_v51  ;;  %v1058_v58 = vld [vmem:[#allocation5 + $0x1d40] sm:$0xff]  ;;  %v5291_v53 = vpack.c.bf16 %v1202_v48, %v1189_v47 }
  0xfe   :  { %5252 = vmatprep.subr.bf16.mxu0 %v5251_v59  ;;  %5508 = vmatprep.subr.bf16.mxu1 %v5507_v63  ;;  %v1071_v59 = vld [vmem:[#allocation5 + $0x1da8] sm:$0xff]  ;;  %v1085_v63 = vld [vmem:[#allocation5 + $0x1e18] sm:$0xff] }
  0xff   :  { %v5273_v3 = vpack.c.bf16 %v1071_v59, %v1058_v58  ;;  %v1203_v58 = vld [vmem:[#allocation5 + $0x21c8] sm:$0xff] }
 0x100   :  { %v1215_v59 = vld [vmem:[#allocation5 + $0x2228] sm:$0xff] }
 0x101   :  { %5254 = vmatpush1.bf16.msra.mxu0 %v5253_v5  ;;  %5510 = vmatpush1.bf16.msra.mxu1 %v5509_v6  ;;  %v5275_v5 = vpack.c.bf16 %v1098_v0, %v1085_v63  ;;  %v1084_v6 = vld [vmem:[#allocation5 + $0x1e10] sm:$0xff]  ;;  %v5295_v1 = vpack.c.bf16 %v1228_v60, %v1215_v59 }
 0x102   :  { %5256 = vmatprep.subr.bf16.mxu0 %v5255_v7  ;;  %5512 = vmatprep.subr.bf16.mxu1 %v5511_v11  ;;  %v1097_v7 = vld [vmem:[#allocation5 + $0x1e78] sm:$0xff]  ;;  %v1111_v11 = vld [vmem:[#allocation5 + $0x1ee8] sm:$0xff] }
 0x103   :  { %v5277_v15 = vpack.c.bf16 %v1097_v7, %v1084_v6  ;;  %v1229_v6 = vld [vmem:[#allocation5 + $0x2298] sm:$0xff] }
 0x104   :  { %1991 = vmatmul.mubr.f32.vlgmr.msra.gmra.mrb[0].mxu0 %v116_v17  ;;  %2275 = vmatmul.mubr.f32.vlgmr.msra.gmra.mrb[0].mxu1 %v116_v17  ;;  %v5279_v17 = vpack.c.bf16 %v1124_v12, %v1111_v11  ;;  %v1241_v7 = vld [vmem:[#allocation5 + $0x22f8] sm:$0xff] }
 0x105   :  { %5258 = vmatpush1.bf16.msra.mxu0 %v5257_v18  ;;  %5514 = vmatpush1.bf16.msra.mxu1 %v5513_v19  ;;  %v1110_v18 = vld [vmem:[#allocation5 + $0x1ee0] sm:$0xff]  ;;  %v1123_v19 = vld [vmem:[#allocation5 + $0x1f48] sm:$0xff]  ;;  %v5299_v13 = vpack.c.bf16 %v1254_v8, %v1241_v7 }
 0x106   :  { %5260 = vmatprep.subr.bf16.mxu0 %v5259_v20  ;;  %5516 = vmatprep.subr.bf16.mxu1 %v5515_v24  ;;  %v1112_v20 = vld [vmem:[#allocation5 + $0x1ef0] sm:$0xff]  ;;  %v1150_v24 = vld [vmem:[#allocation5 + $0x2020] sm:$0xff]  ;;  %v5281_v27 = vpack.c.bf16 %v1123_v19, %v1110_v18  ;;  %v1255_v18 = vld [vmem:[#allocation5 + $0x2368] sm:$0xff] }
 0x107   :  { %2061 = vmatprep.mubr.f32.mxu0 %v119_v30  ;;  %2345 = vmatprep.mubr.f32.mxu1 %v119_v30  ;;  %v5537_v28 = vpack.c.bf16 %v1125_v22, %v1112_v20  ;;  %v5283_v29 = vpack.c.bf16 %v1150_v24, %v1137_v23  ;;  %v1136_v30 = vld [vmem:[#allocation5 + $0x1fb0] sm:$0xff]  ;;  %v1267_v19 = vld [vmem:[#allocation5 + $0x23c8] sm:$0xff]  ;;  %v1282_v22 = vld [vmem:[#allocation5 + $0x2440] sm:$0xff] }
 0x108   :  { %v1280_v20 = vld [vmem:[#allocation5 + $0x2430] sm:$0xff] }
 0x109   :  { %5262 = vmatpush1.bf16.msra.mxu0 %v5261_v31  ;;  %5518 = vmatpush1.bf16.msra.mxu1 %v5517_v32  ;;  %v1149_v31 = vld [vmem:[#allocation5 + $0x2018] sm:$0xff]  ;;  %v1138_v32 = vld [vmem:[#allocation5 + $0x1fc0] sm:$0xff] }
 0x10a   :  { %5264 = vmatprep.subr.bf16.mxu0 %v5263_v33  ;;  %5520 = vmatprep.subr.bf16.mxu1 %v5519_v37  ;;  %v5539_v33 = vpack.c.bf16 %v1152_v26, %v1139_v25  ;;  %v1165_v37 = vld [vmem:[#allocation5 + $0x2098] sm:$0xff]  ;;  %v5285_v39 = vpack.c.bf16 %v1149_v31, %v1136_v30  ;;  %v5541_v40 = vpack.c.bf16 %v1151_v34, %v1138_v32  ;;  %v1266_v26 = vld [vmem:[#allocation5 + $0x23c0] sm:$0xff]  ;;  %v1308_v34 = vld [vmem:[#allocation5 + $0x2510] sm:$0xff] }
 0x10b   :  { %v5303_v25 = vpack.c.bf16 %v1280_v20, %v1267_v19  ;;  %v1281_v30 = vld [vmem:[#allocation5 + $0x2438] sm:$0xff]  ;;  %v1306_v32 = vld [vmem:[#allocation5 + $0x2500] sm:$0xff] }
 0x10c   :  { %v1293_v31 = vld [vmem:[#allocation5 + $0x2498] sm:$0xff]  ;;  %v118_v19 = vld [vmem:[#allocation2 + $0x20] sm:$0xff] }
 0x10d   :  { %5266 = vmatpush1.bf16.msra.mxu0 %v5265_v43  ;;  %5522 = vmatpush1.bf16.msra.mxu1 %v5521_v44  ;;  %v1175_v43 = vld [vmem:[#allocation5 + $0x20e8] sm:$0xff]  ;;  %v1164_v44 = vld [vmem:[#allocation5 + $0x2090] sm:$0xff] }
 0x10e   :  { %5268 = vmatprep.subr.bf16.mxu0 %v5267_v45  ;;  %5524 = vmatprep.subr.bf16.mxu1 %v5523_v49  ;;  %v5543_v45 = vpack.c.bf16 %v1178_v38, %v1165_v37  ;;  %v1191_v49 = vld [vmem:[#allocation5 + $0x2168] sm:$0xff]  ;;  %v5289_v51 = vpack.c.bf16 %v1175_v43, %v1162_v42  ;;  %v5545_v52 = vpack.c.bf16 %v1177_v46, %v1164_v44  ;;  %v1292_v38 = vld [vmem:[#allocation5 + $0x2490] sm:$0xff]  ;;  %v1334_v46 = vld [vmem:[#allocation5 + $0x25e0] sm:$0xff] }
 0x10f   :  { %v5307_v37 = vpack.c.bf16 %v1306_v32, %v1293_v31  ;;  %v1307_v42 = vld [vmem:[#allocation5 + $0x2508] sm:$0xff]  ;;  %v1332_v44 = vld [vmem:[#allocation5 + $0x25d0] sm:$0xff]  ;;  %v1438_v31 = vld [vmem:[#allocation5 + $0x2920] sm:$0xff] }
 0x110   :  { %v1319_v43 = vld [vmem:[#allocation5 + $0x2568] sm:$0xff]  ;;  %v121_v32 = vld [vmem:[#allocation2 + $0x38] sm:$0xff] }
 0x111   :  { %5270 = vmatpush1.bf16.msra.mxu0 %v5269_v55  ;;  %5526 = vmatpush1.bf16.msra.mxu1 %v5525_v56  ;;  %v1201_v55 = vld [vmem:[#allocation5 + $0x21b8] sm:$0xff]  ;;  %v1190_v56 = vld [vmem:[#allocation5 + $0x2160] sm:$0xff] }
 0x112   :  { %5272 = vmatprep.subr.bf16.mxu0 %v5271_v57  ;;  %5528 = vmatprep.subr.bf16.mxu1 %v5527_v61  ;;  %v5547_v57 = vpack.c.bf16 %v1204_v50, %v1191_v49  ;;  %v1217_v61 = vld [vmem:[#allocation5 + $0x2238] sm:$0xff]  ;;  %v5293_v63 = vpack.c.bf16 %v1201_v55, %v1188_v54  ;;  %v5549_v0 = vpack.c.bf16 %v1203_v58, %v1190_v56  ;;  %v1318_v50 = vld [vmem:[#allocation5 + $0x2560] sm:$0xff]  ;;  %v1360_v58 = vld [vmem:[#allocation5 + $0x26b0] sm:$0xff] }
 0x113   :  { %v5311_v49 = vpack.c.bf16 %v1332_v44, %v1319_v43  ;;  %v1333_v54 = vld [vmem:[#allocation5 + $0x25d8] sm:$0xff]  ;;  %v1358_v56 = vld [vmem:[#allocation5 + $0x26a0] sm:$0xff]  ;;  %v1451_v43 = vld [vmem:[#allocation5 + $0x2988] sm:$0xff] }
 0x114   :  { %v1345_v55 = vld [vmem:[#allocation5 + $0x2638] sm:$0xff]  ;;  %v1464_v44 = vld [vmem:[#allocation5 + $0x29f0] sm:$0xff] }
 0x115   :  { %5274 = vmatpush1.bf16.msra.mxu0 %v5273_v3  ;;  %5530 = vmatpush1.bf16.msra.mxu1 %v5529_v4  ;;  %v1227_v3 = vld [vmem:[#allocation5 + $0x2288] sm:$0xff]  ;;  %v1216_v4 = vld [vmem:[#allocation5 + $0x2230] sm:$0xff] }
 0x116   :  { %5276 = vmatprep.subr.bf16.mxu0 %v5275_v5  ;;  %5532 = vmatprep.subr.bf16.mxu1 %v5531_v9  ;;  %v5551_v5 = vpack.c.bf16 %v1230_v62, %v1217_v61  ;;  %v1243_v9 = vld [vmem:[#allocation5 + $0x2308] sm:$0xff]  ;;  %v5297_v11 = vpack.c.bf16 %v1227_v3, %v1214_v2  ;;  %v5553_v12 = vpack.c.bf16 %v1229_v6, %v1216_v4  ;;  %v1344_v62 = vld [vmem:[#allocation5 + $0x2630] sm:$0xff]  ;;  %v1386_v6 = vld [vmem:[#allocation5 + $0x2780] sm:$0xff] }
 0x117   :  { %v5315_v61 = vpack.c.bf16 %v1358_v56, %v1345_v55  ;;  %v1359_v2 = vld [vmem:[#allocation5 + $0x26a8] sm:$0xff]  ;;  %v1384_v4 = vld [vmem:[#allocation5 + $0x2770] sm:$0xff]  ;;  %v1477_v55 = vld [vmem:[#allocation5 + $0x2a58] sm:$0xff] }
 0x118   :  { %v1371_v3 = vld [vmem:[#allocation5 + $0x2708] sm:$0xff]  ;;  %v1490_v56 = vld [vmem:[#allocation5 + $0x2ac0] sm:$0xff] }
 0x119   :  { %5278 = vmatpush1.bf16.msra.mxu0 %v5277_v15  ;;  %5534 = vmatpush1.bf16.msra.mxu1 %v5533_v16  ;;  %v1253_v15 = vld [vmem:[#allocation5 + $0x2358] sm:$0xff]  ;;  %v1242_v16 = vld [vmem:[#allocation5 + $0x2300] sm:$0xff] }
 0x11a   :  { %5280 = vmatprep.subr.bf16.mxu0 %v5279_v17  ;;  %5536 = vmatprep.subr.bf16.mxu1 %v5535_v21  ;;  %v5555_v17 = vpack.c.bf16 %v1256_v10, %v1243_v9  ;;  %v1269_v21 = vld [vmem:[#allocation5 + $0x23d8] sm:$0xff]  ;;  %v5301_v23 = vpack.c.bf16 %v1253_v15, %v1240_v14  ;;  %v5557_v24 = vpack.c.bf16 %v1255_v18, %v1242_v16  ;;  %v1370_v10 = vld [vmem:[#allocation5 + $0x2700] sm:$0xff]  ;;  %v1412_v18 = vld [vmem:[#allocation5 + $0x2850] sm:$0xff] }
 0x11b   :  { %v5319_v9 = vpack.c.bf16 %v1384_v4, %v1371_v3  ;;  %v1385_v14 = vld [vmem:[#allocation5 + $0x2778] sm:$0xff]  ;;  %v1410_v16 = vld [vmem:[#allocation5 + $0x2840] sm:$0xff]  ;;  %v1503_v3 = vld [vmem:[#allocation5 + $0x2b28] sm:$0xff] }
 0x11c   :  { %v1397_v15 = vld [vmem:[#allocation5 + $0x27d8] sm:$0xff]  ;;  %v1516_v4 = vld [vmem:[#allocation5 + $0x2b90] sm:$0xff] }
 0x11d   :  { %5282 = vmatpush1.bf16.msra.mxu0 %v5281_v27  ;;  %5538 = vmatpush1.bf16.msra.mxu1 %v5537_v28  ;;  %v1279_v27 = vld [vmem:[#allocation5 + $0x2428] sm:$0xff]  ;;  %v1268_v28 = vld [vmem:[#allocation5 + $0x23d0] sm:$0xff] }
 0x11e   :  { %5284 = vmatprep.subr.bf16.mxu0 %v5283_v29  ;;  %5540 = vmatprep.subr.bf16.mxu1 %v5539_v33  ;;  %v5559_v29 = vpack.c.bf16 %v1282_v22, %v1269_v21  ;;  %v1295_v33 = vld [vmem:[#allocation5 + $0x24a8] sm:$0xff]  ;;  %v5305_v35 = vpack.c.bf16 %v1279_v27, %v1266_v26  ;;  %v5561_v36 = vpack.c.bf16 %v1281_v30, %v1268_v28  ;;  %v1425_v30 = vld [vmem:[#allocation5 + $0x28b8] sm:$0xff] }
 0x11f   :  { %v5323_v22 = vpack.c.bf16 %v1410_v16, %v1397_v15  ;;  %v1411_v27 = vld [vmem:[#allocation5 + $0x2848] sm:$0xff]  ;;  %v1529_v15 = vld [vmem:[#allocation5 + $0x2bf8] sm:$0xff]  ;;  %v1542_v16 = vld [vmem:[#allocation5 + $0x2c60] sm:$0xff] }
 0x120   :  { %v1423_v28 = vld [vmem:[#allocation5 + $0x28a8] sm:$0xff] }
 0x121   :  { %5286 = vmatpush1.bf16.msra.mxu0 %v5285_v39  ;;  %5542 = vmatpush1.bf16.msra.mxu1 %v5541_v40  ;;  %v1305_v39 = vld [vmem:[#allocation5 + $0x24f8] sm:$0xff]  ;;  %v1294_v40 = vld [vmem:[#allocation5 + $0x24a0] sm:$0xff] }
 0x122   :  { %5288 = vmatprep.subr.bf16.mxu0 %v5287_v41  ;;  %5544 = vmatprep.subr.bf16.mxu1 %v5543_v45  ;;  %v5563_v41 = vpack.c.bf16 %v1308_v34, %v1295_v33  ;;  %v1321_v45 = vld [vmem:[#allocation5 + $0x2578] sm:$0xff]  ;;  %v5309_v47 = vpack.c.bf16 %v1305_v39, %v1292_v38  ;;  %v5565_v48 = vpack.c.bf16 %v1307_v42, %v1294_v40  ;;  %v1424_v38 = vld [vmem:[#allocation5 + $0x28b0] sm:$0xff]  ;;  %v1462_v42 = vld [vmem:[#allocation5 + $0x29e0] sm:$0xff] }
 0x123   :  { %v5583_v39 = vpack.c.bf16 %v1438_v31, %v1425_v30  ;;  %v1437_v40 = vld [vmem:[#allocation5 + $0x2918] sm:$0xff] }
 0x125   :  { %5290 = vmatpush1.bf16.msra.mxu0 %v5289_v51  ;;  %5546 = vmatpush1.bf16.msra.mxu1 %v5545_v52  ;;  %v1331_v51 = vld [vmem:[#allocation5 + $0x25c8] sm:$0xff]  ;;  %v1320_v52 = vld [vmem:[#allocation5 + $0x2570] sm:$0xff] }
 0x126   :  { %5292 = vmatprep.subr.bf16.mxu0 %v5291_v53  ;;  %5548 = vmatprep.subr.bf16.mxu1 %v5547_v57  ;;  %v5567_v53 = vpack.c.bf16 %v1334_v46, %v1321_v45  ;;  %v1347_v57 = vld [vmem:[#allocation5 + $0x2648] sm:$0xff]  ;;  %v5313_v59 = vpack.c.bf16 %v1331_v51, %v1318_v50  ;;  %v5569_v60 = vpack.c.bf16 %v1333_v54, %v1320_v52  ;;  %v1450_v50 = vld [vmem:[#allocation5 + $0x2980] sm:$0xff]  ;;  %v1488_v54 = vld [vmem:[#allocation5 + $0x2ab0] sm:$0xff] }
 0x127   :  { %v5585_v46 = vpack.c.bf16 %v1437_v40, %v1424_v38  ;;  %v5587_v51 = vpack.c.bf16 %v1464_v44, %v1451_v43  ;;  %v1463_v52 = vld [vmem:[#allocation5 + $0x29e8] sm:$0xff]  ;;  %v1592_v38 = vld [vmem:[#allocation5 + $0x2df0] sm:$0xff]  ;;  %v1594_v40 = vld [vmem:[#allocation5 + $0x2e00] sm:$0xff] }
 0x128   :  { %v1578_v44 = vld [vmem:[#allocation5 + $0x2d80] sm:$0xff] }
 0x129   :  { %5294 = vmatpush1.bf16.msra.mxu0 %v5293_v63  ;;  %5550 = vmatpush1.bf16.msra.mxu1 %v5549_v0  ;;  %v1357_v63 = vld [vmem:[#allocation5 + $0x2698] sm:$0xff]  ;;  %v1346_v0 = vld [vmem:[#allocation5 + $0x2640] sm:$0xff] }
 0x12a   :  { %5296 = vmatprep.subr.bf16.mxu0 %v5295_v1  ;;  %5552 = vmatprep.subr.bf16.mxu1 %v5551_v5  ;;  %v5571_v1 = vpack.c.bf16 %v1360_v58, %v1347_v57  ;;  %v1373_v5 = vld [vmem:[#allocation5 + $0x2718] sm:$0xff]  ;;  %v5317_v7 = vpack.c.bf16 %v1357_v63, %v1344_v62  ;;  %v5573_v8 = vpack.c.bf16 %v1359_v2, %v1346_v0  ;;  %v1476_v62 = vld [vmem:[#allocation5 + $0x2a50] sm:$0xff]  ;;  %v1514_v2 = vld [vmem:[#allocation5 + $0x2b80] sm:$0xff] }
 0x12b   :  { %v5589_v58 = vpack.c.bf16 %v1463_v52, %v1450_v50  ;;  %v5591_v63 = vpack.c.bf16 %v1490_v56, %v1477_v55  ;;  %v1489_v0 = vld [vmem:[#allocation5 + $0x2ab8] sm:$0xff]  ;;  %v1618_v50 = vld [vmem:[#allocation5 + $0x2ec0] sm:$0xff]  ;;  %v1620_v52 = vld [vmem:[#allocation5 + $0x2ed0] sm:$0xff] }
 0x12c   :  { %v1604_v56 = vld [vmem:[#allocation5 + $0x2e50] sm:$0xff] }
 0x12d   :  { %5298 = vmatpush1.bf16.msra.mxu0 %v5297_v11  ;;  %5554 = vmatpush1.bf16.msra.mxu1 %v5553_v12  ;;  %v1383_v11 = vld [vmem:[#allocation5 + $0x2768] sm:$0xff]  ;;  %v1372_v12 = vld [vmem:[#allocation5 + $0x2710] sm:$0xff] }
 0x12e   :  { %5300 = vmatprep.subr.bf16.mxu0 %v5299_v13  ;;  %5556 = vmatprep.subr.bf16.mxu1 %v5555_v17  ;;  %v5575_v13 = vpack.c.bf16 %v1386_v6, %v1373_v5  ;;  %v1399_v17 = vld [vmem:[#allocation5 + $0x27e8] sm:$0xff]  ;;  %v5321_v20 = vpack.c.bf16 %v1383_v11, %v1370_v10  ;;  %v5577_v21 = vpack.c.bf16 %v1385_v14, %v1372_v12  ;;  %v1502_v10 = vld [vmem:[#allocation5 + $0x2b20] sm:$0xff]  ;;  %v1540_v14 = vld [vmem:[#allocation5 + $0x2c50] sm:$0xff] }
 0x12f   :  { %v5579_v26 = vpack.c.bf16 %v1412_v18, %v1399_v17  ;;  %v5593_v6 = vpack.c.bf16 %v1489_v0, %v1476_v62  ;;  %v5595_v11 = vpack.c.bf16 %v1516_v4, %v1503_v3  ;;  %v1515_v12 = vld [vmem:[#allocation5 + $0x2b88] sm:$0xff]  ;;  %v1644_v62 = vld [vmem:[#allocation5 + $0x2f90] sm:$0xff]  ;;  %v1646_v0 = vld [vmem:[#allocation5 + $0x2fa0] sm:$0xff] }
 0x130   :  { %v5597_v18 = vpack.c.bf16 %v1515_v12, %v1502_v10  ;;  %v1630_v4 = vld [vmem:[#allocation5 + $0x2f20] sm:$0xff]  ;;  %v1672_v12 = vld [vmem:[#allocation5 + $0x3070] sm:$0xff] }
 0x131   :  { %5302 = vmatpush1.bf16.msra.mxu0 %v5301_v23  ;;  %5558 = vmatpush1.bf16.msra.mxu1 %v5557_v24  ;;  %v1396_v23 = vld [vmem:[#allocation5 + $0x27d0] sm:$0xff]  ;;  %v1409_v24 = vld [vmem:[#allocation5 + $0x2838] sm:$0xff]  ;;  %v1670_v10 = vld [vmem:[#allocation5 + $0x3060] sm:$0xff] }
 0x132   :  { %5304 = vmatprep.subr.bf16.mxu0 %v5303_v25  ;;  %5560 = vmatprep.subr.bf16.mxu1 %v5559_v29  ;;  %v1398_v25 = vld [vmem:[#allocation5 + $0x27e0] sm:$0xff]  ;;  %v1436_v29 = vld [vmem:[#allocation5 + $0x2910] sm:$0xff]  ;;  %v5325_v33 = vpack.c.bf16 %v1409_v24, %v1396_v23  ;;  %v5599_v23 = vpack.c.bf16 %v1542_v16, %v1529_v15  ;;  %v1541_v24 = vld [vmem:[#allocation5 + $0x2c58] sm:$0xff] }
 0x133   :  { %v5581_v34 = vpack.c.bf16 %v1411_v27, %v1398_v25  ;;  %v1553_v25 = vld [vmem:[#allocation5 + $0x2cb8] sm:$0xff]  ;;  %v1555_v27 = vld [vmem:[#allocation5 + $0x2cc8] sm:$0xff]  ;;  %v1656_v16 = vld [vmem:[#allocation5 + $0x2ff0] sm:$0xff] }
 0x135   :  { %5306 = vmatpush1.bf16.msra.mxu0 %v5305_v35  ;;  %5562 = vmatpush1.bf16.msra.mxu1 %v5561_v36  ;;  %v5327_v35 = vpack.c.bf16 %v1436_v29, %v1423_v28  ;;  %v1422_v36 = vld [vmem:[#allocation5 + $0x28a0] sm:$0xff]  ;;  %v1568_v28 = vld [vmem:[#allocation5 + $0x2d30] sm:$0xff] }
 0x136   :  { %5308 = vmatprep.subr.bf16.mxu0 %v5307_v37  ;;  %5564 = vmatprep.subr.bf16.mxu1 %v5563_v41  ;;  %v1435_v37 = vld [vmem:[#allocation5 + $0x2908] sm:$0xff]  ;;  %v1449_v41 = vld [vmem:[#allocation5 + $0x2978] sm:$0xff] }
 0x137   :  { %v5329_v45 = vpack.c.bf16 %v1435_v37, %v1422_v36  ;;  %v1567_v36 = vld [vmem:[#allocation5 + $0x2d28] sm:$0xff] }
 0x138   :  { %v1579_v37 = vld [vmem:[#allocation5 + $0x2d88] sm:$0xff] }
 0x139   :  { %5310 = vmatpush1.bf16.msra.mxu0 %v5309_v47  ;;  %5566 = vmatpush1.bf16.msra.mxu1 %v5565_v48  ;;  %v5331_v47 = vpack.c.bf16 %v1462_v42, %v1449_v41  ;;  %v1448_v48 = vld [vmem:[#allocation5 + $0x2970] sm:$0xff]  ;;  %v5351_v43 = vpack.c.bf16 %v1592_v38, %v1579_v37 }
 0x13a   :  { %5312 = vmatprep.subr.bf16.mxu0 %v5311_v49  ;;  %5568 = vmatprep.subr.bf16.mxu1 %v5567_v53  ;;  %v1461_v49 = vld [vmem:[#allocation5 + $0x29d8] sm:$0xff]  ;;  %v1475_v53 = vld [vmem:[#allocation5 + $0x2a48] sm:$0xff] }
 0x13b   :  { %v5333_v57 = vpack.c.bf16 %v1461_v49, %v1448_v48  ;;  %v1593_v48 = vld [vmem:[#allocation5 + $0x2df8] sm:$0xff] }
 0x13c   :  { %v1605_v49 = vld [vmem:[#allocation5 + $0x2e58] sm:$0xff] }
 0x13d   :  { %5314 = vmatpush1.bf16.msra.mxu0 %v5313_v59  ;;  %5570 = vmatpush1.bf16.msra.mxu1 %v5569_v60  ;;  %v5335_v59 = vpack.c.bf16 %v1488_v54, %v1475_v53  ;;  %v1474_v60 = vld [vmem:[#allocation5 + $0x2a40] sm:$0xff]  ;;  %v5355_v55 = vpack.c.bf16 %v1618_v50, %v1605_v49 }
 0x13e   :  { %5316 = vmatprep.subr.bf16.mxu0 %v5315_v61  ;;  %5572 = vmatprep.subr.bf16.mxu1 %v5571_v1  ;;  %v1487_v61 = vld [vmem:[#allocation5 + $0x2aa8] sm:$0xff]  ;;  %v1501_v1 = vld [vmem:[#allocation5 + $0x2b18] sm:$0xff] }
 0x13f   :  { %v5337_v5 = vpack.c.bf16 %v1487_v61, %v1474_v60  ;;  %v1619_v60 = vld [vmem:[#allocation5 + $0x2ec8] sm:$0xff] }
 0x140   :  { %v1631_v61 = vld [vmem:[#allocation5 + $0x2f28] sm:$0xff] }
 0x141   :  { %5318 = vmatpush1.bf16.msra.mxu0 %v5317_v7  ;;  %5574 = vmatpush1.bf16.msra.mxu1 %v5573_v8  ;;  %v5339_v7 = vpack.c.bf16 %v1514_v2, %v1501_v1  ;;  %v1500_v8 = vld [vmem:[#allocation5 + $0x2b10] sm:$0xff]  ;;  %v5359_v3 = vpack.c.bf16 %v1644_v62, %v1631_v61 }
 0x142   :  { %5320 = vmatprep.subr.bf16.mxu0 %v5319_v9  ;;  %5576 = vmatprep.subr.bf16.mxu1 %v5575_v13  ;;  %v1513_v9 = vld [vmem:[#allocation5 + $0x2b78] sm:$0xff]  ;;  %v1527_v13 = vld [vmem:[#allocation5 + $0x2be8] sm:$0xff] }
 0x143   :  { %v5341_v17 = vpack.c.bf16 %v1513_v9, %v1500_v8  ;;  %v1645_v8 = vld [vmem:[#allocation5 + $0x2f98] sm:$0xff] }
 0x144   :  { %2062 = vmatmul.mubr.f32.vlgmr.msra.gmra.mrb[0].mxu0 %v118_v19  ;;  %2346 = vmatmul.mubr.f32.vlgmr.msra.gmra.mrb[0].mxu1 %v118_v19  ;;  %v5343_v19 = vpack.c.bf16 %v1540_v14, %v1527_v13  ;;  %v1657_v9 = vld [vmem:[#allocation5 + $0x2ff8] sm:$0xff] }
 0x145   :  { %5322 = vmatpush1.bf16.msra.mxu0 %v5321_v20  ;;  %5578 = vmatpush1.bf16.msra.mxu1 %v5577_v21  ;;  %v1526_v20 = vld [vmem:[#allocation5 + $0x2be0] sm:$0xff]  ;;  %v1539_v21 = vld [vmem:[#allocation5 + $0x2c48] sm:$0xff]  ;;  %v5363_v15 = vpack.c.bf16 %v1670_v10, %v1657_v9 }
 0x146   :  { %5324 = vmatprep.subr.bf16.mxu0 %v5323_v22  ;;  %5580 = vmatprep.subr.bf16.mxu1 %v5579_v26  ;;  %v1528_v22 = vld [vmem:[#allocation5 + $0x2bf0] sm:$0xff]  ;;  %v1566_v26 = vld [vmem:[#allocation5 + $0x2d20] sm:$0xff]  ;;  %v5345_v29 = vpack.c.bf16 %v1539_v21, %v1526_v20  ;;  %v1671_v20 = vld [vmem:[#allocation5 + $0x3068] sm:$0xff] }
 0x147   :  { %2132 = vmatprep.mubr.f32.mxu0 %v121_v32  ;;  %2416 = vmatprep.mubr.f32.mxu1 %v121_v32  ;;  %v5601_v30 = vpack.c.bf16 %v1541_v24, %v1528_v22  ;;  %v5347_v31 = vpack.c.bf16 %v1566_v26, %v1553_v25  ;;  %v1552_v32 = vld [vmem:[#allocation5 + $0x2cb0] sm:$0xff]  ;;  %v1683_v21 = vld [vmem:[#allocation5 + $0x30c8] sm:$0xff]  ;;  %v1698_v24 = vld [vmem:[#allocation5 + $0x3140] sm:$0xff] }
 0x148   :  { %v1696_v22 = vld [vmem:[#allocation5 + $0x3130] sm:$0xff] }
 0x149   :  { %5326 = vmatpush1.bf16.msra.mxu0 %v5325_v33  ;;  %5582 = vmatpush1.bf16.msra.mxu1 %v5581_v34  ;;  %v1565_v33 = vld [vmem:[#allocation5 + $0x2d18] sm:$0xff]  ;;  %v1554_v34 = vld [vmem:[#allocation5 + $0x2cc0] sm:$0xff] }
 0x14a   :  { %5328 = vmatprep.subr.bf16.mxu0 %v5327_v35  ;;  %5584 = vmatprep.subr.bf16.mxu1 %v5583_v39  ;;  %v5603_v35 = vpack.c.bf16 %v1568_v28, %v1555_v27  ;;  %v1581_v39 = vld [vmem:[#allocation5 + $0x2d98] sm:$0xff]  ;;  %v5349_v41 = vpack.c.bf16 %v1565_v33, %v1552_v32  ;;  %v5605_v42 = vpack.c.bf16 %v1567_v36, %v1554_v34  ;;  %v1682_v28 = vld [vmem:[#allocation5 + $0x30c0] sm:$0xff]  ;;  %v1724_v36 = vld [vmem:[#allocation5 + $0x3210] sm:$0xff] }
 0x14b   :  { %v5367_v27 = vpack.c.bf16 %v1696_v22, %v1683_v21  ;;  %v1697_v32 = vld [vmem:[#allocation5 + $0x3138] sm:$0xff]  ;;  %v1722_v34 = vld [vmem:[#allocation5 + $0x3200] sm:$0xff]  ;;  %v120_v21 = vld [vmem:[#allocation2 + $0x30] sm:$0xff] }
 0x14c   :  { %v1709_v33 = vld [vmem:[#allocation5 + $0x3198] sm:$0xff] }
 0x14d   :  { %5330 = vmatpush1.bf16.msra.mxu0 %v5329_v45  ;;  %5586 = vmatpush1.bf16.msra.mxu1 %v5585_v46  ;;  %v1591_v45 = vld [vmem:[#allocation5 + $0x2de8] sm:$0xff]  ;;  %v1580_v46 = vld [vmem:[#allocation5 + $0x2d90] sm:$0xff] }
 0x14e   :  { %5332 = vmatprep.subr.bf16.mxu0 %v5331_v47  ;;  %5588 = vmatprep.subr.bf16.mxu1 %v5587_v51  ;;  %v5607_v47 = vpack.c.bf16 %v1594_v40, %v1581_v39  ;;  %v1607_v51 = vld [vmem:[#allocation5 + $0x2e68] sm:$0xff]  ;;  %v5353_v53 = vpack.c.bf16 %v1591_v45, %v1578_v44  ;;  %v5609_v54 = vpack.c.bf16 %v1593_v48, %v1580_v46  ;;  %v1708_v40 = vld [vmem:[#allocation5 + $0x3190] sm:$0xff]  ;;  %v1750_v48 = vld [vmem:[#allocation5 + $0x32e0] sm:$0xff] }
 0x14f   :  { %v5371_v39 = vpack.c.bf16 %v1722_v34, %v1709_v33  ;;  %v1723_v44 = vld [vmem:[#allocation5 + $0x3208] sm:$0xff]  ;;  %v1748_v46 = vld [vmem:[#allocation5 + $0x32d0] sm:$0xff]  ;;  %v194_v33 = vld [vmem:[#allocation5 + $0x240] sm:$0xff] }
 0x150   :  { %v1735_v45 = vld [vmem:[#allocation5 + $0x3268] sm:$0xff] }
 0x151   :  { %5334 = vmatpush1.bf16.msra.mxu0 %v5333_v57  ;;  %5590 = vmatpush1.bf16.msra.mxu1 %v5589_v58  ;;  %v1617_v57 = vld [vmem:[#allocation5 + $0x2eb8] sm:$0xff]  ;;  %v1606_v58 = vld [vmem:[#allocation5 + $0x2e60] sm:$0xff] }
 0x152   :  { %5336 = vmatprep.subr.bf16.mxu0 %v5335_v59  ;;  %5592 = vmatprep.subr.bf16.mxu1 %v5591_v63  ;;  %v5611_v59 = vpack.c.bf16 %v1620_v52, %v1607_v51  ;;  %v1633_v63 = vld [vmem:[#allocation5 + $0x2f38] sm:$0xff]  ;;  %v5357_v1 = vpack.c.bf16 %v1617_v57, %v1604_v56  ;;  %v5613_v2 = vpack.c.bf16 %v1619_v60, %v1606_v58  ;;  %v1734_v52 = vld [vmem:[#allocation5 + $0x3260] sm:$0xff]  ;;  %v1776_v60 = vld [vmem:[#allocation5 + $0x33b0] sm:$0xff] }
 0x153   :  { %v5375_v51 = vpack.c.bf16 %v1748_v46, %v1735_v45  ;;  %v1749_v56 = vld [vmem:[#allocation5 + $0x32d8] sm:$0xff]  ;;  %v1774_v58 = vld [vmem:[#allocation5 + $0x33a0] sm:$0xff]  ;;  %v207_v45 = vld [vmem:[#allocation5 + $0x2a8] sm:$0xff] }
 0x154   :  { %v1761_v57 = vld [vmem:[#allocation5 + $0x3338] sm:$0xff]  ;;  %v220_v46 = vld [vmem:[#allocation5 + $0x310] sm:$0xff] }
 0x155   :  { %5338 = vmatpush1.bf16.msra.mxu0 %v5337_v5  ;;  %5594 = vmatpush1.bf16.msra.mxu1 %v5593_v6  ;;  %v1643_v5 = vld [vmem:[#allocation5 + $0x2f88] sm:$0xff]  ;;  %v1632_v6 = vld [vmem:[#allocation5 + $0x2f30] sm:$0xff] }
 0x156   :  { %5340 = vmatprep.subr.bf16.mxu0 %v5339_v7  ;;  %5596 = vmatprep.subr.bf16.mxu1 %v5595_v11  ;;  %v5615_v7 = vpack.c.bf16 %v1646_v0, %v1633_v63  ;;  %v1659_v11 = vld [vmem:[#allocation5 + $0x3008] sm:$0xff]  ;;  %v5361_v13 = vpack.c.bf16 %v1643_v5, %v1630_v4  ;;  %v5617_v14 = vpack.c.bf16 %v1645_v8, %v1632_v6  ;;  %v1760_v0 = vld [vmem:[#allocation5 + $0x3330] sm:$0xff]  ;;  %v142_v8 = vld [vmem:[#allocation5 + $0xa0] sm:$0xff] }
 0x157   :  { %v5379_v63 = vpack.c.bf16 %v1774_v58, %v1761_v57  ;;  %v1775_v4 = vld [vmem:[#allocation5 + $0x33a8] sm:$0xff]  ;;  %v140_v6 = vld [vmem:[#allocation5 + $0x90] sm:$0xff]  ;;  %v233_v57 = vld [vmem:[#allocation5 + $0x378] sm:$0xff] }
 0x158   :  { %v127_v5 = vld [vmem:[#allocation5 + $0x28] sm:$0xff]  ;;  %v246_v58 = vld [vmem:[#allocation5 + $0x3e0] sm:$0xff] }
 0x159   :  { %5342 = vmatpush1.bf16.msra.mxu0 %v5341_v17  ;;  %5598 = vmatpush1.bf16.msra.mxu1 %v5597_v18  ;;  %v1669_v17 = vld [vmem:[#allocation5 + $0x3058] sm:$0xff]  ;;  %v1658_v18 = vld [vmem:[#allocation5 + $0x3000] sm:$0xff] }
 0x15a   :  { %5344 = vmatprep.subr.bf16.mxu0 %v5343_v19  ;;  %5600 = vmatprep.subr.bf16.mxu1 %v5599_v23  ;;  %v5619_v19 = vpack.c.bf16 %v1672_v12, %v1659_v11  ;;  %v1685_v23 = vld [vmem:[#allocation5 + $0x30d8] sm:$0xff]  ;;  %v5365_v25 = vpack.c.bf16 %v1669_v17, %v1656_v16  ;;  %v5621_v26 = vpack.c.bf16 %v1671_v20, %v1658_v18  ;;  %v126_v12 = vld [vmem:[#allocation5 + $0x20] sm:$0xff]  ;;  %v168_v20 = vld [vmem:[#allocation5 + $0x170] sm:$0xff] }
 0x15b   :  { %v5639_v11 = vpack.c.bf16 %v140_v6, %v127_v5  ;;  %v141_v16 = vld [vmem:[#allocation5 + $0x98] sm:$0xff]  ;;  %v166_v18 = vld [vmem:[#allocation5 + $0x160] sm:$0xff]  ;;  %v259_v5 = vld [vmem:[#allocation5 + $0x448] sm:$0xff] }
 0x15c   :  { %v153_v17 = vld [vmem:[#allocation5 + $0xf8] sm:$0xff]  ;;  %v272_v6 = vld [vmem:[#allocation5 + $0x4b0] sm:$0xff] }
 0x15d   :  { %5346 = vmatpush1.bf16.msra.mxu0 %v5345_v29  ;;  %5602 = vmatpush1.bf16.msra.mxu1 %v5601_v30  ;;  %v1695_v29 = vld [vmem:[#allocation5 + $0x3128] sm:$0xff]  ;;  %v1684_v30 = vld [vmem:[#allocation5 + $0x30d0] sm:$0xff] }
 0x15e   :  { %5348 = vmatprep.subr.bf16.mxu0 %v5347_v31  ;;  %5604 = vmatprep.subr.bf16.mxu1 %v5603_v35  ;;  %v5623_v31 = vpack.c.bf16 %v1698_v24, %v1685_v23  ;;  %v1711_v35 = vld [vmem:[#allocation5 + $0x31a8] sm:$0xff]  ;;  %v5369_v37 = vpack.c.bf16 %v1695_v29, %v1682_v28  ;;  %v5625_v38 = vpack.c.bf16 %v1697_v32, %v1684_v30  ;;  %v181_v32 = vld [vmem:[#allocation5 + $0x1d8] sm:$0xff] }
 0x15f   :  { %v5643_v24 = vpack.c.bf16 %v166_v18, %v153_v17  ;;  %v167_v29 = vld [vmem:[#allocation5 + $0x168] sm:$0xff]  ;;  %v285_v17 = vld [vmem:[#allocation5 + $0x518] sm:$0xff]  ;;  %v298_v18 = vld [vmem:[#allocation5 + $0x580] sm:$0xff] }
 0x160   :  { %v179_v30 = vld [vmem:[#allocation5 + $0x1c8] sm:$0xff] }
 0x161   :  { %5350 = vmatpush1.bf16.msra.mxu0 %v5349_v41  ;;  %5606 = vmatpush1.bf16.msra.mxu1 %v5605_v42  ;;  %v1721_v41 = vld [vmem:[#allocation5 + $0x31f8] sm:$0xff]  ;;  %v1710_v42 = vld [vmem:[#allocation5 + $0x31a0] sm:$0xff] }
 0x162   :  { %5352 = vmatprep.subr.bf16.mxu0 %v5351_v43  ;;  %5608 = vmatprep.subr.bf16.mxu1 %v5607_v47  ;;  %v5627_v43 = vpack.c.bf16 %v1724_v36, %v1711_v35  ;;  %v1737_v47 = vld [vmem:[#allocation5 + $0x3278] sm:$0xff]  ;;  %v5373_v49 = vpack.c.bf16 %v1721_v41, %v1708_v40  ;;  %v5629_v50 = vpack.c.bf16 %v1723_v44, %v1710_v42  ;;  %v7094_v44 = vld [vmem:[#allocation2 + $0x8] sm:$0xff] }
 0x163   :  { %v5903_v40 = vpack.c.bf16 %v194_v33, %v181_v32  ;;  %v193_v41 = vld [vmem:[#allocation5 + $0x238] sm:$0xff] }
 0x164   :  { %v205_v42 = vld [vmem:[#allocation5 + $0x298] sm:$0xff] }
 0x165   :  { %5354 = vmatpush1.bf16.msra.mxu0 %v5353_v53  ;;  %5610 = vmatpush1.bf16.msra.mxu1 %v5609_v54  ;;  %v1747_v53 = vld [vmem:[#allocation5 + $0x32c8] sm:$0xff]  ;;  %v1736_v54 = vld [vmem:[#allocation5 + $0x3270] sm:$0xff] }
 0x166   :  { %5356 = vmatprep.subr.bf16.mxu0 %v5355_v55  ;;  %5612 = vmatprep.subr.bf16.mxu1 %v5611_v59  ;;  %v5631_v55 = vpack.c.bf16 %v1750_v48, %v1737_v47  ;;  %v1763_v59 = vld [vmem:[#allocation5 + $0x3348] sm:$0xff]  ;;  %v5377_v61 = vpack.c.bf16 %v1747_v53, %v1734_v52  ;;  %v5633_v62 = vpack.c.bf16 %v1749_v56, %v1736_v54  ;;  %v206_v52 = vld [vmem:[#allocation5 + $0x2a0] sm:$0xff]  ;;  %v244_v56 = vld [vmem:[#allocation5 + $0x3d0] sm:$0xff] }
 0x167   :  { %v5907_v53 = vpack.c.bf16 %v220_v46, %v207_v45  ;;  %v219_v54 = vld [vmem:[#allocation5 + $0x308] sm:$0xff]  ;;  %v334_v46 = vld [vmem:[#allocation5 + $0x6a0] sm:$0xff] }
 0x169   :  { %5358 = vmatpush1.bf16.msra.mxu0 %v5357_v1  ;;  %5614 = vmatpush1.bf16.msra.mxu1 %v5613_v2  ;;  %v1773_v1 = vld [vmem:[#allocation5 + $0x3398] sm:$0xff]  ;;  %v1762_v2 = vld [vmem:[#allocation5 + $0x3340] sm:$0xff] }
 0x16a   :  { %5360 = vmatprep.subr.bf16.mxu0 %v5359_v3  ;;  %5616 = vmatprep.subr.bf16.mxu1 %v5615_v7  ;;  %v5635_v3 = vpack.c.bf16 %v1776_v60, %v1763_v59  ;;  %v129_v7 = vld [vmem:[#allocation5 + $0x38] sm:$0xff]  ;;  %v5381_v9 = vpack.c.bf16 %v1773_v1, %v1760_v0  ;;  %v5637_v10 = vpack.c.bf16 %v1775_v4, %v1762_v2  ;;  %v232_v0 = vld [vmem:[#allocation5 + $0x370] sm:$0xff]  ;;  %v270_v4 = vld [vmem:[#allocation5 + $0x4a0] sm:$0xff] }
 0x16b   :  { %v5909_v60 = vpack.c.bf16 %v219_v54, %v206_v52  ;;  %v5911_v1 = vpack.c.bf16 %v246_v58, %v233_v57  ;;  %v245_v2 = vld [vmem:[#allocation5 + $0x3d8] sm:$0xff]  ;;  %v374_v52 = vld [vmem:[#allocation5 + $0x7e0] sm:$0xff]  ;;  %v376_v54 = vld [vmem:[#allocation5 + $0x7f0] sm:$0xff] }
 0x16c   :  { %v360_v58 = vld [vmem:[#allocation5 + $0x770] sm:$0xff] }
 0x16d   :  { %5362 = vmatpush1.bf16.msra.mxu0 %v5361_v13  ;;  %5618 = vmatpush1.bf16.msra.mxu1 %v5617_v14  ;;  %v139_v13 = vld [vmem:[#allocation5 + $0x88] sm:$0xff]  ;;  %v128_v14 = vld [vmem:[#allocation5 + $0x30] sm:$0xff] }
 0x16e   :  { %5364 = vmatprep.subr.bf16.mxu0 %v5363_v15  ;;  %5620 = vmatprep.subr.bf16.mxu1 %v5619_v19  ;;  %v5895_v15 = vpack.c.bf16 %v142_v8, %v129_v7  ;;  %v155_v19 = vld [vmem:[#allocation5 + $0x108] sm:$0xff]  ;;  %v5641_v22 = vpack.c.bf16 %v139_v13, %v126_v12  ;;  %v5897_v23 = vpack.c.bf16 %v141_v16, %v128_v14  ;;  %v258_v12 = vld [vmem:[#allocation5 + $0x440] sm:$0xff]  ;;  %v296_v16 = vld [vmem:[#allocation5 + $0x570] sm:$0xff] }
 0x16f   :  { %v5899_v28 = vpack.c.bf16 %v168_v20, %v155_v19  ;;  %v5913_v8 = vpack.c.bf16 %v245_v2, %v232_v0  ;;  %v5915_v13 = vpack.c.bf16 %v272_v6, %v259_v5  ;;  %v271_v14 = vld [vmem:[#allocation5 + $0x4a8] sm:$0xff]  ;;  %v400_v0 = vld [vmem:[#allocation5 + $0x8b0] sm:$0xff]  ;;  %v402_v2 = vld [vmem:[#allocation5 + $0x8c0] sm:$0xff] }
 0x170   :  { %v5917_v20 = vpack.c.bf16 %v271_v14, %v258_v12  ;;  %v386_v6 = vld [vmem:[#allocation5 + $0x840] sm:$0xff]  ;;  %v428_v14 = vld [vmem:[#allocation5 + $0x990] sm:$0xff] }
 0x171   :  { %5366 = vmatpush1.bf16.msra.mxu0 %v5365_v25  ;;  %5622 = vmatpush1.bf16.msra.mxu1 %v5621_v26  ;;  %v152_v25 = vld [vmem:[#allocation5 + $0xf0] sm:$0xff]  ;;  %v165_v26 = vld [vmem:[#allocation5 + $0x158] sm:$0xff]  ;;  %v426_v12 = vld [vmem:[#allocation5 + $0x980] sm:$0xff] }
 0x172   :  { %5368 = vmatprep.subr.bf16.mxu0 %v5367_v27  ;;  %5624 = vmatprep.subr.bf16.mxu1 %v5623_v31  ;;  %v154_v27 = vld [vmem:[#allocation5 + $0x100] sm:$0xff]  ;;  %v192_v31 = vld [vmem:[#allocation5 + $0x230] sm:$0xff]  ;;  %v5645_v34 = vpack.c.bf16 %v165_v26, %v152_v25  ;;  %v5919_v25 = vpack.c.bf16 %v298_v18, %v285_v17  ;;  %v297_v26 = vld [vmem:[#allocation5 + $0x578] sm:$0xff] }
 0x173   :  { %v5901_v35 = vpack.c.bf16 %v167_v29, %v154_v27  ;;  %v5647_v36 = vpack.c.bf16 %v192_v31, %v179_v30  ;;  %v309_v27 = vld [vmem:[#allocation5 + $0x5d8] sm:$0xff]  ;;  %v311_v29 = vld [vmem:[#allocation5 + $0x5e8] sm:$0xff]  ;;  %v324_v30 = vld [vmem:[#allocation5 + $0x650] sm:$0xff] }
 0x174   :  { %v412_v18 = vld [vmem:[#allocation5 + $0x910] sm:$0xff] }
 0x175   :  { %5370 = vmatpush1.bf16.msra.mxu0 %v5369_v37  ;;  %5626 = vmatpush1.bf16.msra.mxu1 %v5625_v38  ;;  %v178_v37 = vld [vmem:[#allocation5 + $0x1c0] sm:$0xff]  ;;  %v191_v38 = vld [vmem:[#allocation5 + $0x228] sm:$0xff] }
 0x176   :  { %5372 = vmatprep.subr.bf16.mxu0 %v5371_v39  ;;  %5628 = vmatprep.subr.bf16.mxu1 %v5627_v43  ;;  %v180_v39 = vld [vmem:[#allocation5 + $0x1d0] sm:$0xff]  ;;  %v218_v43 = vld [vmem:[#allocation5 + $0x300] sm:$0xff]  ;;  %v5649_v47 = vpack.c.bf16 %v191_v38, %v178_v37  ;;  %v5923_v37 = vpack.c.bf16 %v324_v30, %v311_v29  ;;  %v323_v38 = vld [vmem:[#allocation5 + $0x648] sm:$0xff] }
 0x177   :  { %v5905_v48 = vpack.c.bf16 %v193_v41, %v180_v39  ;;  %v335_v39 = vld [vmem:[#allocation5 + $0x6a8] sm:$0xff]  ;;  %v337_v41 = vld [vmem:[#allocation5 + $0x6b8] sm:$0xff]  ;;  %v438_v30 = vld [vmem:[#allocation5 + $0x9e0] sm:$0xff] }
 0x179   :  { %5374 = vmatpush1.bf16.msra.mxu0 %v5373_v49  ;;  %5630 = vmatpush1.bf16.msra.mxu1 %v5629_v50  ;;  %v5651_v49 = vpack.c.bf16 %v218_v43, %v205_v42  ;;  %v204_v50 = vld [vmem:[#allocation5 + $0x290] sm:$0xff]  ;;  %v350_v42 = vld [vmem:[#allocation5 + $0x720] sm:$0xff] }
 0x17a   :  { %5376 = vmatprep.subr.bf16.mxu0 %v5375_v51  ;;  %5632 = vmatprep.subr.bf16.mxu1 %v5631_v55  ;;  %v217_v51 = vld [vmem:[#allocation5 + $0x2f8] sm:$0xff]  ;;  %v231_v55 = vld [vmem:[#allocation5 + $0x368] sm:$0xff] }
 0x17b   :  { %v5653_v59 = vpack.c.bf16 %v217_v51, %v204_v50  ;;  %v349_v50 = vld [vmem:[#allocation5 + $0x718] sm:$0xff] }
 0x17c   :  { %v361_v51 = vld [vmem:[#allocation5 + $0x778] sm:$0xff] }
 0x17d   :  { %5378 = vmatpush1.bf16.msra.mxu0 %v5377_v61  ;;  %5634 = vmatpush1.bf16.msra.mxu1 %v5633_v62  ;;  %v5655_v61 = vpack.c.bf16 %v244_v56, %v231_v55  ;;  %v230_v62 = vld [vmem:[#allocation5 + $0x360] sm:$0xff]  ;;  %v5675_v57 = vpack.c.bf16 %v374_v52, %v361_v51 }
 0x17e   :  { %5380 = vmatprep.subr.bf16.mxu0 %v5379_v63  ;;  %5636 = vmatprep.subr.bf16.mxu1 %v5635_v3  ;;  %v243_v63 = vld [vmem:[#allocation5 + $0x3c8] sm:$0xff]  ;;  %v257_v3 = vld [vmem:[#allocation5 + $0x438] sm:$0xff] }
 0x17f   :  { %v5657_v7 = vpack.c.bf16 %v243_v63, %v230_v62  ;;  %v375_v62 = vld [vmem:[#allocation5 + $0x7e8] sm:$0xff] }
 0x180   :  { %v387_v63 = vld [vmem:[#allocation5 + $0x848] sm:$0xff] }
 0x181   :  { %5382 = vmatpush1.bf16.msra.mxu0 %v5381_v9  ;;  %5638 = vmatpush1.bf16.msra.mxu1 %v5637_v10  ;;  %v5659_v9 = vpack.c.bf16 %v270_v4, %v257_v3  ;;  %v256_v10 = vld [vmem:[#allocation5 + $0x430] sm:$0xff]  ;;  %v5679_v5 = vpack.c.bf16 %v400_v0, %v387_v63 }
 0x182   :  { %5640 = vmatprep.subr.bf16.mxu0 %v5639_v11  ;;  %5896 = vmatprep.subr.bf16.mxu1 %v5895_v15  ;;  %v269_v11 = vld [vmem:[#allocation5 + $0x498] sm:$0xff]  ;;  %v283_v15 = vld [vmem:[#allocation5 + $0x508] sm:$0xff] }
 0x183   :  { %v5661_v19 = vpack.c.bf16 %v269_v11, %v256_v10  ;;  %v401_v10 = vld [vmem:[#allocation5 + $0x8b8] sm:$0xff] }
 0x184   :  { %2133 = vmatmul.mubr.f32.vlgmr.msra.gmra.mrb[0].mxu0 %v120_v21  ;;  %2417 = vmatmul.mubr.f32.vlgmr.msra.gmra.mrb[0].mxu1 %v120_v21  ;;  %v5663_v21 = vpack.c.bf16 %v296_v16, %v283_v15  ;;  %v413_v11 = vld [vmem:[#allocation5 + $0x918] sm:$0xff] }
 0x185   :  { %5642 = vmatpush1.bf16.msra.mxu0 %v5641_v22  ;;  %5898 = vmatpush1.bf16.msra.mxu1 %v5897_v23  ;;  %v282_v22 = vld [vmem:[#allocation5 + $0x500] sm:$0xff]  ;;  %v295_v23 = vld [vmem:[#allocation5 + $0x568] sm:$0xff]  ;;  %v5683_v17 = vpack.c.bf16 %v426_v12, %v413_v11 }
 0x186   :  { %5644 = vmatprep.subr.bf16.mxu0 %v5643_v24  ;;  %5900 = vmatprep.subr.bf16.mxu1 %v5899_v28  ;;  %v284_v24 = vld [vmem:[#allocation5 + $0x510] sm:$0xff]  ;;  %v322_v28 = vld [vmem:[#allocation5 + $0x640] sm:$0xff]  ;;  %v5665_v31 = vpack.c.bf16 %v295_v23, %v282_v22  ;;  %v427_v22 = vld [vmem:[#allocation5 + $0x988] sm:$0xff] }
 0x187   :  { %2487 = vmatprep.mubr.f32.mxu0 %v7094_v44  ;;  %2771 = vmatprep.mubr.f32.mxu1 %v7094_v44  ;;  %v5921_v32 = vpack.c.bf16 %v297_v26, %v284_v24  ;;  %v5667_v33 = vpack.c.bf16 %v322_v28, %v309_v27  ;;  %v439_v23 = vld [vmem:[#allocation5 + $0x9e8] sm:$0xff]  ;;  %v452_v24 = vld [vmem:[#allocation5 + $0xa50] sm:$0xff]  ;;  %v454_v26 = vld [vmem:[#allocation5 + $0xa60] sm:$0xff] }
 0x188   :  { %v5687_v29 = vpack.c.bf16 %v452_v24, %v439_v23 }
 0x189   :  { %5646 = vmatpush1.bf16.msra.mxu0 %v5645_v34  ;;  %5902 = vmatpush1.bf16.msra.mxu1 %v5901_v35  ;;  %v308_v34 = vld [vmem:[#allocation5 + $0x5d0] sm:$0xff]  ;;  %v321_v35 = vld [vmem:[#allocation5 + $0x638] sm:$0xff] }
 0x18a   :  { %5648 = vmatprep.subr.bf16.mxu0 %v5647_v36  ;;  %5904 = vmatprep.subr.bf16.mxu1 %v5903_v40  ;;  %v310_v36 = vld [vmem:[#allocation5 + $0x5e0] sm:$0xff]  ;;  %v348_v40 = vld [vmem:[#allocation5 + $0x710] sm:$0xff]  ;;  %v5669_v43 = vpack.c.bf16 %v321_v35, %v308_v34  ;;  %v453_v34 = vld [vmem:[#allocation5 + $0xa58] sm:$0xff] }
 0x18b   :  { %v5925_v44 = vpack.c.bf16 %v323_v38, %v310_v36  ;;  %v5671_v45 = vpack.c.bf16 %v348_v40, %v335_v39  ;;  %v465_v35 = vld [vmem:[#allocation5 + $0xab8] sm:$0xff]  ;;  %v478_v36 = vld [vmem:[#allocation5 + $0xb20] sm:$0xff]  ;;  %v480_v38 = vld [vmem:[#allocation5 + $0xb30] sm:$0xff] }
 0x18d   :  { %5650 = vmatpush1.bf16.msra.mxu0 %v5649_v47  ;;  %5906 = vmatpush1.bf16.msra.mxu1 %v5905_v48  ;;  %v347_v47 = vld [vmem:[#allocation5 + $0x708] sm:$0xff]  ;;  %v336_v48 = vld [vmem:[#allocation5 + $0x6b0] sm:$0xff] }
 0x18e   :  { %5652 = vmatprep.subr.bf16.mxu0 %v5651_v49  ;;  %5908 = vmatprep.subr.bf16.mxu1 %v5907_v53  ;;  %v5927_v49 = vpack.c.bf16 %v350_v42, %v337_v41  ;;  %v363_v53 = vld [vmem:[#allocation5 + $0x788] sm:$0xff]  ;;  %v5673_v55 = vpack.c.bf16 %v347_v47, %v334_v46  ;;  %v5929_v56 = vpack.c.bf16 %v349_v50, %v336_v48  ;;  %v464_v42 = vld [vmem:[#allocation5 + $0xab0] sm:$0xff]  ;;  %v506_v50 = vld [vmem:[#allocation5 + $0xc00] sm:$0xff] }
 0x18f   :  { %v5691_v41 = vpack.c.bf16 %v478_v36, %v465_v35  ;;  %v479_v46 = vld [vmem:[#allocation5 + $0xb28] sm:$0xff]  ;;  %v504_v48 = vld [vmem:[#allocation5 + $0xbf0] sm:$0xff]  ;;  %v610_v35 = vld [vmem:[#allocation5 + $0xf40] sm:$0xff] }
 0x190   :  { %v491_v47 = vld [vmem:[#allocation5 + $0xb88] sm:$0xff] }
 0x191   :  { %5654 = vmatpush1.bf16.msra.mxu0 %v5653_v59  ;;  %5910 = vmatpush1.bf16.msra.mxu1 %v5909_v60  ;;  %v373_v59 = vld [vmem:[#allocation5 + $0x7d8] sm:$0xff]  ;;  %v362_v60 = vld [vmem:[#allocation5 + $0x780] sm:$0xff] }
 0x192   :  { %5656 = vmatprep.subr.bf16.mxu0 %v5655_v61  ;;  %5912 = vmatprep.subr.bf16.mxu1 %v5911_v1  ;;  %v5931_v61 = vpack.c.bf16 %v376_v54, %v363_v53  ;;  %v389_v1 = vld [vmem:[#allocation5 + $0x858] sm:$0xff]  ;;  %v5677_v3 = vpack.c.bf16 %v373_v59, %v360_v58  ;;  %v5933_v4 = vpack.c.bf16 %v375_v62, %v362_v60  ;;  %v490_v54 = vld [vmem:[#allocation5 + $0xb80] sm:$0xff]  ;;  %v532_v62 = vld [vmem:[#allocation5 + $0xcd0] sm:$0xff] }
 0x193   :  { %v5695_v53 = vpack.c.bf16 %v504_v48, %v491_v47  ;;  %v505_v58 = vld [vmem:[#allocation5 + $0xbf8] sm:$0xff]  ;;  %v530_v60 = vld [vmem:[#allocation5 + $0xcc0] sm:$0xff]  ;;  %v623_v47 = vld [vmem:[#allocation5 + $0xfa8] sm:$0xff] }
 0x194   :  { %v517_v59 = vld [vmem:[#allocation5 + $0xc58] sm:$0xff]  ;;  %v636_v48 = vld [vmem:[#allocation5 + $0x1010] sm:$0xff] }
 0x195   :  { %5658 = vmatpush1.bf16.msra.mxu0 %v5657_v7  ;;  %5914 = vmatpush1.bf16.msra.mxu1 %v5913_v8  ;;  %v399_v7 = vld [vmem:[#allocation5 + $0x8a8] sm:$0xff]  ;;  %v388_v8 = vld [vmem:[#allocation5 + $0x850] sm:$0xff] }
 0x196   :  { %5660 = vmatprep.subr.bf16.mxu0 %v5659_v9  ;;  %5916 = vmatprep.subr.bf16.mxu1 %v5915_v13  ;;  %v5935_v9 = vpack.c.bf16 %v402_v2, %v389_v1  ;;  %v415_v13 = vld [vmem:[#allocation5 + $0x928] sm:$0xff]  ;;  %v5681_v15 = vpack.c.bf16 %v399_v7, %v386_v6  ;;  %v5937_v16 = vpack.c.bf16 %v401_v10, %v388_v8  ;;  %v516_v2 = vld [vmem:[#allocation5 + $0xc50] sm:$0xff]  ;;  %v558_v10 = vld [vmem:[#allocation5 + $0xda0] sm:$0xff] }
 0x197   :  { %v5699_v1 = vpack.c.bf16 %v530_v60, %v517_v59  ;;  %v531_v6 = vld [vmem:[#allocation5 + $0xcc8] sm:$0xff]  ;;  %v556_v8 = vld [vmem:[#allocation5 + $0xd90] sm:$0xff]  ;;  %v649_v59 = vld [vmem:[#allocation5 + $0x1078] sm:$0xff] }
 0x198   :  { %v543_v7 = vld [vmem:[#allocation5 + $0xd28] sm:$0xff]  ;;  %v662_v60 = vld [vmem:[#allocation5 + $0x10e0] sm:$0xff] }
 0x199   :  { %5662 = vmatpush1.bf16.msra.mxu0 %v5661_v19  ;;  %5918 = vmatpush1.bf16.msra.mxu1 %v5917_v20  ;;  %v425_v19 = vld [vmem:[#allocation5 + $0x978] sm:$0xff]  ;;  %v414_v20 = vld [vmem:[#allocation5 + $0x920] sm:$0xff] }
 0x19a   :  { %5664 = vmatprep.subr.bf16.mxu0 %v5663_v21  ;;  %5920 = vmatprep.subr.bf16.mxu1 %v5919_v25  ;;  %v5939_v21 = vpack.c.bf16 %v428_v14, %v415_v13  ;;  %v441_v25 = vld [vmem:[#allocation5 + $0x9f8] sm:$0xff]  ;;  %v5685_v27 = vpack.c.bf16 %v425_v19, %v412_v18  ;;  %v5941_v28 = vpack.c.bf16 %v427_v22, %v414_v20  ;;  %v542_v14 = vld [vmem:[#allocation5 + $0xd20] sm:$0xff]  ;;  %v584_v22 = vld [vmem:[#allocation5 + $0xe70] sm:$0xff] }
 0x19b   :  { %v5703_v13 = vpack.c.bf16 %v556_v8, %v543_v7  ;;  %v557_v18 = vld [vmem:[#allocation5 + $0xd98] sm:$0xff]  ;;  %v582_v20 = vld [vmem:[#allocation5 + $0xe60] sm:$0xff]  ;;  %v675_v7 = vld [vmem:[#allocation5 + $0x1148] sm:$0xff] }
 0x19c   :  { %v569_v19 = vld [vmem:[#allocation5 + $0xdf8] sm:$0xff]  ;;  %v688_v8 = vld [vmem:[#allocation5 + $0x11b0] sm:$0xff] }
 0x19d   :  { %5666 = vmatpush1.bf16.msra.mxu0 %v5665_v31  ;;  %5922 = vmatpush1.bf16.msra.mxu1 %v5921_v32  ;;  %v451_v31 = vld [vmem:[#allocation5 + $0xa48] sm:$0xff]  ;;  %v440_v32 = vld [vmem:[#allocation5 + $0x9f0] sm:$0xff] }
 0x19e   :  { %5668 = vmatprep.subr.bf16.mxu0 %v5667_v33  ;;  %5924 = vmatprep.subr.bf16.mxu1 %v5923_v37  ;;  %v5943_v33 = vpack.c.bf16 %v454_v26, %v441_v25  ;;  %v467_v37 = vld [vmem:[#allocation5 + $0xac8] sm:$0xff]  ;;  %v5689_v39 = vpack.c.bf16 %v451_v31, %v438_v30  ;;  %v5945_v40 = vpack.c.bf16 %v453_v34, %v440_v32  ;;  %v568_v26 = vld [vmem:[#allocation5 + $0xdf0] sm:$0xff]  ;;  %v597_v34 = vld [vmem:[#allocation5 + $0xed8] sm:$0xff] }
 0x19f   :  { %v5707_v25 = vpack.c.bf16 %v582_v20, %v569_v19  ;;  %v583_v30 = vld [vmem:[#allocation5 + $0xe68] sm:$0xff]  ;;  %v608_v32 = vld [vmem:[#allocation5 + $0xf30] sm:$0xff]  ;;  %v701_v19 = vld [vmem:[#allocation5 + $0x1218] sm:$0xff] }
 0x1a0   :  { %v595_v31 = vld [vmem:[#allocation5 + $0xec8] sm:$0xff]  ;;  %v714_v20 = vld [vmem:[#allocation5 + $0x1280] sm:$0xff] }
 0x1a1   :  { %5670 = vmatpush1.bf16.msra.mxu0 %v5669_v43  ;;  %5926 = vmatpush1.bf16.msra.mxu1 %v5925_v44  ;;  %v477_v43 = vld [vmem:[#allocation5 + $0xb18] sm:$0xff]  ;;  %v466_v44 = vld [vmem:[#allocation5 + $0xac0] sm:$0xff] }
 0x1a2   :  { %5672 = vmatprep.subr.bf16.mxu0 %v5671_v45  ;;  %5928 = vmatprep.subr.bf16.mxu1 %v5927_v49  ;;  %v5947_v45 = vpack.c.bf16 %v480_v38, %v467_v37  ;;  %v493_v49 = vld [vmem:[#allocation5 + $0xb98] sm:$0xff]  ;;  %v5693_v51 = vpack.c.bf16 %v477_v43, %v464_v42  ;;  %v5949_v52 = vpack.c.bf16 %v479_v46, %v466_v44 }
 0x1a3   :  { %v5711_v38 = vpack.c.bf16 %v608_v32, %v595_v31  ;;  %v5967_v42 = vpack.c.bf16 %v610_v35, %v597_v34  ;;  %v609_v43 = vld [vmem:[#allocation5 + $0xf38] sm:$0xff]  ;;  %v727_v31 = vld [vmem:[#allocation5 + $0x12e8] sm:$0xff]  ;;  %v740_v32 = vld [vmem:[#allocation5 + $0x1350] sm:$0xff] }
 0x1a4   :  { %v621_v44 = vld [vmem:[#allocation5 + $0xf98] sm:$0xff] }
 0x1a5   :  { %5674 = vmatpush1.bf16.msra.mxu0 %v5673_v55  ;;  %5930 = vmatpush1.bf16.msra.mxu1 %v5929_v56  ;;  %v503_v55 = vld [vmem:[#allocation5 + $0xbe8] sm:$0xff]  ;;  %v492_v56 = vld [vmem:[#allocation5 + $0xb90] sm:$0xff]  ;;  %v7096_v46 = vld [vmem:[#allocation2 + $0x18] sm:$0xff] }
 0x1a6   :  { %5676 = vmatprep.subr.bf16.mxu0 %v5675_v57  ;;  %5932 = vmatprep.subr.bf16.mxu1 %v5931_v61  ;;  %v5951_v57 = vpack.c.bf16 %v506_v50, %v493_v49  ;;  %v519_v61 = vld [vmem:[#allocation5 + $0xc68] sm:$0xff]  ;;  %v5697_v63 = vpack.c.bf16 %v503_v55, %v490_v54  ;;  %v5953_v0 = vpack.c.bf16 %v505_v58, %v492_v56  ;;  %v622_v54 = vld [vmem:[#allocation5 + $0xfa0] sm:$0xff]  ;;  %v660_v58 = vld [vmem:[#allocation5 + $0x10d0] sm:$0xff] }
 0x1a7   :  { %v5971_v55 = vpack.c.bf16 %v636_v48, %v623_v47  ;;  %v635_v56 = vld [vmem:[#allocation5 + $0x1008] sm:$0xff]  ;;  %v750_v48 = vld [vmem:[#allocation5 + $0x13a0] sm:$0xff] }
 0x1a9   :  { %5678 = vmatpush1.bf16.msra.mxu0 %v5677_v3  ;;  %5934 = vmatpush1.bf16.msra.mxu1 %v5933_v4  ;;  %v529_v3 = vld [vmem:[#allocation5 + $0xcb8] sm:$0xff]  ;;  %v518_v4 = vld [vmem:[#allocation5 + $0xc60] sm:$0xff] }
 0x1aa   :  { %5680 = vmatprep.subr.bf16.mxu0 %v5679_v5  ;;  %5936 = vmatprep.subr.bf16.mxu1 %v5935_v9  ;;  %v5955_v5 = vpack.c.bf16 %v532_v62, %v519_v61  ;;  %v545_v9 = vld [vmem:[#allocation5 + $0xd38] sm:$0xff]  ;;  %v5701_v11 = vpack.c.bf16 %v529_v3, %v516_v2  ;;  %v5957_v12 = vpack.c.bf16 %v531_v6, %v518_v4  ;;  %v648_v2 = vld [vmem:[#allocation5 + $0x1070] sm:$0xff]  ;;  %v686_v6 = vld [vmem:[#allocation5 + $0x11a0] sm:$0xff] }
 0x1ab   :  { %v5973_v62 = vpack.c.bf16 %v635_v56, %v622_v54  ;;  %v5975_v3 = vpack.c.bf16 %v662_v60, %v649_v59  ;;  %v661_v4 = vld [vmem:[#allocation5 + $0x10d8] sm:$0xff]  ;;  %v790_v54 = vld [vmem:[#allocation5 + $0x14e0] sm:$0xff]  ;;  %v792_v56 = vld [vmem:[#allocation5 + $0x14f0] sm:$0xff] }
 0x1ac   :  { %v776_v60 = vld [vmem:[#allocation5 + $0x1470] sm:$0xff] }
 0x1ad   :  { %5682 = vmatpush1.bf16.msra.mxu0 %v5681_v15  ;;  %5938 = vmatpush1.bf16.msra.mxu1 %v5937_v16  ;;  %v555_v15 = vld [vmem:[#allocation5 + $0xd88] sm:$0xff]  ;;  %v544_v16 = vld [vmem:[#allocation5 + $0xd30] sm:$0xff] }
 0x1ae   :  { %5684 = vmatprep.subr.bf16.mxu0 %v5683_v17  ;;  %5940 = vmatprep.subr.bf16.mxu1 %v5939_v21  ;;  %v5959_v17 = vpack.c.bf16 %v558_v10, %v545_v9  ;;  %v571_v21 = vld [vmem:[#allocation5 + $0xe08] sm:$0xff]  ;;  %v5705_v23 = vpack.c.bf16 %v555_v15, %v542_v14  ;;  %v5961_v24 = vpack.c.bf16 %v557_v18, %v544_v16  ;;  %v674_v14 = vld [vmem:[#allocation5 + $0x1140] sm:$0xff]  ;;  %v712_v18 = vld [vmem:[#allocation5 + $0x1270] sm:$0xff] }
 0x1af   :  { %v5977_v10 = vpack.c.bf16 %v661_v4, %v648_v2  ;;  %v5979_v15 = vpack.c.bf16 %v688_v8, %v675_v7  ;;  %v687_v16 = vld [vmem:[#allocation5 + $0x11a8] sm:$0xff]  ;;  %v816_v2 = vld [vmem:[#allocation5 + $0x15b0] sm:$0xff]  ;;  %v818_v4 = vld [vmem:[#allocation5 + $0x15c0] sm:$0xff] }
 0x1b0   :  { %v802_v8 = vld [vmem:[#allocation5 + $0x1540] sm:$0xff] }
 0x1b1   :  { %5686 = vmatpush1.bf16.msra.mxu0 %v5685_v27  ;;  %5942 = vmatpush1.bf16.msra.mxu1 %v5941_v28  ;;  %v581_v27 = vld [vmem:[#allocation5 + $0xe58] sm:$0xff]  ;;  %v570_v28 = vld [vmem:[#allocation5 + $0xe00] sm:$0xff] }
 0x1b2   :  { %5688 = vmatprep.subr.bf16.mxu0 %v5687_v29  ;;  %5944 = vmatprep.subr.bf16.mxu1 %v5943_v33  ;;  %v5963_v29 = vpack.c.bf16 %v584_v22, %v571_v21  ;;  %v7095_v33 = vld [vmem:[#allocation2] sm:$0xff]  ;;  %v5709_v36 = vpack.c.bf16 %v581_v27, %v568_v26  ;;  %v5965_v37 = vpack.c.bf16 %v583_v30, %v570_v28  ;;  %v700_v26 = vld [vmem:[#allocation5 + $0x1210] sm:$0xff]  ;;  %v713_v28 = vld [vmem:[#allocation5 + $0x1278] sm:$0xff] }
 0x1b3   :  { %v5981_v22 = vpack.c.bf16 %v687_v16, %v674_v14  ;;  %v5983_v27 = vpack.c.bf16 %v714_v20, %v701_v19  ;;  %v738_v30 = vld [vmem:[#allocation5 + $0x1340] sm:$0xff]  ;;  %v5985_v34 = vpack.c.bf16 %v713_v28, %v700_v26  ;;  %v844_v16 = vld [vmem:[#allocation5 + $0x1690] sm:$0xff] }
 0x1b4   :  { %v842_v14 = vld [vmem:[#allocation5 + $0x1680] sm:$0xff]  ;;  %v828_v20 = vld [vmem:[#allocation5 + $0x1610] sm:$0xff] }
 0x1b5   :  { %5690 = vmatpush1.bf16.msra.mxu0 %v5689_v39  ;;  %5946 = vmatpush1.bf16.msra.mxu1 %v5945_v40  ;;  %v594_v39 = vld [vmem:[#allocation5 + $0xec0] sm:$0xff]  ;;  %v607_v40 = vld [vmem:[#allocation5 + $0xf28] sm:$0xff]  ;;  %v868_v26 = vld [vmem:[#allocation5 + $0x1750] sm:$0xff] }
 0x1b6   :  { %5692 = vmatprep.subr.bf16.mxu0 %v5691_v41  ;;  %5948 = vmatprep.subr.bf16.mxu1 %v5947_v45  ;;  %v596_v41 = vld [vmem:[#allocation5 + $0xed0] sm:$0xff]  ;;  %v634_v45 = vld [vmem:[#allocation5 + $0x1000] sm:$0xff]  ;;  %v5713_v49 = vpack.c.bf16 %v607_v40, %v594_v39  ;;  %v5987_v39 = vpack.c.bf16 %v740_v32, %v727_v31  ;;  %v739_v40 = vld [vmem:[#allocation5 + $0x1348] sm:$0xff] }
 0x1b7   :  { %v5969_v50 = vpack.c.bf16 %v609_v43, %v596_v41  ;;  %v751_v41 = vld [vmem:[#allocation5 + $0x13a8] sm:$0xff]  ;;  %v753_v43 = vld [vmem:[#allocation5 + $0x13b8] sm:$0xff]  ;;  %v870_v28 = vld [vmem:[#allocation5 + $0x1760] sm:$0xff] }
 0x1b8   :  { %v854_v32 = vld [vmem:[#allocation5 + $0x16e0] sm:$0xff] }
 0x1b9   :  { %5694 = vmatpush1.bf16.msra.mxu0 %v5693_v51  ;;  %5950 = vmatpush1.bf16.msra.mxu1 %v5949_v52  ;;  %v5715_v51 = vpack.c.bf16 %v634_v45, %v621_v44  ;;  %v620_v52 = vld [vmem:[#allocation5 + $0xf90] sm:$0xff]  ;;  %v766_v44 = vld [vmem:[#allocation5 + $0x1420] sm:$0xff] }
 0x1ba   :  { %5696 = vmatprep.subr.bf16.mxu0 %v5695_v53  ;;  %5952 = vmatprep.subr.bf16.mxu1 %v5951_v57  ;;  %v633_v53 = vld [vmem:[#allocation5 + $0xff8] sm:$0xff]  ;;  %v647_v57 = vld [vmem:[#allocation5 + $0x1068] sm:$0xff] }
 0x1bb   :  { %v5717_v61 = vpack.c.bf16 %v633_v53, %v620_v52  ;;  %v765_v52 = vld [vmem:[#allocation5 + $0x1418] sm:$0xff] }
 0x1bc   :  { %v777_v53 = vld [vmem:[#allocation5 + $0x1478] sm:$0xff] }
 0x1bd   :  { %5698 = vmatpush1.bf16.msra.mxu0 %v5697_v63  ;;  %5954 = vmatpush1.bf16.msra.mxu1 %v5953_v0  ;;  %v5719_v63 = vpack.c.bf16 %v660_v58, %v647_v57  ;;  %v646_v0 = vld [vmem:[#allocation5 + $0x1060] sm:$0xff]  ;;  %v5739_v59 = vpack.c.bf16 %v790_v54, %v777_v53 }
 0x1be   :  { %5700 = vmatprep.subr.bf16.mxu0 %v5699_v1  ;;  %5956 = vmatprep.subr.bf16.mxu1 %v5955_v5  ;;  %v659_v1 = vld [vmem:[#allocation5 + $0x10c8] sm:$0xff]  ;;  %v673_v5 = vld [vmem:[#allocation5 + $0x1138] sm:$0xff] }
 0x1bf   :  { %v5721_v9 = vpack.c.bf16 %v659_v1, %v646_v0  ;;  %v791_v0 = vld [vmem:[#allocation5 + $0x14e8] sm:$0xff] }
 0x1c0   :  { %v803_v1 = vld [vmem:[#allocation5 + $0x1548] sm:$0xff] }
 0x1c1   :  { %5702 = vmatpush1.bf16.msra.mxu0 %v5701_v11  ;;  %5958 = vmatpush1.bf16.msra.mxu1 %v5957_v12  ;;  %v5723_v11 = vpack.c.bf16 %v686_v6, %v673_v5  ;;  %v672_v12 = vld [vmem:[#allocation5 + $0x1130] sm:$0xff]  ;;  %v5743_v7 = vpack.c.bf16 %v816_v2, %v803_v1 }
 0x1c2   :  { %5704 = vmatprep.subr.bf16.mxu0 %v5703_v13  ;;  %5960 = vmatprep.subr.bf16.mxu1 %v5959_v17  ;;  %v685_v13 = vld [vmem:[#allocation5 + $0x1198] sm:$0xff]  ;;  %v699_v17 = vld [vmem:[#allocation5 + $0x1208] sm:$0xff] }
 0x1c3   :  { %v5725_v21 = vpack.c.bf16 %v685_v13, %v672_v12  ;;  %v817_v12 = vld [vmem:[#allocation5 + $0x15b8] sm:$0xff] }
 0x1c4   :  { %2488 = vmatmul.mubr.f32.vlgmr.msra.gmra.mrb[2].mxu0 %v7095_v33  ;;  %2772 = vmatmul.mubr.f32.vlgmr.msra.gmra.mrb[2].mxu1 %v7095_v33  ;;  %v829_v13 = vld [vmem:[#allocation5 + $0x1618] sm:$0xff] }
 0x1c5   :  { %5706 = vmatpush1.bf16.msra.mxu0 %v5705_v23  ;;  %5962 = vmatpush1.bf16.msra.mxu1 %v5961_v24  ;;  %v5727_v23 = vpack.c.bf16 %v712_v18, %v699_v17  ;;  %v698_v24 = vld [vmem:[#allocation5 + $0x1200] sm:$0xff]  ;;  %v5747_v19 = vpack.c.bf16 %v842_v14, %v829_v13 }
 0x1c6   :  { %5708 = vmatprep.subr.bf16.mxu0 %v5707_v25  ;;  %5964 = vmatprep.subr.bf16.mxu1 %v5963_v29  ;;  %v711_v25 = vld [vmem:[#allocation5 + $0x1268] sm:$0xff]  ;;  %v725_v29 = vld [vmem:[#allocation5 + $0x12d8] sm:$0xff] }
 0x1c7   :  { %2558 = vmatprep.mubr.f32.mxu0 %v7096_v46  ;;  %2842 = vmatprep.mubr.f32.mxu1 %v7096_v46  ;;  %v5729_v33 = vpack.c.bf16 %v711_v25, %v698_v24  ;;  %v5731_v35 = vpack.c.bf16 %v738_v30, %v725_v29  ;;  %v843_v24 = vld [vmem:[#allocation5 + $0x1688] sm:$0xff] }
 0x1c8   :  { %v855_v25 = vld [vmem:[#allocation5 + $0x16e8] sm:$0xff] }
 0x1c9   :  { %5710 = vmatpush1.bf16.msra.mxu0 %v5709_v36  ;;  %5966 = vmatpush1.bf16.msra.mxu1 %v5965_v37  ;;  %v724_v36 = vld [vmem:[#allocation5 + $0x12d0] sm:$0xff]  ;;  %v737_v37 = vld [vmem:[#allocation5 + $0x1338] sm:$0xff]  ;;  %v5751_v31 = vpack.c.bf16 %v868_v26, %v855_v25 }
 0x1ca   :  { %5712 = vmatprep.subr.bf16.mxu0 %v5711_v38  ;;  %5968 = vmatprep.subr.bf16.mxu1 %v5967_v42  ;;  %v726_v38 = vld [vmem:[#allocation5 + $0x12e0] sm:$0xff]  ;;  %v764_v42 = vld [vmem:[#allocation5 + $0x1410] sm:$0xff]  ;;  %v5733_v45 = vpack.c.bf16 %v737_v37, %v724_v36  ;;  %v869_v36 = vld [vmem:[#allocation5 + $0x1758] sm:$0xff] }
 0x1cb   :  { %v5989_v46 = vpack.c.bf16 %v739_v40, %v726_v38  ;;  %v5735_v47 = vpack.c.bf16 %v764_v42, %v751_v41  ;;  %v881_v37 = vld [vmem:[#allocation5 + $0x17b8] sm:$0xff]  ;;  %v894_v38 = vld [vmem:[#allocation5 + $0x1820] sm:$0xff]  ;;  %v896_v40 = vld [vmem:[#allocation5 + $0x1830] sm:$0xff] }
 0x1cd   :  { %5714 = vmatpush1.bf16.msra.mxu0 %v5713_v49  ;;  %5970 = vmatpush1.bf16.msra.mxu1 %v5969_v50  ;;  %v763_v49 = vld [vmem:[#allocation5 + $0x1408] sm:$0xff]  ;;  %v752_v50 = vld [vmem:[#allocation5 + $0x13b0] sm:$0xff] }
 0x1ce   :  { %5716 = vmatprep.subr.bf16.mxu0 %v5715_v51  ;;  %5972 = vmatprep.subr.bf16.mxu1 %v5971_v55  ;;  %v5991_v51 = vpack.c.bf16 %v766_v44, %v753_v43  ;;  %v779_v55 = vld [vmem:[#allocation5 + $0x1488] sm:$0xff]  ;;  %v5737_v57 = vpack.c.bf16 %v763_v49, %v750_v48  ;;  %v5993_v58 = vpack.c.bf16 %v765_v52, %v752_v50  ;;  %v880_v44 = vld [vmem:[#allocation5 + $0x17b0] sm:$0xff]  ;;  %v922_v52 = vld [vmem:[#allocation5 + $0x1900] sm:$0xff] }
 0x1cf   :  { %v5755_v43 = vpack.c.bf16 %v894_v38, %v881_v37  ;;  %v895_v48 = vld [vmem:[#allocation5 + $0x1828] sm:$0xff]  ;;  %v920_v50 = vld [vmem:[#allocation5 + $0x18f0] sm:$0xff]  ;;  %v1026_v37 = vld [vmem:[#allocation5 + $0x1c40] sm:$0xff] }
 0x1d0   :  { %v907_v49 = vld [vmem:[#allocation5 + $0x1888] sm:$0xff] }
 0x1d1   :  { %5718 = vmatpush1.bf16.msra.mxu0 %v5717_v61  ;;  %5974 = vmatpush1.bf16.msra.mxu1 %v5973_v62  ;;  %v789_v61 = vld [vmem:[#allocation5 + $0x14d8] sm:$0xff]  ;;  %v778_v62 = vld [vmem:[#allocation5 + $0x1480] sm:$0xff] }
 0x1d2   :  { %5720 = vmatprep.subr.bf16.mxu0 %v5719_v63  ;;  %5976 = vmatprep.subr.bf16.mxu1 %v5975_v3  ;;  %v5995_v63 = vpack.c.bf16 %v792_v56, %v779_v55  ;;  %v805_v3 = vld [vmem:[#allocation5 + $0x1558] sm:$0xff]  ;;  %v5741_v5 = vpack.c.bf16 %v789_v61, %v776_v60  ;;  %v5997_v6 = vpack.c.bf16 %v791_v0, %v778_v62  ;;  %v906_v56 = vld [vmem:[#allocation5 + $0x1880] sm:$0xff]  ;;  %v948_v0 = vld [vmem:[#allocation5 + $0x19d0] sm:$0xff] }
 0x1d3   :  { %v5759_v55 = vpack.c.bf16 %v920_v50, %v907_v49  ;;  %v921_v60 = vld [vmem:[#allocation5 + $0x18f8] sm:$0xff]  ;;  %v946_v62 = vld [vmem:[#allocation5 + $0x19c0] sm:$0xff]  ;;  %v1039_v49 = vld [vmem:[#allocation5 + $0x1ca8] sm:$0xff] }
 0x1d4   :  { %v933_v61 = vld [vmem:[#allocation5 + $0x1958] sm:$0xff]  ;;  %v1052_v50 = vld [vmem:[#allocation5 + $0x1d10] sm:$0xff] }
 0x1d5   :  { %5722 = vmatpush1.bf16.msra.mxu0 %v5721_v9  ;;  %5978 = vmatpush1.bf16.msra.mxu1 %v5977_v10  ;;  %v815_v9 = vld [vmem:[#allocation5 + $0x15a8] sm:$0xff]  ;;  %v804_v10 = vld [vmem:[#allocation5 + $0x1550] sm:$0xff] }
 0x1d6   :  { %5724 = vmatprep.subr.bf16.mxu0 %v5723_v11  ;;  %5980 = vmatprep.subr.bf16.mxu1 %v5979_v15  ;;  %v5999_v11 = vpack.c.bf16 %v818_v4, %v805_v3  ;;  %v831_v15 = vld [vmem:[#allocation5 + $0x1628] sm:$0xff]  ;;  %v5745_v17 = vpack.c.bf16 %v815_v9, %v802_v8  ;;  %v6001_v18 = vpack.c.bf16 %v817_v12, %v804_v10  ;;  %v932_v4 = vld [vmem:[#allocation5 + $0x1950] sm:$0xff]  ;;  %v974_v12 = vld [vmem:[#allocation5 + $0x1aa0] sm:$0xff] }
 0x1d7   :  { %v5763_v3 = vpack.c.bf16 %v946_v62, %v933_v61  ;;  %v947_v8 = vld [vmem:[#allocation5 + $0x19c8] sm:$0xff]  ;;  %v972_v10 = vld [vmem:[#allocation5 + $0x1a90] sm:$0xff]  ;;  %v1065_v61 = vld [vmem:[#allocation5 + $0x1d78] sm:$0xff] }
 0x1d8   :  { %v959_v9 = vld [vmem:[#allocation5 + $0x1a28] sm:$0xff]  ;;  %v1078_v62 = vld [vmem:[#allocation5 + $0x1de0] sm:$0xff] }
 0x1d9   :  { %5726 = vmatpush1.bf16.msra.mxu0 %v5725_v21  ;;  %5982 = vmatpush1.bf16.msra.mxu1 %v5981_v22  ;;  %v841_v21 = vld [vmem:[#allocation5 + $0x1678] sm:$0xff]  ;;  %v830_v22 = vld [vmem:[#allocation5 + $0x1620] sm:$0xff] }
 0x1da   :  { %5728 = vmatprep.subr.bf16.mxu0 %v5727_v23  ;;  %5984 = vmatprep.subr.bf16.mxu1 %v5983_v27  ;;  %v6003_v23 = vpack.c.bf16 %v844_v16, %v831_v15  ;;  %v857_v27 = vld [vmem:[#allocation5 + $0x16f8] sm:$0xff]  ;;  %v5749_v29 = vpack.c.bf16 %v841_v21, %v828_v20  ;;  %v6005_v30 = vpack.c.bf16 %v843_v24, %v830_v22  ;;  %v958_v16 = vld [vmem:[#allocation5 + $0x1a20] sm:$0xff]  ;;  %v1000_v24 = vld [vmem:[#allocation5 + $0x1b70] sm:$0xff] }
 0x1db   :  { %v5767_v15 = vpack.c.bf16 %v972_v10, %v959_v9  ;;  %v973_v20 = vld [vmem:[#allocation5 + $0x1a98] sm:$0xff]  ;;  %v998_v22 = vld [vmem:[#allocation5 + $0x1b60] sm:$0xff]  ;;  %v1091_v9 = vld [vmem:[#allocation5 + $0x1e48] sm:$0xff] }
 0x1dc   :  { %v985_v21 = vld [vmem:[#allocation5 + $0x1af8] sm:$0xff]  ;;  %v1104_v10 = vld [vmem:[#allocation5 + $0x1eb0] sm:$0xff] }
 0x1dd   :  { %5730 = vmatpush1.bf16.msra.mxu0 %v5729_v33  ;;  %5986 = vmatpush1.bf16.msra.mxu1 %v5985_v34  ;;  %v867_v33 = vld [vmem:[#allocation5 + $0x1748] sm:$0xff]  ;;  %v856_v34 = vld [vmem:[#allocation5 + $0x16f0] sm:$0xff] }
 0x1de   :  { %5732 = vmatprep.subr.bf16.mxu0 %v5731_v35  ;;  %5988 = vmatprep.subr.bf16.mxu1 %v5987_v39  ;;  %v6007_v35 = vpack.c.bf16 %v870_v28, %v857_v27  ;;  %v883_v39 = vld [vmem:[#allocation5 + $0x17c8] sm:$0xff]  ;;  %v5753_v41 = vpack.c.bf16 %v867_v33, %v854_v32  ;;  %v6009_v42 = vpack.c.bf16 %v869_v36, %v856_v34  ;;  %v984_v28 = vld [vmem:[#allocation5 + $0x1af0] sm:$0xff]  ;;  %v1013_v36 = vld [vmem:[#allocation5 + $0x1bd8] sm:$0xff] }
 0x1df   :  { %v5771_v27 = vpack.c.bf16 %v998_v22, %v985_v21  ;;  %v999_v32 = vld [vmem:[#allocation5 + $0x1b68] sm:$0xff]  ;;  %v1024_v34 = vld [vmem:[#allocation5 + $0x1c30] sm:$0xff]  ;;  %v1117_v21 = vld [vmem:[#allocation5 + $0x1f18] sm:$0xff] }
 0x1e0   :  { %v1011_v33 = vld [vmem:[#allocation5 + $0x1bc8] sm:$0xff]  ;;  %v1130_v22 = vld [vmem:[#allocation5 + $0x1f80] sm:$0xff] }
 0x1e1   :  { %5734 = vmatpush1.bf16.msra.mxu0 %v5733_v45  ;;  %5990 = vmatpush1.bf16.msra.mxu1 %v5989_v46  ;;  %v893_v45 = vld [vmem:[#allocation5 + $0x1818] sm:$0xff]  ;;  %v882_v46 = vld [vmem:[#allocation5 + $0x17c0] sm:$0xff] }
 0x1e2   :  { %5736 = vmatprep.subr.bf16.mxu0 %v5735_v47  ;;  %5992 = vmatprep.subr.bf16.mxu1 %v5991_v51  ;;  %v6011_v47 = vpack.c.bf16 %v896_v40, %v883_v39  ;;  %v909_v51 = vld [vmem:[#allocation5 + $0x1898] sm:$0xff]  ;;  %v5757_v53 = vpack.c.bf16 %v893_v45, %v880_v44  ;;  %v6013_v54 = vpack.c.bf16 %v895_v48, %v882_v46  ;;  %v7098_v48 = vld [vmem:[#allocation2 + $0x28] sm:$0xff] }
 0x1e3   :  { %v5775_v40 = vpack.c.bf16 %v1024_v34, %v1011_v33  ;;  %v6031_v44 = vpack.c.bf16 %v1026_v37, %v1013_v36  ;;  %v1025_v45 = vld [vmem:[#allocation5 + $0x1c38] sm:$0xff]  ;;  %v1143_v33 = vld [vmem:[#allocation5 + $0x1fe8] sm:$0xff]  ;;  %v1156_v34 = vld [vmem:[#allocation5 + $0x2050] sm:$0xff] }
 0x1e4   :  { %v1037_v46 = vld [vmem:[#allocation5 + $0x1c98] sm:$0xff] }
 0x1e5   :  { %5738 = vmatpush1.bf16.msra.mxu0 %v5737_v57  ;;  %5994 = vmatpush1.bf16.msra.mxu1 %v5993_v58  ;;  %v919_v57 = vld [vmem:[#allocation5 + $0x18e8] sm:$0xff]  ;;  %v908_v58 = vld [vmem:[#allocation5 + $0x1890] sm:$0xff] }
 0x1e6   :  { %5740 = vmatprep.subr.bf16.mxu0 %v5739_v59  ;;  %5996 = vmatprep.subr.bf16.mxu1 %v5995_v63  ;;  %v6015_v59 = vpack.c.bf16 %v922_v52, %v909_v51  ;;  %v935_v63 = vld [vmem:[#allocation5 + $0x1968] sm:$0xff]  ;;  %v5761_v1 = vpack.c.bf16 %v919_v57, %v906_v56  ;;  %v6017_v2 = vpack.c.bf16 %v921_v60, %v908_v58  ;;  %v1038_v56 = vld [vmem:[#allocation5 + $0x1ca0] sm:$0xff]  ;;  %v1076_v60 = vld [vmem:[#allocation5 + $0x1dd0] sm:$0xff] }
 0x1e7   :  { %v6035_v57 = vpack.c.bf16 %v1052_v50, %v1039_v49  ;;  %v1051_v58 = vld [vmem:[#allocation5 + $0x1d08] sm:$0xff]  ;;  %v1166_v50 = vld [vmem:[#allocation5 + $0x20a0] sm:$0xff] }
 0x1e9   :  { %5742 = vmatpush1.bf16.msra.mxu0 %v5741_v5  ;;  %5998 = vmatpush1.bf16.msra.mxu1 %v5997_v6  ;;  %v945_v5 = vld [vmem:[#allocation5 + $0x19b8] sm:$0xff]  ;;  %v934_v6 = vld [vmem:[#allocation5 + $0x1960] sm:$0xff] }
 0x1ea   :  { %5744 = vmatprep.subr.bf16.mxu0 %v5743_v7  ;;  %6000 = vmatprep.subr.bf16.mxu1 %v5999_v11  ;;  %v6019_v7 = vpack.c.bf16 %v948_v0, %v935_v63  ;;  %v961_v11 = vld [vmem:[#allocation5 + $0x1a38] sm:$0xff]  ;;  %v5765_v13 = vpack.c.bf16 %v945_v5, %v932_v4  ;;  %v6021_v14 = vpack.c.bf16 %v947_v8, %v934_v6  ;;  %v1064_v4 = vld [vmem:[#allocation5 + $0x1d70] sm:$0xff]  ;;  %v1102_v8 = vld [vmem:[#allocation5 + $0x1ea0] sm:$0xff] }
 0x1eb   :  { %v6037_v0 = vpack.c.bf16 %v1051_v58, %v1038_v56  ;;  %v6039_v5 = vpack.c.bf16 %v1078_v62, %v1065_v61  ;;  %v1077_v6 = vld [vmem:[#allocation5 + $0x1dd8] sm:$0xff]  ;;  %v1206_v56 = vld [vmem:[#allocation5 + $0x21e0] sm:$0xff]  ;;  %v1208_v58 = vld [vmem:[#allocation5 + $0x21f0] sm:$0xff] }
 0x1ec   :  { %v1192_v62 = vld [vmem:[#allocation5 + $0x2170] sm:$0xff] }
 0x1ed   :  { %5746 = vmatpush1.bf16.msra.mxu0 %v5745_v17  ;;  %6002 = vmatpush1.bf16.msra.mxu1 %v6001_v18  ;;  %v971_v17 = vld [vmem:[#allocation5 + $0x1a88] sm:$0xff]  ;;  %v960_v18 = vld [vmem:[#allocation5 + $0x1a30] sm:$0xff] }
 0x1ee   :  { %5748 = vmatprep.subr.bf16.mxu0 %v5747_v19  ;;  %6004 = vmatprep.subr.bf16.mxu1 %v6003_v23  ;;  %v6023_v19 = vpack.c.bf16 %v974_v12, %v961_v11  ;;  %v987_v23 = vld [vmem:[#allocation5 + $0x1b08] sm:$0xff]  ;;  %v5769_v25 = vpack.c.bf16 %v971_v17, %v958_v16  ;;  %v6025_v26 = vpack.c.bf16 %v973_v20, %v960_v18  ;;  %v1090_v16 = vld [vmem:[#allocation5 + $0x1e40] sm:$0xff]  ;;  %v1128_v20 = vld [vmem:[#allocation5 + $0x1f70] sm:$0xff] }
 0x1ef   :  { %v6041_v12 = vpack.c.bf16 %v1077_v6, %v1064_v4  ;;  %v6043_v17 = vpack.c.bf16 %v1104_v10, %v1091_v9  ;;  %v1103_v18 = vld [vmem:[#allocation5 + $0x1ea8] sm:$0xff]  ;;  %v1232_v4 = vld [vmem:[#allocation5 + $0x22b0] sm:$0xff]  ;;  %v1234_v6 = vld [vmem:[#allocation5 + $0x22c0] sm:$0xff] }
 0x1f0   :  { %v1218_v10 = vld [vmem:[#allocation5 + $0x2240] sm:$0xff] }
 0x1f1   :  { %5750 = vmatpush1.bf16.msra.mxu0 %v5749_v29  ;;  %6006 = vmatpush1.bf16.msra.mxu1 %v6005_v30  ;;  %v997_v29 = vld [vmem:[#allocation5 + $0x1b58] sm:$0xff]  ;;  %v986_v30 = vld [vmem:[#allocation5 + $0x1b00] sm:$0xff] }
 0x1f2   :  { %5752 = vmatprep.subr.bf16.mxu0 %v5751_v31  ;;  %6008 = vmatprep.subr.bf16.mxu1 %v6007_v35  ;;  %v6027_v31 = vpack.c.bf16 %v1000_v24, %v987_v23  ;;  %v7097_v35 = vld [vmem:[#allocation2 + $0x10] sm:$0xff]  ;;  %v5773_v38 = vpack.c.bf16 %v997_v29, %v984_v28  ;;  %v6029_v39 = vpack.c.bf16 %v999_v32, %v986_v30  ;;  %v1129_v30 = vld [vmem:[#allocation5 + $0x1f78] sm:$0xff]  ;;  %v1154_v32 = vld [vmem:[#allocation5 + $0x2040] sm:$0xff] }
 0x1f3   :  { %v6045_v24 = vpack.c.bf16 %v1103_v18, %v1090_v16  ;;  %v1116_v28 = vld [vmem:[#allocation5 + $0x1f10] sm:$0xff]  ;;  %v6047_v29 = vpack.c.bf16 %v1130_v22, %v1117_v21  ;;  %v1258_v16 = vld [vmem:[#allocation5 + $0x2380] sm:$0xff] }
 0x1f4   :  { %v6049_v36 = vpack.c.bf16 %v1129_v30, %v1116_v28  ;;  %v1260_v18 = vld [vmem:[#allocation5 + $0x2390] sm:$0xff]  ;;  %v1286_v30 = vld [vmem:[#allocation5 + $0x2460] sm:$0xff] }
 0x1f5   :  { %5754 = vmatpush1.bf16.msra.mxu0 %v5753_v41  ;;  %6010 = vmatpush1.bf16.msra.mxu1 %v6009_v42  ;;  %v1010_v41 = vld [vmem:[#allocation5 + $0x1bc0] sm:$0xff]  ;;  %v1023_v42 = vld [vmem:[#allocation5 + $0x1c28] sm:$0xff]  ;;  %v1244_v22 = vld [vmem:[#allocation5 + $0x2310] sm:$0xff] }
 0x1f6   :  { %5756 = vmatprep.subr.bf16.mxu0 %v5755_v43  ;;  %6012 = vmatprep.subr.bf16.mxu1 %v6011_v47  ;;  %v1012_v43 = vld [vmem:[#allocation5 + $0x1bd0] sm:$0xff]  ;;  %v1050_v47 = vld [vmem:[#allocation5 + $0x1d00] sm:$0xff]  ;;  %v5777_v51 = vpack.c.bf16 %v1023_v42, %v1010_v41  ;;  %v6051_v41 = vpack.c.bf16 %v1156_v34, %v1143_v33  ;;  %v1155_v42 = vld [vmem:[#allocation5 + $0x2048] sm:$0xff] }
 0x1f7   :  { %v6033_v52 = vpack.c.bf16 %v1025_v45, %v1012_v43  ;;  %v1167_v43 = vld [vmem:[#allocation5 + $0x20a8] sm:$0xff]  ;;  %v1169_v45 = vld [vmem:[#allocation5 + $0x20b8] sm:$0xff]  ;;  %v1284_v28 = vld [vmem:[#allocation5 + $0x2450] sm:$0xff] }
 0x1f8   :  { %v1270_v34 = vld [vmem:[#allocation5 + $0x23e0] sm:$0xff] }
 0x1f9   :  { %5758 = vmatpush1.bf16.msra.mxu0 %v5757_v53  ;;  %6014 = vmatpush1.bf16.msra.mxu1 %v6013_v54  ;;  %v5779_v53 = vpack.c.bf16 %v1050_v47, %v1037_v46  ;;  %v1036_v54 = vld [vmem:[#allocation5 + $0x1c90] sm:$0xff]  ;;  %v1182_v46 = vld [vmem:[#allocation5 + $0x2120] sm:$0xff] }
 0x1fa   :  { %5760 = vmatprep.subr.bf16.mxu0 %v5759_v55  ;;  %6016 = vmatprep.subr.bf16.mxu1 %v6015_v59  ;;  %v1049_v55 = vld [vmem:[#allocation5 + $0x1cf8] sm:$0xff]  ;;  %v1063_v59 = vld [vmem:[#allocation5 + $0x1d68] sm:$0xff] }
 0x1fb   :  { %v5781_v63 = vpack.c.bf16 %v1049_v55, %v1036_v54  ;;  %v1181_v54 = vld [vmem:[#allocation5 + $0x2118] sm:$0xff] }
 0x1fc   :  { %v1193_v55 = vld [vmem:[#allocation5 + $0x2178] sm:$0xff] }
 0x1fd   :  { %5762 = vmatpush1.bf16.msra.mxu0 %v5761_v1  ;;  %6018 = vmatpush1.bf16.msra.mxu1 %v6017_v2  ;;  %v5783_v1 = vpack.c.bf16 %v1076_v60, %v1063_v59  ;;  %v1062_v2 = vld [vmem:[#allocation5 + $0x1d60] sm:$0xff]  ;;  %v5803_v61 = vpack.c.bf16 %v1206_v56, %v1193_v55 }
 0x1fe   :  { %5764 = vmatprep.subr.bf16.mxu0 %v5763_v3  ;;  %6020 = vmatprep.subr.bf16.mxu1 %v6019_v7  ;;  %v1075_v3 = vld [vmem:[#allocation5 + $0x1dc8] sm:$0xff]  ;;  %v1089_v7 = vld [vmem:[#allocation5 + $0x1e38] sm:$0xff] }
 0x1ff   :  { %v5785_v11 = vpack.c.bf16 %v1075_v3, %v1062_v2  ;;  %v1207_v2 = vld [vmem:[#allocation5 + $0x21e8] sm:$0xff] }
 0x200   :  { %v1219_v3 = vld [vmem:[#allocation5 + $0x2248] sm:$0xff] }
 0x201   :  { %5766 = vmatpush1.bf16.msra.mxu0 %v5765_v13  ;;  %6022 = vmatpush1.bf16.msra.mxu1 %v6021_v14  ;;  %v5787_v13 = vpack.c.bf16 %v1102_v8, %v1089_v7  ;;  %v1088_v14 = vld [vmem:[#allocation5 + $0x1e30] sm:$0xff]  ;;  %v5807_v9 = vpack.c.bf16 %v1232_v4, %v1219_v3 }
 0x202   :  { %5768 = vmatprep.subr.bf16.mxu0 %v5767_v15  ;;  %6024 = vmatprep.subr.bf16.mxu1 %v6023_v19  ;;  %v1101_v15 = vld [vmem:[#allocation5 + $0x1e98] sm:$0xff]  ;;  %v1115_v19 = vld [vmem:[#allocation5 + $0x1f08] sm:$0xff] }
 0x203   :  { %v5789_v23 = vpack.c.bf16 %v1101_v15, %v1088_v14  ;;  %v1233_v14 = vld [vmem:[#allocation5 + $0x22b8] sm:$0xff] }
 0x204   :  { %2559 = vmatmul.mubr.f32.vlgmr.msra.gmra.mrb[2].mxu0 %v7097_v35  ;;  %2843 = vmatmul.mubr.f32.vlgmr.msra.gmra.mrb[2].mxu1 %v7097_v35  ;;  %v1245_v15 = vld [vmem:[#allocation5 + $0x2318] sm:$0xff] }
 0x205   :  { %5770 = vmatpush1.bf16.msra.mxu0 %v5769_v25  ;;  %6026 = vmatpush1.bf16.msra.mxu1 %v6025_v26  ;;  %v5791_v25 = vpack.c.bf16 %v1128_v20, %v1115_v19  ;;  %v1114_v26 = vld [vmem:[#allocation5 + $0x1f00] sm:$0xff]  ;;  %v5811_v21 = vpack.c.bf16 %v1258_v16, %v1245_v15 }
 0x206   :  { %5772 = vmatprep.subr.bf16.mxu0 %v5771_v27  ;;  %6028 = vmatprep.subr.bf16.mxu1 %v6027_v31  ;;  %v1127_v27 = vld [vmem:[#allocation5 + $0x1f68] sm:$0xff]  ;;  %v1141_v31 = vld [vmem:[#allocation5 + $0x1fd8] sm:$0xff] }
 0x207   :  { %2629 = vmatprep.mubr.f32.mxu0 %v7098_v48  ;;  %2913 = vmatprep.mubr.f32.mxu1 %v7098_v48  ;;  %v5793_v35 = vpack.c.bf16 %v1127_v27, %v1114_v26  ;;  %v5795_v37 = vpack.c.bf16 %v1154_v32, %v1141_v31  ;;  %v1259_v26 = vld [vmem:[#allocation5 + $0x2388] sm:$0xff] }
 0x208   :  { %v1271_v27 = vld [vmem:[#allocation5 + $0x23e8] sm:$0xff] }
 0x209   :  { %5774 = vmatpush1.bf16.msra.mxu0 %v5773_v38  ;;  %6030 = vmatpush1.bf16.msra.mxu1 %v6029_v39  ;;  %v1140_v38 = vld [vmem:[#allocation5 + $0x1fd0] sm:$0xff]  ;;  %v1153_v39 = vld [vmem:[#allocation5 + $0x2038] sm:$0xff]  ;;  %v5815_v33 = vpack.c.bf16 %v1284_v28, %v1271_v27 }
 0x20a   :  { %5776 = vmatprep.subr.bf16.mxu0 %v5775_v40  ;;  %6032 = vmatprep.subr.bf16.mxu1 %v6031_v44  ;;  %v1142_v40 = vld [vmem:[#allocation5 + $0x1fe0] sm:$0xff]  ;;  %v1180_v44 = vld [vmem:[#allocation5 + $0x2110] sm:$0xff]  ;;  %v5797_v47 = vpack.c.bf16 %v1153_v39, %v1140_v38  ;;  %v1285_v38 = vld [vmem:[#allocation5 + $0x2458] sm:$0xff] }
 0x20b   :  { %v6053_v48 = vpack.c.bf16 %v1155_v42, %v1142_v40  ;;  %v5799_v49 = vpack.c.bf16 %v1180_v44, %v1167_v43  ;;  %v1297_v39 = vld [vmem:[#allocation5 + $0x24b8] sm:$0xff]  ;;  %v1310_v40 = vld [vmem:[#allocation5 + $0x2520] sm:$0xff]  ;;  %v1312_v42 = vld [vmem:[#allocation5 + $0x2530] sm:$0xff] }
 0x20d   :  { %5778 = vmatpush1.bf16.msra.mxu0 %v5777_v51  ;;  %6034 = vmatpush1.bf16.msra.mxu1 %v6033_v52  ;;  %v1179_v51 = vld [vmem:[#allocation5 + $0x2108] sm:$0xff]  ;;  %v1168_v52 = vld [vmem:[#allocation5 + $0x20b0] sm:$0xff] }
 0x20e   :  { %5780 = vmatprep.subr.bf16.mxu0 %v5779_v53  ;;  %6036 = vmatprep.subr.bf16.mxu1 %v6035_v57  ;;  %v6055_v53 = vpack.c.bf16 %v1182_v46, %v1169_v45  ;;  %v1195_v57 = vld [vmem:[#allocation5 + $0x2188] sm:$0xff]  ;;  %v5801_v59 = vpack.c.bf16 %v1179_v51, %v1166_v50  ;;  %v6057_v60 = vpack.c.bf16 %v1181_v54, %v1168_v52  ;;  %v1296_v46 = vld [vmem:[#allocation5 + $0x24b0] sm:$0xff]  ;;  %v1338_v54 = vld [vmem:[#allocation5 + $0x2600] sm:$0xff] }
 0x20f   :  { %v5819_v45 = vpack.c.bf16 %v1310_v40, %v1297_v39  ;;  %v1311_v50 = vld [vmem:[#allocation5 + $0x2528] sm:$0xff]  ;;  %v1336_v52 = vld [vmem:[#allocation5 + $0x25f0] sm:$0xff]  ;;  %v1442_v39 = vld [vmem:[#allocation5 + $0x2940] sm:$0xff] }
 0x210   :  { %v1323_v51 = vld [vmem:[#allocation5 + $0x2588] sm:$0xff] }
 0x211   :  { %5782 = vmatpush1.bf16.msra.mxu0 %v5781_v63  ;;  %6038 = vmatpush1.bf16.msra.mxu1 %v6037_v0  ;;  %v1205_v63 = vld [vmem:[#allocation5 + $0x21d8] sm:$0xff]  ;;  %v1194_v0 = vld [vmem:[#allocation5 + $0x2180] sm:$0xff] }
 0x212   :  { %5784 = vmatprep.subr.bf16.mxu0 %v5783_v1  ;;  %6040 = vmatprep.subr.bf16.mxu1 %v6039_v5  ;;  %v6059_v1 = vpack.c.bf16 %v1208_v58, %v1195_v57  ;;  %v1221_v5 = vld [vmem:[#allocation5 + $0x2258] sm:$0xff]  ;;  %v5805_v7 = vpack.c.bf16 %v1205_v63, %v1192_v62  ;;  %v6061_v8 = vpack.c.bf16 %v1207_v2, %v1194_v0  ;;  %v1322_v58 = vld [vmem:[#allocation5 + $0x2580] sm:$0xff]  ;;  %v1364_v2 = vld [vmem:[#allocation5 + $0x26d0] sm:$0xff] }
 0x213   :  { %v5823_v57 = vpack.c.bf16 %v1336_v52, %v1323_v51  ;;  %v1337_v62 = vld [vmem:[#allocation5 + $0x25f8] sm:$0xff]  ;;  %v1362_v0 = vld [vmem:[#allocation5 + $0x26c0] sm:$0xff]  ;;  %v1455_v51 = vld [vmem:[#allocation5 + $0x29a8] sm:$0xff] }
 0x214   :  { %v1349_v63 = vld [vmem:[#allocation5 + $0x2658] sm:$0xff]  ;;  %v1468_v52 = vld [vmem:[#allocation5 + $0x2a10] sm:$0xff] }
 0x215   :  { %5786 = vmatpush1.bf16.msra.mxu0 %v5785_v11  ;;  %6042 = vmatpush1.bf16.msra.mxu1 %v6041_v12  ;;  %v1231_v11 = vld [vmem:[#allocation5 + $0x22a8] sm:$0xff]  ;;  %v1220_v12 = vld [vmem:[#allocation5 + $0x2250] sm:$0xff] }
 0x216   :  { %5788 = vmatprep.subr.bf16.mxu0 %v5787_v13  ;;  %6044 = vmatprep.subr.bf16.mxu1 %v6043_v17  ;;  %v6063_v13 = vpack.c.bf16 %v1234_v6, %v1221_v5  ;;  %v1247_v17 = vld [vmem:[#allocation5 + $0x2328] sm:$0xff]  ;;  %v5809_v19 = vpack.c.bf16 %v1231_v11, %v1218_v10  ;;  %v6065_v20 = vpack.c.bf16 %v1233_v14, %v1220_v12  ;;  %v1348_v6 = vld [vmem:[#allocation5 + $0x2650] sm:$0xff]  ;;  %v1390_v14 = vld [vmem:[#allocation5 + $0x27a0] sm:$0xff] }
 0x217   :  { %v5827_v5 = vpack.c.bf16 %v1362_v0, %v1349_v63  ;;  %v1363_v10 = vld [vmem:[#allocation5 + $0x26c8] sm:$0xff]  ;;  %v1388_v12 = vld [vmem:[#allocation5 + $0x2790] sm:$0xff]  ;;  %v1481_v63 = vld [vmem:[#allocation5 + $0x2a78] sm:$0xff] }
 0x218   :  { %v1375_v11 = vld [vmem:[#allocation5 + $0x2728] sm:$0xff]  ;;  %v1494_v0 = vld [vmem:[#allocation5 + $0x2ae0] sm:$0xff] }
 0x219   :  { %5790 = vmatpush1.bf16.msra.mxu0 %v5789_v23  ;;  %6046 = vmatpush1.bf16.msra.mxu1 %v6045_v24  ;;  %v1257_v23 = vld [vmem:[#allocation5 + $0x2378] sm:$0xff]  ;;  %v1246_v24 = vld [vmem:[#allocation5 + $0x2320] sm:$0xff] }
 0x21a   :  { %5792 = vmatprep.subr.bf16.mxu0 %v5791_v25  ;;  %6048 = vmatprep.subr.bf16.mxu1 %v6047_v29  ;;  %v6067_v25 = vpack.c.bf16 %v1260_v18, %v1247_v17  ;;  %v1273_v29 = vld [vmem:[#allocation5 + $0x23f8] sm:$0xff]  ;;  %v5813_v31 = vpack.c.bf16 %v1257_v23, %v1244_v22  ;;  %v6069_v32 = vpack.c.bf16 %v1259_v26, %v1246_v24  ;;  %v1374_v18 = vld [vmem:[#allocation5 + $0x2720] sm:$0xff]  ;;  %v1416_v26 = vld [vmem:[#allocation5 + $0x2870] sm:$0xff] }
 0x21b   :  { %v5831_v17 = vpack.c.bf16 %v1388_v12, %v1375_v11  ;;  %v1389_v22 = vld [vmem:[#allocation5 + $0x2798] sm:$0xff]  ;;  %v1414_v24 = vld [vmem:[#allocation5 + $0x2860] sm:$0xff]  ;;  %v1507_v11 = vld [vmem:[#allocation5 + $0x2b48] sm:$0xff] }
 0x21c   :  { %v1401_v23 = vld [vmem:[#allocation5 + $0x27f8] sm:$0xff]  ;;  %v1520_v12 = vld [vmem:[#allocation5 + $0x2bb0] sm:$0xff] }
 0x21d   :  { %5794 = vmatpush1.bf16.msra.mxu0 %v5793_v35  ;;  %6050 = vmatpush1.bf16.msra.mxu1 %v6049_v36  ;;  %v1283_v35 = vld [vmem:[#allocation5 + $0x2448] sm:$0xff]  ;;  %v1272_v36 = vld [vmem:[#allocation5 + $0x23f0] sm:$0xff] }
 0x21e   :  { %5796 = vmatprep.subr.bf16.mxu0 %v5795_v37  ;;  %6052 = vmatprep.subr.bf16.mxu1 %v6051_v41  ;;  %v6071_v37 = vpack.c.bf16 %v1286_v30, %v1273_v29  ;;  %v1299_v41 = vld [vmem:[#allocation5 + $0x24c8] sm:$0xff]  ;;  %v5817_v43 = vpack.c.bf16 %v1283_v35, %v1270_v34  ;;  %v6073_v44 = vpack.c.bf16 %v1285_v38, %v1272_v36  ;;  %v1400_v30 = vld [vmem:[#allocation5 + $0x27f0] sm:$0xff]  ;;  %v1429_v38 = vld [vmem:[#allocation5 + $0x28d8] sm:$0xff] }
 0x21f   :  { %v5835_v29 = vpack.c.bf16 %v1414_v24, %v1401_v23  ;;  %v1415_v34 = vld [vmem:[#allocation5 + $0x2868] sm:$0xff]  ;;  %v1440_v36 = vld [vmem:[#allocation5 + $0x2930] sm:$0xff]  ;;  %v1533_v23 = vld [vmem:[#allocation5 + $0x2c18] sm:$0xff] }
 0x220   :  { %v1427_v35 = vld [vmem:[#allocation5 + $0x28c8] sm:$0xff]  ;;  %v1546_v24 = vld [vmem:[#allocation5 + $0x2c80] sm:$0xff] }
 0x221   :  { %5798 = vmatpush1.bf16.msra.mxu0 %v5797_v47  ;;  %6054 = vmatpush1.bf16.msra.mxu1 %v6053_v48  ;;  %v1309_v47 = vld [vmem:[#allocation5 + $0x2518] sm:$0xff]  ;;  %v1298_v48 = vld [vmem:[#allocation5 + $0x24c0] sm:$0xff] }
 0x222   :  { %5800 = vmatprep.subr.bf16.mxu0 %v5799_v49  ;;  %6056 = vmatprep.subr.bf16.mxu1 %v6055_v53  ;;  %v6075_v49 = vpack.c.bf16 %v1312_v42, %v1299_v41  ;;  %v1325_v53 = vld [vmem:[#allocation5 + $0x2598] sm:$0xff]  ;;  %v5821_v55 = vpack.c.bf16 %v1309_v47, %v1296_v46  ;;  %v6077_v56 = vpack.c.bf16 %v1311_v50, %v1298_v48 }
 0x223   :  { %v5839_v42 = vpack.c.bf16 %v1440_v36, %v1427_v35  ;;  %v6095_v46 = vpack.c.bf16 %v1442_v39, %v1429_v38  ;;  %v1441_v47 = vld [vmem:[#allocation5 + $0x2938] sm:$0xff]  ;;  %v1570_v35 = vld [vmem:[#allocation5 + $0x2d40] sm:$0xff]  ;;  %v1559_v38 = vld [vmem:[#allocation5 + $0x2ce8] sm:$0xff] }
 0x224   :  { %v1453_v48 = vld [vmem:[#allocation5 + $0x2998] sm:$0xff]  ;;  %v1572_v39 = vld [vmem:[#allocation5 + $0x2d50] sm:$0xff] }
 0x225   :  { %5802 = vmatpush1.bf16.msra.mxu0 %v5801_v59  ;;  %6058 = vmatpush1.bf16.msra.mxu1 %v6057_v60  ;;  %v1335_v59 = vld [vmem:[#allocation5 + $0x25e8] sm:$0xff]  ;;  %v1324_v60 = vld [vmem:[#allocation5 + $0x2590] sm:$0xff]  ;;  %v7100_v50 = vld [vmem:[#allocation2 + $0x38] sm:$0xff] }
 0x226   :  { %5804 = vmatprep.subr.bf16.mxu0 %v5803_v61  ;;  %6060 = vmatprep.subr.bf16.mxu1 %v6059_v1  ;;  %v6079_v61 = vpack.c.bf16 %v1338_v54, %v1325_v53  ;;  %v1351_v1 = vld [vmem:[#allocation5 + $0x2668] sm:$0xff]  ;;  %v5825_v3 = vpack.c.bf16 %v1335_v59, %v1322_v58  ;;  %v6081_v4 = vpack.c.bf16 %v1337_v62, %v1324_v60  ;;  %v1454_v58 = vld [vmem:[#allocation5 + $0x29a0] sm:$0xff]  ;;  %v1492_v62 = vld [vmem:[#allocation5 + $0x2ad0] sm:$0xff] }
 0x227   :  { %v6099_v59 = vpack.c.bf16 %v1468_v52, %v1455_v51  ;;  %v1467_v60 = vld [vmem:[#allocation5 + $0x2a08] sm:$0xff]  ;;  %v1585_v51 = vld [vmem:[#allocation5 + $0x2db8] sm:$0xff]  ;;  %v1598_v52 = vld [vmem:[#allocation5 + $0x2e20] sm:$0xff] }
 0x229   :  { %5806 = vmatpush1.bf16.msra.mxu0 %v5805_v7  ;;  %6062 = vmatpush1.bf16.msra.mxu1 %v6061_v8  ;;  %v1361_v7 = vld [vmem:[#allocation5 + $0x26b8] sm:$0xff]  ;;  %v1350_v8 = vld [vmem:[#allocation5 + $0x2660] sm:$0xff] }
 0x22a   :  { %5808 = vmatprep.subr.bf16.mxu0 %v5807_v9  ;;  %6064 = vmatprep.subr.bf16.mxu1 %v6063_v13  ;;  %v6083_v9 = vpack.c.bf16 %v1364_v2, %v1351_v1  ;;  %v1377_v13 = vld [vmem:[#allocation5 + $0x2738] sm:$0xff]  ;;  %v5829_v15 = vpack.c.bf16 %v1361_v7, %v1348_v6  ;;  %v6085_v16 = vpack.c.bf16 %v1363_v10, %v1350_v8  ;;  %v1480_v6 = vld [vmem:[#allocation5 + $0x2a70] sm:$0xff]  ;;  %v1518_v10 = vld [vmem:[#allocation5 + $0x2ba0] sm:$0xff] }
 0x22b   :  { %v6101_v2 = vpack.c.bf16 %v1467_v60, %v1454_v58  ;;  %v6103_v7 = vpack.c.bf16 %v1494_v0, %v1481_v63  ;;  %v1493_v8 = vld [vmem:[#allocation5 + $0x2ad8] sm:$0xff]  ;;  %v1584_v58 = vld [vmem:[#allocation5 + $0x2db0] sm:$0xff]  ;;  %v1611_v63 = vld [vmem:[#allocation5 + $0x2e88] sm:$0xff] }
 0x22c   :  { %v1597_v60 = vld [vmem:[#allocation5 + $0x2e18] sm:$0xff]  ;;  %v1624_v0 = vld [vmem:[#allocation5 + $0x2ef0] sm:$0xff] }
 0x22d   :  { %5810 = vmatpush1.bf16.msra.mxu0 %v5809_v19  ;;  %6066 = vmatpush1.bf16.msra.mxu1 %v6065_v20  ;;  %v1387_v19 = vld [vmem:[#allocation5 + $0x2788] sm:$0xff]  ;;  %v1376_v20 = vld [vmem:[#allocation5 + $0x2730] sm:$0xff] }
 0x22e   :  { %5812 = vmatprep.subr.bf16.mxu0 %v5811_v21  ;;  %6068 = vmatprep.subr.bf16.mxu1 %v6067_v25  ;;  %v6087_v21 = vpack.c.bf16 %v1390_v14, %v1377_v13  ;;  %v1403_v25 = vld [vmem:[#allocation5 + $0x2808] sm:$0xff]  ;;  %v5833_v27 = vpack.c.bf16 %v1387_v19, %v1374_v18  ;;  %v6089_v28 = vpack.c.bf16 %v1389_v22, %v1376_v20  ;;  %v1506_v18 = vld [vmem:[#allocation5 + $0x2b40] sm:$0xff]  ;;  %v1544_v22 = vld [vmem:[#allocation5 + $0x2c70] sm:$0xff] }
 0x22f   :  { %v6105_v14 = vpack.c.bf16 %v1493_v8, %v1480_v6  ;;  %v6107_v19 = vpack.c.bf16 %v1520_v12, %v1507_v11  ;;  %v1519_v20 = vld [vmem:[#allocation5 + $0x2ba8] sm:$0xff]  ;;  %v1610_v6 = vld [vmem:[#allocation5 + $0x2e80] sm:$0xff]  ;;  %v1637_v11 = vld [vmem:[#allocation5 + $0x2f58] sm:$0xff] }
 0x230   :  { %v1623_v8 = vld [vmem:[#allocation5 + $0x2ee8] sm:$0xff]  ;;  %v1650_v12 = vld [vmem:[#allocation5 + $0x2fc0] sm:$0xff] }
 0x231   :  { %5814 = vmatpush1.bf16.msra.mxu0 %v5813_v31  ;;  %6070 = vmatpush1.bf16.msra.mxu1 %v6069_v32  ;;  %v1413_v31 = vld [vmem:[#allocation5 + $0x2858] sm:$0xff]  ;;  %v1402_v32 = vld [vmem:[#allocation5 + $0x2800] sm:$0xff] }
 0x232   :  { %5816 = vmatprep.subr.bf16.mxu0 %v5815_v33  ;;  %6072 = vmatprep.subr.bf16.mxu1 %v6071_v37  ;;  %v6091_v33 = vpack.c.bf16 %v1416_v26, %v1403_v25  ;;  %v7099_v37 = vld [vmem:[#allocation2 + $0x20] sm:$0xff]  ;;  %v5837_v40 = vpack.c.bf16 %v1413_v31, %v1400_v30  ;;  %v6093_v41 = vpack.c.bf16 %v1415_v34, %v1402_v32  ;;  %v1532_v30 = vld [vmem:[#allocation5 + $0x2c10] sm:$0xff]  ;;  %v1557_v34 = vld [vmem:[#allocation5 + $0x2cd8] sm:$0xff] }
 0x233   :  { %v6109_v26 = vpack.c.bf16 %v1519_v20, %v1506_v18  ;;  %v6111_v32 = vpack.c.bf16 %v1546_v24, %v1533_v23  ;;  %v1636_v18 = vld [vmem:[#allocation5 + $0x2f50] sm:$0xff]  ;;  %v1649_v20 = vld [vmem:[#allocation5 + $0x2fb8] sm:$0xff]  ;;  %v1663_v23 = vld [vmem:[#allocation5 + $0x3028] sm:$0xff] }
 0x234   :  { %v1676_v24 = vld [vmem:[#allocation5 + $0x3090] sm:$0xff] }
 0x235   :  { %5818 = vmatpush1.bf16.msra.mxu0 %v5817_v43  ;;  %6074 = vmatpush1.bf16.msra.mxu1 %v6073_v44  ;;  %v1426_v43 = vld [vmem:[#allocation5 + $0x28c0] sm:$0xff]  ;;  %v1439_v44 = vld [vmem:[#allocation5 + $0x2928] sm:$0xff] }
 0x236   :  { %5820 = vmatprep.subr.bf16.mxu0 %v5819_v45  ;;  %6076 = vmatprep.subr.bf16.mxu1 %v6075_v49  ;;  %v1428_v45 = vld [vmem:[#allocation5 + $0x28d0] sm:$0xff]  ;;  %v1466_v49 = vld [vmem:[#allocation5 + $0x2a00] sm:$0xff]  ;;  %v5841_v53 = vpack.c.bf16 %v1439_v44, %v1426_v43  ;;  %v5859_v43 = vpack.c.bf16 %v1570_v35, %v1557_v34  ;;  %v1687_v34 = vld [vmem:[#allocation5 + $0x30e8] sm:$0xff] }
 0x237   :  { %v6097_v54 = vpack.c.bf16 %v1441_v47, %v1428_v45  ;;  %v1556_v44 = vld [vmem:[#allocation5 + $0x2cd0] sm:$0xff]  ;;  %v1569_v45 = vld [vmem:[#allocation5 + $0x2d38] sm:$0xff]  ;;  %v6115_v47 = vpack.c.bf16 %v1572_v39, %v1559_v38  ;;  %v1702_v39 = vld [vmem:[#allocation5 + $0x3160] sm:$0xff] }
 0x238   :  { %v1700_v35 = vld [vmem:[#allocation5 + $0x3150] sm:$0xff]  ;;  %v1689_v38 = vld [vmem:[#allocation5 + $0x30f8] sm:$0xff] }
 0x239   :  { %5822 = vmatpush1.bf16.msra.mxu0 %v5821_v55  ;;  %6078 = vmatpush1.bf16.msra.mxu1 %v6077_v56  ;;  %v5843_v55 = vpack.c.bf16 %v1466_v49, %v1453_v48  ;;  %v1452_v56 = vld [vmem:[#allocation5 + $0x2990] sm:$0xff]  ;;  %v1571_v48 = vld [vmem:[#allocation5 + $0x2d48] sm:$0xff] }
 0x23a   :  { %5824 = vmatprep.subr.bf16.mxu0 %v5823_v57  ;;  %6080 = vmatprep.subr.bf16.mxu1 %v6079_v61  ;;  %v1465_v57 = vld [vmem:[#allocation5 + $0x29f8] sm:$0xff]  ;;  %v1479_v61 = vld [vmem:[#allocation5 + $0x2a68] sm:$0xff] }
 0x23b   :  { %v5845_v1 = vpack.c.bf16 %v1465_v57, %v1452_v56  ;;  %v1583_v49 = vld [vmem:[#allocation5 + $0x2da8] sm:$0xff]  ;;  %v1582_v56 = vld [vmem:[#allocation5 + $0x2da0] sm:$0xff] }
 0x23c   :  { %v1595_v57 = vld [vmem:[#allocation5 + $0x2e08] sm:$0xff] }
 0x23d   :  { %5826 = vmatpush1.bf16.msra.mxu0 %v5825_v3  ;;  %6082 = vmatpush1.bf16.msra.mxu1 %v6081_v4  ;;  %v5847_v3 = vpack.c.bf16 %v1492_v62, %v1479_v61  ;;  %v1478_v4 = vld [vmem:[#allocation5 + $0x2a60] sm:$0xff]  ;;  %v1609_v61 = vld [vmem:[#allocation5 + $0x2e78] sm:$0xff] }
 0x23e   :  { %5828 = vmatprep.subr.bf16.mxu0 %v5827_v5  ;;  %6084 = vmatprep.subr.bf16.mxu1 %v6083_v9  ;;  %v1491_v5 = vld [vmem:[#allocation5 + $0x2ac8] sm:$0xff]  ;;  %v1505_v9 = vld [vmem:[#allocation5 + $0x2b38] sm:$0xff]  ;;  %v1622_v62 = vld [vmem:[#allocation5 + $0x2ee0] sm:$0xff] }
 0x23f   :  { %v5849_v13 = vpack.c.bf16 %v1491_v5, %v1478_v4  ;;  %v1608_v4 = vld [vmem:[#allocation5 + $0x2e70] sm:$0xff]  ;;  %v1621_v5 = vld [vmem:[#allocation5 + $0x2ed8] sm:$0xff] }
 0x241   :  { %5830 = vmatpush1.bf16.msra.mxu0 %v5829_v15  ;;  %6086 = vmatpush1.bf16.msra.mxu1 %v6085_v16  ;;  %v5851_v15 = vpack.c.bf16 %v1518_v10, %v1505_v9  ;;  %v1504_v16 = vld [vmem:[#allocation5 + $0x2b30] sm:$0xff]  ;;  %v1635_v9 = vld [vmem:[#allocation5 + $0x2f48] sm:$0xff] }
 0x242   :  { %5832 = vmatprep.subr.bf16.mxu0 %v5831_v17  ;;  %6088 = vmatprep.subr.bf16.mxu1 %v6087_v21  ;;  %v1517_v17 = vld [vmem:[#allocation5 + $0x2b98] sm:$0xff]  ;;  %v1531_v21 = vld [vmem:[#allocation5 + $0x2c08] sm:$0xff]  ;;  %v1648_v10 = vld [vmem:[#allocation5 + $0x2fb0] sm:$0xff] }
 0x243   :  { %v5853_v25 = vpack.c.bf16 %v1517_v17, %v1504_v16  ;;  %v1634_v16 = vld [vmem:[#allocation5 + $0x2f40] sm:$0xff]  ;;  %v1647_v17 = vld [vmem:[#allocation5 + $0x2fa8] sm:$0xff] }
 0x244   :  { %2630 = vmatmul.mubr.f32.vlgmr.msra.gmra.mrb[2].mxu0 %v7099_v37  ;;  %2914 = vmatmul.mubr.f32.vlgmr.msra.gmra.mrb[2].mxu1 %v7099_v37 }
 0x245   :  { %5834 = vmatpush1.bf16.msra.mxu0 %v5833_v27  ;;  %6090 = vmatpush1.bf16.msra.mxu1 %v6089_v28  ;;  %v5855_v27 = vpack.c.bf16 %v1544_v22, %v1531_v21  ;;  %v1530_v28 = vld [vmem:[#allocation5 + $0x2c00] sm:$0xff]  ;;  %v1661_v21 = vld [vmem:[#allocation5 + $0x3018] sm:$0xff] }
 0x246   :  { %5836 = vmatprep.subr.bf16.mxu0 %v5835_v29  ;;  %6092 = vmatprep.subr.bf16.mxu1 %v6091_v33  ;;  %v1543_v29 = vld [vmem:[#allocation5 + $0x2c68] sm:$0xff]  ;;  %v1545_v33 = vld [vmem:[#allocation5 + $0x2c78] sm:$0xff]  ;;  %v1674_v22 = vld [vmem:[#allocation5 + $0x3080] sm:$0xff] }
 0x247   :  { %2700 = vmatprep.mubr.f32.mxu0 %v7100_v50  ;;  %2984 = vmatprep.mubr.f32.mxu1 %v7100_v50  ;;  %v1596_v50 = vld [vmem:[#allocation5 + $0x2e10] sm:$0xff] }
 0x249   :  { %5838 = vmatpush1.bf16.msra.mxu0 %v5837_v40  ;;  %6094 = vmatpush1.bf16.msra.mxu1 %v6093_v41  ;;  %v5857_v41 = vpack.c.bf16 %v1543_v29, %v1530_v28  ;;  %v1660_v28 = vld [vmem:[#allocation5 + $0x3010] sm:$0xff]  ;;  %v1673_v29 = vld [vmem:[#allocation5 + $0x3078] sm:$0xff] }
 0x24a   :  { %5840 = vmatprep.subr.bf16.mxu0 %v5839_v42  ;;  %6096 = vmatprep.subr.bf16.mxu1 %v6095_v46  ;;  %v6113_v42 = vpack.c.bf16 %v1545_v33, %v1532_v30  ;;  %v1558_v46 = vld [vmem:[#allocation5 + $0x2ce0] sm:$0xff]  ;;  %v1675_v33 = vld [vmem:[#allocation5 + $0x3088] sm:$0xff] }
 0x24b   :  { %v1662_v30 = vld [vmem:[#allocation5 + $0x3020] sm:$0xff] }
 0x24d   :  { %5842 = vmatpush1.bf16.msra.mxu0 %v5841_v53  ;;  %6098 = vmatpush1.bf16.msra.mxu1 %v6097_v54  ;;  %v5861_v53 = vpack.c.bf16 %v1569_v45, %v1556_v44  ;;  %v6117_v54 = vpack.c.bf16 %v1571_v48, %v1558_v46  ;;  %v1686_v44 = vld [vmem:[#allocation5 + $0x30e0] sm:$0xff]  ;;  %v1699_v45 = vld [vmem:[#allocation5 + $0x3148] sm:$0xff]  ;;  %v1688_v46 = vld [vmem:[#allocation5 + $0x30f0] sm:$0xff] }
 0x24e   :  { %5844 = vmatprep.subr.bf16.mxu0 %v5843_v55  ;;  %6100 = vmatprep.subr.bf16.mxu1 %v6099_v59  ;;  %v5863_v55 = vpack.c.bf16 %v1596_v50, %v1583_v49  ;;  %v6119_v59 = vpack.c.bf16 %v1598_v52, %v1585_v51  ;;  %v1701_v48 = vld [vmem:[#allocation5 + $0x3158] sm:$0xff]  ;;  %v1726_v50 = vld [vmem:[#allocation5 + $0x3220] sm:$0xff]  ;;  %v1715_v51 = vld [vmem:[#allocation5 + $0x31c8] sm:$0xff] }
 0x24f   :  { %v1713_v49 = vld [vmem:[#allocation5 + $0x31b8] sm:$0xff]  ;;  %v1728_v52 = vld [vmem:[#allocation5 + $0x3230] sm:$0xff] }
 0x251   :  { %5846 = vmatpush1.bf16.msra.mxu0 %v5845_v1  ;;  %6102 = vmatpush1.bf16.msra.mxu1 %v6101_v2  ;;  %v5865_v1 = vpack.c.bf16 %v1595_v57, %v1582_v56  ;;  %v6121_v2 = vpack.c.bf16 %v1597_v60, %v1584_v58  ;;  %v1712_v56 = vld [vmem:[#allocation5 + $0x31b0] sm:$0xff]  ;;  %v1725_v57 = vld [vmem:[#allocation5 + $0x3218] sm:$0xff]  ;;  %v1714_v58 = vld [vmem:[#allocation5 + $0x31c0] sm:$0xff] }
 0x252   :  { %5848 = vmatprep.subr.bf16.mxu0 %v5847_v3  ;;  %6104 = vmatprep.subr.bf16.mxu1 %v6103_v7  ;;  %v5867_v3 = vpack.c.bf16 %v1622_v62, %v1609_v61  ;;  %v6123_v7 = vpack.c.bf16 %v1624_v0, %v1611_v63  ;;  %v1727_v60 = vld [vmem:[#allocation5 + $0x3228] sm:$0xff]  ;;  %v1752_v62 = vld [vmem:[#allocation5 + $0x32f0] sm:$0xff]  ;;  %v1741_v63 = vld [vmem:[#allocation5 + $0x3298] sm:$0xff] }
 0x253   :  { %v1739_v61 = vld [vmem:[#allocation5 + $0x3288] sm:$0xff]  ;;  %v1754_v0 = vld [vmem:[#allocation5 + $0x3300] sm:$0xff] }
 0x255   :  { %5850 = vmatpush1.bf16.msra.mxu0 %v5849_v13  ;;  %6106 = vmatpush1.bf16.msra.mxu1 %v6105_v14  ;;  %v5869_v13 = vpack.c.bf16 %v1621_v5, %v1608_v4  ;;  %v6125_v14 = vpack.c.bf16 %v1623_v8, %v1610_v6  ;;  %v1738_v4 = vld [vmem:[#allocation5 + $0x3280] sm:$0xff]  ;;  %v1751_v5 = vld [vmem:[#allocation5 + $0x32e8] sm:$0xff]  ;;  %v1740_v6 = vld [vmem:[#allocation5 + $0x3290] sm:$0xff] }
 0x256   :  { %5852 = vmatprep.subr.bf16.mxu0 %v5851_v15  ;;  %6108 = vmatprep.subr.bf16.mxu1 %v6107_v19  ;;  %v5871_v15 = vpack.c.bf16 %v1648_v10, %v1635_v9  ;;  %v6127_v19 = vpack.c.bf16 %v1650_v12, %v1637_v11  ;;  %v1753_v8 = vld [vmem:[#allocation5 + $0x32f8] sm:$0xff]  ;;  %v1778_v10 = vld [vmem:[#allocation5 + $0x33c0] sm:$0xff]  ;;  %v1767_v11 = vld [vmem:[#allocation5 + $0x3368] sm:$0xff] }
 0x257   :  { %v7442_v31 = vpop.f32.mrb[0].mxu0  ;;  %v7444_v36 = vpop.f32.mrb[0].mxu1  ;;  %v1765_v9 = vld [vmem:[#allocation5 + $0x3358] sm:$0xff]  ;;  %v1780_v12 = vld [vmem:[#allocation5 + $0x33d0] sm:$0xff] }
 0x258   :  { %v7446_v37 = vpop.f32.mrb[1].mxu0  ;;  %v7448_v40 = vpop.f32.mrb[1].mxu1 }
 0x259   :  { %5854 = vmatpush1.bf16.msra.mxu0 %v5853_v25  ;;  %6110 = vmatpush1.bf16.msra.mxu1 %v6109_v26  ;;  %v5873_v25 = vpack.c.bf16 %v1647_v17, %v1634_v16  ;;  %v6129_v26 = vpack.c.bf16 %v1649_v20, %v1636_v18  ;;  %v1764_v16 = vld [vmem:[#allocation5 + $0x3350] sm:$0xff]  ;;  %v1777_v17 = vld [vmem:[#allocation5 + $0x33b8] sm:$0xff]  ;;  %v1766_v18 = vld [vmem:[#allocation5 + $0x3360] sm:$0xff] }
 0x25a   :  { %5856 = vmatprep.subr.bf16.mxu0 %v5855_v27  ;;  %6112 = vmatprep.subr.bf16.mxu1 %v6111_v32  ;;  %v5875_v27 = vpack.c.bf16 %v1674_v22, %v1661_v21  ;;  %v6131_v32 = vpack.c.bf16 %v1676_v24, %v1663_v23  ;;  %v1779_v20 = vld [vmem:[#allocation5 + $0x33c8] sm:$0xff]  ;;  %v144_v22 = vld [vmem:[#allocation5 + $0xb0] sm:$0xff]  ;;  %v133_v23 = vld [vmem:[#allocation5 + $0x58] sm:$0xff] }
 0x25b   :  { %v131_v21 = vld [vmem:[#allocation5 + $0x48] sm:$0xff]  ;;  %v146_v24 = vld [vmem:[#allocation5 + $0xc0] sm:$0xff] }
 0x25d   :  { %5858 = vmatpush1.bf16.msra.mxu0 %v5857_v41  ;;  %6114 = vmatpush1.bf16.msra.mxu1 %v6113_v42  ;;  %v5877_v41 = vpack.c.bf16 %v1673_v29, %v1660_v28  ;;  %v6133_v42 = vpack.c.bf16 %v1675_v33, %v1662_v30  ;;  %v130_v28 = vld [vmem:[#allocation5 + $0x40] sm:$0xff]  ;;  %v143_v29 = vld [vmem:[#allocation5 + $0xa8] sm:$0xff]  ;;  %v132_v30 = vld [vmem:[#allocation5 + $0x50] sm:$0xff] }
 0x25e   :  { %5860 = vmatprep.subr.bf16.mxu0 %v5859_v43  ;;  %6116 = vmatprep.subr.bf16.mxu1 %v6115_v47  ;;  %v5879_v43 = vpack.c.bf16 %v1700_v35, %v1687_v34  ;;  %v6135_v47 = vpack.c.bf16 %v1702_v39, %v1689_v38  ;;  %v145_v33 = vld [vmem:[#allocation5 + $0xb8] sm:$0xff]  ;;  %v170_v35 = vld [vmem:[#allocation5 + $0x180] sm:$0xff]  ;;  %v159_v38 = vld [vmem:[#allocation5 + $0x128] sm:$0xff] }
 0x25f   :  { %v157_v34 = vld [vmem:[#allocation5 + $0x118] sm:$0xff]  ;;  %v172_v39 = vld [vmem:[#allocation5 + $0x190] sm:$0xff] }
 0x261   :  { %5862 = vmatpush1.bf16.msra.mxu0 %v5861_v53  ;;  %6118 = vmatpush1.bf16.msra.mxu1 %v6117_v54  ;;  %v5881_v53 = vpack.c.bf16 %v1699_v45, %v1686_v44  ;;  %v6137_v54 = vpack.c.bf16 %v1701_v48, %v1688_v46  ;;  %v156_v44 = vld [vmem:[#allocation5 + $0x110] sm:$0xff]  ;;  %v169_v45 = vld [vmem:[#allocation5 + $0x178] sm:$0xff]  ;;  %v158_v46 = vld [vmem:[#allocation5 + $0x120] sm:$0xff] }
 0x262   :  { %5864 = vmatprep.subr.bf16.mxu0 %v5863_v55  ;;  %6120 = vmatprep.subr.bf16.mxu1 %v6119_v59  ;;  %v5883_v55 = vpack.c.bf16 %v1726_v50, %v1713_v49  ;;  %v6139_v59 = vpack.c.bf16 %v1728_v52, %v1715_v51  ;;  %v171_v48 = vld [vmem:[#allocation5 + $0x188] sm:$0xff]  ;;  %v196_v50 = vld [vmem:[#allocation5 + $0x250] sm:$0xff]  ;;  %v185_v52 = vld [vmem:[#allocation5 + $0x1f8] sm:$0xff] }
 0x263   :  { %v183_v49 = vld [vmem:[#allocation5 + $0x1e8] sm:$0xff]  ;;  %v7101_v51 = vld [vmem:[#allocation2 + $0x30] sm:$0xff] }
 0x265   :  { %5866 = vmatpush1.bf16.msra.mxu0 %v5865_v1  ;;  %6122 = vmatpush1.bf16.msra.mxu1 %v6121_v2  ;;  %v5885_v1 = vpack.c.bf16 %v1725_v57, %v1712_v56  ;;  %v6141_v2 = vpack.c.bf16 %v1727_v60, %v1714_v58  ;;  %v6159_v56 = vpack.c.bf16 %v196_v50, %v183_v49  ;;  %v182_v57 = vld [vmem:[#allocation5 + $0x1e0] sm:$0xff]  ;;  %v195_v58 = vld [vmem:[#allocation5 + $0x248] sm:$0xff]  ;;  %v301_v50 = vld [vmem:[#allocation5 + $0x598] sm:$0xff] }
 0x266   :  { %5868 = vmatprep.subr.bf16.mxu0 %v5867_v3  ;;  %6124 = vmatprep.subr.bf16.mxu1 %v6123_v7  ;;  %v5887_v3 = vpack.c.bf16 %v1752_v62, %v1739_v61  ;;  %v6143_v7 = vpack.c.bf16 %v1754_v0, %v1741_v63  ;;  %v197_v61 = vld [vmem:[#allocation5 + $0x258] sm:$0xff]  ;;  %v222_v63 = vld [vmem:[#allocation5 + $0x320] sm:$0xff]  ;;  %v7102_v0 = vld [vmem:[#allocation2 + $0x8] sm:$0xff] }
 0x267   :  { %v209_v62 = vld [vmem:[#allocation5 + $0x2b8] sm:$0xff] }
 0x269   :  { %5870 = vmatpush1.bf16.msra.mxu0 %v5869_v13  ;;  %6126 = vmatpush1.bf16.msra.mxu1 %v6125_v14  ;;  %v5889_v13 = vpack.c.bf16 %v1751_v5, %v1738_v4  ;;  %v6145_v14 = vpack.c.bf16 %v1753_v8, %v1740_v6  ;;  %v6163_v5 = vpack.c.bf16 %v222_v63, %v209_v62  ;;  %v208_v6 = vld [vmem:[#allocation5 + $0x2b0] sm:$0xff]  ;;  %v210_v8 = vld [vmem:[#allocation5 + $0x2c0] sm:$0xff]  ;;  %v327_v62 = vld [vmem:[#allocation5 + $0x668] sm:$0xff] }
 0x26a   :  { %5872 = vmatprep.subr.bf16.mxu0 %v5871_v15  ;;  %6128 = vmatprep.subr.bf16.mxu1 %v6127_v19  ;;  %v5891_v15 = vpack.c.bf16 %v1778_v10, %v1765_v9  ;;  %v6147_v19 = vpack.c.bf16 %v1780_v12, %v1767_v11  ;;  %v223_v10 = vld [vmem:[#allocation5 + $0x328] sm:$0xff]  ;;  %v248_v12 = vld [vmem:[#allocation5 + $0x3f0] sm:$0xff] }
 0x26b   :  { %v235_v11 = vld [vmem:[#allocation5 + $0x388] sm:$0xff] }
 0x26c   :  { %v339_v63 = vld [vmem:[#allocation5 + $0x6c8] sm:$0xff] }
 0x26d   :  { %5874 = vmatpush1.bf16.msra.mxu0 %v5873_v25  ;;  %6130 = vmatpush1.bf16.msra.mxu1 %v6129_v26  ;;  %v5893_v25 = vpack.c.bf16 %v1777_v17, %v1764_v16  ;;  %v6149_v26 = vpack.c.bf16 %v1779_v20, %v1766_v18  ;;  %v6421_v16 = vpack.c.bf16 %v223_v10, %v210_v8  ;;  %v234_v18 = vld [vmem:[#allocation5 + $0x380] sm:$0xff]  ;;  %v236_v20 = vld [vmem:[#allocation5 + $0x390] sm:$0xff]  ;;  %v353_v10 = vld [vmem:[#allocation5 + $0x738] sm:$0xff] }
 0x26e   :  { %5876 = vmatprep.subr.bf16.mxu0 %v5875_v27  ;;  %6132 = vmatprep.subr.bf16.mxu1 %v6131_v32  ;;  %v6151_v27 = vpack.c.bf16 %v144_v22, %v131_v21  ;;  %v6407_v32 = vpack.c.bf16 %v146_v24, %v133_v23  ;;  %v6167_v17 = vpack.c.bf16 %v248_v12, %v235_v11  ;;  %v249_v22 = vld [vmem:[#allocation5 + $0x3f8] sm:$0xff]  ;;  %v274_v24 = vld [vmem:[#allocation5 + $0x4c0] sm:$0xff]  ;;  %v340_v8 = vld [vmem:[#allocation5 + $0x6d0] sm:$0xff] }
 0x26f   :  { %v261_v23 = vld [vmem:[#allocation5 + $0x458] sm:$0xff]  ;;  %v378_v12 = vld [vmem:[#allocation5 + $0x800] sm:$0xff] }
 0x270   :  { %v365_v11 = vld [vmem:[#allocation5 + $0x798] sm:$0xff] }
 0x271   :  { %5878 = vmatpush1.bf16.msra.mxu0 %v5877_v41  ;;  %6134 = vmatpush1.bf16.msra.mxu1 %v6133_v42  ;;  %v6153_v41 = vpack.c.bf16 %v143_v29, %v130_v28  ;;  %v6409_v42 = vpack.c.bf16 %v145_v33, %v132_v30  ;;  %v6425_v28 = vpack.c.bf16 %v249_v22, %v236_v20  ;;  %v260_v30 = vld [vmem:[#allocation5 + $0x450] sm:$0xff]  ;;  %v262_v33 = vld [vmem:[#allocation5 + $0x460] sm:$0xff]  ;;  %v379_v22 = vld [vmem:[#allocation5 + $0x808] sm:$0xff] }
 0x272   :  { %5880 = vmatprep.subr.bf16.mxu0 %v5879_v43  ;;  %6136 = vmatprep.subr.bf16.mxu1 %v6135_v47  ;;  %v6155_v43 = vpack.c.bf16 %v170_v35, %v157_v34  ;;  %v6411_v47 = vpack.c.bf16 %v172_v39, %v159_v38  ;;  %v6171_v29 = vpack.c.bf16 %v274_v24, %v261_v23  ;;  %v275_v35 = vld [vmem:[#allocation5 + $0x4c8] sm:$0xff]  ;;  %v300_v39 = vld [vmem:[#allocation5 + $0x590] sm:$0xff]  ;;  %v366_v20 = vld [vmem:[#allocation5 + $0x7a0] sm:$0xff] }
 0x273   :  { %v287_v38 = vld [vmem:[#allocation5 + $0x528] sm:$0xff]  ;;  %v404_v24 = vld [vmem:[#allocation5 + $0x8d0] sm:$0xff] }
 0x274   :  { %v391_v23 = vld [vmem:[#allocation5 + $0x868] sm:$0xff] }
 0x275   :  { %5882 = vmatpush1.bf16.msra.mxu0 %v5881_v53  ;;  %6138 = vmatpush1.bf16.msra.mxu1 %v6137_v54  ;;  %v198_v53 = vld [vmem:[#allocation5 + $0x260] sm:$0xff]  ;;  %v6157_v54 = vpack.c.bf16 %v169_v45, %v156_v44  ;;  %v6429_v44 = vpack.c.bf16 %v275_v35, %v262_v33  ;;  %v6175_v45 = vpack.c.bf16 %v300_v39, %v287_v38  ;;  %v392_v33 = vld [vmem:[#allocation5 + $0x870] sm:$0xff]  ;;  %v405_v35 = vld [vmem:[#allocation5 + $0x8d8] sm:$0xff] }
 0x276   :  { %5884 = vmatprep.subr.bf16.mxu0 %v5883_v55  ;;  %6140 = vmatprep.subr.bf16.mxu1 %v6139_v59  ;;  %v6413_v55 = vpack.c.bf16 %v171_v48, %v158_v46  ;;  %v184_v59 = vld [vmem:[#allocation5 + $0x1f0] sm:$0xff]  ;;  %v6415_v60 = vpack.c.bf16 %v198_v53, %v185_v52  ;;  %v286_v46 = vld [vmem:[#allocation5 + $0x520] sm:$0xff]  ;;  %v315_v53 = vld [vmem:[#allocation5 + $0x608] sm:$0xff] }
 0x277   :  { %v6417_v4 = vpack.c.bf16 %v197_v61, %v184_v59  ;;  %v288_v48 = vld [vmem:[#allocation5 + $0x530] sm:$0xff]  ;;  %v326_v52 = vld [vmem:[#allocation5 + $0x660] sm:$0xff]  ;;  %v325_v59 = vld [vmem:[#allocation5 + $0x658] sm:$0xff] }
 0x278   :  { %v417_v38 = vld [vmem:[#allocation5 + $0x938] sm:$0xff]  ;;  %v430_v39 = vld [vmem:[#allocation5 + $0x9a0] sm:$0xff] }
 0x279   :  { %5886 = vmatpush1.bf16.msra.mxu0 %v5885_v1  ;;  %6142 = vmatpush1.bf16.msra.mxu1 %v6141_v2  ;;  %v211_v1 = vld [vmem:[#allocation5 + $0x2c8] sm:$0xff]  ;;  %v224_v2 = vld [vmem:[#allocation5 + $0x330] sm:$0xff] }
 0x27a   :  { %5888 = vmatprep.subr.bf16.mxu0 %v5887_v3  ;;  %6144 = vmatprep.subr.bf16.mxu1 %v6143_v7  ;;  %v6161_v3 = vpack.c.bf16 %v195_v58, %v182_v57  ;;  %v221_v7 = vld [vmem:[#allocation5 + $0x318] sm:$0xff]  ;;  %v6419_v9 = vpack.c.bf16 %v224_v2, %v211_v1  ;;  %v312_v58 = vld [vmem:[#allocation5 + $0x5f0] sm:$0xff]  ;;  %v354_v2 = vld [vmem:[#allocation5 + $0x740] sm:$0xff] }
 0x27b   :  { %v341_v1 = vld [vmem:[#allocation5 + $0x6d8] sm:$0xff] }
 0x27d   :  { %5890 = vmatpush1.bf16.msra.mxu0 %v5889_v13  ;;  %6146 = vmatpush1.bf16.msra.mxu1 %v6145_v14  ;;  %v237_v13 = vld [vmem:[#allocation5 + $0x398] sm:$0xff]  ;;  %v250_v14 = vld [vmem:[#allocation5 + $0x400] sm:$0xff] }
 0x27e   :  { %5892 = vmatprep.subr.bf16.mxu0 %v5891_v15  ;;  %6148 = vmatprep.subr.bf16.mxu1 %v6147_v19  ;;  %v6165_v15 = vpack.c.bf16 %v221_v7, %v208_v6  ;;  %v247_v19 = vld [vmem:[#allocation5 + $0x3e8] sm:$0xff]  ;;  %v6423_v21 = vpack.c.bf16 %v250_v14, %v237_v13  ;;  %v338_v6 = vld [vmem:[#allocation5 + $0x6c0] sm:$0xff]  ;;  %v380_v14 = vld [vmem:[#allocation5 + $0x810] sm:$0xff] }
 0x27f   :  { %v351_v7 = vld [vmem:[#allocation5 + $0x728] sm:$0xff] }
 0x280   :  { %v367_v13 = vld [vmem:[#allocation5 + $0x7a8] sm:$0xff] }
 0x281   :  { %5894 = vmatpush1.bf16.msra.mxu0 %v5893_v25  ;;  %6150 = vmatpush1.bf16.msra.mxu1 %v6149_v26  ;;  %v263_v25 = vld [vmem:[#allocation5 + $0x468] sm:$0xff]  ;;  %v276_v26 = vld [vmem:[#allocation5 + $0x4d0] sm:$0xff] }
 0x282   :  { %6152 = vmatprep.subr.bf16.mxu0 %v6151_v27  ;;  %6408 = vmatprep.subr.bf16.mxu1 %v6407_v32  ;;  %v6169_v27 = vpack.c.bf16 %v247_v19, %v234_v18  ;;  %v273_v32 = vld [vmem:[#allocation5 + $0x4b8] sm:$0xff]  ;;  %v6427_v34 = vpack.c.bf16 %v276_v26, %v263_v25  ;;  %v364_v18 = vld [vmem:[#allocation5 + $0x790] sm:$0xff]  ;;  %v406_v26 = vld [vmem:[#allocation5 + $0x8e0] sm:$0xff] }
 0x283   :  { %v377_v19 = vld [vmem:[#allocation5 + $0x7f8] sm:$0xff] }
 0x284   :  { %2701 = vmatmul.mubr.f32.vlgmr.msra.gmra.mrb[2].mxu0 %v7101_v51  ;;  %2985 = vmatmul.mubr.f32.vlgmr.msra.gmra.mrb[2].mxu1 %v7101_v51  ;;  %v313_v51 = vld [vmem:[#allocation5 + $0x5f8] sm:$0xff] }
 0x285   :  { %6154 = vmatpush1.bf16.msra.mxu0 %v6153_v41  ;;  %6410 = vmatpush1.bf16.msra.mxu1 %v6409_v42  ;;  %v289_v41 = vld [vmem:[#allocation5 + $0x538] sm:$0xff]  ;;  %v302_v42 = vld [vmem:[#allocation5 + $0x5a0] sm:$0xff]  ;;  %v6179_v57 = vpack.c.bf16 %v326_v52, %v313_v51  ;;  %v443_v51 = vld [vmem:[#allocation5 + $0xa08] sm:$0xff] }
 0x286   :  { %6156 = vmatprep.subr.bf16.mxu0 %v6155_v43  ;;  %6412 = vmatprep.subr.bf16.mxu1 %v6411_v47  ;;  %v6173_v43 = vpack.c.bf16 %v273_v32, %v260_v30  ;;  %v299_v47 = vld [vmem:[#allocation5 + $0x588] sm:$0xff]  ;;  %v6431_v49 = vpack.c.bf16 %v302_v42, %v289_v41  ;;  %v393_v25 = vld [vmem:[#allocation5 + $0x878] sm:$0xff]  ;;  %v390_v30 = vld [vmem:[#allocation5 + $0x860] sm:$0xff] }
 0x287   :  { %3055 = vmatprep.mubr.f32.mxu0 %v7102_v0  ;;  %3339 = vmatprep.mubr.f32.mxu1 %v7102_v0  ;;  %v352_v0 = vld [vmem:[#allocation5 + $0x730] sm:$0xff]  ;;  %v403_v32 = vld [vmem:[#allocation5 + $0x8c8] sm:$0xff] }
 0x288   :  { %v419_v41 = vld [vmem:[#allocation5 + $0x948] sm:$0xff]  ;;  %v432_v42 = vld [vmem:[#allocation5 + $0x9b0] sm:$0xff] }
 0x289   :  { %6158 = vmatpush1.bf16.msra.mxu0 %v6157_v54  ;;  %6414 = vmatpush1.bf16.msra.mxu1 %v6413_v55  ;;  %v328_v54 = vld [vmem:[#allocation5 + $0x670] sm:$0xff]  ;;  %v6177_v55 = vpack.c.bf16 %v299_v47, %v286_v46  ;;  %v429_v47 = vld [vmem:[#allocation5 + $0x998] sm:$0xff] }
 0x28a   :  { %6160 = vmatprep.subr.bf16.mxu0 %v6159_v56  ;;  %6416 = vmatprep.subr.bf16.mxu1 %v6415_v60  ;;  %v6433_v56 = vpack.c.bf16 %v301_v50, %v288_v48  ;;  %v314_v60 = vld [vmem:[#allocation5 + $0x600] sm:$0xff]  ;;  %v6435_v61 = vpack.c.bf16 %v328_v54, %v315_v53  ;;  %v416_v46 = vld [vmem:[#allocation5 + $0x930] sm:$0xff]  ;;  %v431_v50 = vld [vmem:[#allocation5 + $0x9a8] sm:$0xff] }
 0x28b   :  { %v418_v48 = vld [vmem:[#allocation5 + $0x940] sm:$0xff]  ;;  %v456_v52 = vld [vmem:[#allocation5 + $0xa70] sm:$0xff]  ;;  %v445_v53 = vld [vmem:[#allocation5 + $0xa18] sm:$0xff] }
 0x28c   :  { %v458_v54 = vld [vmem:[#allocation5 + $0xa80] sm:$0xff] }
 0x28d   :  { %6162 = vmatpush1.bf16.msra.mxu0 %v6161_v3  ;;  %6418 = vmatpush1.bf16.msra.mxu1 %v6417_v4  ;;  %v6181_v3 = vpack.c.bf16 %v325_v59, %v312_v58  ;;  %v6437_v4 = vpack.c.bf16 %v327_v62, %v314_v60  ;;  %v442_v58 = vld [vmem:[#allocation5 + $0xa00] sm:$0xff]  ;;  %v455_v59 = vld [vmem:[#allocation5 + $0xa68] sm:$0xff]  ;;  %v444_v60 = vld [vmem:[#allocation5 + $0xa10] sm:$0xff] }
 0x28e   :  { %6164 = vmatprep.subr.bf16.mxu0 %v6163_v5  ;;  %6420 = vmatprep.subr.bf16.mxu1 %v6419_v9  ;;  %v6183_v5 = vpack.c.bf16 %v352_v0, %v339_v63  ;;  %v6439_v9 = vpack.c.bf16 %v354_v2, %v341_v1  ;;  %v457_v62 = vld [vmem:[#allocation5 + $0xa78] sm:$0xff]  ;;  %v482_v0 = vld [vmem:[#allocation5 + $0xb40] sm:$0xff]  ;;  %v471_v1 = vld [vmem:[#allocation5 + $0xae8] sm:$0xff] }
 0x28f   :  { %v469_v63 = vld [vmem:[#allocation5 + $0xad8] sm:$0xff]  ;;  %v484_v2 = vld [vmem:[#allocation5 + $0xb50] sm:$0xff] }
 0x291   :  { %6166 = vmatpush1.bf16.msra.mxu0 %v6165_v15  ;;  %6422 = vmatpush1.bf16.msra.mxu1 %v6421_v16  ;;  %v6185_v15 = vpack.c.bf16 %v351_v7, %v338_v6  ;;  %v6441_v16 = vpack.c.bf16 %v353_v10, %v340_v8  ;;  %v468_v6 = vld [vmem:[#allocation5 + $0xad0] sm:$0xff]  ;;  %v481_v7 = vld [vmem:[#allocation5 + $0xb38] sm:$0xff]  ;;  %v470_v8 = vld [vmem:[#allocation5 + $0xae0] sm:$0xff] }
 0x292   :  { %6168 = vmatprep.subr.bf16.mxu0 %v6167_v17  ;;  %6424 = vmatprep.subr.bf16.mxu1 %v6423_v21  ;;  %v6187_v17 = vpack.c.bf16 %v378_v12, %v365_v11  ;;  %v6443_v21 = vpack.c.bf16 %v380_v14, %v367_v13  ;;  %v483_v10 = vld [vmem:[#allocation5 + $0xb48] sm:$0xff]  ;;  %v508_v12 = vld [vmem:[#allocation5 + $0xc10] sm:$0xff]  ;;  %v497_v13 = vld [vmem:[#allocation5 + $0xbb8] sm:$0xff] }
 0x293   :  { %v495_v11 = vld [vmem:[#allocation5 + $0xba8] sm:$0xff]  ;;  %v510_v14 = vld [vmem:[#allocation5 + $0xc20] sm:$0xff] }
 0x295   :  { %6170 = vmatpush1.bf16.msra.mxu0 %v6169_v27  ;;  %6426 = vmatpush1.bf16.msra.mxu1 %v6425_v28  ;;  %v6189_v27 = vpack.c.bf16 %v377_v19, %v364_v18  ;;  %v6445_v28 = vpack.c.bf16 %v379_v22, %v366_v20  ;;  %v494_v18 = vld [vmem:[#allocation5 + $0xba0] sm:$0xff]  ;;  %v507_v19 = vld [vmem:[#allocation5 + $0xc08] sm:$0xff]  ;;  %v496_v20 = vld [vmem:[#allocation5 + $0xbb0] sm:$0xff] }
 0x296   :  { %6172 = vmatprep.subr.bf16.mxu0 %v6171_v29  ;;  %6428 = vmatprep.subr.bf16.mxu1 %v6427_v34  ;;  %v6191_v29 = vpack.c.bf16 %v404_v24, %v391_v23  ;;  %v6447_v34 = vpack.c.bf16 %v406_v26, %v393_v25  ;;  %v509_v22 = vld [vmem:[#allocation5 + $0xc18] sm:$0xff]  ;;  %v534_v24 = vld [vmem:[#allocation5 + $0xce0] sm:$0xff]  ;;  %v523_v25 = vld [vmem:[#allocation5 + $0xc88] sm:$0xff] }
 0x297   :  { %v521_v23 = vld [vmem:[#allocation5 + $0xc78] sm:$0xff]  ;;  %v536_v26 = vld [vmem:[#allocation5 + $0xcf0] sm:$0xff] }
 0x299   :  { %6174 = vmatpush1.bf16.msra.mxu0 %v6173_v43  ;;  %6430 = vmatpush1.bf16.msra.mxu1 %v6429_v44  ;;  %v6193_v43 = vpack.c.bf16 %v403_v32, %v390_v30  ;;  %v6449_v44 = vpack.c.bf16 %v405_v35, %v392_v33  ;;  %v520_v30 = vld [vmem:[#allocation5 + $0xc70] sm:$0xff]  ;;  %v533_v32 = vld [vmem:[#allocation5 + $0xcd8] sm:$0xff]  ;;  %v522_v33 = vld [vmem:[#allocation5 + $0xc80] sm:$0xff] }
 0x29a   :  { %6176 = vmatprep.subr.bf16.mxu0 %v6175_v45  ;;  %6432 = vmatprep.subr.bf16.mxu1 %v6431_v49  ;;  %v6195_v45 = vpack.c.bf16 %v430_v39, %v417_v38  ;;  %v6451_v49 = vpack.c.bf16 %v432_v42, %v419_v41  ;;  %v535_v35 = vld [vmem:[#allocation5 + $0xce8] sm:$0xff]  ;;  %v560_v39 = vld [vmem:[#allocation5 + $0xdb0] sm:$0xff]  ;;  %v549_v41 = vld [vmem:[#allocation5 + $0xd58] sm:$0xff] }
 0x29b   :  { %v547_v38 = vld [vmem:[#allocation5 + $0xd48] sm:$0xff]  ;;  %v562_v42 = vld [vmem:[#allocation5 + $0xdc0] sm:$0xff] }
 0x29d   :  { %6178 = vmatpush1.bf16.msra.mxu0 %v6177_v55  ;;  %6434 = vmatpush1.bf16.msra.mxu1 %v6433_v56  ;;  %v6197_v55 = vpack.c.bf16 %v429_v47, %v416_v46  ;;  %v6453_v56 = vpack.c.bf16 %v431_v50, %v418_v48  ;;  %v546_v46 = vld [vmem:[#allocation5 + $0xd40] sm:$0xff]  ;;  %v559_v47 = vld [vmem:[#allocation5 + $0xda8] sm:$0xff]  ;;  %v548_v48 = vld [vmem:[#allocation5 + $0xd50] sm:$0xff] }
 0x29e   :  { %6180 = vmatprep.subr.bf16.mxu0 %v6179_v57  ;;  %6436 = vmatprep.subr.bf16.mxu1 %v6435_v61  ;;  %v6199_v57 = vpack.c.bf16 %v456_v52, %v443_v51  ;;  %v6455_v61 = vpack.c.bf16 %v458_v54, %v445_v53  ;;  %v561_v50 = vld [vmem:[#allocation5 + $0xdb8] sm:$0xff]  ;;  %v586_v52 = vld [vmem:[#allocation5 + $0xe80] sm:$0xff]  ;;  %v575_v53 = vld [vmem:[#allocation5 + $0xe28] sm:$0xff] }
 0x29f   :  { %v573_v51 = vld [vmem:[#allocation5 + $0xe18] sm:$0xff]  ;;  %v588_v54 = vld [vmem:[#allocation5 + $0xe90] sm:$0xff] }
 0x2a1   :  { %6182 = vmatpush1.bf16.msra.mxu0 %v6181_v3  ;;  %6438 = vmatpush1.bf16.msra.mxu1 %v6437_v4  ;;  %v6201_v3 = vpack.c.bf16 %v455_v59, %v442_v58  ;;  %v6457_v4 = vpack.c.bf16 %v457_v62, %v444_v60  ;;  %v572_v58 = vld [vmem:[#allocation5 + $0xe10] sm:$0xff]  ;;  %v585_v59 = vld [vmem:[#allocation5 + $0xe78] sm:$0xff]  ;;  %v574_v60 = vld [vmem:[#allocation5 + $0xe20] sm:$0xff] }
 0x2a2   :  { %6184 = vmatprep.subr.bf16.mxu0 %v6183_v5  ;;  %6440 = vmatprep.subr.bf16.mxu1 %v6439_v9  ;;  %v6203_v5 = vpack.c.bf16 %v482_v0, %v469_v63  ;;  %v6459_v9 = vpack.c.bf16 %v484_v2, %v471_v1  ;;  %v587_v62 = vld [vmem:[#allocation5 + $0xe88] sm:$0xff]  ;;  %v612_v0 = vld [vmem:[#allocation5 + $0xf50] sm:$0xff]  ;;  %v7103_v1 = vld [vmem:[#allocation2] sm:$0xff] }
 0x2a3   :  { %v599_v63 = vld [vmem:[#allocation5 + $0xee8] sm:$0xff]  ;;  %v601_v2 = vld [vmem:[#allocation5 + $0xef8] sm:$0xff] }
 0x2a5   :  { %6186 = vmatpush1.bf16.msra.mxu0 %v6185_v15  ;;  %6442 = vmatpush1.bf16.msra.mxu1 %v6441_v16  ;;  %v6205_v15 = vpack.c.bf16 %v481_v7, %v468_v6  ;;  %v6461_v16 = vpack.c.bf16 %v483_v10, %v470_v8  ;;  %v6223_v6 = vpack.c.bf16 %v612_v0, %v599_v63  ;;  %v598_v7 = vld [vmem:[#allocation5 + $0xee0] sm:$0xff]  ;;  %v611_v8 = vld [vmem:[#allocation5 + $0xf48] sm:$0xff]  ;;  %v717_v0 = vld [vmem:[#allocation5 + $0x1298] sm:$0xff] }
 0x2a6   :  { %6188 = vmatprep.subr.bf16.mxu0 %v6187_v17  ;;  %6444 = vmatprep.subr.bf16.mxu1 %v6443_v21  ;;  %v6207_v17 = vpack.c.bf16 %v508_v12, %v495_v11  ;;  %v6463_v21 = vpack.c.bf16 %v510_v14, %v497_v13  ;;  %v613_v11 = vld [vmem:[#allocation5 + $0xf58] sm:$0xff]  ;;  %v638_v13 = vld [vmem:[#allocation5 + $0x1020] sm:$0xff] }
 0x2a7   :  { %v625_v12 = vld [vmem:[#allocation5 + $0xfb8] sm:$0xff] }
 0x2a8   :  { %v7104_v14 = vld [vmem:[#allocation2 + $0x18] sm:$0xff] }
 0x2a9   :  { %6190 = vmatpush1.bf16.msra.mxu0 %v6189_v27  ;;  %6446 = vmatpush1.bf16.msra.mxu1 %v6445_v28  ;;  %v6209_v27 = vpack.c.bf16 %v507_v19, %v494_v18  ;;  %v6465_v28 = vpack.c.bf16 %v509_v22, %v496_v20  ;;  %v6227_v19 = vpack.c.bf16 %v638_v13, %v625_v12  ;;  %v624_v20 = vld [vmem:[#allocation5 + $0xfb0] sm:$0xff]  ;;  %v626_v22 = vld [vmem:[#allocation5 + $0xfc0] sm:$0xff]  ;;  %v743_v12 = vld [vmem:[#allocation5 + $0x1368] sm:$0xff] }
 0x2aa   :  { %6192 = vmatprep.subr.bf16.mxu0 %v6191_v29  ;;  %6448 = vmatprep.subr.bf16.mxu1 %v6447_v34  ;;  %v6211_v29 = vpack.c.bf16 %v534_v24, %v521_v23  ;;  %v6467_v34 = vpack.c.bf16 %v536_v26, %v523_v25  ;;  %v639_v24 = vld [vmem:[#allocation5 + $0x1028] sm:$0xff]  ;;  %v664_v26 = vld [vmem:[#allocation5 + $0x10f0] sm:$0xff] }
 0x2ab   :  { %v651_v25 = vld [vmem:[#allocation5 + $0x1088] sm:$0xff] }
 0x2ac   :  { %v755_v13 = vld [vmem:[#allocation5 + $0x13c8] sm:$0xff] }
 0x2ad   :  { %6194 = vmatpush1.bf16.msra.mxu0 %v6193_v43  ;;  %6450 = vmatpush1.bf16.msra.mxu1 %v6449_v44  ;;  %v6213_v43 = vpack.c.bf16 %v533_v32, %v520_v30  ;;  %v6469_v44 = vpack.c.bf16 %v535_v35, %v522_v33  ;;  %v6485_v30 = vpack.c.bf16 %v639_v24, %v626_v22  ;;  %v650_v33 = vld [vmem:[#allocation5 + $0x1080] sm:$0xff]  ;;  %v652_v35 = vld [vmem:[#allocation5 + $0x1090] sm:$0xff]  ;;  %v769_v24 = vld [vmem:[#allocation5 + $0x1438] sm:$0xff] }
 0x2ae   :  { %6196 = vmatprep.subr.bf16.mxu0 %v6195_v45  ;;  %6452 = vmatprep.subr.bf16.mxu1 %v6451_v49  ;;  %v6215_v45 = vpack.c.bf16 %v560_v39, %v547_v38  ;;  %v6471_v49 = vpack.c.bf16 %v562_v42, %v549_v41  ;;  %v6231_v32 = vpack.c.bf16 %v664_v26, %v651_v25  ;;  %v665_v39 = vld [vmem:[#allocation5 + $0x10f8] sm:$0xff]  ;;  %v690_v42 = vld [vmem:[#allocation5 + $0x11c0] sm:$0xff]  ;;  %v756_v22 = vld [vmem:[#allocation5 + $0x13d0] sm:$0xff] }
 0x2af   :  { %v677_v41 = vld [vmem:[#allocation5 + $0x1158] sm:$0xff]  ;;  %v794_v26 = vld [vmem:[#allocation5 + $0x1500] sm:$0xff] }
 0x2b0   :  { %v781_v25 = vld [vmem:[#allocation5 + $0x1498] sm:$0xff] }
 0x2b1   :  { %6198 = vmatpush1.bf16.msra.mxu0 %v6197_v55  ;;  %6454 = vmatpush1.bf16.msra.mxu1 %v6453_v56  ;;  %v6217_v55 = vpack.c.bf16 %v559_v47, %v546_v46  ;;  %v6473_v56 = vpack.c.bf16 %v561_v50, %v548_v48  ;;  %v6489_v46 = vpack.c.bf16 %v665_v39, %v652_v35  ;;  %v676_v48 = vld [vmem:[#allocation5 + $0x1150] sm:$0xff]  ;;  %v678_v50 = vld [vmem:[#allocation5 + $0x1160] sm:$0xff]  ;;  %v795_v39 = vld [vmem:[#allocation5 + $0x1508] sm:$0xff] }
 0x2b2   :  { %6200 = vmatprep.subr.bf16.mxu0 %v6199_v57  ;;  %6456 = vmatprep.subr.bf16.mxu1 %v6455_v61  ;;  %v6219_v57 = vpack.c.bf16 %v586_v52, %v573_v51  ;;  %v6475_v61 = vpack.c.bf16 %v588_v54, %v575_v53  ;;  %v6235_v47 = vpack.c.bf16 %v690_v42, %v677_v41  ;;  %v691_v52 = vld [vmem:[#allocation5 + $0x11c8] sm:$0xff]  ;;  %v716_v54 = vld [vmem:[#allocation5 + $0x1290] sm:$0xff]  ;;  %v782_v35 = vld [vmem:[#allocation5 + $0x14a0] sm:$0xff] }
 0x2b3   :  { %v703_v53 = vld [vmem:[#allocation5 + $0x1228] sm:$0xff]  ;;  %v820_v42 = vld [vmem:[#allocation5 + $0x15d0] sm:$0xff] }
 0x2b4   :  { %v807_v41 = vld [vmem:[#allocation5 + $0x1568] sm:$0xff] }
 0x2b5   :  { %6202 = vmatpush1.bf16.msra.mxu0 %v6201_v3  ;;  %6458 = vmatpush1.bf16.msra.mxu1 %v6457_v4  ;;  %v614_v3 = vld [vmem:[#allocation5 + $0xf60] sm:$0xff]  ;;  %v6221_v4 = vpack.c.bf16 %v585_v59, %v572_v58  ;;  %v6493_v58 = vpack.c.bf16 %v691_v52, %v678_v50  ;;  %v6239_v59 = vpack.c.bf16 %v716_v54, %v703_v53  ;;  %v808_v50 = vld [vmem:[#allocation5 + $0x1570] sm:$0xff]  ;;  %v821_v52 = vld [vmem:[#allocation5 + $0x15d8] sm:$0xff] }
 0x2b6   :  { %6204 = vmatprep.subr.bf16.mxu0 %v6203_v5  ;;  %6460 = vmatprep.subr.bf16.mxu1 %v6459_v9  ;;  %v6477_v5 = vpack.c.bf16 %v587_v62, %v574_v60  ;;  %v600_v9 = vld [vmem:[#allocation5 + $0xef0] sm:$0xff]  ;;  %v6479_v10 = vpack.c.bf16 %v614_v3, %v601_v2  ;;  %v702_v60 = vld [vmem:[#allocation5 + $0x1220] sm:$0xff]  ;;  %v731_v3 = vld [vmem:[#allocation5 + $0x1308] sm:$0xff] }
 0x2b7   :  { %v6481_v18 = vpack.c.bf16 %v613_v11, %v600_v9  ;;  %v704_v62 = vld [vmem:[#allocation5 + $0x1230] sm:$0xff]  ;;  %v742_v2 = vld [vmem:[#allocation5 + $0x1360] sm:$0xff]  ;;  %v741_v9 = vld [vmem:[#allocation5 + $0x1358] sm:$0xff] }
 0x2b8   :  { %v833_v53 = vld [vmem:[#allocation5 + $0x1638] sm:$0xff]  ;;  %v846_v54 = vld [vmem:[#allocation5 + $0x16a0] sm:$0xff] }
 0x2b9   :  { %6206 = vmatpush1.bf16.msra.mxu0 %v6205_v15  ;;  %6462 = vmatpush1.bf16.msra.mxu1 %v6461_v16  ;;  %v627_v15 = vld [vmem:[#allocation5 + $0xfc8] sm:$0xff]  ;;  %v640_v16 = vld [vmem:[#allocation5 + $0x1030] sm:$0xff] }
 0x2ba   :  { %6208 = vmatprep.subr.bf16.mxu0 %v6207_v17  ;;  %6464 = vmatprep.subr.bf16.mxu1 %v6463_v21  ;;  %v6225_v17 = vpack.c.bf16 %v611_v8, %v598_v7  ;;  %v637_v21 = vld [vmem:[#allocation5 + $0x1018] sm:$0xff]  ;;  %v6483_v23 = vpack.c.bf16 %v640_v16, %v627_v15  ;;  %v728_v8 = vld [vmem:[#allocation5 + $0x12f0] sm:$0xff]  ;;  %v770_v16 = vld [vmem:[#allocation5 + $0x1440] sm:$0xff] }
 0x2bb   :  { %v757_v15 = vld [vmem:[#allocation5 + $0x13d8] sm:$0xff] }
 0x2bd   :  { %6210 = vmatpush1.bf16.msra.mxu0 %v6209_v27  ;;  %6466 = vmatpush1.bf16.msra.mxu1 %v6465_v28  ;;  %v653_v27 = vld [vmem:[#allocation5 + $0x1098] sm:$0xff]  ;;  %v666_v28 = vld [vmem:[#allocation5 + $0x1100] sm:$0xff] }
 0x2be   :  { %6212 = vmatprep.subr.bf16.mxu0 %v6211_v29  ;;  %6468 = vmatprep.subr.bf16.mxu1 %v6467_v34  ;;  %v6229_v29 = vpack.c.bf16 %v637_v21, %v624_v20  ;;  %v663_v34 = vld [vmem:[#allocation5 + $0x10e8] sm:$0xff]  ;;  %v6487_v38 = vpack.c.bf16 %v666_v28, %v653_v27  ;;  %v754_v20 = vld [vmem:[#allocation5 + $0x13c0] sm:$0xff]  ;;  %v796_v28 = vld [vmem:[#allocation5 + $0x1510] sm:$0xff] }
 0x2bf   :  { %v767_v21 = vld [vmem:[#allocation5 + $0x1428] sm:$0xff] }
 0x2c0   :  { %v783_v27 = vld [vmem:[#allocation5 + $0x14a8] sm:$0xff] }
 0x2c1   :  { %6214 = vmatpush1.bf16.msra.mxu0 %v6213_v43  ;;  %6470 = vmatpush1.bf16.msra.mxu1 %v6469_v44  ;;  %v679_v43 = vld [vmem:[#allocation5 + $0x1168] sm:$0xff]  ;;  %v692_v44 = vld [vmem:[#allocation5 + $0x11d0] sm:$0xff] }
 0x2c2   :  { %6216 = vmatprep.subr.bf16.mxu0 %v6215_v45  ;;  %6472 = vmatprep.subr.bf16.mxu1 %v6471_v49  ;;  %v6233_v45 = vpack.c.bf16 %v663_v34, %v650_v33  ;;  %v689_v49 = vld [vmem:[#allocation5 + $0x11b8] sm:$0xff]  ;;  %v6491_v51 = vpack.c.bf16 %v692_v44, %v679_v43  ;;  %v780_v33 = vld [vmem:[#allocation5 + $0x1490] sm:$0xff]  ;;  %v822_v44 = vld [vmem:[#allocation5 + $0x15e0] sm:$0xff] }
 0x2c3   :  { %v793_v34 = vld [vmem:[#allocation5 + $0x14f8] sm:$0xff] }
 0x2c4   :  { %3056 = vmatmul.mubr.f32.vlgmr.msra.gmra.mrb[4].mxu0 %v7103_v1  ;;  %3340 = vmatmul.mubr.f32.vlgmr.msra.gmra.mrb[4].mxu1 %v7103_v1  ;;  %v729_v1 = vld [vmem:[#allocation5 + $0x12f8] sm:$0xff] }
 0x2c5   :  { %6218 = vmatpush1.bf16.msra.mxu0 %v6217_v55  ;;  %6474 = vmatpush1.bf16.msra.mxu1 %v6473_v56  ;;  %v705_v55 = vld [vmem:[#allocation5 + $0x1238] sm:$0xff]  ;;  %v718_v56 = vld [vmem:[#allocation5 + $0x12a0] sm:$0xff]  ;;  %v6243_v7 = vpack.c.bf16 %v742_v2, %v729_v1  ;;  %v859_v1 = vld [vmem:[#allocation5 + $0x1708] sm:$0xff] }
 0x2c6   :  { %6220 = vmatprep.subr.bf16.mxu0 %v6219_v57  ;;  %6476 = vmatprep.subr.bf16.mxu1 %v6475_v61  ;;  %v6237_v57 = vpack.c.bf16 %v689_v49, %v676_v48  ;;  %v715_v61 = vld [vmem:[#allocation5 + $0x1288] sm:$0xff]  ;;  %v6495_v63 = vpack.c.bf16 %v718_v56, %v705_v55  ;;  %v809_v43 = vld [vmem:[#allocation5 + $0x1578] sm:$0xff]  ;;  %v806_v48 = vld [vmem:[#allocation5 + $0x1560] sm:$0xff] }
 0x2c7   :  { %3126 = vmatprep.mubr.f32.mxu0 %v7104_v14  ;;  %3410 = vmatprep.mubr.f32.mxu1 %v7104_v14  ;;  %v768_v14 = vld [vmem:[#allocation5 + $0x1430] sm:$0xff]  ;;  %v819_v49 = vld [vmem:[#allocation5 + $0x15c8] sm:$0xff] }
 0x2c8   :  { %v835_v55 = vld [vmem:[#allocation5 + $0x1648] sm:$0xff]  ;;  %v848_v56 = vld [vmem:[#allocation5 + $0x16b0] sm:$0xff] }
 0x2c9   :  { %6222 = vmatpush1.bf16.msra.mxu0 %v6221_v4  ;;  %6478 = vmatpush1.bf16.msra.mxu1 %v6477_v5  ;;  %v744_v4 = vld [vmem:[#allocation5 + $0x1370] sm:$0xff]  ;;  %v6241_v5 = vpack.c.bf16 %v715_v61, %v702_v60  ;;  %v845_v61 = vld [vmem:[#allocation5 + $0x1698] sm:$0xff] }
 0x2ca   :  { %6224 = vmatprep.subr.bf16.mxu0 %v6223_v6  ;;  %6480 = vmatprep.subr.bf16.mxu1 %v6479_v10  ;;  %v6497_v6 = vpack.c.bf16 %v717_v0, %v704_v62  ;;  %v730_v10 = vld [vmem:[#allocation5 + $0x1300] sm:$0xff]  ;;  %v6499_v11 = vpack.c.bf16 %v744_v4, %v731_v3  ;;  %v832_v60 = vld [vmem:[#allocation5 + $0x1630] sm:$0xff]  ;;  %v847_v0 = vld [vmem:[#allocation5 + $0x16a8] sm:$0xff] }
 0x2cb   :  { %v834_v62 = vld [vmem:[#allocation5 + $0x1640] sm:$0xff]  ;;  %v872_v2 = vld [vmem:[#allocation5 + $0x1770] sm:$0xff]  ;;  %v861_v3 = vld [vmem:[#allocation5 + $0x1718] sm:$0xff] }
 0x2cc   :  { %v874_v4 = vld [vmem:[#allocation5 + $0x1780] sm:$0xff] }
 0x2cd   :  { %6226 = vmatpush1.bf16.msra.mxu0 %v6225_v17  ;;  %6482 = vmatpush1.bf16.msra.mxu1 %v6481_v18  ;;  %v6245_v17 = vpack.c.bf16 %v741_v9, %v728_v8  ;;  %v6501_v18 = vpack.c.bf16 %v743_v12, %v730_v10  ;;  %v858_v8 = vld [vmem:[#allocation5 + $0x1700] sm:$0xff]  ;;  %v871_v9 = vld [vmem:[#allocation5 + $0x1768] sm:$0xff]  ;;  %v860_v10 = vld [vmem:[#allocation5 + $0x1710] sm:$0xff] }
 0x2ce   :  { %6228 = vmatprep.subr.bf16.mxu0 %v6227_v19  ;;  %6484 = vmatprep.subr.bf16.mxu1 %v6483_v23  ;;  %v6247_v19 = vpack.c.bf16 %v768_v14, %v755_v13  ;;  %v6503_v23 = vpack.c.bf16 %v770_v16, %v757_v15  ;;  %v873_v12 = vld [vmem:[#allocation5 + $0x1778] sm:$0xff]  ;;  %v898_v14 = vld [vmem:[#allocation5 + $0x1840] sm:$0xff]  ;;  %v887_v15 = vld [vmem:[#allocation5 + $0x17e8] sm:$0xff] }
 0x2cf   :  { %v885_v13 = vld [vmem:[#allocation5 + $0x17d8] sm:$0xff]  ;;  %v900_v16 = vld [vmem:[#allocation5 + $0x1850] sm:$0xff] }
 0x2d1   :  { %6230 = vmatpush1.bf16.msra.mxu0 %v6229_v29  ;;  %6486 = vmatpush1.bf16.msra.mxu1 %v6485_v30  ;;  %v6249_v29 = vpack.c.bf16 %v767_v21, %v754_v20  ;;  %v6505_v30 = vpack.c.bf16 %v769_v24, %v756_v22  ;;  %v884_v20 = vld [vmem:[#allocation5 + $0x17d0] sm:$0xff]  ;;  %v897_v21 = vld [vmem:[#allocation5 + $0x1838] sm:$0xff]  ;;  %v886_v22 = vld [vmem:[#allocation5 + $0x17e0] sm:$0xff] }
 0x2d2   :  { %6232 = vmatprep.subr.bf16.mxu0 %v6231_v32  ;;  %6488 = vmatprep.subr.bf16.mxu1 %v6487_v38  ;;  %v6251_v32 = vpack.c.bf16 %v794_v26, %v781_v25  ;;  %v6507_v38 = vpack.c.bf16 %v796_v28, %v783_v27  ;;  %v899_v24 = vld [vmem:[#allocation5 + $0x1848] sm:$0xff]  ;;  %v924_v26 = vld [vmem:[#allocation5 + $0x1910] sm:$0xff]  ;;  %v913_v27 = vld [vmem:[#allocation5 + $0x18b8] sm:$0xff] }
 0x2d3   :  { %v911_v25 = vld [vmem:[#allocation5 + $0x18a8] sm:$0xff]  ;;  %v926_v28 = vld [vmem:[#allocation5 + $0x1920] sm:$0xff] }
 0x2d5   :  { %6234 = vmatpush1.bf16.msra.mxu0 %v6233_v45  ;;  %6490 = vmatpush1.bf16.msra.mxu1 %v6489_v46  ;;  %v6253_v45 = vpack.c.bf16 %v793_v34, %v780_v33  ;;  %v6509_v46 = vpack.c.bf16 %v795_v39, %v782_v35  ;;  %v910_v33 = vld [vmem:[#allocation5 + $0x18a0] sm:$0xff]  ;;  %v923_v34 = vld [vmem:[#allocation5 + $0x1908] sm:$0xff]  ;;  %v912_v35 = vld [vmem:[#allocation5 + $0x18b0] sm:$0xff] }
 0x2d6   :  { %6236 = vmatprep.subr.bf16.mxu0 %v6235_v47  ;;  %6492 = vmatprep.subr.bf16.mxu1 %v6491_v51  ;;  %v6255_v47 = vpack.c.bf16 %v820_v42, %v807_v41  ;;  %v6511_v51 = vpack.c.bf16 %v822_v44, %v809_v43  ;;  %v925_v39 = vld [vmem:[#allocation5 + $0x1918] sm:$0xff]  ;;  %v950_v42 = vld [vmem:[#allocation5 + $0x19e0] sm:$0xff]  ;;  %v939_v43 = vld [vmem:[#allocation5 + $0x1988] sm:$0xff] }
 0x2d7   :  { %v937_v41 = vld [vmem:[#allocation5 + $0x1978] sm:$0xff]  ;;  %v952_v44 = vld [vmem:[#allocation5 + $0x19f0] sm:$0xff] }
 0x2d9   :  { %6238 = vmatpush1.bf16.msra.mxu0 %v6237_v57  ;;  %6494 = vmatpush1.bf16.msra.mxu1 %v6493_v58  ;;  %v6257_v57 = vpack.c.bf16 %v819_v49, %v806_v48  ;;  %v6513_v58 = vpack.c.bf16 %v821_v52, %v808_v50  ;;  %v936_v48 = vld [vmem:[#allocation5 + $0x1970] sm:$0xff]  ;;  %v949_v49 = vld [vmem:[#allocation5 + $0x19d8] sm:$0xff]  ;;  %v938_v50 = vld [vmem:[#allocation5 + $0x1980] sm:$0xff] }
 0x2da   :  { %6240 = vmatprep.subr.bf16.mxu0 %v6239_v59  ;;  %6496 = vmatprep.subr.bf16.mxu1 %v6495_v63  ;;  %v6259_v59 = vpack.c.bf16 %v846_v54, %v833_v53  ;;  %v6515_v63 = vpack.c.bf16 %v848_v56, %v835_v55  ;;  %v951_v52 = vld [vmem:[#allocation5 + $0x19e8] sm:$0xff]  ;;  %v976_v54 = vld [vmem:[#allocation5 + $0x1ab0] sm:$0xff]  ;;  %v965_v55 = vld [vmem:[#allocation5 + $0x1a58] sm:$0xff] }
 0x2db   :  { %v963_v53 = vld [vmem:[#allocation5 + $0x1a48] sm:$0xff]  ;;  %v978_v56 = vld [vmem:[#allocation5 + $0x1ac0] sm:$0xff] }
 0x2dd   :  { %6242 = vmatpush1.bf16.msra.mxu0 %v6241_v5  ;;  %6498 = vmatpush1.bf16.msra.mxu1 %v6497_v6  ;;  %v6261_v5 = vpack.c.bf16 %v845_v61, %v832_v60  ;;  %v6517_v6 = vpack.c.bf16 %v847_v0, %v834_v62  ;;  %v962_v60 = vld [vmem:[#allocation5 + $0x1a40] sm:$0xff]  ;;  %v975_v61 = vld [vmem:[#allocation5 + $0x1aa8] sm:$0xff]  ;;  %v964_v62 = vld [vmem:[#allocation5 + $0x1a50] sm:$0xff] }
 0x2de   :  { %6244 = vmatprep.subr.bf16.mxu0 %v6243_v7  ;;  %6500 = vmatprep.subr.bf16.mxu1 %v6499_v11  ;;  %v6263_v7 = vpack.c.bf16 %v872_v2, %v859_v1  ;;  %v6519_v11 = vpack.c.bf16 %v874_v4, %v861_v3  ;;  %v977_v0 = vld [vmem:[#allocation5 + $0x1ab8] sm:$0xff]  ;;  %v1002_v2 = vld [vmem:[#allocation5 + $0x1b80] sm:$0xff]  ;;  %v991_v3 = vld [vmem:[#allocation5 + $0x1b28] sm:$0xff] }
 0x2df   :  { %v989_v1 = vld [vmem:[#allocation5 + $0x1b18] sm:$0xff]  ;;  %v1004_v4 = vld [vmem:[#allocation5 + $0x1b90] sm:$0xff] }
 0x2e1   :  { %6246 = vmatpush1.bf16.msra.mxu0 %v6245_v17  ;;  %6502 = vmatpush1.bf16.msra.mxu1 %v6501_v18  ;;  %v6265_v17 = vpack.c.bf16 %v871_v9, %v858_v8  ;;  %v6521_v18 = vpack.c.bf16 %v873_v12, %v860_v10  ;;  %v988_v8 = vld [vmem:[#allocation5 + $0x1b10] sm:$0xff]  ;;  %v1001_v9 = vld [vmem:[#allocation5 + $0x1b78] sm:$0xff]  ;;  %v990_v10 = vld [vmem:[#allocation5 + $0x1b20] sm:$0xff] }
 0x2e2   :  { %6248 = vmatprep.subr.bf16.mxu0 %v6247_v19  ;;  %6504 = vmatprep.subr.bf16.mxu1 %v6503_v23  ;;  %v6267_v19 = vpack.c.bf16 %v898_v14, %v885_v13  ;;  %v6523_v23 = vpack.c.bf16 %v900_v16, %v887_v15  ;;  %v1003_v12 = vld [vmem:[#allocation5 + $0x1b88] sm:$0xff]  ;;  %v1028_v14 = vld [vmem:[#allocation5 + $0x1c50] sm:$0xff]  ;;  %v1017_v16 = vld [vmem:[#allocation5 + $0x1bf8] sm:$0xff] }
 0x2e3   :  { %v1015_v13 = vld [vmem:[#allocation5 + $0x1be8] sm:$0xff]  ;;  %v7105_v15 = vld [vmem:[#allocation2 + $0x10] sm:$0xff] }
 0x2e5   :  { %6250 = vmatpush1.bf16.msra.mxu0 %v6249_v29  ;;  %6506 = vmatpush1.bf16.msra.mxu1 %v6505_v30  ;;  %v6269_v29 = vpack.c.bf16 %v897_v21, %v884_v20  ;;  %v6525_v30 = vpack.c.bf16 %v899_v24, %v886_v22  ;;  %v6287_v20 = vpack.c.bf16 %v1028_v14, %v1015_v13  ;;  %v1014_v21 = vld [vmem:[#allocation5 + $0x1be0] sm:$0xff]  ;;  %v1027_v22 = vld [vmem:[#allocation5 + $0x1c48] sm:$0xff]  ;;  %v1133_v14 = vld [vmem:[#allocation5 + $0x1f98] sm:$0xff] }
 0x2e6   :  { %6252 = vmatprep.subr.bf16.mxu0 %v6251_v32  ;;  %6508 = vmatprep.subr.bf16.mxu1 %v6507_v38  ;;  %v6271_v32 = vpack.c.bf16 %v924_v26, %v911_v25  ;;  %v6527_v38 = vpack.c.bf16 %v926_v28, %v913_v27  ;;  %v1029_v25 = vld [vmem:[#allocation5 + $0x1c58] sm:$0xff]  ;;  %v1054_v27 = vld [vmem:[#allocation5 + $0x1d20] sm:$0xff]  ;;  %v7106_v28 = vld [vmem:[#allocation2 + $0x28] sm:$0xff] }
 0x2e7   :  { %v1041_v26 = vld [vmem:[#allocation5 + $0x1cb8] sm:$0xff] }
 0x2e9   :  { %6254 = vmatpush1.bf16.msra.mxu0 %v6253_v45  ;;  %6510 = vmatpush1.bf16.msra.mxu1 %v6509_v46  ;;  %v6273_v45 = vpack.c.bf16 %v923_v34, %v910_v33  ;;  %v6529_v46 = vpack.c.bf16 %v925_v39, %v912_v35  ;;  %v6291_v34 = vpack.c.bf16 %v1054_v27, %v1041_v26  ;;  %v1040_v35 = vld [vmem:[#allocation5 + $0x1cb0] sm:$0xff]  ;;  %v1042_v39 = vld [vmem:[#allocation5 + $0x1cc0] sm:$0xff]  ;;  %v1159_v26 = vld [vmem:[#allocation5 + $0x2068] sm:$0xff] }
 0x2ea   :  { %6256 = vmatprep.subr.bf16.mxu0 %v6255_v47  ;;  %6512 = vmatprep.subr.bf16.mxu1 %v6511_v51  ;;  %v6275_v47 = vpack.c.bf16 %v950_v42, %v937_v41  ;;  %v6531_v51 = vpack.c.bf16 %v952_v44, %v939_v43  ;;  %v1055_v42 = vld [vmem:[#allocation5 + $0x1d28] sm:$0xff]  ;;  %v1080_v44 = vld [vmem:[#allocation5 + $0x1df0] sm:$0xff] }
 0x2eb   :  { %v1067_v43 = vld [vmem:[#allocation5 + $0x1d88] sm:$0xff] }
 0x2ec   :  { %v1171_v27 = vld [vmem:[#allocation5 + $0x20c8] sm:$0xff] }
 0x2ed   :  { %6258 = vmatpush1.bf16.msra.mxu0 %v6257_v57  ;;  %6514 = vmatpush1.bf16.msra.mxu1 %v6513_v58  ;;  %v6277_v57 = vpack.c.bf16 %v949_v49, %v936_v48  ;;  %v6533_v58 = vpack.c.bf16 %v951_v52, %v938_v50  ;;  %v6549_v48 = vpack.c.bf16 %v1055_v42, %v1042_v39  ;;  %v1066_v50 = vld [vmem:[#allocation5 + $0x1d80] sm:$0xff]  ;;  %v1068_v52 = vld [vmem:[#allocation5 + $0x1d90] sm:$0xff]  ;;  %v1185_v42 = vld [vmem:[#allocation5 + $0x2138] sm:$0xff] }
 0x2ee   :  { %6260 = vmatprep.subr.bf16.mxu0 %v6259_v59  ;;  %6516 = vmatprep.subr.bf16.mxu1 %v6515_v63  ;;  %v6279_v59 = vpack.c.bf16 %v976_v54, %v963_v53  ;;  %v6535_v63 = vpack.c.bf16 %v978_v56, %v965_v55  ;;  %v6295_v49 = vpack.c.bf16 %v1080_v44, %v1067_v43  ;;  %v1081_v54 = vld [vmem:[#allocation5 + $0x1df8] sm:$0xff]  ;;  %v1106_v56 = vld [vmem:[#allocation5 + $0x1ec0] sm:$0xff]  ;;  %v1172_v39 = vld [vmem:[#allocation5 + $0x20d0] sm:$0xff] }
 0x2ef   :  { %v1093_v55 = vld [vmem:[#allocation5 + $0x1e58] sm:$0xff]  ;;  %v1210_v44 = vld [vmem:[#allocation5 + $0x2200] sm:$0xff] }
 0x2f0   :  { %v1197_v43 = vld [vmem:[#allocation5 + $0x2198] sm:$0xff] }
 0x2f1   :  { %6262 = vmatpush1.bf16.msra.mxu0 %v6261_v5  ;;  %6518 = vmatpush1.bf16.msra.mxu1 %v6517_v6  ;;  %v6281_v5 = vpack.c.bf16 %v975_v61, %v962_v60  ;;  %v6537_v6 = vpack.c.bf16 %v977_v0, %v964_v62  ;;  %v6553_v60 = vpack.c.bf16 %v1081_v54, %v1068_v52  ;;  %v1092_v62 = vld [vmem:[#allocation5 + $0x1e50] sm:$0xff]  ;;  %v1094_v0 = vld [vmem:[#allocation5 + $0x1e60] sm:$0xff]  ;;  %v1211_v54 = vld [vmem:[#allocation5 + $0x2208] sm:$0xff] }
 0x2f2   :  { %6264 = vmatprep.subr.bf16.mxu0 %v6263_v7  ;;  %6520 = vmatprep.subr.bf16.mxu1 %v6519_v11  ;;  %v6283_v7 = vpack.c.bf16 %v1002_v2, %v989_v1  ;;  %v6539_v11 = vpack.c.bf16 %v1004_v4, %v991_v3  ;;  %v6299_v61 = vpack.c.bf16 %v1106_v56, %v1093_v55  ;;  %v1107_v2 = vld [vmem:[#allocation5 + $0x1ec8] sm:$0xff]  ;;  %v1132_v4 = vld [vmem:[#allocation5 + $0x1f90] sm:$0xff]  ;;  %v1198_v52 = vld [vmem:[#allocation5 + $0x21a0] sm:$0xff] }
 0x2f3   :  { %v1119_v3 = vld [vmem:[#allocation5 + $0x1f28] sm:$0xff]  ;;  %v1236_v56 = vld [vmem:[#allocation5 + $0x22d0] sm:$0xff] }
 0x2f4   :  { %v1223_v55 = vld [vmem:[#allocation5 + $0x2268] sm:$0xff] }
 0x2f5   :  { %6266 = vmatpush1.bf16.msra.mxu0 %v6265_v17  ;;  %6522 = vmatpush1.bf16.msra.mxu1 %v6521_v18  ;;  %v1030_v17 = vld [vmem:[#allocation5 + $0x1c60] sm:$0xff]  ;;  %v6285_v18 = vpack.c.bf16 %v1001_v9, %v988_v8  ;;  %v6557_v8 = vpack.c.bf16 %v1107_v2, %v1094_v0  ;;  %v6303_v9 = vpack.c.bf16 %v1132_v4, %v1119_v3  ;;  %v1224_v0 = vld [vmem:[#allocation5 + $0x2270] sm:$0xff]  ;;  %v1237_v2 = vld [vmem:[#allocation5 + $0x22d8] sm:$0xff] }
 0x2f6   :  { %6268 = vmatprep.subr.bf16.mxu0 %v6267_v19  ;;  %6524 = vmatprep.subr.bf16.mxu1 %v6523_v23  ;;  %v6541_v19 = vpack.c.bf16 %v1003_v12, %v990_v10  ;;  %v1016_v23 = vld [vmem:[#allocation5 + $0x1bf0] sm:$0xff]  ;;  %v6543_v24 = vpack.c.bf16 %v1030_v17, %v1017_v16  ;;  %v1118_v10 = vld [vmem:[#allocation5 + $0x1f20] sm:$0xff]  ;;  %v1147_v17 = vld [vmem:[#allocation5 + $0x2008] sm:$0xff] }
 0x2f7   :  { %v6545_v33 = vpack.c.bf16 %v1029_v25, %v1016_v23  ;;  %v1120_v12 = vld [vmem:[#allocation5 + $0x1f30] sm:$0xff]  ;;  %v1158_v16 = vld [vmem:[#allocation5 + $0x2060] sm:$0xff]  ;;  %v1157_v23 = vld [vmem:[#allocation5 + $0x2058] sm:$0xff] }
 0x2f8   :  { %v1249_v3 = vld [vmem:[#allocation5 + $0x2338] sm:$0xff]  ;;  %v1262_v4 = vld [vmem:[#allocation5 + $0x23a0] sm:$0xff] }
 0x2f9   :  { %6270 = vmatpush1.bf16.msra.mxu0 %v6269_v29  ;;  %6526 = vmatpush1.bf16.msra.mxu1 %v6525_v30  ;;  %v1043_v29 = vld [vmem:[#allocation5 + $0x1cc8] sm:$0xff]  ;;  %v1056_v30 = vld [vmem:[#allocation5 + $0x1d30] sm:$0xff] }
 0x2fa   :  { %6272 = vmatprep.subr.bf16.mxu0 %v6271_v32  ;;  %6528 = vmatprep.subr.bf16.mxu1 %v6527_v38  ;;  %v6289_v32 = vpack.c.bf16 %v1027_v22, %v1014_v21  ;;  %v1053_v38 = vld [vmem:[#allocation5 + $0x1d18] sm:$0xff]  ;;  %v6547_v41 = vpack.c.bf16 %v1056_v30, %v1043_v29  ;;  %v1144_v22 = vld [vmem:[#allocation5 + $0x1ff0] sm:$0xff]  ;;  %v1186_v30 = vld [vmem:[#allocation5 + $0x2140] sm:$0xff] }
 0x2fb   :  { %v1173_v29 = vld [vmem:[#allocation5 + $0x20d8] sm:$0xff] }
 0x2fd   :  { %6274 = vmatpush1.bf16.msra.mxu0 %v6273_v45  ;;  %6530 = vmatpush1.bf16.msra.mxu1 %v6529_v46  ;;  %v1069_v45 = vld [vmem:[#allocation5 + $0x1d98] sm:$0xff]  ;;  %v1082_v46 = vld [vmem:[#allocation5 + $0x1e00] sm:$0xff] }
 0x2fe   :  { %6276 = vmatprep.subr.bf16.mxu0 %v6275_v47  ;;  %6532 = vmatprep.subr.bf16.mxu1 %v6531_v51  ;;  %v6293_v47 = vpack.c.bf16 %v1053_v38, %v1040_v35  ;;  %v1079_v51 = vld [vmem:[#allocation5 + $0x1de8] sm:$0xff]  ;;  %v6551_v53 = vpack.c.bf16 %v1082_v46, %v1069_v45  ;;  %v1170_v35 = vld [vmem:[#allocation5 + $0x20c0] sm:$0xff]  ;;  %v1212_v46 = vld [vmem:[#allocation5 + $0x2210] sm:$0xff] }
 0x2ff   :  { %v1183_v38 = vld [vmem:[#allocation5 + $0x2128] sm:$0xff] }
 0x300   :  { %v1199_v45 = vld [vmem:[#allocation5 + $0x21a8] sm:$0xff] }
 0x301   :  { %6278 = vmatpush1.bf16.msra.mxu0 %v6277_v57  ;;  %6534 = vmatpush1.bf16.msra.mxu1 %v6533_v58  ;;  %v1095_v57 = vld [vmem:[#allocation5 + $0x1e68] sm:$0xff]  ;;  %v1108_v58 = vld [vmem:[#allocation5 + $0x1ed0] sm:$0xff] }
 0x302   :  { %6280 = vmatprep.subr.bf16.mxu0 %v6279_v59  ;;  %6536 = vmatprep.subr.bf16.mxu1 %v6535_v63  ;;  %v6297_v59 = vpack.c.bf16 %v1079_v51, %v1066_v50  ;;  %v1105_v63 = vld [vmem:[#allocation5 + $0x1eb8] sm:$0xff]  ;;  %v6555_v1 = vpack.c.bf16 %v1108_v58, %v1095_v57  ;;  %v1196_v50 = vld [vmem:[#allocation5 + $0x2190] sm:$0xff]  ;;  %v1238_v58 = vld [vmem:[#allocation5 + $0x22e0] sm:$0xff] }
 0x303   :  { %v1209_v51 = vld [vmem:[#allocation5 + $0x21f8] sm:$0xff] }
 0x304   :  { %3127 = vmatmul.mubr.f32.vlgmr.msra.gmra.mrb[4].mxu0 %v7105_v15  ;;  %3411 = vmatmul.mubr.f32.vlgmr.msra.gmra.mrb[4].mxu1 %v7105_v15  ;;  %v1145_v15 = vld [vmem:[#allocation5 + $0x1ff8] sm:$0xff] }
 0x305   :  { %6282 = vmatpush1.bf16.msra.mxu0 %v6281_v5  ;;  %6538 = vmatpush1.bf16.msra.mxu1 %v6537_v6  ;;  %v1121_v5 = vld [vmem:[#allocation5 + $0x1f38] sm:$0xff]  ;;  %v1134_v6 = vld [vmem:[#allocation5 + $0x1fa0] sm:$0xff]  ;;  %v6307_v21 = vpack.c.bf16 %v1158_v16, %v1145_v15  ;;  %v1275_v15 = vld [vmem:[#allocation5 + $0x2408] sm:$0xff] }
 0x306   :  { %6284 = vmatprep.subr.bf16.mxu0 %v6283_v7  ;;  %6540 = vmatprep.subr.bf16.mxu1 %v6539_v11  ;;  %v6301_v7 = vpack.c.bf16 %v1105_v63, %v1092_v62  ;;  %v1131_v11 = vld [vmem:[#allocation5 + $0x1f88] sm:$0xff]  ;;  %v6559_v13 = vpack.c.bf16 %v1134_v6, %v1121_v5  ;;  %v1225_v57 = vld [vmem:[#allocation5 + $0x2278] sm:$0xff]  ;;  %v1222_v62 = vld [vmem:[#allocation5 + $0x2260] sm:$0xff] }
 0x307   :  { %3197 = vmatprep.mubr.f32.mxu0 %v7106_v28  ;;  %3481 = vmatprep.mubr.f32.mxu1 %v7106_v28  ;;  %v1184_v28 = vld [vmem:[#allocation5 + $0x2130] sm:$0xff]  ;;  %v1235_v63 = vld [vmem:[#allocation5 + $0x22c8] sm:$0xff] }
 0x308   :  { %v1251_v5 = vld [vmem:[#allocation5 + $0x2348] sm:$0xff]  ;;  %v1264_v6 = vld [vmem:[#allocation5 + $0x23b0] sm:$0xff] }
 0x309   :  { %6286 = vmatpush1.bf16.msra.mxu0 %v6285_v18  ;;  %6542 = vmatpush1.bf16.msra.mxu1 %v6541_v19  ;;  %v1160_v18 = vld [vmem:[#allocation5 + $0x2070] sm:$0xff]  ;;  %v6305_v19 = vpack.c.bf16 %v1131_v11, %v1118_v10  ;;  %v1261_v11 = vld [vmem:[#allocation5 + $0x2398] sm:$0xff] }
 0x30a   :  { %6288 = vmatprep.subr.bf16.mxu0 %v6287_v20  ;;  %6544 = vmatprep.subr.bf16.mxu1 %v6543_v24  ;;  %v6561_v20 = vpack.c.bf16 %v1133_v14, %v1120_v12  ;;  %v1146_v24 = vld [vmem:[#allocation5 + $0x2000] sm:$0xff]  ;;  %v6563_v25 = vpack.c.bf16 %v1160_v18, %v1147_v17  ;;  %v1248_v10 = vld [vmem:[#allocation5 + $0x2330] sm:$0xff]  ;;  %v1263_v14 = vld [vmem:[#allocation5 + $0x23a8] sm:$0xff] }
 0x30b   :  { %v1250_v12 = vld [vmem:[#allocation5 + $0x2340] sm:$0xff]  ;;  %v1288_v16 = vld [vmem:[#allocation5 + $0x2470] sm:$0xff]  ;;  %v1277_v17 = vld [vmem:[#allocation5 + $0x2418] sm:$0xff] }
 0x30c   :  { %v1290_v18 = vld [vmem:[#allocation5 + $0x2480] sm:$0xff] }
 0x30d   :  { %6290 = vmatpush1.bf16.msra.mxu0 %v6289_v32  ;;  %6546 = vmatpush1.bf16.msra.mxu1 %v6545_v33  ;;  %v6309_v32 = vpack.c.bf16 %v1157_v23, %v1144_v22  ;;  %v6565_v33 = vpack.c.bf16 %v1159_v26, %v1146_v24  ;;  %v1274_v22 = vld [vmem:[#allocation5 + $0x2400] sm:$0xff]  ;;  %v1287_v23 = vld [vmem:[#allocation5 + $0x2468] sm:$0xff]  ;;  %v1276_v24 = vld [vmem:[#allocation5 + $0x2410] sm:$0xff] }
 0x30e   :  { %6292 = vmatprep.subr.bf16.mxu0 %v6291_v34  ;;  %6548 = vmatprep.subr.bf16.mxu1 %v6547_v41  ;;  %v6311_v34 = vpack.c.bf16 %v1184_v28, %v1171_v27  ;;  %v6567_v41 = vpack.c.bf16 %v1186_v30, %v1173_v29  ;;  %v1289_v26 = vld [vmem:[#allocation5 + $0x2478] sm:$0xff]  ;;  %v1314_v28 = vld [vmem:[#allocation5 + $0x2540] sm:$0xff]  ;;  %v1303_v29 = vld [vmem:[#allocation5 + $0x24e8] sm:$0xff] }
 0x30f   :  { %v1301_v27 = vld [vmem:[#allocation5 + $0x24d8] sm:$0xff]  ;;  %v1316_v30 = vld [vmem:[#allocation5 + $0x2550] sm:$0xff] }
 0x311   :  { %6294 = vmatpush1.bf16.msra.mxu0 %v6293_v47  ;;  %6550 = vmatpush1.bf16.msra.mxu1 %v6549_v48  ;;  %v6313_v47 = vpack.c.bf16 %v1183_v38, %v1170_v35  ;;  %v6569_v48 = vpack.c.bf16 %v1185_v42, %v1172_v39  ;;  %v1300_v35 = vld [vmem:[#allocation5 + $0x24d0] sm:$0xff]  ;;  %v1313_v38 = vld [vmem:[#allocation5 + $0x2538] sm:$0xff]  ;;  %v1302_v39 = vld [vmem:[#allocation5 + $0x24e0] sm:$0xff] }
 0x312   :  { %6296 = vmatprep.subr.bf16.mxu0 %v6295_v49  ;;  %6552 = vmatprep.subr.bf16.mxu1 %v6551_v53  ;;  %v6315_v49 = vpack.c.bf16 %v1210_v44, %v1197_v43  ;;  %v6571_v53 = vpack.c.bf16 %v1212_v46, %v1199_v45  ;;  %v1315_v42 = vld [vmem:[#allocation5 + $0x2548] sm:$0xff]  ;;  %v1340_v44 = vld [vmem:[#allocation5 + $0x2610] sm:$0xff]  ;;  %v1329_v45 = vld [vmem:[#allocation5 + $0x25b8] sm:$0xff] }
 0x313   :  { %v1327_v43 = vld [vmem:[#allocation5 + $0x25a8] sm:$0xff]  ;;  %v1342_v46 = vld [vmem:[#allocation5 + $0x2620] sm:$0xff] }
 0x315   :  { %6298 = vmatpush1.bf16.msra.mxu0 %v6297_v59  ;;  %6554 = vmatpush1.bf16.msra.mxu1 %v6553_v60  ;;  %v6317_v59 = vpack.c.bf16 %v1209_v51, %v1196_v50  ;;  %v6573_v60 = vpack.c.bf16 %v1211_v54, %v1198_v52  ;;  %v1326_v50 = vld [vmem:[#allocation5 + $0x25a0] sm:$0xff]  ;;  %v1339_v51 = vld [vmem:[#allocation5 + $0x2608] sm:$0xff]  ;;  %v1328_v52 = vld [vmem:[#allocation5 + $0x25b0] sm:$0xff] }
 0x316   :  { %6300 = vmatprep.subr.bf16.mxu0 %v6299_v61  ;;  %6556 = vmatprep.subr.bf16.mxu1 %v6555_v1  ;;  %v6319_v61 = vpack.c.bf16 %v1236_v56, %v1223_v55  ;;  %v6575_v1 = vpack.c.bf16 %v1238_v58, %v1225_v57  ;;  %v1341_v54 = vld [vmem:[#allocation5 + $0x2618] sm:$0xff]  ;;  %v1366_v56 = vld [vmem:[#allocation5 + $0x26e0] sm:$0xff]  ;;  %v1355_v57 = vld [vmem:[#allocation5 + $0x2688] sm:$0xff] }
 0x317   :  { %v1353_v55 = vld [vmem:[#allocation5 + $0x2678] sm:$0xff]  ;;  %v1368_v58 = vld [vmem:[#allocation5 + $0x26f0] sm:$0xff] }
 0x319   :  { %6302 = vmatpush1.bf16.msra.mxu0 %v6301_v7  ;;  %6558 = vmatpush1.bf16.msra.mxu1 %v6557_v8  ;;  %v6321_v7 = vpack.c.bf16 %v1235_v63, %v1222_v62  ;;  %v6577_v8 = vpack.c.bf16 %v1237_v2, %v1224_v0  ;;  %v1352_v62 = vld [vmem:[#allocation5 + $0x2670] sm:$0xff]  ;;  %v1365_v63 = vld [vmem:[#allocation5 + $0x26d8] sm:$0xff]  ;;  %v1354_v0 = vld [vmem:[#allocation5 + $0x2680] sm:$0xff] }
 0x31a   :  { %6304 = vmatprep.subr.bf16.mxu0 %v6303_v9  ;;  %6560 = vmatprep.subr.bf16.mxu1 %v6559_v13  ;;  %v6323_v9 = vpack.c.bf16 %v1262_v4, %v1249_v3  ;;  %v6579_v13 = vpack.c.bf16 %v1264_v6, %v1251_v5  ;;  %v1367_v2 = vld [vmem:[#allocation5 + $0x26e8] sm:$0xff]  ;;  %v1392_v4 = vld [vmem:[#allocation5 + $0x27b0] sm:$0xff]  ;;  %v1381_v5 = vld [vmem:[#allocation5 + $0x2758] sm:$0xff] }
 0x31b   :  { %v1379_v3 = vld [vmem:[#allocation5 + $0x2748] sm:$0xff]  ;;  %v1394_v6 = vld [vmem:[#allocation5 + $0x27c0] sm:$0xff] }
 0x31d   :  { %6306 = vmatpush1.bf16.msra.mxu0 %v6305_v19  ;;  %6562 = vmatpush1.bf16.msra.mxu1 %v6561_v20  ;;  %v6325_v19 = vpack.c.bf16 %v1261_v11, %v1248_v10  ;;  %v6581_v20 = vpack.c.bf16 %v1263_v14, %v1250_v12  ;;  %v1378_v10 = vld [vmem:[#allocation5 + $0x2740] sm:$0xff]  ;;  %v1391_v11 = vld [vmem:[#allocation5 + $0x27a8] sm:$0xff]  ;;  %v1380_v12 = vld [vmem:[#allocation5 + $0x2750] sm:$0xff] }
 0x31e   :  { %6308 = vmatprep.subr.bf16.mxu0 %v6307_v21  ;;  %6564 = vmatprep.subr.bf16.mxu1 %v6563_v25  ;;  %v6327_v21 = vpack.c.bf16 %v1288_v16, %v1275_v15  ;;  %v6583_v25 = vpack.c.bf16 %v1290_v18, %v1277_v17  ;;  %v1393_v14 = vld [vmem:[#allocation5 + $0x27b8] sm:$0xff]  ;;  %v1418_v16 = vld [vmem:[#allocation5 + $0x2880] sm:$0xff]  ;;  %v1407_v17 = vld [vmem:[#allocation5 + $0x2828] sm:$0xff] }
 0x31f   :  { %v1405_v15 = vld [vmem:[#allocation5 + $0x2818] sm:$0xff]  ;;  %v1420_v18 = vld [vmem:[#allocation5 + $0x2890] sm:$0xff] }
 0x321   :  { %6310 = vmatpush1.bf16.msra.mxu0 %v6309_v32  ;;  %6566 = vmatpush1.bf16.msra.mxu1 %v6565_v33  ;;  %v6329_v32 = vpack.c.bf16 %v1287_v23, %v1274_v22  ;;  %v6585_v33 = vpack.c.bf16 %v1289_v26, %v1276_v24  ;;  %v1404_v22 = vld [vmem:[#allocation5 + $0x2810] sm:$0xff]  ;;  %v1417_v23 = vld [vmem:[#allocation5 + $0x2878] sm:$0xff]  ;;  %v1406_v24 = vld [vmem:[#allocation5 + $0x2820] sm:$0xff] }
 0x322   :  { %6312 = vmatprep.subr.bf16.mxu0 %v6311_v34  ;;  %6568 = vmatprep.subr.bf16.mxu1 %v6567_v41  ;;  %v6331_v34 = vpack.c.bf16 %v1314_v28, %v1301_v27  ;;  %v6587_v41 = vpack.c.bf16 %v1316_v30, %v1303_v29  ;;  %v1419_v26 = vld [vmem:[#allocation5 + $0x2888] sm:$0xff]  ;;  %v1444_v28 = vld [vmem:[#allocation5 + $0x2950] sm:$0xff]  ;;  %v7107_v29 = vld [vmem:[#allocation2 + $0x20] sm:$0xff] }
 0x323   :  { %v1431_v27 = vld [vmem:[#allocation5 + $0x28e8] sm:$0xff]  ;;  %v1433_v30 = vld [vmem:[#allocation5 + $0x28f8] sm:$0xff] }
 0x325   :  { %6314 = vmatpush1.bf16.msra.mxu0 %v6313_v47  ;;  %6570 = vmatpush1.bf16.msra.mxu1 %v6569_v48  ;;  %v6333_v47 = vpack.c.bf16 %v1313_v38, %v1300_v35  ;;  %v6589_v48 = vpack.c.bf16 %v1315_v42, %v1302_v39  ;;  %v6351_v35 = vpack.c.bf16 %v1444_v28, %v1431_v27  ;;  %v1430_v38 = vld [vmem:[#allocation5 + $0x28e0] sm:$0xff]  ;;  %v1443_v39 = vld [vmem:[#allocation5 + $0x2948] sm:$0xff] }
 0x326   :  { %6316 = vmatprep.subr.bf16.mxu0 %v6315_v49  ;;  %6572 = vmatprep.subr.bf16.mxu1 %v6571_v53  ;;  %v6335_v49 = vpack.c.bf16 %v1340_v44, %v1327_v43  ;;  %v6591_v53 = vpack.c.bf16 %v1342_v46, %v1329_v45  ;;  %v1445_v43 = vld [vmem:[#allocation5 + $0x2958] sm:$0xff]  ;;  %v1470_v45 = vld [vmem:[#allocation5 + $0x2a20] sm:$0xff] }
 0x327   :  { %v1457_v44 = vld [vmem:[#allocation5 + $0x29b8] sm:$0xff] }
 0x328   :  { %v7450_v46 = vld [vmem:[#allocation2 + $0x38] sm:$0xff] }
 0x329   :  { %6318 = vmatpush1.bf16.msra.mxu0 %v6317_v59  ;;  %6574 = vmatpush1.bf16.msra.mxu1 %v6573_v60  ;;  %v6337_v59 = vpack.c.bf16 %v1339_v51, %v1326_v50  ;;  %v6593_v60 = vpack.c.bf16 %v1341_v54, %v1328_v52  ;;  %v6355_v51 = vpack.c.bf16 %v1470_v45, %v1457_v44  ;;  %v1456_v52 = vld [vmem:[#allocation5 + $0x29b0] sm:$0xff]  ;;  %v1458_v54 = vld [vmem:[#allocation5 + $0x29c0] sm:$0xff] }
 0x32a   :  { %6320 = vmatprep.subr.bf16.mxu0 %v6319_v61  ;;  %6576 = vmatprep.subr.bf16.mxu1 %v6575_v1  ;;  %v6339_v61 = vpack.c.bf16 %v1366_v56, %v1353_v55  ;;  %v6595_v1 = vpack.c.bf16 %v1368_v58, %v1355_v57  ;;  %v1790_v55 = vlaneseq  ;;  %v1471_v57 = vld [vmem:[#allocation5 + $0x2a28] sm:$0xff]  ;;  %v1576_v44 = vld [vmem:[#allocation5 + $0x2d70] sm:$0xff] }
 0x32b   :  { %v1483_v58 = vld [vmem:[#allocation5 + $0x2a88] sm:$0xff] }
 0x32d   :  { %6322 = vmatpush1.bf16.msra.mxu0 %v6321_v7  ;;  %6578 = vmatpush1.bf16.msra.mxu1 %v6577_v8  ;;  %v6341_v7 = vpack.c.bf16 %v1365_v63, %v1352_v62  ;;  %v6597_v8 = vpack.c.bf16 %v1367_v2, %v1354_v0  ;;  %v6613_v63 = vpack.c.bf16 %v1471_v57, %v1458_v54  ;;  %v1495_v2 = vld [vmem:[#allocation5 + $0x2ae8] sm:$0xff]  ;;  %v1600_v57 = vld [vmem:[#allocation5 + $0x2e30] sm:$0xff] }
 0x32e   :  { %6324 = vmatprep.subr.bf16.mxu0 %v6323_v9  ;;  %6580 = vmatprep.subr.bf16.mxu1 %v6579_v13  ;;  %v6343_v9 = vpack.c.bf16 %v1392_v4, %v1379_v3  ;;  %v6599_v13 = vpack.c.bf16 %v1394_v6, %v1381_v5  ;;  %v1484_v3 = vld [vmem:[#allocation5 + $0x2a90] sm:$0xff]  ;;  %v7454_v4 = vshrl.u32 %v1790_v55, 7  ;;  %v1497_v6 = vld [vmem:[#allocation5 + $0x2af8] sm:$0xff]  ;;  %v1575_v55 = vld [vmem:[#allocation5 + $0x2d68] sm:$0xff] }
 0x331   :  { %6326 = vmatpush1.bf16.msra.mxu0 %v6325_v19  ;;  %6582 = vmatpush1.bf16.msra.mxu1 %v6581_v20  ;;  %v6345_v19 = vpack.c.bf16 %v1391_v11, %v1378_v10  ;;  %v6601_v20 = vpack.c.bf16 %v1393_v14, %v1380_v12  ;;  %v1524_v10 = vld [vmem:[#allocation5 + $0x2bd0] sm:$0xff]  ;;  %v1816_v12 = vsub.s32 6, %v7454_v4 }
 0x332   :  { %6328 = vmatprep.subr.bf16.mxu0 %v6327_v21  ;;  %6584 = vmatprep.subr.bf16.mxu1 %v6583_v25  ;;  %v6347_v21 = vpack.c.bf16 %v1418_v16, %v1405_v15  ;;  %v6603_v25 = vpack.c.bf16 %v1420_v18, %v1407_v17  ;;  %v1508_v15 = vld [vmem:[#allocation5 + $0x2b50] sm:$0xff]  ;;  %v1521_v16 = vld [vmem:[#allocation5 + $0x2bb8] sm:$0xff]  ;;  %v1510_v17 = vld [vmem:[#allocation5 + $0x2b60] sm:$0xff] }
 0x335   :  { %6330 = vmatpush1.bf16.msra.mxu0 %v6329_v32  ;;  %6586 = vmatpush1.bf16.msra.mxu1 %v6585_v33  ;;  %v1446_v32 = vld [vmem:[#allocation5 + $0x2960] sm:$0xff]  ;;  %v6349_v33 = vpack.c.bf16 %v1417_v23, %v1404_v22  ;;  %v1537_v23 = vld [vmem:[#allocation5 + $0x2c38] sm:$0xff] }
 0x336   :  { %6332 = vmatprep.subr.bf16.mxu0 %v6331_v34  ;;  %6588 = vmatprep.subr.bf16.mxu1 %v6587_v41  ;;  %v6605_v34 = vpack.c.bf16 %v1419_v26, %v1406_v24  ;;  %v1432_v41 = vld [vmem:[#allocation5 + $0x28f0] sm:$0xff]  ;;  %v6607_v42 = vpack.c.bf16 %v1446_v32, %v1433_v30  ;;  %v7457_v22 = vld [vmem:[#allocation7] sm:$0xff]  ;;  %v6365_v26 = vpack.c.bf16 %v1521_v16, %v1508_v15  ;;  %v1547_v30 = vld [vmem:[#allocation5 + $0x2c88] sm:$0xff] }
 0x337   :  { %v6609_v50 = vpack.c.bf16 %v1445_v43, %v1432_v41  ;;  %v1550_v24 = vld [vmem:[#allocation5 + $0x2ca0] sm:$0xff]  ;;  %v1536_v32 = vld [vmem:[#allocation5 + $0x2c30] sm:$0xff]  ;;  %v1563_v43 = vld [vmem:[#allocation5 + $0x2d08] sm:$0xff] }
 0x338   :  { %v6627_v54 = vpack.c.bf16 %v1576_v44, %v1563_v43  ;;  %v1627_v16 = vld [vmem:[#allocation5 + $0x2f08] sm:$0xff]  ;;  %v1664_v43 = vld [vmem:[#allocation5 + $0x3030] sm:$0xff]  ;;  %v1677_v44 = vld [vmem:[#allocation5 + $0x3098] sm:$0xff] }
 0x339   :  { %6334 = vmatpush1.bf16.msra.mxu0 %v6333_v47  ;;  %6590 = vmatpush1.bf16.msra.mxu1 %v6589_v48  ;;  %v1459_v47 = vld [vmem:[#allocation5 + $0x29c8] sm:$0xff]  ;;  %v1472_v48 = vld [vmem:[#allocation5 + $0x2a30] sm:$0xff] }
 0x33a   :  { %6336 = vmatprep.subr.bf16.mxu0 %v6335_v49  ;;  %6592 = vmatprep.subr.bf16.mxu1 %v6591_v53  ;;  %v6353_v49 = vpack.c.bf16 %v1443_v39, %v1430_v38  ;;  %v1469_v53 = vld [vmem:[#allocation5 + $0x2a18] sm:$0xff]  ;;  %v6611_v56 = vpack.c.bf16 %v1472_v48, %v1459_v47  ;;  %v1574_v39 = vld [vmem:[#allocation5 + $0x2d60] sm:$0xff] }
 0x33b   :  { %v6357_v62 = vpack.c.bf16 %v1469_v53, %v1456_v52  ;;  %v1561_v38 = vld [vmem:[#allocation5 + $0x2cf8] sm:$0xff]  ;;  %v1562_v53 = vld [vmem:[#allocation5 + $0x2d00] sm:$0xff] }
 0x33c   :  { %v1573_v52 = vld [vmem:[#allocation5 + $0x2d58] sm:$0xff] }
 0x33d   :  { %6338 = vmatpush1.bf16.msra.mxu0 %v6337_v59  ;;  %6594 = vmatpush1.bf16.msra.mxu1 %v6593_v60  ;;  %v1496_v59 = vld [vmem:[#allocation5 + $0x2af0] sm:$0xff]  ;;  %v1485_v60 = vld [vmem:[#allocation5 + $0x2a98] sm:$0xff] }
 0x33e   :  { %6340 = vmatprep.subr.bf16.mxu0 %v6339_v61  ;;  %6596 = vmatprep.subr.bf16.mxu1 %v6595_v1  ;;  %v1498_v61 = vld [vmem:[#allocation5 + $0x2b00] sm:$0xff]  ;;  %v6359_v0 = vpack.c.bf16 %v1496_v59, %v1483_v58  ;;  %v1589_v58 = vld [vmem:[#allocation5 + $0x2dd8] sm:$0xff] }
 0x33f   :  { %v1482_v1 = vld [vmem:[#allocation5 + $0x2a80] sm:$0xff]  ;;  %v6615_v5 = vpack.c.bf16 %v1498_v61, %v1485_v60  ;;  %v6629_v61 = vpack.c.bf16 %v1575_v55, %v1562_v53  ;;  %v1693_v53 = vld [vmem:[#allocation5 + $0x3118] sm:$0xff]  ;;  %v6389_v55 = vpack.c.bf16 %v1677_v44, %v1664_v43  ;;  %v355_v44 = vld [vmem:[#allocation5 + $0x748] sm:$0xff] }
 0x340   :  { %v6361_v11 = vpack.c.bf16 %v1495_v2, %v1482_v1  ;;  %v1602_v59 = vld [vmem:[#allocation5 + $0x2e40] sm:$0xff]  ;;  %v1588_v1 = vld [vmem:[#allocation5 + $0x2dd0] sm:$0xff] }
 0x341   :  { %6342 = vmatpush1.bf16.msra.mxu0 %v6341_v7  ;;  %6598 = vmatpush1.bf16.msra.mxu1 %v6597_v8  ;;  %v1509_v7 = vld [vmem:[#allocation5 + $0x2b58] sm:$0xff]  ;;  %v1522_v8 = vld [vmem:[#allocation5 + $0x2bc0] sm:$0xff]  ;;  %v6631_v2 = vpack.c.bf16 %v1602_v59, %v1589_v58  ;;  %v1703_v59 = vld [vmem:[#allocation5 + $0x3168] sm:$0xff] }
 0x342   :  { %6344 = vmatprep.subr.bf16.mxu0 %v6343_v9  ;;  %6600 = vmatprep.subr.bf16.mxu1 %v6599_v13  ;;  %v1511_v9 = vld [vmem:[#allocation5 + $0x2b68] sm:$0xff]  ;;  %v6617_v13 = vpack.c.bf16 %v1497_v6, %v1484_v3  ;;  %v6363_v14 = vpack.c.bf16 %v1522_v8, %v1509_v7  ;;  %v1601_v3 = vld [vmem:[#allocation5 + $0x2e38] sm:$0xff]  ;;  %v1626_v6 = vld [vmem:[#allocation5 + $0x2f00] sm:$0xff] }
 0x343   :  { %v6619_v18 = vpack.c.bf16 %v1524_v10, %v1511_v9  ;;  %v1615_v7 = vld [vmem:[#allocation5 + $0x2ea8] sm:$0xff]  ;;  %v1628_v8 = vld [vmem:[#allocation5 + $0x2f10] sm:$0xff]  ;;  %v6633_v10 = vpack.c.bf16 %v1601_v3, %v1588_v1  ;;  %v1690_v58 = vld [vmem:[#allocation5 + $0x3100] sm:$0xff] }
 0x344   :  { %3198 = vmatmul.mubr.f32.vlgmr.msra.gmra.mrb[4].mxu0 %v7107_v29  ;;  %3482 = vmatmul.mubr.f32.vlgmr.msra.gmra.mrb[4].mxu1 %v7107_v29  ;;  %v1534_v29 = vld [vmem:[#allocation5 + $0x2c20] sm:$0xff]  ;;  %v6635_v15 = vpack.c.bf16 %v1628_v8, %v1615_v7  ;;  %v1719_v1 = vld [vmem:[#allocation5 + $0x31e8] sm:$0xff]  ;;  %v6393_v3 = vpack.c.bf16 %v1703_v59, %v1690_v58  ;;  %v1716_v7 = vld [vmem:[#allocation5 + $0x31d0] sm:$0xff] }
 0x345   :  { %6346 = vmatpush1.bf16.msra.mxu0 %v6345_v19  ;;  %6602 = vmatpush1.bf16.msra.mxu1 %v6601_v20  ;;  %v1523_v19 = vld [vmem:[#allocation5 + $0x2bc8] sm:$0xff]  ;;  %v6369_v48 = vpack.c.bf16 %v1547_v30, %v1534_v29  ;;  %v1653_v29 = vld [vmem:[#allocation5 + $0x2fd8] sm:$0xff]  ;;  %v342_v43 = vld [vmem:[#allocation5 + $0x6e0] sm:$0xff] }
 0x346   :  { %6348 = vmatprep.subr.bf16.mxu0 %v6347_v21  ;;  %6604 = vmatprep.subr.bf16.mxu1 %v6603_v25  ;;  %v1535_v20 = vld [vmem:[#allocation5 + $0x2c28] sm:$0xff]  ;;  %v1548_v21 = vld [vmem:[#allocation5 + $0x2c90] sm:$0xff]  ;;  %v1817_v25 = vrot.slane %v7457_v22, %v1816_v12  ;;  %v6621_v27 = vpack.c.bf16 %v1523_v19, %v1510_v17  ;;  %v1641_v19 = vld [vmem:[#allocation5 + $0x2f78] sm:$0xff] }
 0x347   :  { %3268 = vmatprep.mubr.f32.mxu0 %v7450_v46  ;;  %3552 = vmatprep.mubr.f32.mxu1 %v7450_v46  ;;  %v6367_v28 = vpack.c.bf16 %v1548_v21, %v1535_v20  ;;  %v1612_v12 = vld [vmem:[#allocation5 + $0x2e90] sm:$0xff]  ;;  %v1639_v17 = vld [vmem:[#allocation5 + $0x2f68] sm:$0xff]  ;;  %v1654_v20 = vld [vmem:[#allocation5 + $0x2fe0] sm:$0xff] }
 0x348   :  { %v1665_v30 = vld [vmem:[#allocation5 + $0x3038] sm:$0xff]  ;;  %v368_v58 = vld [vmem:[#allocation5 + $0x7b0] sm:$0xff] }
 0x349   :  { %6350 = vmatpush1.bf16.msra.mxu0 %v6349_v33  ;;  %6606 = vmatpush1.bf16.msra.mxu1 %v6605_v34  ;;  %v6623_v34 = vpack.c.bf16 %v1550_v24, %v1537_v23  ;;  %v1729_v8 = vld [vmem:[#allocation5 + $0x3238] sm:$0xff] }
 0x34a   :  { %6352 = vmatprep.subr.bf16.mxu0 %v6351_v35  ;;  %6608 = vmatprep.subr.bf16.mxu1 %v6607_v42  ;;  %v1549_v35 = vld [vmem:[#allocation5 + $0x2c98] sm:$0xff] }
 0x34b   :  { %v381_v59 = vld [vmem:[#allocation5 + $0x818] sm:$0xff] }
 0x34d   :  { %6354 = vmatpush1.bf16.msra.mxu0 %v6353_v49  ;;  %6610 = vmatpush1.bf16.msra.mxu1 %v6609_v50  ;;  %v6625_v49 = vpack.c.bf16 %v1549_v35, %v1536_v32  ;;  %v6371_v50 = vpack.c.bf16 %v1574_v39, %v1561_v38  ;;  %v1678_v32 = vld [vmem:[#allocation5 + $0x30a0] sm:$0xff]  ;;  %v1680_v35 = vld [vmem:[#allocation5 + $0x30b0] sm:$0xff] }
 0x34e   :  { %6356 = vmatprep.subr.bf16.mxu0 %v6355_v51  ;;  %6612 = vmatprep.subr.bf16.mxu1 %v6611_v56  ;;  %v1560_v51 = vld [vmem:[#allocation5 + $0x2cf0] sm:$0xff]  ;;  %v1587_v56 = vld [vmem:[#allocation5 + $0x2dc8] sm:$0xff] }
 0x34f   :  { %v6373_v60 = vpack.c.bf16 %v1573_v52, %v1560_v51  ;;  %v1691_v51 = vld [vmem:[#allocation5 + $0x3108] sm:$0xff]  ;;  %v1704_v52 = vld [vmem:[#allocation5 + $0x3170] sm:$0xff] }
 0x351   :  { %6358 = vmatpush1.bf16.msra.mxu0 %v6357_v62  ;;  %6614 = vmatpush1.bf16.msra.mxu1 %v6613_v63  ;;  %v6375_v62 = vpack.c.bf16 %v1600_v57, %v1587_v56  ;;  %v1586_v63 = vld [vmem:[#allocation5 + $0x2dc0] sm:$0xff]  ;;  %v6391_v57 = vpack.c.bf16 %v1704_v52, %v1691_v51  ;;  %v6663_v52 = vpack.c.bf16 %v355_v44, %v342_v43  ;;  %v875_v44 = vld [vmem:[#allocation5 + $0x1788] sm:$0xff] }
 0x352   :  { %6360 = vmatprep.subr.bf16.mxu0 %v6359_v0  ;;  %6616 = vmatprep.subr.bf16.mxu1 %v6615_v5  ;;  %v1599_v0 = vld [vmem:[#allocation5 + $0x2e28] sm:$0xff]  ;;  %v1613_v5 = vld [vmem:[#allocation5 + $0x2e98] sm:$0xff]  ;;  %v862_v43 = vld [vmem:[#allocation5 + $0x1720] sm:$0xff] }
 0x353   :  { %v6377_v9 = vpack.c.bf16 %v1599_v0, %v1586_v63  ;;  %v1717_v63 = vld [vmem:[#allocation5 + $0x31d8] sm:$0xff]  ;;  %v1730_v0 = vld [vmem:[#allocation5 + $0x3240] sm:$0xff] }
 0x355   :  { %6362 = vmatpush1.bf16.msra.mxu0 %v6361_v11  ;;  %6618 = vmatpush1.bf16.msra.mxu1 %v6617_v13  ;;  %v6379_v11 = vpack.c.bf16 %v1626_v6, %v1613_v5  ;;  %v1625_v13 = vld [vmem:[#allocation5 + $0x2ef8] sm:$0xff]  ;;  %v6395_v6 = vpack.c.bf16 %v1730_v0, %v1717_v63  ;;  %v6667_v0 = vpack.c.bf16 %v381_v59, %v368_v58  ;;  %v888_v58 = vld [vmem:[#allocation5 + $0x17f0] sm:$0xff] }
 0x356   :  { %6364 = vmatprep.subr.bf16.mxu0 %v6363_v14  ;;  %6620 = vmatprep.subr.bf16.mxu1 %v6619_v18  ;;  %v1614_v14 = vld [vmem:[#allocation5 + $0x2ea0] sm:$0xff]  ;;  %v1652_v18 = vld [vmem:[#allocation5 + $0x2fd0] sm:$0xff]  ;;  %v6381_v21 = vpack.c.bf16 %v1625_v13, %v1612_v12  ;;  %v1743_v12 = vld [vmem:[#allocation5 + $0x32a8] sm:$0xff] }
 0x357   :  { %v7460_v33 = vpop.f32.mrb[2].mxu0  ;;  %v2986_v41 = vpop.f32.mrb[2].mxu1  ;;  %v6637_v23 = vpack.c.bf16 %v1627_v16, %v1614_v14  ;;  %v6383_v24 = vpack.c.bf16 %v1652_v18, %v1639_v17  ;;  %v1756_v13 = vld [vmem:[#allocation5 + $0x3310] sm:$0xff]  ;;  %v1745_v14 = vld [vmem:[#allocation5 + $0x32b8] sm:$0xff]  ;;  %v6397_v16 = vpack.c.bf16 %v1729_v8, %v1716_v7  ;;  %v394_v7 = vld [vmem:[#allocation5 + $0x880] sm:$0xff] }
 0x358   :  { %v7462_v42 = vpop.f32.mrb[3].mxu0  ;;  %v7464_v45 = vadd.f32 %v2986_v41, %v1817_v25  ;;  %v7466_v47 = vpop.f32.mrb[3].mxu1  ;;  %v1638_v25 = vld [vmem:[#allocation5 + $0x2f60] sm:$0xff]  ;;  %v6387_v41 = vpack.c.bf16 %v1678_v32, %v1665_v30  ;;  %v6399_v18 = vpack.c.bf16 %v1756_v13, %v1743_v12  ;;  %v407_v8 = vld [vmem:[#allocation5 + $0x8e8] sm:$0xff]  ;;  %v901_v59 = vld [vmem:[#allocation5 + $0x1858] sm:$0xff] }
 0x359   :  { %6366 = vmatpush1.bf16.msra.mxu0 %v6365_v26  ;;  %6622 = vmatpush1.bf16.msra.mxu1 %v6621_v27  ;;  %v1651_v26 = vld [vmem:[#allocation5 + $0x2fc8] sm:$0xff]  ;;  %v1640_v27 = vld [vmem:[#allocation5 + $0x2f70] sm:$0xff] }
 0x35a   :  { %6368 = vmatprep.subr.bf16.mxu0 %v6367_v28  ;;  %6624 = vmatprep.subr.bf16.mxu1 %v6623_v34  ;;  %v6639_v28 = vpack.c.bf16 %v1654_v20, %v1641_v19  ;;  %v1667_v34 = vld [vmem:[#allocation5 + $0x3048] sm:$0xff]  ;;  %v6385_v38 = vpack.c.bf16 %v1651_v26, %v1638_v25  ;;  %v6641_v39 = vpack.c.bf16 %v1653_v29, %v1640_v27  ;;  %v1742_v19 = vld [vmem:[#allocation5 + $0x32a0] sm:$0xff]  ;;  %v1769_v25 = vld [vmem:[#allocation5 + $0x3378] sm:$0xff] }
 0x35b   :  { %v1755_v20 = vld [vmem:[#allocation5 + $0x3308] sm:$0xff]  ;;  %v1782_v26 = vld [vmem:[#allocation5 + $0x33e0] sm:$0xff] }
 0x35c   :  { %v1771_v27 = vld [vmem:[#allocation5 + $0x3388] sm:$0xff]  ;;  %v6401_v29 = vpack.c.bf16 %v1755_v20, %v1742_v19  ;;  %v6403_v32 = vpack.c.bf16 %v1782_v26, %v1769_v25  ;;  %v420_v20 = vld [vmem:[#allocation5 + $0x950] sm:$0xff]  ;;  %v849_v25 = vld [vmem:[#allocation5 + $0x16b8] sm:$0xff] }
 0x35d   :  { %6370 = vmatpush1.bf16.msra.mxu0 %v6369_v48  ;;  %6626 = vmatpush1.bf16.msra.mxu1 %v6625_v49  ;;  %v1666_v48 = vld [vmem:[#allocation5 + $0x3040] sm:$0xff]  ;;  %v6643_v49 = vpack.c.bf16 %v1680_v35, %v1667_v34  ;;  %v1768_v34 = vld [vmem:[#allocation5 + $0x3370] sm:$0xff]  ;;  %v1781_v35 = vld [vmem:[#allocation5 + $0x33d8] sm:$0xff] }
 0x35e   :  { %6372 = vmatprep.subr.bf16.mxu0 %v6371_v50  ;;  %6628 = vmatprep.subr.bf16.mxu1 %v6627_v54  ;;  %v1679_v50 = vld [vmem:[#allocation5 + $0x30a8] sm:$0xff]  ;;  %v1706_v54 = vld [vmem:[#allocation5 + $0x3180] sm:$0xff]  ;;  %v7111_v26 = vld [vmem:[#allocation2 + $0x18] sm:$0xff] }
 0x35f   :  { %v6645_v56 = vpack.c.bf16 %v1679_v50, %v1666_v48  ;;  %v758_v48 = vld [vmem:[#allocation5 + $0x13e0] sm:$0xff]  ;;  %v6405_v50 = vpack.c.bf16 %v1781_v35, %v1768_v34  ;;  %v615_v19 = vld [vmem:[#allocation5 + $0xf68] sm:$0xff]  ;;  %v628_v34 = vld [vmem:[#allocation5 + $0xfd0] sm:$0xff] }
 0x361   :  { %6374 = vmatpush1.bf16.msra.mxu0 %v6373_v60  ;;  %6630 = vmatpush1.bf16.msra.mxu1 %v6629_v61  ;;  %v1692_v60 = vld [vmem:[#allocation5 + $0x3110] sm:$0xff]  ;;  %v6647_v61 = vpack.c.bf16 %v1706_v54, %v1693_v53  ;;  %v134_v53 = vld [vmem:[#allocation5 + $0x60] sm:$0xff]  ;;  %v147_v54 = vld [vmem:[#allocation5 + $0xc8] sm:$0xff] }
 0x362   :  { %6376 = vmatprep.subr.bf16.mxu0 %v6375_v62  ;;  %6632 = vmatprep.subr.bf16.mxu1 %v6631_v2  ;;  %v1705_v62 = vld [vmem:[#allocation5 + $0x3178] sm:$0xff]  ;;  %v1732_v2 = vld [vmem:[#allocation5 + $0x3250] sm:$0xff] }
 0x363   :  { %v6649_v5 = vpack.c.bf16 %v1705_v62, %v1692_v60  ;;  %v784_v60 = vld [vmem:[#allocation5 + $0x14b0] sm:$0xff]  ;;  %v6665_v62 = vpack.c.bf16 %v147_v54, %v134_v53  ;;  %v654_v53 = vld [vmem:[#allocation5 + $0x10a0] sm:$0xff]  ;;  %v6711_v54 = vpack.c.bf16 %v875_v44, %v862_v43 }
 0x364   :  { %v966_v44 = vld [vmem:[#allocation5 + $0x1a60] sm:$0xff] }
 0x365   :  { %6378 = vmatpush1.bf16.msra.mxu0 %v6377_v9  ;;  %6634 = vmatpush1.bf16.msra.mxu1 %v6633_v10  ;;  %v1718_v9 = vld [vmem:[#allocation5 + $0x31e0] sm:$0xff]  ;;  %v6651_v10 = vpack.c.bf16 %v1732_v2, %v1719_v1  ;;  %v160_v1 = vld [vmem:[#allocation5 + $0x130] sm:$0xff]  ;;  %v173_v2 = vld [vmem:[#allocation5 + $0x198] sm:$0xff] }
 0x366   :  { %6380 = vmatprep.subr.bf16.mxu0 %v6379_v11  ;;  %6636 = vmatprep.subr.bf16.mxu1 %v6635_v15  ;;  %v1731_v11 = vld [vmem:[#allocation5 + $0x3248] sm:$0xff]  ;;  %v1758_v15 = vld [vmem:[#allocation5 + $0x3320] sm:$0xff]  ;;  %v6669_v12 = vpack.c.bf16 %v173_v2, %v160_v1  ;;  %v680_v1 = vld [vmem:[#allocation5 + $0x1170] sm:$0xff]  ;;  %v6715_v2 = vpack.c.bf16 %v901_v59, %v888_v58 }
 0x367   :  { %v6653_v17 = vpack.c.bf16 %v1731_v11, %v1718_v9  ;;  %v7468_v9 = vld [vmem:[#allocation2 + $0x30] sm:$0xff]  ;;  %v823_v11 = vld [vmem:[#allocation5 + $0x15e8] sm:$0xff] }
 0x368   :  { %v992_v59 = vld [vmem:[#allocation5 + $0x1b30] sm:$0xff] }
 0x369   :  { %6382 = vmatpush1.bf16.msra.mxu0 %v6381_v21  ;;  %6638 = vmatpush1.bf16.msra.mxu1 %v6637_v23  ;;  %v1744_v21 = vld [vmem:[#allocation5 + $0x32b0] sm:$0xff]  ;;  %v6655_v23 = vpack.c.bf16 %v1758_v15, %v1745_v14  ;;  %v6671_v14 = vpack.c.bf16 %v407_v8, %v394_v7  ;;  %v186_v15 = vld [vmem:[#allocation5 + $0x200] sm:$0xff]  ;;  %v927_v8 = vld [vmem:[#allocation5 + $0x1928] sm:$0xff] }
 0x36a   :  { %6384 = vmatprep.subr.bf16.mxu0 %v6383_v24  ;;  %6640 = vmatprep.subr.bf16.mxu1 %v6639_v28  ;;  %v1757_v24 = vld [vmem:[#allocation5 + $0x3318] sm:$0xff]  ;;  %v1784_v28 = vld [vmem:[#allocation5 + $0x33f0] sm:$0xff]  ;;  %v914_v7 = vld [vmem:[#allocation5 + $0x18c0] sm:$0xff] }
 0x36b   :  { %v6657_v30 = vpack.c.bf16 %v1757_v24, %v1744_v21  ;;  %v433_v21 = vld [vmem:[#allocation5 + $0x9b8] sm:$0xff]  ;;  %v836_v24 = vld [vmem:[#allocation5 + $0x1650] sm:$0xff] }
 0x36c   :  { %v6707_v35 = vpack.c.bf16 %v849_v25, %v836_v24 }
 0x36d   :  { %6386 = vmatpush1.bf16.msra.mxu0 %v6385_v38  ;;  %6642 = vmatpush1.bf16.msra.mxu1 %v6641_v39  ;;  %v1770_v38 = vld [vmem:[#allocation5 + $0x3380] sm:$0xff]  ;;  %v6659_v39 = vpack.c.bf16 %v1784_v28, %v1771_v27 }
 0x36e   :  { %6388 = vmatprep.subr.bf16.mxu0 %v6387_v41  ;;  %6644 = vmatprep.subr.bf16.mxu1 %v6643_v49  ;;  %v1783_v41 = vld [vmem:[#allocation5 + $0x33e8] sm:$0xff] }
 0x36f   :  { %v771_v49 = vld [vmem:[#allocation5 + $0x1448] sm:$0xff]  ;;  %v6661_v51 = vpack.c.bf16 %v1783_v41, %v1770_v38  ;;  %v641_v38 = vld [vmem:[#allocation5 + $0x1038] sm:$0xff] }
 0x370   :  { %v459_v41 = vld [vmem:[#allocation5 + $0xa88] sm:$0xff] }
 0x371   :  { %6390 = vmatpush1.bf16.msra.mxu0 %v6389_v55  ;;  %6646 = vmatpush1.bf16.msra.mxu1 %v6645_v56  ;;  %v550_v55 = vld [vmem:[#allocation5 + $0xd60] sm:$0xff]  ;;  %v6695_v56 = vpack.c.bf16 %v771_v49, %v758_v48  ;;  %v6709_v49 = vpack.c.bf16 %v641_v38, %v628_v34  ;;  %v1187_v34 = vld [vmem:[#allocation5 + $0x2148] sm:$0xff] }
 0x372   :  { %6392 = vmatprep.subr.bf16.mxu0 %v6391_v57  ;;  %6648 = vmatprep.subr.bf16.mxu1 %v6647_v61  ;;  %v563_v57 = vld [vmem:[#allocation5 + $0xdc8] sm:$0xff]  ;;  %v797_v61 = vld [vmem:[#allocation5 + $0x1518] sm:$0xff] }
 0x373   :  { %v6697_v63 = vpack.c.bf16 %v563_v57, %v550_v55  ;;  %v667_v55 = vld [vmem:[#allocation5 + $0x1108] sm:$0xff]  ;;  %v485_v57 = vld [vmem:[#allocation5 + $0xb58] sm:$0xff] }
 0x374   :  { %v1603_v38 = vld [vmem:[#allocation5 + $0x2e48] sm:$0xff] }
 0x375   :  { %6394 = vmatpush1.bf16.msra.mxu0 %v6393_v3  ;;  %6650 = vmatpush1.bf16.msra.mxu1 %v6649_v5  ;;  %v576_v3 = vld [vmem:[#allocation5 + $0xe30] sm:$0xff]  ;;  %v6699_v5 = vpack.c.bf16 %v797_v61, %v784_v60  ;;  %v6713_v61 = vpack.c.bf16 %v667_v55, %v654_v53  ;;  %v1213_v53 = vld [vmem:[#allocation5 + $0x2218] sm:$0xff] }
 0x376   :  { %6396 = vmatprep.subr.bf16.mxu0 %v6395_v6  ;;  %6652 = vmatprep.subr.bf16.mxu1 %v6651_v10  ;;  %v589_v6 = vld [vmem:[#allocation5 + $0xe98] sm:$0xff]  ;;  %v810_v10 = vld [vmem:[#allocation5 + $0x1580] sm:$0xff] }
 0x377   :  { %v6701_v13 = vpack.c.bf16 %v589_v6, %v576_v3  ;;  %v693_v3 = vld [vmem:[#allocation5 + $0x11d8] sm:$0xff]  ;;  %v511_v6 = vld [vmem:[#allocation5 + $0xc28] sm:$0xff] }
 0x378   :  { %v1629_v55 = vld [vmem:[#allocation5 + $0x2f18] sm:$0xff] }
 0x379   :  { %6398 = vmatpush1.bf16.msra.mxu0 %v6397_v16  ;;  %6654 = vmatpush1.bf16.msra.mxu1 %v6653_v17  ;;  %v199_v16 = vld [vmem:[#allocation5 + $0x268] sm:$0xff]  ;;  %v602_v17 = vld [vmem:[#allocation5 + $0xf00] sm:$0xff] }
 0x37a   :  { %6400 = vmatprep.subr.bf16.mxu0 %v6399_v18  ;;  %6656 = vmatprep.subr.bf16.mxu1 %v6655_v23  ;;  %v6703_v18 = vpack.c.bf16 %v823_v11, %v810_v10  ;;  %v7110_v23 = vld [vmem:[#allocation2 + $0x8] sm:$0xff]  ;;  %v6673_v27 = vpack.c.bf16 %v199_v16, %v186_v15  ;;  %v6705_v28 = vpack.c.bf16 %v615_v19, %v602_v17  ;;  %v706_v15 = vld [vmem:[#allocation5 + $0x1240] sm:$0xff]  ;;  %v537_v19 = vld [vmem:[#allocation5 + $0xcf8] sm:$0xff] }
 0x37b   :  { %v6717_v11 = vpack.c.bf16 %v693_v3, %v680_v1  ;;  %v6719_v16 = vpack.c.bf16 %v927_v8, %v914_v7  ;;  %v719_v17 = vld [vmem:[#allocation5 + $0x12a8] sm:$0xff]  ;;  %v1642_v3 = vld [vmem:[#allocation5 + $0x2f80] sm:$0xff] }
 0x37c   :  { %v6721_v24 = vpack.c.bf16 %v719_v17, %v706_v15  ;;  %v1239_v1 = vld [vmem:[#allocation5 + $0x22e8] sm:$0xff]  ;;  %v1265_v17 = vld [vmem:[#allocation5 + $0x23b8] sm:$0xff] }
 0x37d   :  { %6402 = vmatpush1.bf16.msra.mxu0 %v6401_v29  ;;  %6658 = vmatpush1.bf16.msra.mxu1 %v6657_v30  ;;  %v6675_v29 = vpack.c.bf16 %v433_v21, %v420_v20  ;;  %v212_v30 = vld [vmem:[#allocation5 + $0x2d0] sm:$0xff]  ;;  %v953_v21 = vld [vmem:[#allocation5 + $0x19f8] sm:$0xff]  ;;  %v1447_v15 = vld [vmem:[#allocation5 + $0x2968] sm:$0xff] }
 0x37e   :  { %6404 = vmatprep.subr.bf16.mxu0 %v6403_v32  ;;  %6660 = vmatprep.subr.bf16.mxu1 %v6659_v39  ;;  %v225_v32 = vld [vmem:[#allocation5 + $0x338] sm:$0xff]  ;;  %v446_v39 = vld [vmem:[#allocation5 + $0xa20] sm:$0xff]  ;;  %v940_v20 = vld [vmem:[#allocation5 + $0x1990] sm:$0xff] }
 0x37f   :  { %v6677_v48 = vpack.c.bf16 %v225_v32, %v212_v30  ;;  %v745_v30 = vld [vmem:[#allocation5 + $0x1378] sm:$0xff]  ;;  %v1174_v32 = vld [vmem:[#allocation5 + $0x20e0] sm:$0xff] }
 0x380   :  { %v6727_v43 = vpack.c.bf16 %v1187_v34, %v1174_v32  ;;  %v1291_v32 = vld [vmem:[#allocation5 + $0x2488] sm:$0xff]  ;;  %v1694_v34 = vld [vmem:[#allocation5 + $0x3120] sm:$0xff] }
 0x381   :  { %6406 = vmatpush1.bf16.msra.mxu0 %v6405_v50  ;;  %6662 = vmatpush1.bf16.msra.mxu1 %v6661_v51  ;;  %v6679_v50 = vpack.c.bf16 %v459_v41, %v446_v39  ;;  %v238_v51 = vld [vmem:[#allocation5 + $0x3a0] sm:$0xff] }
 0x382   :  { %6664 = vmatprep.subr.bf16.mxu0 %v6663_v52  ;;  %6696 = vmatprep.subr.bf16.mxu1 %v6695_v56  ;;  %v251_v52 = vld [vmem:[#allocation5 + $0x408] sm:$0xff]  ;;  %v472_v56 = vld [vmem:[#allocation5 + $0xaf0] sm:$0xff] }
 0x383   :  { %v6681_v60 = vpack.c.bf16 %v251_v52, %v238_v51  ;;  %v1395_v51 = vld [vmem:[#allocation5 + $0x27c8] sm:$0xff]  ;;  %v1200_v52 = vld [vmem:[#allocation5 + $0x21b0] sm:$0xff] }
 0x384   :  { %3269 = vmatmul.mubr.f32.vlgmr.msra.gmra.mrb[4].mxu0 %v7468_v9  ;;  %3553 = vmatmul.mubr.f32.vlgmr.msra.gmra.mrb[4].mxu1 %v7468_v9  ;;  %v6731_v58 = vpack.c.bf16 %v1213_v53, %v1200_v52  ;;  %v1720_v52 = vld [vmem:[#allocation5 + $0x31f0] sm:$0xff]  ;;  %v1733_v53 = vld [vmem:[#allocation5 + $0x3258] sm:$0xff] }
 0x385   :  { %6666 = vmatpush3.bf16.msra.mxu0 %v6665_v62  ;;  %6698 = vmatpush3.bf16.msra.mxu1 %v6697_v63  ;;  %v6683_v62 = vpack.c.bf16 %v485_v57, %v472_v56  ;;  %v264_v63 = vld [vmem:[#allocation5 + $0x470] sm:$0xff] }
 0x386   :  { %6668 = vmatprep.subr.bf16.mxu0 %v6667_v0  ;;  %6700 = vmatprep.subr.bf16.mxu1 %v6699_v5  ;;  %v277_v0 = vld [vmem:[#allocation5 + $0x4d8] sm:$0xff]  ;;  %v498_v5 = vld [vmem:[#allocation5 + $0xbc0] sm:$0xff] }
 0x387   :  { %3623 = vmatprep.mubr.f32.mxu0 %v7110_v23  ;;  %3693 = vmatprep.mubr.f32.mxu1 %v7111_v26  ;;  %v6685_v10 = vpack.c.bf16 %v277_v0, %v264_v63  ;;  %v316_v26 = vld [vmem:[#allocation5 + $0x610] sm:$0xff]  ;;  %v1421_v63 = vld [vmem:[#allocation5 + $0x2898] sm:$0xff]  ;;  %v1226_v0 = vld [vmem:[#allocation5 + $0x2280] sm:$0xff] }
 0x389   :  { %6670 = vmatpush3.bf16.msra.mxu0 %v6669_v12  ;;  %6702 = vmatpush3.bf16.msra.mxu1 %v6701_v13  ;;  %v6687_v12 = vpack.c.bf16 %v511_v6, %v498_v5  ;;  %v290_v13 = vld [vmem:[#allocation5 + $0x540] sm:$0xff]  ;;  %v1655_v5 = vld [vmem:[#allocation5 + $0x2fe8] sm:$0xff]  ;;  %v7113_v6 = vld [vmem:[#allocation2 + $0x10] sm:$0xff] }
 0x38a   :  { %6672 = vmatprep.subr.bf16.mxu0 %v6671_v14  ;;  %6704 = vmatprep.subr.bf16.mxu1 %v6703_v18  ;;  %v303_v14 = vld [vmem:[#allocation5 + $0x5a8] sm:$0xff]  ;;  %v524_v18 = vld [vmem:[#allocation5 + $0xc90] sm:$0xff] }
 0x38b   :  { %v6689_v23 = vpack.c.bf16 %v303_v14, %v290_v13  ;;  %v6691_v25 = vpack.c.bf16 %v537_v19, %v524_v18  ;;  %v1434_v13 = vld [vmem:[#allocation5 + $0x2900] sm:$0xff]  ;;  %v6767_v14 = vpack.c.bf16 %v1655_v5, %v1642_v3  ;;  %v7114_v18 = vld [vmem:[#allocation2 + $0x28] sm:$0xff]  ;;  %v1668_v19 = vld [vmem:[#allocation5 + $0x3050] sm:$0xff] }
 0x38d   :  { %6674 = vmatpush3.bf16.msra.mxu0 %v6673_v27  ;;  %6706 = vmatpush3.bf16.msra.mxu1 %v6705_v28  ;;  %v329_v27 = vld [vmem:[#allocation5 + $0x678] sm:$0xff]  ;;  %v732_v28 = vld [vmem:[#allocation5 + $0x1310] sm:$0xff] }
 0x38e   :  { %6676 = vmatprep.subr.bf16.mxu0 %v6675_v29  ;;  %6708 = vmatprep.subr.bf16.mxu1 %v6707_v35  ;;  %v6723_v29 = vpack.c.bf16 %v953_v21, %v940_v20  ;;  %v1590_v35 = vld [vmem:[#allocation5 + $0x2de0] sm:$0xff]  ;;  %v6693_v39 = vpack.c.bf16 %v329_v27, %v316_v26  ;;  %v6725_v41 = vpack.c.bf16 %v745_v30, %v732_v28  ;;  %v1681_v20 = vld [vmem:[#allocation5 + $0x30b8] sm:$0xff]  ;;  %v1460_v27 = vld [vmem:[#allocation5 + $0x29d0] sm:$0xff] }
 0x38f   :  { %v1057_v26 = vld [vmem:[#allocation5 + $0x1d38] sm:$0xff]  ;;  %v6771_v28 = vpack.c.bf16 %v1681_v20, %v1668_v19  ;;  %v1278_v30 = vld [vmem:[#allocation5 + $0x2420] sm:$0xff] }
 0x391   :  { %6678 = vmatpush3.bf16.msra.mxu0 %v6677_v48  ;;  %6710 = vmatpush3.bf16.msra.mxu1 %v6709_v49  ;;  %v979_v48 = vld [vmem:[#allocation5 + $0x1ac8] sm:$0xff]  ;;  %v1382_v49 = vld [vmem:[#allocation5 + $0x2760] sm:$0xff] }
 0x392   :  { %6680 = vmatprep.subr.bf16.mxu0 %v6679_v50  ;;  %6712 = vmatprep.subr.bf16.mxu1 %v6711_v54  ;;  %v6759_v50 = vpack.c.bf16 %v1603_v38, %v1590_v35  ;;  %v1616_v54 = vld [vmem:[#allocation5 + $0x2eb0] sm:$0xff]  ;;  %v6729_v56 = vpack.c.bf16 %v979_v48, %v966_v44  ;;  %v6761_v57 = vpack.c.bf16 %v1395_v51, %v1382_v49  ;;  %v1707_v35 = vld [vmem:[#allocation5 + $0x3188] sm:$0xff]  ;;  %v1486_v44 = vld [vmem:[#allocation5 + $0x2aa0] sm:$0xff] }
 0x393   :  { %v6775_v48 = vpack.c.bf16 %v1707_v35, %v1694_v34  ;;  %v1499_v49 = vld [vmem:[#allocation5 + $0x2b08] sm:$0xff]  ;;  %v1317_v51 = vld [vmem:[#allocation5 + $0x2558] sm:$0xff] }
 0x395   :  { %6682 = vmatpush3.bf16.msra.mxu0 %v6681_v60  ;;  %6714 = vmatpush3.bf16.msra.mxu1 %v6713_v61  ;;  %v1005_v60 = vld [vmem:[#allocation5 + $0x1b98] sm:$0xff]  ;;  %v1408_v61 = vld [vmem:[#allocation5 + $0x2830] sm:$0xff] }
 0x396   :  { %6684 = vmatprep.subr.bf16.mxu0 %v6683_v62  ;;  %6716 = vmatprep.subr.bf16.mxu1 %v6715_v2  ;;  %v6763_v62 = vpack.c.bf16 %v1629_v55, %v1616_v54  ;;  %v7112_v2 = vld [vmem:[#allocation2] sm:$0xff]  ;;  %v6733_v7 = vpack.c.bf16 %v1005_v60, %v992_v59  ;;  %v6765_v8 = vpack.c.bf16 %v1421_v63, %v1408_v61  ;;  %v1512_v59 = vld [vmem:[#allocation5 + $0x2b70] sm:$0xff]  ;;  %v1525_v61 = vld [vmem:[#allocation5 + $0x2bd8] sm:$0xff] }
 0x397   :  { %v6777_v55 = vpack.c.bf16 %v1499_v49, %v1486_v44  ;;  %v6779_v60 = vpack.c.bf16 %v1733_v53, %v1720_v52  ;;  %v1343_v63 = vld [vmem:[#allocation5 + $0x2628] sm:$0xff]  ;;  %v6781_v3 = vpack.c.bf16 %v1525_v61, %v1512_v59  ;;  %v3902_v53 = vld [vmem:[#allocation8 + $0x190] sm:$0xff] }
 0x398   :  { %v3884_v44 = vld [vmem:[#allocation8 + $0x100] sm:$0xff] }
 0x399   :  { %6686 = vmatpush3.bf16.msra.mxu0 %v6685_v10  ;;  %6718 = vmatpush3.bf16.msra.mxu1 %v6717_v11  ;;  %v6735_v10 = vpack.c.bf16 %v1239_v1, %v1226_v0  ;;  %v1018_v11 = vld [vmem:[#allocation5 + $0x1c00] sm:$0xff]  ;;  %v1759_v1 = vld [vmem:[#allocation5 + $0x3328] sm:$0xff] }
 0x39a   :  { %6688 = vmatprep.subr.bf16.mxu0 %v6687_v12  ;;  %6720 = vmatprep.subr.bf16.mxu1 %v6719_v16  ;;  %v1031_v12 = vld [vmem:[#allocation5 + $0x1c68] sm:$0xff]  ;;  %v1252_v16 = vld [vmem:[#allocation5 + $0x2350] sm:$0xff]  ;;  %v1746_v0 = vld [vmem:[#allocation5 + $0x32c0] sm:$0xff] }
 0x39b   :  { %v6737_v21 = vpack.c.bf16 %v1031_v12, %v1018_v11  ;;  %v1551_v11 = vld [vmem:[#allocation5 + $0x2ca8] sm:$0xff]  ;;  %v1356_v12 = vld [vmem:[#allocation5 + $0x2690] sm:$0xff] }
 0x39c   :  { %v3872_v61 = vld [vmem:[#allocation8 + $0xa0] sm:$0xff] }
 0x39d   :  { %6690 = vmatpush3.bf16.msra.mxu0 %v6689_v23  ;;  %6722 = vmatpush3.bf16.msra.mxu1 %v6721_v24  ;;  %v6769_v23 = vpack.c.bf16 %v1447_v15, %v1434_v13  ;;  %v6739_v24 = vpack.c.bf16 %v1265_v17, %v1252_v16  ;;  %v1369_v13 = vld [vmem:[#allocation5 + $0x26f8] sm:$0xff]  ;;  %v1772_v15 = vld [vmem:[#allocation5 + $0x3390] sm:$0xff]  ;;  %v1804_v17 = vsub.s32 3, %v7454_v4 }
 0x39e   :  { %6692 = vmatprep.subr.bf16.mxu0 %v6691_v25  ;;  %6724 = vmatprep.subr.bf16.mxu1 %v6723_v29  ;;  %v1044_v25 = vld [vmem:[#allocation5 + $0x1cd0] sm:$0xff]  ;;  %v1473_v29 = vld [vmem:[#allocation5 + $0x2a38] sm:$0xff]  ;;  %v6755_v20 = vpack.c.bf16 %v1369_v13, %v1356_v12 }
 0x39f   :  { %v6741_v38 = vpack.c.bf16 %v1057_v26, %v1044_v25  ;;  %v1785_v16 = vld [vmem:[#allocation5 + $0x33f8] sm:$0xff]  ;;  %v1805_v34 = vrot.slane %v7457_v22, %v1804_v17 }
 0x3a0   :  { %v6787_v25 = vpack.c.bf16 %v1785_v16, %v1772_v15  ;;  %v1577_v26 = vld [vmem:[#allocation5 + $0x2d78] sm:$0xff]  ;;  %v3875_v15 = vld [vmem:[#allocation8 + $0xb8] sm:$0xff] }
 0x3a1   :  { %6694 = vmatpush3.bf16.msra.mxu0 %v6693_v39  ;;  %6726 = vmatpush3.bf16.msra.mxu1 %v6725_v41  ;;  %v6743_v39 = vpack.c.bf16 %v1291_v32, %v1278_v30  ;;  %v1070_v41 = vld [vmem:[#allocation5 + $0x1da0] sm:$0xff]  ;;  %v3900_v30 = vld [vmem:[#allocation8 + $0x180] sm:$0xff]  ;;  %v3901_v32 = vld [vmem:[#allocation8 + $0x188] sm:$0xff]  ;;  %v7034_v52 = vadd.f32 %v7448_v40, %v1805_v34 }
 0x3a2   :  { %6728 = vmatprep.subr.bf16.mxu0 %v6727_v43  ;;  %6760 = vmatprep.subr.bf16.mxu1 %v6759_v50  ;;  %v1083_v43 = vld [vmem:[#allocation5 + $0x1e08] sm:$0xff]  ;;  %v1304_v50 = vld [vmem:[#allocation5 + $0x24f0] sm:$0xff]  ;;  %v3874_v13 = vld [vmem:[#allocation8 + $0xb0] sm:$0xff] }
 0x3a3   :  { %v6745_v54 = vpack.c.bf16 %v1083_v43, %v1070_v41  ;;  %v3853_v41 = vld [vmem:[#allocation8 + $0x8] sm:$0xff]  ;;  %v6823_v43 = vpack.c.bf16 %v3901_v32, %v3900_v30  ;;  %v3904_v40 = vld [vmem:[#allocation8 + $0x1a0] sm:$0xff]  ;;  %v3906_v16 = vld [vmem:[#allocation8 + $0x1b0] sm:$0xff] }
 0x3a4   :  { %3624 = vmatmul.mubr.f32.vlgmr.msra.gmra.mrb[6].mxu0 %v7112_v2  ;;  %3694 = vmatmul.mubr.f32.vlgmr.msra.gmra.mrb[6].mxu1 %v7113_v6  ;;  %v1122_v6 = vld [vmem:[#allocation5 + $0x1f40] sm:$0xff]  ;;  %v3889_v12 = vld [vmem:[#allocation8 + $0x128] sm:$0xff] }
 0x3a5   :  { %6730 = vmatpush3.bf16.msra.mxu0 %v6729_v56  ;;  %6762 = vmatpush3.bf16.msra.mxu1 %v6761_v57  ;;  %v6747_v56 = vpack.c.bf16 %v1317_v51, %v1304_v50  ;;  %v1096_v57 = vld [vmem:[#allocation5 + $0x1e70] sm:$0xff]  ;;  %v3870_v50 = vld [vmem:[#allocation8 + $0x90] sm:$0xff]  ;;  %v3871_v51 = vld [vmem:[#allocation8 + $0x98] sm:$0xff] }
 0x3a6   :  { %6732 = vmatprep.subr.bf16.mxu0 %v6731_v58  ;;  %6764 = vmatprep.subr.bf16.mxu1 %v6763_v62  ;;  %v1109_v58 = vld [vmem:[#allocation5 + $0x1ed8] sm:$0xff]  ;;  %v1330_v62 = vld [vmem:[#allocation5 + $0x25c0] sm:$0xff]  ;;  %v6795_v59 = vpack.c.bf16 %v3871_v51, %v3870_v50 }
 0x3a7   :  { %3763 = vmatprep.mubr.f32.mxu0 %v7114_v18  ;;  %3833 = vmatprep.mubr.f32.mxu1 %v7450_v46  ;;  %v6773_v46 = vpack.c.bf16 %v1473_v29, %v1460_v27  ;;  %v6749_v2 = vpack.c.bf16 %v1109_v58, %v1096_v57  ;;  %v6751_v5 = vpack.c.bf16 %v1343_v63, %v1330_v62  ;;  %v3868_v27 = vld [vmem:[#allocation8 + $0x80] sm:$0xff]  ;;  %v3855_v57 = vld [vmem:[#allocation8 + $0x18] sm:$0xff]  ;;  %v3886_v58 = vld [vmem:[#allocation8 + $0x110] sm:$0xff] }
 0x3a8   :  { %v3873_v62 = vld [vmem:[#allocation8 + $0xa8] sm:$0xff]  ;;  %v7115_v63 = vld [vmem:[#allocation2 + $0x20] sm:$0xff] }
 0x3a9   :  { %6734 = vmatpush3.bf16.msra.mxu0 %v6733_v7  ;;  %6766 = vmatpush3.bf16.msra.mxu1 %v6765_v8  ;;  %v1135_v7 = vld [vmem:[#allocation5 + $0x1fa8] sm:$0xff]  ;;  %v1538_v8 = vld [vmem:[#allocation5 + $0x2c40] sm:$0xff]  ;;  %v3909_v30 = vld [vmem:[#allocation8 + $0x1c8] sm:$0xff] }
 0x3aa   :  { %6736 = vmatprep.subr.bf16.mxu0 %v6735_v10  ;;  %6768 = vmatprep.subr.bf16.mxu1 %v6767_v14  ;;  %v6783_v10 = vpack.c.bf16 %v1759_v1, %v1746_v0  ;;  %v1796_v14 = vsub.s32 1, %v7454_v4  ;;  %v6753_v18 = vpack.c.bf16 %v1135_v7, %v1122_v6  ;;  %v6785_v19 = vpack.c.bf16 %v1551_v11, %v1538_v8  ;;  %v3905_v1 = vld [vmem:[#allocation8 + $0x1a8] sm:$0xff]  ;;  %v3856_v7 = vld [vmem:[#allocation8 + $0x20] sm:$0xff]  ;;  %v3911_v50 = vld [vmem:[#allocation8 + $0x1d8] sm:$0xff] }
 0x3ab   :  { %v6799_v6 = vpack.c.bf16 %v3873_v62, %v3872_v61  ;;  %v3857_v8 = vld [vmem:[#allocation8 + $0x28] sm:$0xff]  ;;  %v6831_v11 = vpack.c.bf16 %v3905_v1, %v3904_v40  ;;  %v3864_v40 = vld [vmem:[#allocation8 + $0x60] sm:$0xff] }
 0x3ac   :  { %v1797_v29 = vrot.slane %v7457_v22, %v1796_v14  ;;  %v3913_v61 = vld [vmem:[#allocation8 + $0x1e8] sm:$0xff] }
 0x3ad   :  { %6738 = vmatpush3.bf16.msra.mxu0 %v6737_v21  ;;  %6770 = vmatpush3.bf16.msra.mxu1 %v6769_v23  ;;  %v1148_v21 = vld [vmem:[#allocation5 + $0x2010] sm:$0xff]  ;;  %v1161_v23 = vld [vmem:[#allocation5 + $0x2078] sm:$0xff] }
 0x3ae   :  { %6740 = vmatprep.subr.bf16.mxu0 %v6739_v24  ;;  %6772 = vmatprep.subr.bf16.mxu1 %v6771_v28  ;;  %v1564_v24 = vld [vmem:[#allocation5 + $0x2d10] sm:$0xff]  ;;  %v6757_v35 = vpack.c.bf16 %v1161_v23, %v1148_v21  ;;  %v7032_v49 = vadd.f32 %v7446_v37, %v1797_v29  ;;  %v3858_v21 = vld [vmem:[#allocation8 + $0x30] sm:$0xff]  ;;  %v3859_v23 = vld [vmem:[#allocation8 + $0x38] sm:$0xff] }
 0x3af   :  { %v3869_v28 = vld [vmem:[#allocation8 + $0x88] sm:$0xff]  ;;  %v3908_v29 = vld [vmem:[#allocation8 + $0x1c0] sm:$0xff]  ;;  %v6805_v32 = vpack.c.bf16 %v3859_v23, %v3858_v21  ;;  %v3867_v21 = vld [vmem:[#allocation8 + $0x78] sm:$0xff] }
 0x3b0   :  { %v3840_v37 = vmax.f32 %v7032_v49, 0.0  ;;  %v3910_v49 = vld [vmem:[#allocation8 + $0x1d0] sm:$0xff]  ;;  %v3865_v1 = vld [vmem:[#allocation8 + $0x68] sm:$0xff] }
 0x3b1   :  { %6742 = vmatpush3.bf16.msra.mxu0 %v6741_v38  ;;  %6774 = vmatpush3.bf16.msra.mxu1 %v6773_v46  ;;  %v6789_v38 = vpack.c.bf16 %v1577_v26, %v1564_v24  ;;  %v6791_v46 = vpack.c.bf16 %v3869_v28, %v3868_v27  ;;  %v3890_v24 = vld [vmem:[#allocation8 + $0x130] sm:$0xff]  ;;  %v3891_v26 = vld [vmem:[#allocation8 + $0x138] sm:$0xff]  ;;  %v3876_v27 = vld [vmem:[#allocation8 + $0xc0] sm:$0xff] }
 0x3b2   :  { %6744 = vmatprep.subr.bf16.mxu0 %v6743_v39  ;;  %6776 = vmatprep.subr.bf16.mxu1 %v6775_v48  ;;  %v3852_v39 = vld [vmem:[#allocation8] sm:$0xff]  ;;  %v3885_v48 = vld [vmem:[#allocation8 + $0x108] sm:$0xff]  ;;  %v6837_v34 = vpack.c.bf16 %v3891_v26, %v3890_v24  ;;  %v3898_v23 = vld [vmem:[#allocation8 + $0x170] sm:$0xff] }
 0x3b3   :  { %v6793_v22 = vpack.c.bf16 %v3853_v41, %v3852_v39  ;;  %v3877_v28 = vld [vmem:[#allocation8 + $0xc8] sm:$0xff]  ;;  %v3892_v39 = vld [vmem:[#allocation8 + $0x140] sm:$0xff]  ;;  %v6839_v41 = vpack.c.bf16 %v3909_v30, %v3908_v29  ;;  %v3899_v26 = vld [vmem:[#allocation8 + $0x178] sm:$0xff] }
 0x3b4   :  { %v3964_v30 = vld [vmem:[#allocation8 + $0x380] sm:$0xff] }
 0x3b5   :  { %6746 = vmatpush3.bf16.msra.mxu0 %v6745_v54  ;;  %6778 = vmatpush3.bf16.msra.mxu1 %v6777_v55  ;;  %v3903_v54 = vld [vmem:[#allocation8 + $0x198] sm:$0xff]  ;;  %v6825_v55 = vpack.c.bf16 %v3885_v48, %v3884_v44  ;;  %v3878_v44 = vld [vmem:[#allocation8 + $0xd0] sm:$0xff] }
 0x3b6   :  { %6748 = vmatprep.subr.bf16.mxu0 %v6747_v56  ;;  %6780 = vmatprep.subr.bf16.mxu1 %v6779_v60  ;;  %v3854_v56 = vld [vmem:[#allocation8 + $0x10] sm:$0xff]  ;;  %v3887_v60 = vld [vmem:[#allocation8 + $0x118] sm:$0xff]  ;;  %v6827_v0 = vpack.c.bf16 %v3903_v54, %v3902_v53 }
 0x3b7   :  { %v3879_v48 = vld [vmem:[#allocation8 + $0xd8] sm:$0xff]  ;;  %v3862_v53 = vld [vmem:[#allocation8 + $0x50] sm:$0xff] }
 0x3b8   :  { %v3863_v54 = vld [vmem:[#allocation8 + $0x58] sm:$0xff] }
 0x3b9   :  { %6750 = vmatpush3.bf16.msra.mxu0 %v6749_v2  ;;  %6782 = vmatpush3.bf16.msra.mxu1 %v6781_v3  ;;  %v3842_v2 = vmax.f32 %v7034_v52, 0.0  ;;  %v6797_v3 = vpack.c.bf16 %v3855_v57, %v3854_v56  ;;  %v6843_v56 = vpack.c.bf16 %v3911_v50, %v3910_v49  ;;  %v3895_v57 = vld [vmem:[#allocation8 + $0x158] sm:$0xff]  ;;  %v6813_v62 = vpack.c.bf16 %v3863_v54, %v3862_v53  ;;  %v3948_v49 = vld [vmem:[#allocation8 + $0x300] sm:$0xff]  ;;  %v3949_v50 = vld [vmem:[#allocation8 + $0x308] sm:$0xff] }
 0x3ba   :  { %6752 = vmatprep.subr.bf16.mxu0 %v6751_v5  ;;  %6784 = vmatprep.subr.bf16.mxu1 %v6783_v10  ;;  %v6829_v5 = vpack.c.bf16 %v3887_v60, %v3886_v58  ;;  %v3888_v10 = vld [vmem:[#allocation8 + $0x120] sm:$0xff]  ;;  %v3966_v54 = vld [vmem:[#allocation8 + $0x390] sm:$0xff] }
 0x3bb   :  { %v3880_v58 = vld [vmem:[#allocation8 + $0xe0] sm:$0xff] }
 0x3bc   :  { %v3912_v60 = vld [vmem:[#allocation8 + $0x1e0] sm:$0xff] }
 0x3bd   :  { %6754 = vmatpush3.bf16.msra.mxu0 %v6753_v18  ;;  %6786 = vmatpush3.bf16.msra.mxu1 %v6785_v19  ;;  %v3907_v18 = vld [vmem:[#allocation8 + $0x1b8] sm:$0xff]  ;;  %v6833_v19 = vpack.c.bf16 %v3889_v12, %v3888_v10  ;;  %v1812_v10 = vsub.s32 5, %v7454_v4 }
 0x3be   :  { %6756 = vmatprep.subr.bf16.mxu0 %v6755_v20  ;;  %6788 = vmatprep.subr.bf16.mxu1 %v6787_v25  ;;  %v6803_v20 = vpack.c.bf16 %v3875_v15, %v3874_v13  ;;  %v6835_v25 = vpack.c.bf16 %v3907_v18, %v3906_v16  ;;  %v3915_v12 = vld [vmem:[#allocation8 + $0x1f8] sm:$0xff]  ;;  %v1820_v13 = vsub.s32 7, %v7454_v4  ;;  %v6817_v15 = vpack.c.bf16 %v3865_v1, %v3864_v40  ;;  %v3968_v40 = vld [vmem:[#allocation8 + $0x3a0] sm:$0xff]  ;;  %v3969_v1 = vld [vmem:[#allocation8 + $0x3a8] sm:$0xff] }
 0x3bf   :  { %v7488_v16 = vld [vmem:[#allocation7] sm:$0xff] }
 0x3c0   :  { %v1813_v29 = vrot.slane %v7488_v16, %v1812_v10  ;;  %v3921_v10 = vld [vmem:[#allocation8 + $0x228] sm:$0xff] }
 0x3c1   :  { %6758 = vmatpush3.bf16.msra.mxu0 %v6757_v35  ;;  %6790 = vmatpush3.bf16.msra.mxu1 %v6789_v38  ;;  %v6807_v35 = vpack.c.bf16 %v3877_v28, %v3876_v27  ;;  %v3860_v38 = vld [vmem:[#allocation8 + $0x40] sm:$0xff]  ;;  %v3933_v28 = vld [vmem:[#allocation8 + $0x288] sm:$0xff] }
 0x3c2   :  { %6792 = vmatprep.subr.bf16.mxu0 %v6791_v46  ;;  %6824 = vmatprep.subr.bf16.mxu1 %v6823_v43  ;;  %v3861_v46 = vld [vmem:[#allocation8 + $0x48] sm:$0xff]  ;;  %v3932_v27 = vld [vmem:[#allocation8 + $0x280] sm:$0xff] }
 0x3c3   :  { %v3893_v43 = vld [vmem:[#allocation8 + $0x148] sm:$0xff]  ;;  %v6809_v51 = vpack.c.bf16 %v3861_v46, %v3860_v38  ;;  %v6853_v46 = vpack.c.bf16 %v3899_v26, %v3898_v23  ;;  %v3954_v26 = vld [vmem:[#allocation8 + $0x330] sm:$0xff] }
 0x3c4   :  { %3764 = vmatmul.mubr.f32.vlgmr.msra.gmra.mrb[8].mxu0 %v7115_v63  ;;  %3834 = vmatmul.mubr.f32.vlgmr.msra.gmra.mrb[8].mxu1 %v7468_v9  ;;  %v6801_v9 = vpack.c.bf16 %v3857_v8, %v3856_v7  ;;  %v6841_v52 = vpack.c.bf16 %v3893_v43, %v3892_v39  ;;  %v3882_v7 = vld [vmem:[#allocation8 + $0xf0] sm:$0xff]  ;;  %v3883_v8 = vld [vmem:[#allocation8 + $0xf8] sm:$0xff]  ;;  %v6855_v39 = vpack.c.bf16 %v3933_v28, %v3932_v27  ;;  %v3917_v43 = vld [vmem:[#allocation8 + $0x208] sm:$0xff] }
 0x3c5   :  { %6794 = vmatpush3.bf16.msra.mxu0 %v6793_v22  ;;  %4131 = vmatprep.mubr.f32.mxu0 %v3840_v37  ;;  %v6811_v22 = vpack.c.bf16 %v3879_v48, %v3878_v44  ;;  %v1792_v37 = vsub.s32 0, %v7454_v4  ;;  %v3955_v28 = vld [vmem:[#allocation8 + $0x338] sm:$0xff] }
 0x3c6   :  { %6826 = vmatpush3.bf16.msra.mxu1 %v6825_v55  ;;  %4201 = vmatprep.mubr.f32.mxu1 %v3842_v2  ;;  %v3894_v55 = vld [vmem:[#allocation8 + $0x150] sm:$0xff]  ;;  %v3896_v2 = vld [vmem:[#allocation8 + $0x160] sm:$0xff] }
 0x3c7   :  { %6796 = vmatprep.subr.bf16.mxu0 %v6795_v59  ;;  %6828 = vmatprep.subr.bf16.mxu1 %v6827_v0  ;;  %v3881_v59 = vld [vmem:[#allocation8 + $0xe8] sm:$0xff]  ;;  %v6845_v63 = vpack.c.bf16 %v3895_v57, %v3894_v55  ;;  %v1793_v18 = vrot.slane %v7488_v16, %v1792_v37  ;;  %v3967_v55 = vld [vmem:[#allocation8 + $0x398] sm:$0xff]  ;;  %v6889_v57 = vpack.c.bf16 %v3949_v50, %v3948_v49  ;;  %v3942_v49 = vld [vmem:[#allocation8 + $0x2d0] sm:$0xff] }
 0x3c8   :  { %v6815_v0 = vpack.c.bf16 %v3881_v59, %v3880_v58  ;;  %v3918_v58 = vld [vmem:[#allocation8 + $0x210] sm:$0xff]  ;;  %v3943_v50 = vld [vmem:[#allocation8 + $0x2d8] sm:$0xff] }
 0x3c9   :  { %6798 = vmatpush3.bf16.msra.mxu0 %v6797_v3  ;;  %v1800_v3 = vsub.s32 2, %v7454_v4  ;;  %v7031_v38 = vadd.f32 %v7442_v31, %v1793_v18  ;;  %v3950_v59 = vld [vmem:[#allocation8 + $0x310] sm:$0xff]  ;;  %v3939_v18 = vld [vmem:[#allocation8 + $0x2b8] sm:$0xff] }
 0x3ca   :  { %6830 = vmatpush3.bf16.msra.mxu1 %v6829_v5  ;;  %6800 = vmatprep.subr.bf16.mxu0 %v6799_v6  ;;  %v6847_v5 = vpack.c.bf16 %v3913_v61, %v3912_v60  ;;  %v3897_v6 = vld [vmem:[#allocation8 + $0x168] sm:$0xff] }
 0x3cb   :  { %6832 = vmatprep.subr.bf16.mxu1 %v6831_v11  ;;  %v3914_v11 = vld [vmem:[#allocation8 + $0x1f0] sm:$0xff]  ;;  %v1801_v24 = vrot.slane %v7488_v16, %v1800_v3 }
 0x3cd   :  { %6802 = vmatpush3.bf16.msra.mxu0 %v6801_v9  ;;  %v6849_v9 = vpack.c.bf16 %v3897_v6, %v3896_v2  ;;  %v7033_v44 = vadd.f32 %v7444_v36, %v1801_v24  ;;  %v3919_v36 = vld [vmem:[#allocation8 + $0x218] sm:$0xff]  ;;  %v3922_v24 = vld [vmem:[#allocation8 + $0x230] sm:$0xff] }
 0x3ce   :  { %6834 = vmatpush3.bf16.msra.mxu1 %v6833_v19  ;;  %6804 = vmatprep.subr.bf16.mxu0 %v6803_v20  ;;  %v6819_v19 = vpack.c.bf16 %v3883_v8, %v3882_v7  ;;  %v3866_v20 = vld [vmem:[#allocation8 + $0x70] sm:$0xff]  ;;  %v3920_v8 = vld [vmem:[#allocation8 + $0x220] sm:$0xff] }
 0x3cf   :  { %6836 = vmatprep.subr.bf16.mxu1 %v6835_v25  ;;  %v6851_v25 = vpack.c.bf16 %v3915_v12, %v3914_v11  ;;  %v3841_v60 = vmax.f32 %v7033_v44, 0.0  ;;  %v3952_v11 = vld [vmem:[#allocation8 + $0x320] sm:$0xff]  ;;  %v6895_v12 = vpack.c.bf16 %v3969_v1, %v3968_v40  ;;  %v3929_v40 = vld [vmem:[#allocation8 + $0x268] sm:$0xff] }
 0x3d0   :  { %v3960_v1 = vld [vmem:[#allocation8 + $0x360] sm:$0xff] }
 0x3d1   :  { %6806 = vmatpush3.bf16.msra.mxu0 %v6805_v32  ;;  %v3965_v32 = vld [vmem:[#allocation8 + $0x388] sm:$0xff] }
 0x3d2   :  { %6838 = vmatpush3.bf16.msra.mxu1 %v6837_v34  ;;  %6808 = vmatprep.subr.bf16.mxu0 %v6807_v35  ;;  %v1821_v34 = vrot.slane %v7488_v16, %v1820_v13  ;;  %v6821_v35 = vpack.c.bf16 %v3867_v21, %v3866_v20  ;;  %v6887_v48 = vpack.c.bf16 %v3965_v32, %v3964_v30  ;;  %v3953_v13 = vld [vmem:[#allocation8 + $0x328] sm:$0xff]  ;;  %v3972_v32 = vld [vmem:[#allocation8 + $0x3c0] sm:$0xff] }
 0x3d3   :  { %6840 = vmatprep.subr.bf16.mxu1 %v6839_v41  ;;  %v3916_v41 = vld [vmem:[#allocation8 + $0x200] sm:$0xff]  ;;  %v6865_v20 = vpack.c.bf16 %v3921_v10, %v3920_v8  ;;  %v6897_v21 = vpack.c.bf16 %v3953_v13, %v3952_v11  ;;  %v3941_v30 = vld [vmem:[#allocation8 + $0x2c8] sm:$0xff]  ;;  %v3978_v8 = vld [vmem:[#allocation8 + $0x3f0] sm:$0xff] }
 0x3d4   :  { %v7038_v53 = vadd.f32 %v7466_v47, %v1821_v34  ;;  %v6857_v31 = vpack.c.bf16 %v3917_v43, %v3916_v41  ;;  %v6891_v47 = vpack.c.bf16 %v3967_v55, %v3966_v54  ;;  %v3973_v34 = vld [vmem:[#allocation8 + $0x3c8] sm:$0xff]  ;;  %v3956_v43 = vld [vmem:[#allocation8 + $0x340] sm:$0xff]  ;;  %v3926_v54 = vld [vmem:[#allocation8 + $0x250] sm:$0xff] }
 0x3d5   :  { %6810 = vmatpush3.bf16.msra.mxu0 %v6809_v51  ;;  %v7036_v51 = vadd.f32 %v7462_v42, %v1813_v29  ;;  %v3936_v42 = vld [vmem:[#allocation8 + $0x2a0] sm:$0xff]  ;;  %v3925_v41 = vld [vmem:[#allocation8 + $0x248] sm:$0xff]  ;;  %v6903_v44 = vpack.c.bf16 %v3973_v34, %v3972_v32  ;;  %v3927_v55 = vld [vmem:[#allocation8 + $0x258] sm:$0xff] }
 0x3d6   :  { %6842 = vmatpush3.bf16.msra.mxu1 %v6841_v52  ;;  %6812 = vmatprep.subr.bf16.mxu0 %v6811_v22  ;;  %v3934_v52 = vld [vmem:[#allocation8 + $0x290] sm:$0xff]  ;;  %v3935_v22 = vld [vmem:[#allocation8 + $0x298] sm:$0xff]  ;;  %v3846_v2 = vmax.f32 %v7038_v53, 0.0  ;;  %v3940_v29 = vld [vmem:[#allocation8 + $0x2c0] sm:$0xff] }
 0x3d7   :  { %6844 = vmatprep.subr.bf16.mxu1 %v6843_v56  ;;  %v3839_v56 = vmax.f32 %v7031_v38, 0.0  ;;  %v6859_v61 = vpack.c.bf16 %v3935_v22, %v3934_v52  ;;  %v6901_v38 = vpack.c.bf16 %v3955_v28, %v3954_v26  ;;  %v3975_v52 = vld [vmem:[#allocation8 + $0x3d8] sm:$0xff]  ;;  %v4029_v26 = vld [vmem:[#allocation8 + $0x588] sm:$0xff]  ;;  %v4012_v34 = vld [vmem:[#allocation8 + $0x500] sm:$0xff] }
 0x3d8   :  { %v3979_v10 = vld [vmem:[#allocation8 + $0x3f8] sm:$0xff]  ;;  %v3981_v32 = vld [vmem:[#allocation8 + $0x408] sm:$0xff] }
 0x3d9   :  { %6814 = vmatpush3.bf16.msra.mxu0 %v6813_v62  ;;  %v3951_v62 = vld [vmem:[#allocation8 + $0x318] sm:$0xff] }
 0x3da   :  { %6846 = vmatpush3.bf16.msra.mxu1 %v6845_v63  ;;  %6816 = vmatprep.subr.bf16.mxu0 %v6815_v0  ;;  %v3937_v63 = vld [vmem:[#allocation8 + $0x2a8] sm:$0xff]  ;;  %v3844_v0 = vmax.f32 %v7036_v51, 0.0  ;;  %v6893_v6 = vpack.c.bf16 %v3951_v62, %v3950_v59  ;;  %v3974_v51 = vld [vmem:[#allocation8 + $0x3d0] sm:$0xff]  ;;  %v6877_v62 = vpack.c.bf16 %v3927_v55, %v3926_v54  ;;  %v4000_v54 = vld [vmem:[#allocation8 + $0x4a0] sm:$0xff] }
 0x3db   :  { %6848 = vmatprep.subr.bf16.mxu1 %v6847_v5  ;;  %v6861_v5 = vpack.c.bf16 %v3919_v36, %v3918_v58  ;;  %v6863_v7 = vpack.c.bf16 %v3937_v63, %v3936_v42  ;;  %v3959_v58 = vld [vmem:[#allocation8 + $0x358] sm:$0xff]  ;;  %v3944_v36 = vld [vmem:[#allocation8 + $0x2e0] sm:$0xff]  ;;  %v3945_v59 = vld [vmem:[#allocation8 + $0x2e8] sm:$0xff]  ;;  %v1808_v42 = vsub.s32 4, %v7454_v4 }
 0x3dc   :  { %v4001_v55 = vld [vmem:[#allocation8 + $0x4a8] sm:$0xff] }
 0x3dd   :  { %6818 = vmatpush3.bf16.msra.mxu0 %v6817_v15  ;;  %v3938_v15 = vld [vmem:[#allocation8 + $0x2b0] sm:$0xff] }
 0x3de   :  { %6850 = vmatpush3.bf16.msra.mxu1 %v6849_v9  ;;  %6820 = vmatprep.subr.bf16.mxu0 %v6819_v19  ;;  %v3970_v9 = vld [vmem:[#allocation8 + $0x3b0] sm:$0xff]  ;;  %v3971_v19 = vld [vmem:[#allocation8 + $0x3b8] sm:$0xff]  ;;  %v6867_v23 = vpack.c.bf16 %v3939_v18, %v3938_v15 }
 0x3df   :  { %6852 = vmatprep.subr.bf16.mxu1 %v6851_v25  ;;  %v3923_v25 = vld [vmem:[#allocation8 + $0x238] sm:$0xff]  ;;  %v6899_v27 = vpack.c.bf16 %v3971_v19, %v3970_v9  ;;  %v3930_v18 = vld [vmem:[#allocation8 + $0x270] sm:$0xff] }
 0x3e0   :  { %v3931_v9 = vld [vmem:[#allocation8 + $0x278] sm:$0xff]  ;;  %v3962_v19 = vld [vmem:[#allocation8 + $0x370] sm:$0xff] }
 0x3e1   :  { %6822 = vmatpush3.bf16.msra.mxu0 %v6821_v35  ;;  %v6869_v35 = vpack.c.bf16 %v3923_v25, %v3922_v24  ;;  %v3997_v24 = vld [vmem:[#allocation8 + $0x488] sm:$0xff]  ;;  %v4028_v25 = vld [vmem:[#allocation8 + $0x580] sm:$0xff] }
 0x3e2   :  { %6854 = vmatpush3.bf16.msra.mxu1 %v6853_v46  ;;  %6856 = vmatprep.subr.bf16.mxu0 %v6855_v39  ;;  %v6871_v46 = vpack.c.bf16 %v3941_v30, %v3940_v29  ;;  %v3924_v39 = vld [vmem:[#allocation8 + $0x240] sm:$0xff] }
 0x3e3   :  { %6888 = vmatprep.subr.bf16.mxu1 %v6887_v48  ;;  %v3957_v48 = vld [vmem:[#allocation8 + $0x348] sm:$0xff]  ;;  %v6873_v22 = vpack.c.bf16 %v3925_v41, %v3924_v39  ;;  %v3980_v30 = vld [vmem:[#allocation8 + $0x400] sm:$0xff]  ;;  %v3999_v39 = vld [vmem:[#allocation8 + $0x498] sm:$0xff] }
 0x3e4   :  { %4132 = vmatmul.mubr.f32.vlgmr.msra.gmra.mrb[10].mxu0 %v3839_v56  ;;  %v6905_v53 = vpack.c.bf16 %v3957_v48, %v3956_v43  ;;  %v3958_v56 = vld [vmem:[#allocation8 + $0x350] sm:$0xff]  ;;  %v4031_v43 = vld [vmem:[#allocation8 + $0x598] sm:$0xff] }
 0x3e5   :  { %4202 = vmatmul.mubr.f32.vlgmr.msra.gmra.mrb[10].mxu1 %v3841_v60  ;;  %6858 = vmatpush3.bf16.msra.mxu0 %v6857_v31  ;;  %v6875_v31 = vpack.c.bf16 %v3943_v50, %v3942_v49  ;;  %v3976_v60 = vld [vmem:[#allocation8 + $0x3e0] sm:$0xff]  ;;  %v6909_v63 = vpack.c.bf16 %v3959_v58, %v3958_v56  ;;  %v4030_v41 = vld [vmem:[#allocation8 + $0x590] sm:$0xff] }
 0x3e6   :  { %4271 = vmatprep.mubr.f32.mxu0 %v3844_v0  ;;  %6890 = vmatpush3.bf16.msra.mxu1 %v6889_v57  ;;  %v6907_v57 = vpack.c.bf16 %v3975_v52, %v3974_v51  ;;  %v6879_v0 = vpack.c.bf16 %v3945_v59, %v3944_v36  ;;  %v3982_v50 = vld [vmem:[#allocation8 + $0x410] sm:$0xff]  ;;  %v3983_v51 = vld [vmem:[#allocation8 + $0x418] sm:$0xff]  ;;  %v4032_v56 = vld [vmem:[#allocation8 + $0x5a0] sm:$0xff]  ;;  %v6927_v59 = vpack.c.bf16 %v4001_v55, %v4000_v54 }
 0x3e7   :  { %4341 = vmatprep.mubr.f32.mxu1 %v3846_v2  ;;  %6860 = vmatprep.subr.bf16.mxu0 %v6859_v61  ;;  %v3977_v61 = vld [vmem:[#allocation8 + $0x3e8] sm:$0xff]  ;;  %v4014_v52 = vld [vmem:[#allocation8 + $0x510] sm:$0xff]  ;;  %v6925_v58 = vpack.c.bf16 %v3983_v51, %v3982_v50 }
 0x3e8   :  { %6892 = vmatprep.subr.bf16.mxu1 %v6891_v47  ;;  %v3928_v47 = vld [vmem:[#allocation8 + $0x260] sm:$0xff]  ;;  %v6911_v2 = vpack.c.bf16 %v3977_v61, %v3976_v60  ;;  %v3985_v61 = vld [vmem:[#allocation8 + $0x428] sm:$0xff] }
 0x3e9   :  { %6862 = vmatpush3.bf16.msra.mxu0 %v6861_v5  ;;  %v3961_v5 = vld [vmem:[#allocation8 + $0x368] sm:$0xff]  ;;  %v6881_v11 = vpack.c.bf16 %v3929_v40, %v3928_v47  ;;  %v3984_v60 = vld [vmem:[#allocation8 + $0x420] sm:$0xff]  ;;  %v4003_v47 = vld [vmem:[#allocation8 + $0x4b8] sm:$0xff] }
 0x3ea   :  { %6894 = vmatpush3.bf16.msra.mxu1 %v6893_v6  ;;  %6864 = vmatprep.subr.bf16.mxu0 %v6863_v7  ;;  %v3946_v6 = vld [vmem:[#allocation8 + $0x2f0] sm:$0xff]  ;;  %v3947_v7 = vld [vmem:[#allocation8 + $0x2f8] sm:$0xff]  ;;  %v6913_v13 = vpack.c.bf16 %v3961_v5, %v3960_v1  ;;  %v4025_v55 = vld [vmem:[#allocation8 + $0x568] sm:$0xff] }
 0x3eb   :  { %6896 = vmatprep.subr.bf16.mxu1 %v6895_v12  ;;  %v1809_v12 = vrot.slane %v7488_v16, %v1808_v42  ;;  %v6883_v15 = vpack.c.bf16 %v3947_v7, %v3946_v6  ;;  %v4034_v40 = vld [vmem:[#allocation8 + $0x5b0] sm:$0xff]  ;;  %v4035_v1 = vld [vmem:[#allocation8 + $0x5b8] sm:$0xff] }
 0x3ec   :  { %v3986_v7 = vld [vmem:[#allocation8 + $0x430] sm:$0xff] }
 0x3ed   :  { %6866 = vmatpush3.bf16.msra.mxu0 %v6865_v20  ;;  %v6915_v20 = vpack.c.bf16 %v3979_v10, %v3978_v8  ;;  %v7035_v28 = vadd.f32 %v7460_v33, %v1809_v12  ;;  %v3987_v8 = vld [vmem:[#allocation8 + $0x438] sm:$0xff]  ;;  %v4018_v10 = vld [vmem:[#allocation8 + $0x530] sm:$0xff] }
 0x3ee   :  { %6898 = vmatpush3.bf16.msra.mxu1 %v6897_v21  ;;  %6868 = vmatprep.subr.bf16.mxu0 %v6867_v23  ;;  %v3963_v21 = vld [vmem:[#allocation8 + $0x378] sm:$0xff]  ;;  %v3996_v23 = vld [vmem:[#allocation8 + $0x480] sm:$0xff] }
 0x3ef   :  { %6900 = vmatprep.subr.bf16.mxu1 %v6899_v27  ;;  %v6885_v27 = vpack.c.bf16 %v3931_v9, %v3930_v18  ;;  %v6917_v16 = vpack.c.bf16 %v3963_v21, %v3962_v19  ;;  %v6919_v29 = vpack.c.bf16 %v3997_v24, %v3996_v23  ;;  %v3843_v48 = vmax.f32 %v7035_v28, 0.0  ;;  %v4019_v12 = vld [vmem:[#allocation8 + $0x538] sm:$0xff]  ;;  %v4036_v18 = vld [vmem:[#allocation8 + $0x5c0] sm:$0xff]  ;;  %v4037_v9 = vld [vmem:[#allocation8 + $0x5c8] sm:$0xff] }
 0x3f0   :  { %v6933_v19 = vpack.c.bf16 %v3987_v8, %v3986_v7  ;;  %v3988_v23 = vld [vmem:[#allocation8 + $0x440] sm:$0xff]  ;;  %v3989_v24 = vld [vmem:[#allocation8 + $0x448] sm:$0xff]  ;;  %v4006_v28 = vld [vmem:[#allocation8 + $0x4d0] sm:$0xff] }
 0x3f1   :  { %6870 = vmatpush3.bf16.msra.mxu0 %v6869_v35  ;;  %v6951_v35 = vpack.c.bf16 %v4029_v26, %v4028_v25  ;;  %v4020_v25 = vld [vmem:[#allocation8 + $0x540] sm:$0xff]  ;;  %v6967_v26 = vpack.c.bf16 %v4037_v9, %v4036_v18  ;;  %v4045_v9 = vld [vmem:[#allocation8 + $0x608] sm:$0xff] }
 0x3f2   :  { %6902 = vmatpush3.bf16.msra.mxu1 %v6901_v38  ;;  %6872 = vmatprep.subr.bf16.mxu0 %v6871_v46  ;;  %v4013_v38 = vld [vmem:[#allocation8 + $0x508] sm:$0xff]  ;;  %v3998_v46 = vld [vmem:[#allocation8 + $0x490] sm:$0xff]  ;;  %v4044_v18 = vld [vmem:[#allocation8 + $0x600] sm:$0xff] }
 0x3f3   :  { %6904 = vmatprep.subr.bf16.mxu1 %v6903_v44  ;;  %v6921_v44 = vpack.c.bf16 %v3981_v32, %v3980_v30  ;;  %v6953_v33 = vpack.c.bf16 %v4013_v38, %v4012_v34  ;;  %v6923_v49 = vpack.c.bf16 %v3999_v39, %v3998_v46  ;;  %v4039_v30 = vld [vmem:[#allocation8 + $0x5d8] sm:$0xff]  ;;  %v6937_v32 = vpack.c.bf16 %v3989_v24, %v3988_v23  ;;  %v3990_v38 = vld [vmem:[#allocation8 + $0x450] sm:$0xff] }
 0x3f4   :  { %v3991_v46 = vld [vmem:[#allocation8 + $0x458] sm:$0xff]  ;;  %v4022_v39 = vld [vmem:[#allocation8 + $0x550] sm:$0xff]  ;;  %v6984_v24 = vpack.c.bf16 %v4045_v9, %v4044_v18  ;;  %v4562_v18 = vld [vmem:[#allocation11 + $0x20] sm:$0xff] }
 0x3f5   :  { %6874 = vmatpush3.bf16.msra.mxu0 %v6873_v22  ;;  %v3845_v22 = vmax.f32 %v7464_v45, 0.0  ;;  %v6941_v50 = vpack.c.bf16 %v3991_v46, %v3990_v38  ;;  %v4052_v38 = vld [vmem:[#allocation8 + $0x640] sm:$0xff]  ;;  %v4053_v46 = vld [vmem:[#allocation8 + $0x648] sm:$0xff] }
 0x3f6   :  { %6906 = vmatpush3.bf16.msra.mxu1 %v6905_v53  ;;  %6876 = vmatprep.subr.bf16.mxu0 %v6875_v31  ;;  %v6955_v53 = vpack.c.bf16 %v4031_v43, %v4030_v41  ;;  %v4015_v31 = vld [vmem:[#allocation8 + $0x518] sm:$0xff]  ;;  %v4563_v9 = vld [vmem:[#allocation11 + $0x28] sm:$0xff] }
 0x3f7   :  { %6908 = vmatprep.subr.bf16.mxu1 %v6907_v57  ;;  %v4033_v57 = vld [vmem:[#allocation8 + $0x5a8] sm:$0xff]  ;;  %v6957_v36 = vpack.c.bf16 %v4015_v31, %v4014_v52  ;;  %v4023_v43 = vld [vmem:[#allocation8 + $0x558] sm:$0xff]  ;;  %v4024_v31 = vld [vmem:[#allocation8 + $0x560] sm:$0xff] }
 0x3f8   :  { %v6959_v45 = vpack.c.bf16 %v4033_v57, %v4032_v56  ;;  %v6973_v51 = vpack.c.bf16 %v4023_v43, %v4022_v39  ;;  %v4010_v56 = vld [vmem:[#allocation8 + $0x4f0] sm:$0xff]  ;;  %v4011_v57 = vld [vmem:[#allocation8 + $0x4f8] sm:$0xff]  ;;  %v6996_v39 = vpack.c.bf16 %v4053_v46, %v4052_v38 }
 0x3f9   :  { %6878 = vmatpush3.bf16.msra.mxu0 %v6877_v62  ;;  %v4016_v62 = vld [vmem:[#allocation8 + $0x520] sm:$0xff]  ;;  %v4055_v43 = vld [vmem:[#allocation8 + $0x658] sm:$0xff] }
 0x3fa   :  { %6910 = vmatpush3.bf16.msra.mxu1 %v6909_v63  ;;  %6880 = vmatprep.subr.bf16.mxu0 %v6879_v0  ;;  %v4017_v63 = vld [vmem:[#allocation8 + $0x528] sm:$0xff]  ;;  %v4002_v0 = vld [vmem:[#allocation8 + $0x4b0] sm:$0xff] }
 0x3fb   :  { %6912 = vmatprep.subr.bf16.mxu1 %v6911_v2  ;;  %v6929_v2 = vpack.c.bf16 %v3985_v61, %v3984_v60  ;;  %v6961_v5 = vpack.c.bf16 %v4017_v63, %v4016_v62  ;;  %v6931_v6 = vpack.c.bf16 %v4003_v47, %v4002_v0  ;;  %v6977_v60 = vpack.c.bf16 %v4025_v55, %v4024_v31  ;;  %v3994_v62 = vld [vmem:[#allocation8 + $0x470] sm:$0xff]  ;;  %v4027_v47 = vld [vmem:[#allocation8 + $0x578] sm:$0xff] }
 0x3fc   :  { %v6947_v61 = vpack.c.bf16 %v4011_v57, %v4010_v56  ;;  %v4026_v0 = vld [vmem:[#allocation8 + $0x570] sm:$0xff] }
 0x3fd   :  { %6882 = vmatpush3.bf16.msra.mxu0 %v6881_v11  ;;  %v6963_v11 = vpack.c.bf16 %v4035_v1, %v4034_v40  ;;  %v6981_v1 = vpack.c.bf16 %v4027_v47, %v4026_v0  ;;  %v4558_v47 = vld [vmem:[#allocation11] sm:$0xff] }
 0x3fe   :  { %6914 = vmatpush3.bf16.msra.mxu1 %v6913_v13  ;;  %6884 = vmatprep.subr.bf16.mxu0 %v6883_v15  ;;  %v4004_v13 = vld [vmem:[#allocation8 + $0x4c0] sm:$0xff]  ;;  %v4005_v15 = vld [vmem:[#allocation8 + $0x4c8] sm:$0xff] }
 0x3ff   :  { %6916 = vmatprep.subr.bf16.mxu1 %v6915_v20  ;;  %v6965_v20 = vpack.c.bf16 %v4019_v12, %v4018_v10  ;;  %v6935_v21 = vpack.c.bf16 %v4005_v15, %v4004_v13 }
 0x401   :  { %6886 = vmatpush3.bf16.msra.mxu0 %v6885_v27  ;;  %v4021_v27 = vld [vmem:[#allocation8 + $0x548] sm:$0xff] }
 0x402   :  { %6918 = vmatpush3.bf16.msra.mxu1 %v6917_v16  ;;  %6920 = vmatprep.subr.bf16.mxu0 %v6919_v29  ;;  %v4007_v16 = vld [vmem:[#allocation8 + $0x4d8] sm:$0xff]  ;;  %v4038_v29 = vld [vmem:[#allocation8 + $0x5d0] sm:$0xff]  ;;  %v6969_v34 = vpack.c.bf16 %v4021_v27, %v4020_v25 }
 0x403   :  { %6952 = vmatprep.subr.bf16.mxu1 %v6951_v35  ;;  %v6939_v35 = vpack.c.bf16 %v4007_v16, %v4006_v28  ;;  %v6971_v41 = vpack.c.bf16 %v4039_v30, %v4038_v29  ;;  %v4047_v27 = vld [vmem:[#allocation8 + $0x618] sm:$0xff]  ;;  %v4048_v28 = vld [vmem:[#allocation8 + $0x620] sm:$0xff]  ;;  %v4049_v16 = vld [vmem:[#allocation8 + $0x628] sm:$0xff]  ;;  %v7316_v29 = vmov 0.0  }
 0x404   :  { %4272 = vmatmul.mubr.f32.vlgmr.msra.gmra.mrb[12].mxu0 %v3843_v48  ;;  %v4009_v48 = vld [vmem:[#allocation8 + $0x4e8] sm:$0xff]  ;;  %v6990_v30 = vpack.c.bf16 %v4049_v16, %v4048_v28 }
 0x405   :  { %4342 = vmatmul.mubr.f32.vlgmr.msra.gmra.mrb[12].mxu1 %v3845_v22  ;;  %6922 = vmatpush3.bf16.msra.mxu0 %v6921_v44  ;;  %v4008_v44 = vld [vmem:[#allocation8 + $0x4e0] sm:$0xff] }
 0x406   :  { %6954 = vmatpush3.bf16.msra.mxu1 %v6953_v33  ;;  %6924 = vmatprep.subr.bf16.mxu0 %v6923_v49  ;;  %v4040_v33 = vld [vmem:[#allocation8 + $0x5e0] sm:$0xff]  ;;  %v4041_v49 = vld [vmem:[#allocation8 + $0x5e8] sm:$0xff]  ;;  %v6943_v52 = vpack.c.bf16 %v4009_v48, %v4008_v44 }
 0x407   :  { %6956 = vmatprep.subr.bf16.mxu1 %v6955_v53  ;;  %v3992_v22 = vld [vmem:[#allocation8 + $0x460] sm:$0xff]  ;;  %v3993_v53 = vld [vmem:[#allocation8 + $0x468] sm:$0xff]  ;;  %v6975_v54 = vpack.c.bf16 %v4041_v49, %v4040_v33 }
 0x408   :  { %v4056_v48 = vld [vmem:[#allocation8 + $0x660] sm:$0xff]  ;;  %v4057_v33 = vld [vmem:[#allocation8 + $0x668] sm:$0xff] }
 0x409   :  { %6926 = vmatpush3.bf16.msra.mxu0 %v6925_v58  ;;  %v4042_v58 = vld [vmem:[#allocation8 + $0x5f0] sm:$0xff]  ;;  %v7002_v49 = vpack.c.bf16 %v4057_v33, %v4056_v48  ;;  %v4570_v16 = vld [vmem:[#allocation11 + $0x60] sm:$0xff]  ;;  %v4573_v48 = vld [vmem:[#allocation11 + $0x78] sm:$0xff] }
 0x40a   :  { %6958 = vmatpush3.bf16.msra.mxu1 %v6957_v36  ;;  %6928 = vmatprep.subr.bf16.mxu0 %v6927_v59  ;;  %v4043_v36 = vld [vmem:[#allocation8 + $0x5f8] sm:$0xff]  ;;  %v6945_v59 = vpack.c.bf16 %v3993_v53, %v3992_v22 }
 0x40b   :  { %6960 = vmatprep.subr.bf16.mxu1 %v6959_v45  ;;  %v3995_v45 = vld [vmem:[#allocation8 + $0x478] sm:$0xff]  ;;  %v6979_v63 = vpack.c.bf16 %v4043_v36, %v4042_v58 }
 0x40c   :  { %v6949_v40 = vpack.c.bf16 %v3995_v45, %v3994_v62 }
 0x40d   :  { %6930 = vmatpush3.bf16.msra.mxu0 %v6929_v2  ;;  %v7314_v2 = vmov 0.0|0.0  }
 0x40e   :  { %6962 = vmatpush3.bf16.msra.mxu1 %v6961_v5  ;;  %6932 = vmatprep.subr.bf16.mxu0 %v6931_v6  ;;  %v1787_v5 = vld [vmem:[#allocation7 + $0x8] sm:$0x1f] }
 0x40f   :  { %6964 = vmatprep.subr.bf16.mxu1 %v6963_v11  ;;  %v1825_v6 = vrot.slane %v1787_v5, %v1792_v37  ;;  %v1833_v7 = vrot.slane %v1787_v5, %v1800_v3  ;;  %v1829_v8 = vrot.slane %v1787_v5, %v1796_v14  ;;  %v1837_v10 = vrot.slane %v1787_v5, %v1804_v17 }
 0x410   :  { %v1841_v22 = vrot.slane %v1787_v5, %v1808_v42 }
 0x411   :  { %6934 = vmatpush3.bf16.msra.mxu0 %v6933_v19 }
 0x412   :  { %6966 = vmatpush3.bf16.msra.mxu1 %v6965_v20  ;;  %6936 = vmatprep.subr.bf16.mxu0 %v6935_v21 }
 0x413   :  { %6968 = vmatprep.subr.bf16.mxu1 %v6967_v26  ;;  %v4046_v26 = vld [vmem:[#allocation8 + $0x610] sm:$0xff] }
 0x414   :  { %v6987_v17 = vpack.c.bf16 %v4047_v27, %v4046_v26  ;;  %v4567_v26 = vld [vmem:[#allocation11 + $0x48] sm:$0xff] }
 0x415   :  { %6938 = vmatpush3.bf16.msra.mxu0 %v6937_v32  ;;  %v4050_v32 = vld [vmem:[#allocation8 + $0x630] sm:$0xff] }
 0x416   :  { %6970 = vmatpush3.bf16.msra.mxu1 %v6969_v34  ;;  %6940 = vmatprep.subr.bf16.mxu0 %v6939_v35  ;;  %v4051_v34 = vld [vmem:[#allocation8 + $0x638] sm:$0xff] }
 0x417   :  { %6972 = vmatprep.subr.bf16.mxu1 %v6971_v41  ;;  %v6993_v35 = vpack.c.bf16 %v4051_v34, %v4050_v32  ;;  %v4054_v41 = vld [vmem:[#allocation8 + $0x650] sm:$0xff] }
 0x418   :  { %v6999_v44 = vpack.c.bf16 %v4055_v43, %v4054_v41 }
 0x419   :  { %6942 = vmatpush3.bf16.msra.mxu0 %v6941_v50  ;;  %v4058_v50 = vld [vmem:[#allocation8 + $0x670] sm:$0xff] }
 0x41a   :  { %6974 = vmatpush3.bf16.msra.mxu1 %v6973_v51  ;;  %6944 = vmatprep.subr.bf16.mxu0 %v6943_v52  ;;  %v4059_v51 = vld [vmem:[#allocation8 + $0x678] sm:$0xff] }
 0x41b   :  { %6976 = vmatprep.subr.bf16.mxu1 %v6975_v54  ;;  %v7005_v53 = vpack.c.bf16 %v4059_v51, %v4058_v50 }
 0x41d   :  { %6946 = vmatpush3.bf16.msra.mxu0 %v6945_v59 }
 0x41e   :  { %6978 = vmatpush3.bf16.msra.mxu1 %v6977_v60  ;;  %6948 = vmatprep.subr.bf16.mxu0 %v6947_v61 }
 0x41f   :  { %6980 = vmatprep.subr.bf16.mxu1 %v6979_v63 }
 0x421   :  { %6950 = vmatpush3.bf16.msra.mxu0 %v6949_v40  ;;  %v4559_v40 = vld [vmem:[#allocation11 + $0x8] sm:$0xff] }
 0x422   :  { %6982 = vmatpush3.bf16.msra.mxu1 %v6981_v1  ;;  %6983 = vmatprep.subr.bf16.mxu0 %v7314_v2  ;;  %v4560_v1 = vld [vmem:[#allocation11 + $0x10] sm:$0xff]  ;;  %v7008_v5 = vpack.c.bf16 %v4559_v40, %v4558_v47 }
 0x423   :  { %7007 = vmatprep.subr.bf16.mxu1 %v7314_v2 }
 0x457   :  { %v3270_v11 = vpop.f32.mrb[4].mxu0  ;;  %v3554_v13 = vpop.f32.mrb[4].mxu1 }
 0x458   :  { %v7039_v12 = vadd.f32 %v3270_v11, %v1825_v6  ;;  %v3272_v15 = vpop.f32.mrb[5].mxu0  ;;  %v7041_v19 = vadd.f32 %v3554_v13, %v1833_v7  ;;  %v3556_v21 = vpop.f32.mrb[5].mxu1  ;;  %v4561_v6 = vld [vmem:[#allocation11 + $0x18] sm:$0xff] }
 0x459   :  { %v7040_v20 = vadd.f32 %v3272_v15, %v1829_v8  ;;  %v7042_v23 = vadd.f32 %v3556_v21, %v1837_v10  ;;  %v4671_v10 = vld [vmem:[#allocation10] ss:$0 sm:$0xff]  ;;  %v7014_v21 = vpack.c.bf16 %v4563_v9, %v4562_v18 }
 0x45a   :  { %v3847_v25 = vmax.f32 %v7039_v12, 0.0  ;;  %v3849_v14 = vmax.f32 %v7041_v19, 0.0  ;;  %v7011_v12 = vpack.c.bf16 %v4561_v6, %v4560_v1 }
 0x45b   :  { %v3848_v37 = vmax.f32 %v7040_v20, 0.0  ;;  %v3850_v3 = vmax.f32 %v7042_v23, 0.0 }
 0x45d   :  { %4411 = vmatprep.mubr.f32.mxu0 %v3848_v37  ;;  %4481 = vmatprep.mubr.f32.mxu1 %v3850_v3  ;;  %v4564_v37 = vld [vmem:[#allocation11 + $0x30] sm:$0xff]  ;;  %v4566_v3 = vld [vmem:[#allocation11 + $0x40] sm:$0xff] }
 0x45e   :  { %4412 = vmatmul.mubr.f32.vlgmr.msra.gmra.mrb[14].mxu0 %v3847_v25  ;;  %4482 = vmatmul.mubr.f32.vlgmr.msra.gmra.mrb[14].mxu1 %v3849_v14  ;;  %v7020_v27 = vpack.c.bf16 %v4567_v26, %v4566_v3  ;;  %v4568_v14 = vld [vmem:[#allocation11 + $0x50] sm:$0xff] }
 0x45f   :  { %6985 = vmatpush3.bf16.msra.mxu0 %v6984_v24  ;;  %5089 = vmatprep.mubr.msk.f32.mxu0 %vm7315_vm0, %v7316_v29  ;;  %v4565_v24 = vld [vmem:[#allocation11 + $0x38] sm:$0xff] }
 0x460   :  { %6986 = vmatprep.subr.bf16.mxu0 %v7314_v2  ;;  %5124 = vmatprep.mubr.msk.f32.mxu1 %vm7315_vm0, %v7316_v29  ;;  %v7017_v25 = vpack.c.bf16 %v4565_v24, %v4564_v37  ;;  %v4571_v29 = vld [vmem:[#allocation11 + $0x68] sm:$0xff] }
 0x461   :  { %7009 = vmatpush3.bf16.msra.mxu1 %v7008_v5 }
 0x462   :  { %7010 = vmatprep.subr.bf16.mxu1 %v7314_v2 }
 0x463   :  { %6988 = vmatpush3.bf16.msra.mxu0 %v6987_v17  ;;  %v4569_v17 = vld [vmem:[#allocation11 + $0x58] sm:$0xff] }
 0x464   :  { %6989 = vmatprep.subr.bf16.mxu0 %v7314_v2  ;;  %v7023_v28 = vpack.c.bf16 %v4569_v17, %v4568_v14 }
 0x465   :  { %7012 = vmatpush3.bf16.msra.mxu1 %v7011_v12 }
 0x466   :  { %7013 = vmatprep.subr.bf16.mxu1 %v7314_v2 }
 0x467   :  { %6991 = vmatpush3.bf16.msra.mxu0 %v6990_v30  ;;  %v7026_v30 = vpack.c.bf16 %v4571_v29, %v4570_v16 }
 0x468   :  { %6992 = vmatprep.subr.bf16.mxu0 %v7314_v2 }
 0x469   :  { %7015 = vmatpush3.bf16.msra.mxu1 %v7014_v21 }
 0x46a   :  { %7016 = vmatprep.subr.bf16.mxu1 %v7314_v2 }
 0x46b   :  { %6994 = vmatpush3.bf16.msra.mxu0 %v6993_v35 }
 0x46c   :  { %6995 = vmatprep.subr.bf16.mxu0 %v7314_v2 }
 0x46d   :  { %7018 = vmatpush3.bf16.msra.mxu1 %v7017_v25 }
 0x46e   :  { %7019 = vmatprep.subr.bf16.mxu1 %v7314_v2 }
 0x46f   :  { %6997 = vmatpush3.bf16.msra.mxu0 %v6996_v39 }
 0x470   :  { %6998 = vmatprep.subr.bf16.mxu0 %v7314_v2 }
 0x471   :  { %7021 = vmatpush3.bf16.msra.mxu1 %v7020_v27 }
 0x472   :  { %7022 = vmatprep.subr.bf16.mxu1 %v7314_v2 }
 0x473   :  { %7000 = vmatpush3.bf16.msra.mxu0 %v6999_v44  ;;  %v4572_v44 = vld [vmem:[#allocation11 + $0x70] sm:$0xff] }
 0x474   :  { %7001 = vmatprep.subr.bf16.mxu0 %v7314_v2  ;;  %v7029_v33 = vpack.c.bf16 %v4573_v48, %v4572_v44 }
 0x475   :  { %7024 = vmatpush3.bf16.msra.mxu1 %v7023_v28 }
 0x476   :  { %7025 = vmatprep.subr.bf16.mxu1 %v7314_v2 }
 0x477   :  { %v4705_v52 = vpop.f32.mrb[6].mxu0  ;;  %7003 = vmatpush3.bf16.msra.mxu0 %v7002_v49  ;;  %v4740_v54 = vpop.f32.mrb[6].mxu1 }
 0x478   :  { %v4706_v31 = vpop.f32.mrb[7].mxu0  ;;  %7004 = vmatprep.subr.bf16.mxu0 %v7314_v2  ;;  %v4741_v56 = vpop.f32.mrb[7].mxu1 }
 0x479   :  { %v4707_v55 = vadd.f32 %v4706_v31, %v4705_v52  ;;  %v4742_v57 = vadd.f32 %v4741_v56, %v4740_v54  ;;  %7027 = vmatpush3.bf16.msra.mxu1 %v7026_v30 }
 0x47a   :  { %7028 = vmatprep.subr.bf16.mxu1 %v7314_v2 }
 0x47b   :  { %v3626_v58 = vadd.f32 %v4707_v55, %v1841_v22  ;;  %7006 = vmatpush3.bf16.msra.mxu0 %v7005_v53 }
 0x47d   :  { %v3696_v36 = vadd.f32 %v4742_v57, %v3626_v58  ;;  %7030 = vmatpush3.bf16.msra.mxu1 %v7029_v33  ;;  %v4672_v58 = vld [vmem:[#allocation13] ss:$0 sm:$0xff] }
 0x497   :  { %v4775_v59 = vpop.f32.mrb[8].mxu0  ;;  %v4810_v61 = vpop.f32.mrb[8].mxu1 }
 0x498   :  { %v4776_v60 = vpop.f32.mrb[9].mxu0  ;;  %v4811_v45 = vpop.f32.mrb[9].mxu1 }
 0x499   :  { %v4777_v62 = vadd.f32 %v4776_v60, %v4775_v59  ;;  %v4812_v63 = vadd.f32 %v4811_v45, %v4810_v61 }
 0x49b   :  { %v3766_v4 = vadd.f32 %v4777_v62, %v3696_v36 }
 0x49d   :  { %v3836_v42 = vadd.f32 %v4812_v63, %v3766_v4 }
 0x49f   :  { %v3851_v0 = vmax.f32 %v3836_v42, 0.0 }
 0x4a1   :  { %5090 = vmatmul.mubr.f32.vlgmr.msra.gmra.mrb[16].mxu0 %v3851_v0 }
 0x4b7   :  { %v4845_v7 = vpop.f32.mrb[10].mxu0 }
 0x4b8   :  { %v4880_v8 = vpop.f32.mrb[10].mxu1  ;;  %v4846_v11 = vpop.f32.mrb[11].mxu0 }
 0x4b9   :  { %v4847_v13 = vadd.f32 %v4846_v11, %v4845_v7  ;;  %v4881_v15 = vpop.f32.mrb[11].mxu1 }
 0x4ba   :  { %v4882_v19 = vadd.f32 %v4881_v15, %v4880_v8 }
 0x4bb   :  { %v4134_v20 = vadd.f32 %v4847_v13, %v4671_v10 }
 0x4bd   :  { %v4204_v23 = vadd.f32 %v4882_v19, %v4134_v20 }
 0x4d7   :  { %v4915_v32 = vpop.f32.mrb[12].mxu0 }
 0x4d8   :  { %v4950_v34 = vpop.f32.mrb[12].mxu1  ;;  %v4916_v35 = vpop.f32.mrb[13].mxu0 }
 0x4d9   :  { %v4917_v38 = vadd.f32 %v4916_v35, %v4915_v32  ;;  %v4951_v46 = vpop.f32.mrb[13].mxu1 }
 0x4da   :  { %v4952_v39 = vadd.f32 %v4951_v46, %v4950_v34 }
 0x4db   :  { %v4274_v41 = vadd.f32 %v4917_v38, %v4204_v23 }
 0x4dd   :  { %v4344_v43 = vadd.f32 %v4952_v39, %v4274_v41 }
 0x531   :  { %v4985_v49 = vpop.f32.mrb[14].mxu0  ;;  %v5020_v50 = vpop.f32.mrb[14].mxu1 }
 0x532   :  { %v4986_v51 = vpop.f32.mrb[15].mxu0  ;;  %v5021_v22 = vpop.f32.mrb[15].mxu1 }
 0x533   :  { %v4987_v52 = vadd.f32 %v4986_v51, %v4985_v49  ;;  %v5022_v53 = vadd.f32 %v5021_v22, %v5020_v50 }
 0x535   :  { %v4414_v31 = vadd.f32 %v4987_v52, %v4344_v43 }
 0x537   :  { %v4484_v2 = vadd.f32 %v5022_v53, %v4414_v31 }
 0x574   :  { %v4553_v54 = vpop.f32.mrb[16].mxu0 }
 0x575   :  { %v4554_v55 = vadd.f32 %v4553_v54, %v4484_v2  ;;  %v5091_v56 = vpop.f32.mrb[17].mxu0 }
 0x577   :  { %v4557_v57 = vmax.f32 %v4554_v55, 0.0 }
 0x579   :  { %5125 = vmatmul.mubr.f32.vlgmr.msra.gmra.mrb[16].mxu1 %v4557_v57 }
 0x64c   :  { %v4647_v36 = vpop.f32.mrb[16].mxu1 }
 0x64d   :  { %v4648_v59 = vadd.f32 %v4672_v58, %v4647_v36  ;;  %v5126_v60 = vpop.f32.mrb[17].mxu1 }
 0x64f   :  { %v4651_v61 = vmax.f32 %v4648_v59, 0.0 }
 0x651   :  { %4652 = vst [vmem:[#allocation14] sm:$0xff] %v4651_v61 }
 0x652   :  { %7282 = shalt.err (!%p7279_p4)
}
 0x653   :  { %s7283_s3 = scalar_lea.hbm %s7553_s7, 128 }
 0x654   :  { %p7284_p5 = scmp.ne.s32.totalorder %s7553_s7, %s7283_s3  ;;  %p7287_p6 = scmp.lt.u32.totalorder %s7283_s3, %s7553_s7 }
 0x656   :  { %p7289_p7 = pnand %p7287_p6, %p7284_p5 }
 0x658   :  { %7292 = shalt.err (!%p7289_p7)
}
 0x659   :  { %4662 = dma.vmem_to_hbm [thread:$0]  %s4660_s14, 128, %s7553_s7, [#allocation4]  }
 0x65a   :  { %7301 = dma.done.wait [#allocation4], 128  }
 0x65b   :  { %7302 = vsyncadd [#allocation4], 4294967168 }
 0x65c   :  { %4666 = vsyncpa [#allocation3], 1 }
 0x65d   :  { %4667 = vsyncpa [#allocation6], 1 }
 0x65e   :  { %4668 = vsyncpa [#allocation9], 1 }
 0x65f   :  { %4669 = vsyncpa [#allocation12], 1 }
 0x660   :  { %4670 = vsyncpa [#allocation4], 1 }

</bundles_post_ra>
